<compile_context>
chip_gen: v6e
topology: v6e:2x2x1
jax: 0.10.0
libtpu: 0.0.40
codegen_flags: <defaults>
</compile_context>

<pallas_src>
import jax
import jax.numpy as jnp
from jax.experimental import pallas as pl
from jax.experimental.pallas import tpu as pltpu


def _fused_core_kernel(x_ref, w1_ref, b1_ref, w2_ref, b2_ref, scale_ref, shift_ref,
                       o_ref, xpad_ref, pad1_ref):
    # x_ref    : (1, H, W, Cin)   bf16  (Cin = 1 if the 1->3 expand was folded, else 3)
    # w1_ref   : (9, Cin, C1)     bf16  (tap = dy*3 + dx)
    # b1_ref   : (1, C1)          f32
    # w2_ref   : (9, C1, C2)      bf16
    # b2_ref   : (1, C2)          f32
    # scale_ref/shift_ref : (1, C2) f32 folded eval-mode BatchNorm affine
    # o_ref    : (1, H*W, C2)     f32  (same HBM layout as NHWC)
    # xpad_ref : (H+2, W+2, Cin)  bf16 scratch (zero-padded conv1 input)
    # pad1_ref : (H+2, W+2, C1)   bf16 scratch (zero-padded conv1 activation)
    Hp2, Wp2, Cin = xpad_ref.shape
    H, W = Hp2 - 2, Wp2 - 2
    C1 = pad1_ref.shape[-1]
    C2 = o_ref.shape[-1]
    HW = H * W

    # ---- in-kernel zero padding of the raw input (no wrapper jnp.pad / extra HBM traffic) ----
    xpad_ref[...] = jnp.zeros_like(xpad_ref)
    xpad_ref[1:H + 1, 1:W + 1, :] = x_ref[0]

    # ---- conv1 + bias + ReLU: K is tiny (1 or 3), so use whole-plane VPU broadcast-MACs
    #      instead of degenerate matmuls. Bias hoisted: accumulator initialised with it. ----
    w1 = w1_ref[...].astype(jnp.float32)                               # (9, Cin, C1)
    acc1 = jnp.broadcast_to(b1_ref[0][None, None, :], (H, W, C1))      # f32
    for tap in range(9):
        dy, dx = tap // 3, tap % 3
        patch = xpad_ref[dy:dy + H, dx:dx + W, :].astype(jnp.float32)  # (H, W, Cin)
        for c in range(Cin):
            acc1 = acc1 + patch[:, :, c:c + 1] * w1[tap, c][None, None, :]
    a1 = jnp.maximum(acc1, 0.0).astype(pad1_ref.dtype)                 # (H, W, C1) bf16

    # ---- conv1 activation stays in VMEM; zero-pad it in-place for conv2 ----
    pad1_ref[...] = jnp.zeros_like(pad1_ref)
    pad1_ref[1:H + 1, 1:W + 1, :] = a1

    # ---- conv2: 9 whole-plane MXU matmuls (H*W, C1) x (C1, C2), bf16 operands,
    #      f32 accumulation; accumulator initialised with the hoisted bias. ----
    acc2 = jnp.broadcast_to(b2_ref[0][None, :], (HW, C2))              # f32
    for tap in range(9):
        dy, dx = tap // 3, tap % 3
        lhs = pad1_ref[dy:dy + H, dx:dx + W, :].reshape(HW, C1)        # bf16
        acc2 = acc2 + jnp.dot(lhs, w2_ref[tap],
                              preferred_element_type=jnp.float32)

    # ---- fused epilogue: eval-mode BatchNorm (folded scale/shift) + final ReLU ----
    y = acc2 * scale_ref[0] + shift_ref[0]
    # TODO(synk): C2=64 < 128 lanes => masked stores; a lane-dense (H, W*C2) store would need
    # an in-kernel (H*W, C2)->(H, W*C2) relayout that costs more than it saves at this size.
    o_ref[0] = jnp.maximum(y, 0.0).astype(o_ref.dtype)


def _fused_forward(x_nhwc, w1, b1, w2, b2, scale, shift):
    """x_nhwc: (N, H, W, Cin) ; w1: (3,3,Cin,C1) ; w2: (3,3,C1,C2). Returns (N, H, W, C2) f32."""
    N, H, W, Cin = x_nhwc.shape
    C1 = w1.shape[-1]
    C2 = w2.shape[-1]

    w1_t = w1.reshape(9, Cin, C1).astype(jnp.bfloat16)
    w2_t = w2.reshape(9, C1, C2).astype(jnp.bfloat16)
    b1_t = b1.reshape(1, C1).astype(jnp.float32)
    b2_t = b2.reshape(1, C2).astype(jnp.float32)
    scale_t = scale.reshape(1, C2).astype(jnp.float32)
    shift_t = shift.reshape(1, C2).astype(jnp.float32)

    # TODO(synk): for large (e.g. 224x224) images on v7x, add a row-tiled grid axis with a
    # 2-row halo so blocks fit 64 MiB VMEM; whole-image blocks are fine at this demo size.
    out = pl.pallas_call(
        _fused_core_kernel,
        out_shape=jax.ShapeDtypeStruct((N, H * W, C2), jnp.float32),
        grid_spec=pltpu.PrefetchScalarGridSpec(
            num_scalar_prefetch=0,
            grid=(N,),
            in_specs=[
                pl.BlockSpec((1, H, W, Cin), lambda n: (n, 0, 0, 0)),   # x
                pl.BlockSpec((9, Cin, C1), lambda n: (0, 0, 0)),        # w1
                pl.BlockSpec((1, C1), lambda n: (0, 0)),                # b1
                pl.BlockSpec((9, C1, C2), lambda n: (0, 0, 0)),         # w2
                pl.BlockSpec((1, C2), lambda n: (0, 0)),                # b2
                pl.BlockSpec((1, C2), lambda n: (0, 0)),                # bn scale
                pl.BlockSpec((1, C2), lambda n: (0, 0)),                # bn shift
            ],
            out_specs=pl.BlockSpec((1, H * W, C2), lambda n: (n, 0, 0)),
            scratch_shapes=[
                pltpu.VMEM((H + 2, W + 2, Cin), jnp.bfloat16),          # padded input
                pltpu.VMEM((H + 2, W + 2, C1), jnp.bfloat16),           # padded conv1 act
            ],
        ),
        compiler_params=pltpu.CompilerParams(dimension_semantics=("parallel",)),
    )(x_nhwc.astype(jnp.bfloat16), w1_t, b1_t, w2_t, b2_t, scale_t, shift_t)

    return out.reshape(N, H, W, C2)


class TransferLearningCorePallas:
    """TransferLearningCore with tr_model_fn='vgg16', model_layer=4,
    final_batchnorm=True, final_nonlinearity=True. Weights are deterministic
    synthetic values (no torchvision checkpoint load)."""

    def __init__(self, input_channels=1, key=jax.random.PRNGKey(0)):
        self.input_channels = input_channels
        C1, C2 = 64, 64  # VGG16 first two conv layers
        k1, k2, k3, k4, k5, k6 = jax.random.split(key, 6)
        self.w1 = 0.05 * jax.random.normal(k1, (3, 3, 3, C1), jnp.float32)
        self.b1 = 0.05 * jax.random.normal(k2, (C1,), jnp.float32)
        self.w2 = 0.05 * jax.random.normal(k3, (3, 3, C1, C2), jnp.float32)
        self.b2 = 0.05 * jax.random.normal(k4, (C2,), jnp.float32)
        # OutBatchNorm parameters / running stats.
        # TODO(synk): BatchNorm2d implemented with eval-mode running statistics; training-mode
        # batch-statistic reduction (momentum update) is not implemented.
        self.gamma = 1.0 + 0.1 * jax.random.normal(k5, (C2,), jnp.float32)
        self.beta = 0.1 * jax.random.normal(k6, (C2,), jnp.float32)
        self.running_mean = jnp.zeros((C2,), jnp.float32)
        self.running_var = jnp.ones((C2,), jnp.float32)
        self.eps = 1e-5

    def __call__(self, x_nchw):
        if self.input_channels == 1:
            # x.expand(-1, 3, -1, -1) makes the 3 input channels identical copies, so it is
            # exactly equivalent to summing conv1 weights over their input-channel axis and
            # feeding the raw 1-channel input (3x less input HBM traffic, no broadcast).
            w1_eff = jnp.sum(self.w1, axis=2, keepdims=True)       # (3, 3, 1, C1)
        else:
            w1_eff = self.w1                                       # (3, 3, 3, C1)

        x_nhwc = jnp.transpose(x_nchw, (0, 2, 3, 1))               # NCHW -> NHWC (glue)
        inv_std = 1.0 / jnp.sqrt(self.running_var + self.eps)
        scale = self.gamma * inv_std
        shift = self.beta - self.running_mean * scale
        y = _fused_forward(x_nhwc, w1_eff, self.b1, self.w2, self.b2, scale, shift)
        return jnp.transpose(y, (0, 3, 1, 2))                      # NHWC -> NCHW


if __name__ == "__main__":
    key = jax.random.PRNGKey(0)
    kx, kp = jax.random.split(key)
    x = jax.random.normal(kx, (2, 1, 16, 16), jnp.float32)          # NCHW grayscale input
    core = TransferLearningCorePallas(input_channels=1, key=kp)
    y = core(x)
    jax.block_until_ready(y)
    assert y.shape == (2, 64, 16, 16) and y.dtype == jnp.float32
    assert bool(jnp.all(y >= 0.0))   # final ReLU
    print("KERNEL_OK")
</pallas_src>

<mosaic_0001>
module attributes {stable_mosaic.version = 11 : i64} {
  func.func @_fused_core_kernel(%arg0: i32, %arg1: memref<1x16x16x1xbf16, #tpu.memory_space<vmem>>, %arg2: memref<9x1x64xbf16, #tpu.memory_space<vmem>>, %arg3: memref<1x64xf32, #tpu.memory_space<vmem>>, %arg4: memref<9x64x64xbf16, #tpu.memory_space<vmem>>, %arg5: memref<1x64xf32, #tpu.memory_space<vmem>>, %arg6: memref<1x64xf32, #tpu.memory_space<vmem>>, %arg7: memref<1x64xf32, #tpu.memory_space<vmem>>, %arg8: memref<1x256x64xf32, #tpu.memory_space<vmem>>, %arg9: memref<18x18x1xbf16, #tpu.memory_space<vmem>>, %arg10: memref<18x18x64xbf16, #tpu.memory_space<vmem>>) attributes {dimension_semantics = [#tpu.dimension_semantics<parallel>], iteration_bounds = array<i64: 2>, scalar_prefetch = 0 : i64, scratch_operands = 2 : i64, tpu.core_type = #tpu.core_type<tc>, window_params = [{transform_indices = @transform_0, window_bounds = array<i64: 1, 16, 16, 1>}, {pipeline_mode = #tpu.pipeline_mode<synchronous>, transform_indices = @transform_1, window_bounds = array<i64: 9, 1, 64>}, {pipeline_mode = #tpu.pipeline_mode<synchronous>, transform_indices = @transform_2, window_bounds = array<i64: 1, 64>}, {pipeline_mode = #tpu.pipeline_mode<synchronous>, transform_indices = @transform_3, window_bounds = array<i64: 9, 64, 64>}, {pipeline_mode = #tpu.pipeline_mode<synchronous>, transform_indices = @transform_4, window_bounds = array<i64: 1, 64>}, {pipeline_mode = #tpu.pipeline_mode<synchronous>, transform_indices = @transform_5, window_bounds = array<i64: 1, 64>}, {pipeline_mode = #tpu.pipeline_mode<synchronous>, transform_indices = @transform_6, window_bounds = array<i64: 1, 64>}, {transform_indices = @transform_7, window_bounds = array<i64: 1, 256, 64>}]} {
    %cst = arith.constant 0.000000e+00 : bf16
    %0 = vector.broadcast %cst : bf16 to vector<18x18x1xbf16>
    %c0 = arith.constant 0 : index
    %c0_0 = arith.constant 0 : index
    %c0_1 = arith.constant 0 : index
    %1 = vector.load %arg9[%c0, %c0_0, %c0_1] : memref<18x18x1xbf16, #tpu.memory_space<vmem>>, vector<18x18x1xbf16>
    tpu.vector_store %arg9[%c0, %c0_0, %c0_1], %0 {strides = array<i32>} : memref<18x18x1xbf16, #tpu.memory_space<vmem>>, vector<18x18x1xbf16>,
    %c0_2 = arith.constant 0 : index
    %c0_3 = arith.constant 0 : index
    %c0_4 = arith.constant 0 : index
    %c0_5 = arith.constant 0 : index
    %2 = vector.load %arg1[%c0_2, %c0_3, %c0_4, %c0_5] : memref<1x16x16x1xbf16, #tpu.memory_space<vmem>>, vector<1x16x16x1xbf16>
    %3 = vector.shape_cast %2 : vector<1x16x16x1xbf16> to vector<16x16x1xbf16>
    %c1 = arith.constant 1 : index
    %c1_6 = arith.constant 1 : index
    %c0_7 = arith.constant 0 : index
    %4 = vector.load %arg9[%c1, %c1_6, %c0_7] : memref<18x18x1xbf16, #tpu.memory_space<vmem>>, vector<16x16x1xbf16>
    tpu.vector_store %arg9[%c1, %c1_6, %c0_7], %3 {strides = array<i32>} : memref<18x18x1xbf16, #tpu.memory_space<vmem>>, vector<16x16x1xbf16>,
    %c0_8 = arith.constant 0 : index
    %c0_9 = arith.constant 0 : index
    %c0_10 = arith.constant 0 : index
    %5 = vector.load %arg2[%c0_8, %c0_9, %c0_10] : memref<9x1x64xbf16, #tpu.memory_space<vmem>>, vector<9x1x64xbf16>
    %6 = arith.extf %5 : vector<9x1x64xbf16> to vector<9x1x64xf32>
    %c0_11 = arith.constant 0 : index
    %c0_12 = arith.constant 0 : index
    %7 = vector.load %arg3[%c0_11, %c0_12] : memref<1x64xf32, #tpu.memory_space<vmem>>, vector<1x64xf32>
    %8 = vector.shape_cast %7 : vector<1x64xf32> to vector<64xf32>
    %9 = vector.shape_cast %8 : vector<64xf32> to vector<1x1x64xf32>
    %10 = vector.shape_cast %9 : vector<1x1x64xf32> to vector<1x1x64xf32>
    %11 = vector.broadcast %10 : vector<1x1x64xf32> to vector<16x16x64xf32>
    %c0_13 = arith.constant 0 : index
    %c0_14 = arith.constant 0 : index
    %c0_15 = arith.constant 0 : index
    %12 = vector.load %arg9[%c0_13, %c0_14, %c0_15] : memref<18x18x1xbf16, #tpu.memory_space<vmem>>, vector<16x16x1xbf16>
    %13 = arith.extf %12 : vector<16x16x1xbf16> to vector<16x16x1xf32>
    %14 = vector.extract_strided_slice %6 {offsets = [0, 0, 0], sizes = [1, 1, 64], strides = [1, 1, 1]} : vector<9x1x64xf32> to vector<1x1x64xf32>
    %15 = vector.shape_cast %14 : vector<1x1x64xf32> to vector<64xf32>
    %16 = vector.shape_cast %15 : vector<64xf32> to vector<1x1x64xf32>
    %17 = vector.broadcast %13 : vector<16x16x1xf32> to vector<16x16x64xf32>
    %18 = vector.broadcast %16 : vector<1x1x64xf32> to vector<16x16x64xf32>
    %19 = arith.mulf %17, %18 : vector<16x16x64xf32>
    %20 = arith.addf %11, %19 : vector<16x16x64xf32>
    %c0_16 = arith.constant 0 : index
    %c1_17 = arith.constant 1 : index
    %c0_18 = arith.constant 0 : index
    %21 = vector.load %arg9[%c0_16, %c1_17, %c0_18] : memref<18x18x1xbf16, #tpu.memory_space<vmem>>, vector<16x16x1xbf16>
    %22 = arith.extf %21 : vector<16x16x1xbf16> to vector<16x16x1xf32>
    %23 = vector.extract_strided_slice %6 {offsets = [1, 0, 0], sizes = [1, 1, 64], strides = [1, 1, 1]} : vector<9x1x64xf32> to vector<1x1x64xf32>
    %24 = vector.shape_cast %23 : vector<1x1x64xf32> to vector<64xf32>
    %25 = vector.shape_cast %24 : vector<64xf32> to vector<1x1x64xf32>
    %26 = vector.broadcast %22 : vector<16x16x1xf32> to vector<16x16x64xf32>
    %27 = vector.broadcast %25 : vector<1x1x64xf32> to vector<16x16x64xf32>
    %28 = arith.mulf %26, %27 : vector<16x16x64xf32>
    %29 = arith.addf %20, %28 : vector<16x16x64xf32>
    %c0_19 = arith.constant 0 : index
    %c2 = arith.constant 2 : index
    %c0_20 = arith.constant 0 : index
    %30 = vector.load %arg9[%c0_19, %c2, %c0_20] : memref<18x18x1xbf16, #tpu.memory_space<vmem>>, vector<16x16x1xbf16>
    %31 = arith.extf %30 : vector<16x16x1xbf16> to vector<16x16x1xf32>
    %32 = vector.extract_strided_slice %6 {offsets = [2, 0, 0], sizes = [1, 1, 64], strides = [1, 1, 1]} : vector<9x1x64xf32> to vector<1x1x64xf32>
    %33 = vector.shape_cast %32 : vector<1x1x64xf32> to vector<64xf32>
    %34 = vector.shape_cast %33 : vector<64xf32> to vector<1x1x64xf32>
    %35 = vector.broadcast %31 : vector<16x16x1xf32> to vector<16x16x64xf32>
    %36 = vector.broadcast %34 : vector<1x1x64xf32> to vector<16x16x64xf32>
    %37 = arith.mulf %35, %36 : vector<16x16x64xf32>
    %38 = arith.addf %29, %37 : vector<16x16x64xf32>
    %c1_21 = arith.constant 1 : index
    %c0_22 = arith.constant 0 : index
    %c0_23 = arith.constant 0 : index
    %39 = vector.load %arg9[%c1_21, %c0_22, %c0_23] : memref<18x18x1xbf16, #tpu.memory_space<vmem>>, vector<16x16x1xbf16>
    %40 = arith.extf %39 : vector<16x16x1xbf16> to vector<16x16x1xf32>
    %41 = vector.extract_strided_slice %6 {offsets = [3, 0, 0], sizes = [1, 1, 64], strides = [1, 1, 1]} : vector<9x1x64xf32> to vector<1x1x64xf32>
    %42 = vector.shape_cast %41 : vector<1x1x64xf32> to vector<64xf32>
    %43 = vector.shape_cast %42 : vector<64xf32> to vector<1x1x64xf32>
    %44 = vector.broadcast %40 : vector<16x16x1xf32> to vector<16x16x64xf32>
    %45 = vector.broadcast %43 : vector<1x1x64xf32> to vector<16x16x64xf32>
    %46 = arith.mulf %44, %45 : vector<16x16x64xf32>
    %47 = arith.addf %38, %46 : vector<16x16x64xf32>
    %c1_24 = arith.constant 1 : index
    %c1_25 = arith.constant 1 : index
    %c0_26 = arith.constant 0 : index
    %48 = vector.load %arg9[%c1_24, %c1_25, %c0_26] : memref<18x18x1xbf16, #tpu.memory_space<vmem>>, vector<16x16x1xbf16>
    %49 = arith.extf %48 : vector<16x16x1xbf16> to vector<16x16x1xf32>
    %50 = vector.extract_strided_slice %6 {offsets = [4, 0, 0], sizes = [1, 1, 64], strides = [1, 1, 1]} : vector<9x1x64xf32> to vector<1x1x64xf32>
    %51 = vector.shape_cast %50 : vector<1x1x64xf32> to vector<64xf32>
    %52 = vector.shape_cast %51 : vector<64xf32> to vector<1x1x64xf32>
    %53 = vector.broadcast %49 : vector<16x16x1xf32> to vector<16x16x64xf32>
    %54 = vector.broadcast %52 : vector<1x1x64xf32> to vector<16x16x64xf32>
    %55 = arith.mulf %53, %54 : vector<16x16x64xf32>
    %56 = arith.addf %47, %55 : vector<16x16x64xf32>
    %c1_27 = arith.constant 1 : index
    %c2_28 = arith.constant 2 : index
    %c0_29 = arith.constant 0 : index
    %57 = vector.load %arg9[%c1_27, %c2_28, %c0_29] : memref<18x18x1xbf16, #tpu.memory_space<vmem>>, vector<16x16x1xbf16>
    %58 = arith.extf %57 : vector<16x16x1xbf16> to vector<16x16x1xf32>
    %59 = vector.extract_strided_slice %6 {offsets = [5, 0, 0], sizes = [1, 1, 64], strides = [1, 1, 1]} : vector<9x1x64xf32> to vector<1x1x64xf32>
    %60 = vector.shape_cast %59 : vector<1x1x64xf32> to vector<64xf32>
    %61 = vector.shape_cast %60 : vector<64xf32> to vector<1x1x64xf32>
    %62 = vector.broadcast %58 : vector<16x16x1xf32> to vector<16x16x64xf32>
    %63 = vector.broadcast %61 : vector<1x1x64xf32> to vector<16x16x64xf32>
    %64 = arith.mulf %62, %63 : vector<16x16x64xf32>
    %65 = arith.addf %56, %64 : vector<16x16x64xf32>
    %c2_30 = arith.constant 2 : index
    %c0_31 = arith.constant 0 : index
    %c0_32 = arith.constant 0 : index
    %66 = vector.load %arg9[%c2_30, %c0_31, %c0_32] : memref<18x18x1xbf16, #tpu.memory_space<vmem>>, vector<16x16x1xbf16>
    %67 = arith.extf %66 : vector<16x16x1xbf16> to vector<16x16x1xf32>
    %68 = vector.extract_strided_slice %6 {offsets = [6, 0, 0], sizes = [1, 1, 64], strides = [1, 1, 1]} : vector<9x1x64xf32> to vector<1x1x64xf32>
    %69 = vector.shape_cast %68 : vector<1x1x64xf32> to vector<64xf32>
    %70 = vector.shape_cast %69 : vector<64xf32> to vector<1x1x64xf32>
    %71 = vector.broadcast %67 : vector<16x16x1xf32> to vector<16x16x64xf32>
    %72 = vector.broadcast %70 : vector<1x1x64xf32> to vector<16x16x64xf32>
    %73 = arith.mulf %71, %72 : vector<16x16x64xf32>
    %74 = arith.addf %65, %73 : vector<16x16x64xf32>
    %c2_33 = arith.constant 2 : index
    %c1_34 = arith.constant 1 : index
    %c0_35 = arith.constant 0 : index
    %75 = vector.load %arg9[%c2_33, %c1_34, %c0_35] : memref<18x18x1xbf16, #tpu.memory_space<vmem>>, vector<16x16x1xbf16>
    %76 = arith.extf %75 : vector<16x16x1xbf16> to vector<16x16x1xf32>
    %77 = vector.extract_strided_slice %6 {offsets = [7, 0, 0], sizes = [1, 1, 64], strides = [1, 1, 1]} : vector<9x1x64xf32> to vector<1x1x64xf32>
    %78 = vector.shape_cast %77 : vector<1x1x64xf32> to vector<64xf32>
    %79 = vector.shape_cast %78 : vector<64xf32> to vector<1x1x64xf32>
    %80 = vector.broadcast %76 : vector<16x16x1xf32> to vector<16x16x64xf32>
    %81 = vector.broadcast %79 : vector<1x1x64xf32> to vector<16x16x64xf32>
    %82 = arith.mulf %80, %81 : vector<16x16x64xf32>
    %83 = arith.addf %74, %82 : vector<16x16x64xf32>
    %c2_36 = arith.constant 2 : index
    %c2_37 = arith.constant 2 : index
    %c0_38 = arith.constant 0 : index
    %84 = vector.load %arg9[%c2_36, %c2_37, %c0_38] : memref<18x18x1xbf16, #tpu.memory_space<vmem>>, vector<16x16x1xbf16>
    %85 = arith.extf %84 : vector<16x16x1xbf16> to vector<16x16x1xf32>
    %86 = vector.extract_strided_slice %6 {offsets = [8, 0, 0], sizes = [1, 1, 64], strides = [1, 1, 1]} : vector<9x1x64xf32> to vector<1x1x64xf32>
    %87 = vector.shape_cast %86 : vector<1x1x64xf32> to vector<64xf32>
    %88 = vector.shape_cast %87 : vector<64xf32> to vector<1x1x64xf32>
    %89 = vector.broadcast %85 : vector<16x16x1xf32> to vector<16x16x64xf32>
    %90 = vector.broadcast %88 : vector<1x1x64xf32> to vector<16x16x64xf32>
    %91 = arith.mulf %89, %90 : vector<16x16x64xf32>
    %92 = arith.addf %83, %91 : vector<16x16x64xf32>
    %cst_39 = arith.constant 0.000000e+00 : f32
    %93 = vector.broadcast %cst_39 : f32 to vector<16x16x64xf32>
    %94 = arith.maximumf %92, %93 : vector<16x16x64xf32>
    %95 = arith.truncf %94 : vector<16x16x64xf32> to vector<16x16x64xbf16>
    %cst_40 = arith.constant 0.000000e+00 : bf16
    %96 = vector.broadcast %cst_40 : bf16 to vector<18x18x64xbf16>
    %c0_41 = arith.constant 0 : index
    %c0_42 = arith.constant 0 : index
    %c0_43 = arith.constant 0 : index
    %97 = vector.load %arg10[%c0_41, %c0_42, %c0_43] : memref<18x18x64xbf16, #tpu.memory_space<vmem>>, vector<18x18x64xbf16>
    tpu.vector_store %arg10[%c0_41, %c0_42, %c0_43], %96 {strides = array<i32>} : memref<18x18x64xbf16, #tpu.memory_space<vmem>>, vector<18x18x64xbf16>,
    %c1_44 = arith.constant 1 : index
    %c1_45 = arith.constant 1 : index
    %c0_46 = arith.constant 0 : index
    %98 = vector.load %arg10[%c1_44, %c1_45, %c0_46] : memref<18x18x64xbf16, #tpu.memory_space<vmem>>, vector<16x16x64xbf16>
    tpu.vector_store %arg10[%c1_44, %c1_45, %c0_46], %95 {strides = array<i32>} : memref<18x18x64xbf16, #tpu.memory_space<vmem>>, vector<16x16x64xbf16>,
    %c0_47 = arith.constant 0 : index
    %c0_48 = arith.constant 0 : index
    %99 = vector.load %arg5[%c0_47, %c0_48] : memref<1x64xf32, #tpu.memory_space<vmem>>, vector<1x64xf32>
    %100 = vector.shape_cast %99 : vector<1x64xf32> to vector<64xf32>
    %101 = vector.shape_cast %100 : vector<64xf32> to vector<1x64xf32>
    %102 = vector.shape_cast %101 : vector<1x64xf32> to vector<1x64xf32>
    %103 = vector.broadcast %102 : vector<1x64xf32> to vector<256x64xf32>
    %c0_49 = arith.constant 0 : index
    %c0_50 = arith.constant 0 : index
    %c0_51 = arith.constant 0 : index
    %104 = vector.load %arg10[%c0_49, %c0_50, %c0_51] : memref<18x18x64xbf16, #tpu.memory_space<vmem>>, vector<16x16x64xbf16>
    %105 = vector.shape_cast %104 : vector<16x16x64xbf16> to vector<256x64xbf16>
    %c0_52 = arith.constant 0 : index
    %c0_53 = arith.constant 0 : index
    %c0_54 = arith.constant 0 : index
    %106 = vector.load %arg4[%c0_52, %c0_53, %c0_54] : memref<9x64x64xbf16, #tpu.memory_space<vmem>>, vector<1x64x64xbf16>
    %107 = vector.shape_cast %106 : vector<1x64x64xbf16> to vector<64x64xbf16>
    %cst_55 = arith.constant dense<0.000000e+00> : vector<256x64xf32>
    %108 = tpu.matmul %105, %107, %cst_55 {dimension_numbers = #tpu.dot_dimension_numbers<[1], [0], [0], [1], [0, 0, 1, 1], [], []>} : vector<256x64xbf16>, vector<64x64xbf16>, vector<256x64xf32> -> vector<256x64xf32>
    %109 = arith.addf %103, %108 : vector<256x64xf32>
    %c0_56 = arith.constant 0 : index
    %c1_57 = arith.constant 1 : index
    %c0_58 = arith.constant 0 : index
    %110 = vector.load %arg10[%c0_56, %c1_57, %c0_58] : memref<18x18x64xbf16, #tpu.memory_space<vmem>>, vector<16x16x64xbf16>
    %111 = vector.shape_cast %110 : vector<16x16x64xbf16> to vector<256x64xbf16>
    %c1_59 = arith.constant 1 : index
    %c0_60 = arith.constant 0 : index
    %c0_61 = arith.constant 0 : index
    %112 = vector.load %arg4[%c1_59, %c0_60, %c0_61] : memref<9x64x64xbf16, #tpu.memory_space<vmem>>, vector<1x64x64xbf16>
    %113 = vector.shape_cast %112 : vector<1x64x64xbf16> to vector<64x64xbf16>
    %cst_62 = arith.constant dense<0.000000e+00> : vector<256x64xf32>
    %114 = tpu.matmul %111, %113, %cst_62 {dimension_numbers = #tpu.dot_dimension_numbers<[1], [0], [0], [1], [0, 0, 1, 1], [], []>} : vector<256x64xbf16>, vector<64x64xbf16>, vector<256x64xf32> -> vector<256x64xf32>
    %115 = arith.addf %109, %114 : vector<256x64xf32>
    %c0_63 = arith.constant 0 : index
    %c2_64 = arith.constant 2 : index
    %c0_65 = arith.constant 0 : index
    %116 = vector.load %arg10[%c0_63, %c2_64, %c0_65] : memref<18x18x64xbf16, #tpu.memory_space<vmem>>, vector<16x16x64xbf16>
    %117 = vector.shape_cast %116 : vector<16x16x64xbf16> to vector<256x64xbf16>
    %c2_66 = arith.constant 2 : index
    %c0_67 = arith.constant 0 : index
    %c0_68 = arith.constant 0 : index
    %118 = vector.load %arg4[%c2_66, %c0_67, %c0_68] : memref<9x64x64xbf16, #tpu.memory_space<vmem>>, vector<1x64x64xbf16>
    %119 = vector.shape_cast %118 : vector<1x64x64xbf16> to vector<64x64xbf16>
    %cst_69 = arith.constant dense<0.000000e+00> : vector<256x64xf32>
    %120 = tpu.matmul %117, %119, %cst_69 {dimension_numbers = #tpu.dot_dimension_numbers<[1], [0], [0], [1], [0, 0, 1, 1], [], []>} : vector<256x64xbf16>, vector<64x64xbf16>, vector<256x64xf32> -> vector<256x64xf32>
    %121 = arith.addf %115, %120 : vector<256x64xf32>
    %c1_70 = arith.constant 1 : index
    %c0_71 = arith.constant 0 : index
    %c0_72 = arith.constant 0 : index
    %122 = vector.load %arg10[%c1_70, %c0_71, %c0_72] : memref<18x18x64xbf16, #tpu.memory_space<vmem>>, vector<16x16x64xbf16>
    %123 = vector.shape_cast %122 : vector<16x16x64xbf16> to vector<256x64xbf16>
    %c3 = arith.constant 3 : index
    %c0_73 = arith.constant 0 : index
    %c0_74 = arith.constant 0 : index
    %124 = vector.load %arg4[%c3, %c0_73, %c0_74] : memref<9x64x64xbf16, #tpu.memory_space<vmem>>, vector<1x64x64xbf16>
    %125 = vector.shape_cast %124 : vector<1x64x64xbf16> to vector<64x64xbf16>
    %cst_75 = arith.constant dense<0.000000e+00> : vector<256x64xf32>
    %126 = tpu.matmul %123, %125, %cst_75 {dimension_numbers = #tpu.dot_dimension_numbers<[1], [0], [0], [1], [0, 0, 1, 1], [], []>} : vector<256x64xbf16>, vector<64x64xbf16>, vector<256x64xf32> -> vector<256x64xf32>
    %127 = arith.addf %121, %126 : vector<256x64xf32>
    %c1_76 = arith.constant 1 : index
    %c1_77 = arith.constant 1 : index
    %c0_78 = arith.constant 0 : index
    %128 = vector.load %arg10[%c1_76, %c1_77, %c0_78] : memref<18x18x64xbf16, #tpu.memory_space<vmem>>, vector<16x16x64xbf16>
    %129 = vector.shape_cast %128 : vector<16x16x64xbf16> to vector<256x64xbf16>
    %c4 = arith.constant 4 : index
    %c0_79 = arith.constant 0 : index
    %c0_80 = arith.constant 0 : index
    %130 = vector.load %arg4[%c4, %c0_79, %c0_80] : memref<9x64x64xbf16, #tpu.memory_space<vmem>>, vector<1x64x64xbf16>
    %131 = vector.shape_cast %130 : vector<1x64x64xbf16> to vector<64x64xbf16>
    %cst_81 = arith.constant dense<0.000000e+00> : vector<256x64xf32>
    %132 = tpu.matmul %129, %131, %cst_81 {dimension_numbers = #tpu.dot_dimension_numbers<[1], [0], [0], [1], [0, 0, 1, 1], [], []>} : vector<256x64xbf16>, vector<64x64xbf16>, vector<256x64xf32> -> vector<256x64xf32>
    %133 = arith.addf %127, %132 : vector<256x64xf32>
    %c1_82 = arith.constant 1 : index
    %c2_83 = arith.constant 2 : index
    %c0_84 = arith.constant 0 : index
    %134 = vector.load %arg10[%c1_82, %c2_83, %c0_84] : memref<18x18x64xbf16, #tpu.memory_space<vmem>>, vector<16x16x64xbf16>
    %135 = vector.shape_cast %134 : vector<16x16x64xbf16> to vector<256x64xbf16>
    %c5 = arith.constant 5 : index
    %c0_85 = arith.constant 0 : index
    %c0_86 = arith.constant 0 : index
    %136 = vector.load %arg4[%c5, %c0_85, %c0_86] : memref<9x64x64xbf16, #tpu.memory_space<vmem>>, vector<1x64x64xbf16>
    %137 = vector.shape_cast %136 : vector<1x64x64xbf16> to vector<64x64xbf16>
    %cst_87 = arith.constant dense<0.000000e+00> : vector<256x64xf32>
    %138 = tpu.matmul %135, %137, %cst_87 {dimension_numbers = #tpu.dot_dimension_numbers<[1], [0], [0], [1], [0, 0, 1, 1], [], []>} : vector<256x64xbf16>, vector<64x64xbf16>, vector<256x64xf32> -> vector<256x64xf32>
    %139 = arith.addf %133, %138 : vector<256x64xf32>
    %c2_88 = arith.constant 2 : index
    %c0_89 = arith.constant 0 : index
    %c0_90 = arith.constant 0 : index
    %140 = vector.load %arg10[%c2_88, %c0_89, %c0_90] : memref<18x18x64xbf16, #tpu.memory_space<vmem>>, vector<16x16x64xbf16>
    %141 = vector.shape_cast %140 : vector<16x16x64xbf16> to vector<256x64xbf16>
    %c6 = arith.constant 6 : index
    %c0_91 = arith.constant 0 : index
    %c0_92 = arith.constant 0 : index
    %142 = vector.load %arg4[%c6, %c0_91, %c0_92] : memref<9x64x64xbf16, #tpu.memory_space<vmem>>, vector<1x64x64xbf16>
    %143 = vector.shape_cast %142 : vector<1x64x64xbf16> to vector<64x64xbf16>
    %cst_93 = arith.constant dense<0.000000e+00> : vector<256x64xf32>
    %144 = tpu.matmul %141, %143, %cst_93 {dimension_numbers = #tpu.dot_dimension_numbers<[1], [0], [0], [1], [0, 0, 1, 1], [], []>} : vector<256x64xbf16>, vector<64x64xbf16>, vector<256x64xf32> -> vector<256x64xf32>
    %145 = arith.addf %139, %144 : vector<256x64xf32>
    %c2_94 = arith.constant 2 : index
    %c1_95 = arith.constant 1 : index
    %c0_96 = arith.constant 0 : index
    %146 = vector.load %arg10[%c2_94, %c1_95, %c0_96] : memref<18x18x64xbf16, #tpu.memory_space<vmem>>, vector<16x16x64xbf16>
    %147 = vector.shape_cast %146 : vector<16x16x64xbf16> to vector<256x64xbf16>
    %c7 = arith.constant 7 : index
    %c0_97 = arith.constant 0 : index
    %c0_98 = arith.constant 0 : index
    %148 = vector.load %arg4[%c7, %c0_97, %c0_98] : memref<9x64x64xbf16, #tpu.memory_space<vmem>>, vector<1x64x64xbf16>
    %149 = vector.shape_cast %148 : vector<1x64x64xbf16> to vector<64x64xbf16>
    %cst_99 = arith.constant dense<0.000000e+00> : vector<256x64xf32>
    %150 = tpu.matmul %147, %149, %cst_99 {dimension_numbers = #tpu.dot_dimension_numbers<[1], [0], [0], [1], [0, 0, 1, 1], [], []>} : vector<256x64xbf16>, vector<64x64xbf16>, vector<256x64xf32> -> vector<256x64xf32>
    %151 = arith.addf %145, %150 : vector<256x64xf32>
    %c2_100 = arith.constant 2 : index
    %c2_101 = arith.constant 2 : index
    %c0_102 = arith.constant 0 : index
    %152 = vector.load %arg10[%c2_100, %c2_101, %c0_102] : memref<18x18x64xbf16, #tpu.memory_space<vmem>>, vector<16x16x64xbf16>
    %153 = vector.shape_cast %152 : vector<16x16x64xbf16> to vector<256x64xbf16>
    %c8 = arith.constant 8 : index
    %c0_103 = arith.constant 0 : index
    %c0_104 = arith.constant 0 : index
    %154 = vector.load %arg4[%c8, %c0_103, %c0_104] : memref<9x64x64xbf16, #tpu.memory_space<vmem>>, vector<1x64x64xbf16>
    %155 = vector.shape_cast %154 : vector<1x64x64xbf16> to vector<64x64xbf16>
    %cst_105 = arith.constant dense<0.000000e+00> : vector<256x64xf32>
    %156 = tpu.matmul %153, %155, %cst_105 {dimension_numbers = #tpu.dot_dimension_numbers<[1], [0], [0], [1], [0, 0, 1, 1], [], []>} : vector<256x64xbf16>, vector<64x64xbf16>, vector<256x64xf32> -> vector<256x64xf32>
    %157 = arith.addf %151, %156 : vector<256x64xf32>
    %c0_106 = arith.constant 0 : index
    %c0_107 = arith.constant 0 : index
    %158 = vector.load %arg6[%c0_106, %c0_107] : memref<1x64xf32, #tpu.memory_space<vmem>>, vector<1x64xf32>
    %159 = vector.shape_cast %158 : vector<1x64xf32> to vector<64xf32>
    %160 = vector.shape_cast %159 : vector<64xf32> to vector<1x64xf32>
    %161 = vector.broadcast %160 : vector<1x64xf32> to vector<256x64xf32>
    %162 = arith.mulf %157, %161 : vector<256x64xf32>
    %c0_108 = arith.constant 0 : index
    %c0_109 = arith.constant 0 : index
    %163 = vector.load %arg7[%c0_108, %c0_109] : memref<1x64xf32, #tpu.memory_space<vmem>>, vector<1x64xf32>
    %164 = vector.shape_cast %163 : vector<1x64xf32> to vector<64xf32>
    %165 = vector.shape_cast %164 : vector<64xf32> to vector<1x64xf32>
    %166 = vector.broadcast %165 : vector<1x64xf32> to vector<256x64xf32>
    %167 = arith.addf %162, %166 : vector<256x64xf32>
    %cst_110 = arith.constant 0.000000e+00 : f32
    %168 = vector.broadcast %cst_110 : f32 to vector<256x64xf32>
    %169 = arith.maximumf %167, %168 : vector<256x64xf32>
    %c0_111 = arith.constant 0 : index
    %c0_112 = arith.constant 0 : index
    %c0_113 = arith.constant 0 : index
    %170 = vector.load %arg8[%c0_111, %c0_112, %c0_113] : memref<1x256x64xf32, #tpu.memory_space<vmem>>, vector<1x256x64xf32>
    %171 = vector.shape_cast %170 : vector<1x256x64xf32> to vector<256x64xf32>
    %172 = vector.shape_cast %169 : vector<256x64xf32> to vector<1x256x64xf32>
    tpu.vector_store %arg8[%c0_111, %c0_112, %c0_113], %172 {strides = array<i32>} : memref<1x256x64xf32, #tpu.memory_space<vmem>>, vector<1x256x64xf32>,
    return
  }
  func.func @transform_0(%arg0: i32) -> (i32, i32, i32, i32) {
    %c0_i32 = arith.constant 0 : i32
    %c0_i32_0 = arith.constant 0 : i32
    %c0_i32_1 = arith.constant 0 : i32
    %c0_i32_2 = arith.constant 0 : i32
    return %arg0, %c0_i32, %c0_i32_0, %c0_i32_1 : i32, i32, i32, i32
  }
  func.func @transform_1(%arg0: i32) -> (i32, i32, i32) {
    %c0_i32 = arith.constant 0 : i32
    %c0_i32_0 = arith.constant 0 : i32
    %c0_i32_1 = arith.constant 0 : i32
    %c0_i32_2 = arith.constant 0 : i32
    return %c0_i32, %c0_i32_0, %c0_i32_1 : i32, i32, i32
  }
  func.func @transform_2(%arg0: i32) -> (i32, i32) {
    %c0_i32 = arith.constant 0 : i32
    %c0_i32_0 = arith.constant 0 : i32
    %c0_i32_1 = arith.constant 0 : i32
    return %c0_i32, %c0_i32_0 : i32, i32
  }
  func.func @transform_3(%arg0: i32) -> (i32, i32, i32) {
    %c0_i32 = arith.constant 0 : i32
    %c0_i32_0 = arith.constant 0 : i32
    %c0_i32_1 = arith.constant 0 : i32
    %c0_i32_2 = arith.constant 0 : i32
    return %c0_i32, %c0_i32_0, %c0_i32_1 : i32, i32, i32
  }
  func.func @transform_4(%arg0: i32) -> (i32, i32) {
    %c0_i32 = arith.constant 0 : i32
    %c0_i32_0 = arith.constant 0 : i32
    %c0_i32_1 = arith.constant 0 : i32
    return %c0_i32, %c0_i32_0 : i32, i32
  }
  func.func @transform_5(%arg0: i32) -> (i32, i32) {
    %c0_i32 = arith.constant 0 : i32
    %c0_i32_0 = arith.constant 0 : i32
    %c0_i32_1 = arith.constant 0 : i32
    return %c0_i32, %c0_i32_0 : i32, i32
  }
  func.func @transform_6(%arg0: i32) -> (i32, i32) {
    %c0_i32 = arith.constant 0 : i32
    %c0_i32_0 = arith.constant 0 : i32
    %c0_i32_1 = arith.constant 0 : i32
    return %c0_i32, %c0_i32_0 : i32, i32
  }
  func.func @transform_7(%arg0: i32) -> (i32, i32, i32) {
    %c0_i32 = arith.constant 0 : i32
    %c0_i32_0 = arith.constant 0 : i32
    %c0_i32_1 = arith.constant 0 : i32
    return %arg0, %c0_i32, %c0_i32_0 : i32, i32, i32
  }
}

</mosaic_0001>

<bundles_post_ra>
// kernel: tpu_custom_call.1
= control target key start
LH: loop header
LB: loop body
LE: loop exit
PB: predicated region body
PF: predicated region fallthrough
CT: control target
= control target key end

     0   :  { %s12435_s24 = smov 0   ;;  %s17160_s0 = inlined_call_operand.vmem [shape: bf16[2,16,16,1], index: 0, kind: input, shape index: {}]   ;;  %s17161_s1 = inlined_call_operand.vmem [shape: bf16[9,1,64], index: 1, kind: input, shape index: {}]   ;;  %s17162_s2 = inlined_call_operand.vmem [shape: f32[1,64], index: 2, kind: input, shape index: {}]   ;;  %s17163_s3 = inlined_call_operand.vmem [shape: bf16[9,64,64], index: 3, kind: input, shape index: {}]   ;;  %s17164_s4 = inlined_call_operand.vmem [shape: f32[1,64], index: 4, kind: input, shape index: {}]   ;;  %s17165_s5 = inlined_call_operand.vmem [shape: f32[1,64], index: 5, kind: input, shape index: {}]   ;;  %s17166_s6 = inlined_call_operand.vmem [shape: f32[1,64], index: 6, kind: input, shape index: {}]   ;;  %s17167_s7 = inlined_call_operand.vmem [shape: f32[2,256,64], index: 7, kind: output, shape index: {}]  }
   0x1 LB: > { %s10267_s25 = sadd.s32 4294967295, %s12392_s24   ;;  %p10271_p0 = scmp.ge.s32.totalorder %s12392_s24, 1  ;;  %s12392_s24 = sphi %s12435_s24, %s17_s24  }
   0x2   : > { %p237_p1 = scmp.lt.s32.totalorder %s12392_s24, 3 }
   0x4   : > { %p238_p2 = pnand %p10271_p0, %p237_p1 }
   0x6   : > { %241 = sbr.rel (%p238_p2) target bundleno = 1193 (0x4a9), region = 48 }
   0xb   : > { %vm280_vm0 = vcmask 3072   ;;  %p12445_p3 = scmp.lt.s32.totalorder %s10267_s25, 1  ;;  %vm283_vm1 = vcmask 0   ;;  %v17168_v0 = vmov 0   ;;  %vm368_vm2 = vsmask.f32 256 }
   0xc   : > { %11577 = vset.pattern.permute.xlu0 %v17168_v0  ;;  %281 = vst.msk [vmem:[#allocation2] sm:$0xf] %vm280_vm0, %v17168_v0  ;;  %282 = vst.msk [vmem:[#allocation2 + $0x4] sm:$0xf] %vm280_vm0, %v17168_v0  ;;  %11588 = vset.pattern.permute.xlu1 %v17168_v0  ;;  %vm369_vm3 = vsmask.f32 4368 }
   0xd   : > { %285 = vst.msk [vmem:[#allocation2 + $0xc] sm:$0xf] %vm280_vm0, %v17168_v0  ;;  %286 = vst.msk [vmem:[#allocation2 + $0x10] sm:$0xf] %vm280_vm0, %v17168_v0  ;;  %s17705_s25 = smov (!%p12445_p3, %s10267_s25), 1  ;;  %v17226_v15 = vmov 0 }
   0xe   : > { %288 = vst.msk [vmem:[#allocation2 + $0x18] sm:$0xf] %vm280_vm0, %v17168_v0  ;;  %289 = vst.msk [vmem:[#allocation2 + $0x1c] sm:$0xf] %vm280_vm0, %v17168_v0  ;;  %vm693_vm4 = vsmask.f32 7938 }
   0xf   : > { %291 = vst.msk [vmem:[#allocation2 + $0x24] sm:$0xf] %vm280_vm0, %v17168_v0  ;;  %292 = vst.msk [vmem:[#allocation2 + $0x28] sm:$0xf] %vm280_vm0, %v17168_v0  ;;  %s10750_s27 = sshll.u32 %s17705_s25, 7  ;;  %vm1562_vm8 = vcmask 1046528  }
  0x10   : > { %294 = vst.msk [vmem:[#allocation2 + $0x30] sm:$0xf] %vm280_vm0, %v17168_v0  ;;  %295 = vst.msk [vmem:[#allocation2 + $0x34] sm:$0xf] %vm280_vm0, %v17168_v0  ;;  %s12569_s30 = scalar_lea.vmem %s17160_s0, %s10750_s27  ;;  %vm1919_vm9 = vcmask 1045504   ;;  %vm4572_vm10 = vcmask 516096  }
  0x11   : > { %297 = vst.msk [vmem:[#allocation2 + $0x3c] sm:$0xf] %vm280_vm0, %v17168_v0  ;;  %298 = vst.msk [vmem:[#allocation2 + $0x40] sm:$0xf] %vm280_vm0, %v17168_v0  ;;  %v338_v1 = vld [vmem:[%s12569_s30 + $0x8] sm:$0xf] }
  0x12   : > { %300 = vst.msk [vmem:[#allocation2 + $0x48] sm:$0xf] %vm280_vm0, %v17168_v0  ;;  %301 = vst.msk [vmem:[#allocation2 + $0x4c] sm:$0xf] %vm280_vm0, %v17168_v0  ;;  %v339_v2 = vld [vmem:[%s12569_s30 + $0xc] sm:$0xf] }
  0x13   : > { %303 = vst.msk [vmem:[#allocation2 + $0x54] sm:$0xf] %vm280_vm0, %v17168_v0  ;;  %304 = vst.msk [vmem:[#allocation2 + $0x58] sm:$0xf] %vm280_vm0, %v17168_v0  ;;  %v336_v3 = vld [vmem:[%s12569_s30] sm:$0xf] }
  0x14   : > { %306 = vst.msk [vmem:[#allocation2 + $0x60] sm:$0xf] %vm280_vm0, %v17168_v0  ;;  %307 = vst.msk [vmem:[#allocation2 + $0x64] sm:$0xf] %vm280_vm0, %v17168_v0  ;;  %v389_v4 = vshrl.u32 %v338_v1, 16  ;;  %v392_v5 = vshll.u32 %v338_v1, 16 }
  0x15   : > { %309 = vst.msk [vmem:[#allocation2 + $0x6c] sm:$0xf] %vm280_vm0, %v17168_v0  ;;  %310 = vst.msk [vmem:[#allocation2 + $0x70] sm:$0xf] %vm280_vm0, %v17168_v0  ;;  %v397_v6 = vshrl.u32 %v339_v2, 16  ;;  %v400_v7 = vshll.u32 %v339_v2, 16 }
  0x16   : > { %312 = vst.msk [vmem:[#allocation2 + $0x78] sm:$0xf] %vm280_vm0, %v17168_v0  ;;  %313 = vst.msk [vmem:[#allocation2 + $0x7c] sm:$0xf] %vm280_vm0, %v17168_v0  ;;  %v337_v8 = vld [vmem:[%s12569_s30 + $0x4] sm:$0xf] }
  0x17   : > { %315 = vst.msk [vmem:[#allocation2 + $0x84] sm:$0xf] %vm280_vm0, %v17168_v0  ;;  %316 = vst.msk [vmem:[#allocation2 + $0x88] sm:$0xf] %vm280_vm0, %v17168_v0  ;;  %v10785_v9 = vld [vmem:[#allocation2] sm:$0xff]   ;;  %v372_v10 = vshrl.u32 %v336_v3, 16 }
  0x18   : > { %318 = vst.msk [vmem:[#allocation2 + $0x90] sm:$0xf] %vm280_vm0, %v17168_v0  ;;  %319 = vst.msk [vmem:[#allocation2 + $0x94] sm:$0xf] %vm280_vm0, %v17168_v0  ;;  %v375_v11 = vshll.u32 %v336_v3, 16  ;;  %v380_v12 = vshrl.u32 %v337_v8, 16  ;;  %v10786_v13 = vunpack.c.l.bf16 %v10785_v9  ;;  %v10787_v14 = vunpack.c.h.bf16 %v10785_v9 }
  0x19   : > { %321 = vst.msk [vmem:[#allocation2 + $0x9c] sm:$0xf] %vm280_vm0, %v17168_v0  ;;  %322 = vst.msk [vmem:[#allocation2 + $0xa0] sm:$0xf] %vm280_vm0, %v17168_v0  ;;  %v391_v16 = vrot.slane %v389_v4, 7  ;;  %v12581_v17 = vrot.slane %v397_v6, 7 }
  0x1a   : > { %324 = vst.msk [vmem:[#allocation2 + $0xa8] sm:$0xf] %vm280_vm0, %v17168_v0  ;;  %325 = vst.msk [vmem:[#allocation2 + $0xac] sm:$0xf] %vm280_vm0, %v17168_v0  ;;  %v704_v18 = vld [vmem:[#allocation2 + $0x18] sm:$0xf]  ;;  %v12593_v26 = vpack.i.bf16 %v10787_v14, %v10786_v13 }
  0x1b   : > { %327 = vst.msk [vmem:[#allocation2 + $0xb4] sm:$0xf] %vm280_vm0, %v17168_v0  ;;  %328 = vst.msk [vmem:[#allocation2 + $0xb8] sm:$0xf] %vm280_vm0, %v17168_v0  ;;  %v340_v19 = vld [vmem:[%s12569_s30 + $0x10] sm:$0xf]  ;;  %v394_v27 = vor.u32 %v392_v5, %v391_v16  ;;  %v402_v29 = vor.u32 %v400_v7, %v12581_v17 }
  0x1c   : > { %330 = vst.msk [vmem:[#allocation2 + $0xc0] sm:$0xf] %vm280_vm0, %v17168_v0  ;;  %331 = vst.msk [vmem:[#allocation2 + $0xc4] sm:$0xf] %vm280_vm0, %v17168_v0  ;;  %v374_v21 = vrot.slane %v372_v10, 7  ;;  %v12590_v22 = vrot.slane %v380_v12, 7  ;;  %11579 = vperm.xlu0 %11577, %v12593_v26  }
  0x1d   : > { %333 = vst.msk [vmem:[#allocation2 + $0xcc] sm:$0xf] %vm280_vm0, %v17168_v0  ;;  %334 = vst.msk [vmem:[#allocation2 + $0xd0] sm:$0xf] %vm280_vm0, %v17168_v0  ;;  %v383_v23 = vshll.u32 %v337_v8, 16  ;;  %v406_v25 = vshrl.u32 %v340_v19, 16 }
  0x1e   : > { %284 = vst.msk [vmem:[#allocation2 + $0x8] sm:$0x1] %vm283_vm1, %v17168_v0  ;;  %287 = vst.msk [vmem:[#allocation2 + $0x14] sm:$0x1] %vm283_vm1, %v17168_v0  ;;  %v341_v24 = vld [vmem:[%s12569_s30 + $0x14] sm:$0xf]  ;;  %v377_v31 = vor.u32 %v375_v11, %v374_v21 }
  0x1f   : > { %290 = vst.msk [vmem:[#allocation2 + $0x20] sm:$0x1] %vm283_vm1, %v17168_v0  ;;  %293 = vst.msk [vmem:[#allocation2 + $0x2c] sm:$0x1] %vm283_vm1, %v17168_v0  ;;  %v395_v28 = vrot.slane %v391_v16, 4  ;;  %v378_v32 = vrot.slane %v374_v21, 4  ;;  %v385_v33 = vor.u32 %v383_v23, %v12590_v22 }
  0x20   : > { %296 = vst.msk [vmem:[#allocation2 + $0x38] sm:$0x1] %vm283_vm1, %v17168_v0  ;;  %299 = vst.msk [vmem:[#allocation2 + $0x44] sm:$0x1] %vm283_vm1, %v17168_v0  ;;  %v695_v30 = vld [vmem:[#allocation2 + $0xc] sm:$0xf] }
  0x21   : > { %302 = vst.msk [vmem:[#allocation2 + $0x50] sm:$0x1] %vm283_vm1, %v17168_v0  ;;  %305 = vst.msk [vmem:[#allocation2 + $0x5c] sm:$0x1] %vm283_vm1, %v17168_v0  ;;  %v408_v34 = vrot.slane %v406_v25, 7  ;;  %v409_v38 = vshll.u32 %v340_v19, 16 }
  0x22   : > { %308 = vst.msk [vmem:[#allocation2 + $0x68] sm:$0x1] %vm283_vm1, %v17168_v0  ;;  %311 = vst.msk [vmem:[#allocation2 + $0x74] sm:$0x1] %vm283_vm1, %v17168_v0  ;;  %v342_v35 = vld [vmem:[%s12569_s30 + $0x18] sm:$0xf] }
  0x23   : > { %314 = vst.msk [vmem:[#allocation2 + $0x80] sm:$0x1] %vm283_vm1, %v17168_v0  ;;  %317 = vst.msk [vmem:[#allocation2 + $0x8c] sm:$0x1] %vm283_vm1, %v17168_v0  ;;  %v414_v39 = vshrl.u32 %v341_v24, 16  ;;  %v412_v44 = vrot.slane %v408_v34, 4  ;;  %v411_v48 = vor.u32 %v409_v38, %v408_v34 }
  0x24   : > { %320 = vst.msk [vmem:[#allocation2 + $0x98] sm:$0x1] %vm283_vm1, %v17168_v0  ;;  %323 = vst.msk [vmem:[#allocation2 + $0xa4] sm:$0x1] %vm283_vm1, %v17168_v0  ;;  %v343_v40 = vld [vmem:[%s12569_s30 + $0x1c] sm:$0xf] }
  0x25   : > { %326 = vst.msk [vmem:[#allocation2 + $0xb0] sm:$0x1] %vm283_vm1, %v17168_v0  ;;  %329 = vst.msk [vmem:[#allocation2 + $0xbc] sm:$0x1] %vm283_vm1, %v17168_v0  ;;  %v344_v41 = vld [vmem:[%s12569_s30 + $0x20] sm:$0xf] }
  0x26   : > { %332 = vst.msk [vmem:[#allocation2 + $0xc8] sm:$0x1] %vm283_vm1, %v17168_v0  ;;  %335 = vst.msk [vmem:[#allocation2 + $0xd4] sm:$0x1] %vm283_vm1, %v17168_v0  ;;  %v417_v45 = vshll.u32 %v341_v24, 16  ;;  %v12612_v49 = vrot.slane %v414_v39, 7 }
  0x27   : > { %vm12577_vm5 = vmor %vm368_vm2, %vm369_vm3  ;;  %v711_v46 = vld [vmem:[#allocation2 + $0x24] sm:$0xf]  ;;  %v423_v50 = vshrl.u32 %v342_v35, 16  ;;  %v426_v51 = vshll.u32 %v342_v35, 16  ;;  %v346_v52 = vld [vmem:[%s12569_s30 + $0x28] sm:$0xf] }
  0x28   : > { %v17227_v15 = vsel %vm12577_vm5, 4294967295, %v17226_v15  ;;  %vm12586_vm6 = vmand %vm280_vm0, %vm693_vm4  ;;  %v403_v36 = vsel %vm12577_vm5, %v395_v28, %v402_v29  ;;  %v386_v42 = vsel %vm12577_vm5, %v378_v32, %v385_v33  ;;  %v345_v47 = vld [vmem:[%s12569_s30 + $0x24] sm:$0xf]  ;;  %v431_v53 = vshrl.u32 %v343_v40, 16  ;;  %v718_v60 = vld [vmem:[#allocation2 + $0x30] sm:$0xf] }
  0x29   : > { %17228 = vst [vmem:[#allocation4_spill] sm:$0xff] %v17227_v15  ;;  %v705_v37 = vsel %vm12586_vm6, %v394_v27, %v704_v18  ;;  %707 = vst.msk [vmem:[#allocation2 + $0x1c] sm:$0xf] %vm280_vm0, %v403_v36  ;;  %v696_v43 = vsel %vm12586_vm6, %v377_v31, %v695_v30  ;;  %v434_v54 = vshll.u32 %v343_v40, 16  ;;  %v440_v55 = vshrl.u32 %v344_v41, 16 }
  0x2a   : > { %706 = vst [vmem:[#allocation2 + $0x18] sm:$0xf] %v705_v37  ;;  %697 = vst [vmem:[#allocation2 + $0xc] sm:$0xf] %v696_v43  ;;  %v443_v56 = vshll.u32 %v344_v41, 16  ;;  %v419_v57 = vor.u32 %v417_v45, %v12612_v49  ;;  %v712_v58 = vsel %vm12586_vm6, %v411_v48, %v711_v46  ;;  %v425_v59 = vrot.slane %v423_v50, 7 }
  0x2b   : > { %698 = vst.msk [vmem:[#allocation2 + $0x10] sm:$0xf] %vm280_vm0, %v386_v42  ;;  %v448_v61 = vshrl.u32 %v345_v47, 16  ;;  %713 = vst [vmem:[#allocation2 + $0x24] sm:$0xf] %v712_v58  ;;  %v12618_v62 = vrot.slane %v431_v53, 7 }
  0x2c   : > { %v442_v63 = vrot.slane %v440_v55, 7  ;;  %v451_v1 = vshll.u32 %v345_v47, 16  ;;  %v347_v2 = vld [vmem:[%s12569_s30 + $0x2c] sm:$0xf]  ;;  %v457_v3 = vshrl.u32 %v346_v52, 16  ;;  %v420_v4 = vsel %vm12577_vm5, %v412_v44, %v419_v57  ;;  %vm12744_vm7 = vmand %vm283_vm1, %vm368_vm2 }
  0x2d   : > { %v428_v5 = vor.u32 %v426_v51, %v425_v59  ;;  %v429_v6 = vrot.slane %v425_v59, 4  ;;  %v12623_v7 = vrot.slane %v448_v61, 7  ;;  %v725_v8 = vld [vmem:[#allocation2 + $0x3c] sm:$0xf]  ;;  %714 = vst.msk [vmem:[#allocation2 + $0x28] sm:$0xf] %vm280_vm0, %v420_v4  ;;  %v436_v9 = vor.u32 %v434_v54, %v12618_v62  ;;  %vm14401_vm12 = vmand %vm4572_vm10, %vm368_vm2 }
  0x2e   : > { %v445_v10 = vor.u32 %v443_v56, %v442_v63  ;;  %v446_v11 = vrot.slane %v442_v63, 4  ;;  %v459_v12 = vrot.slane %v457_v3, 7  ;;  %v460_v18 = vshll.u32 %v346_v52, 16  ;;  %v732_v28 = vld [vmem:[#allocation2 + $0x48] sm:$0xf] }
  0x2f   : > { %v719_v14 = vsel %vm12586_vm6, %v428_v5, %v718_v60  ;;  %v453_v16 = vor.u32 %v451_v1, %v12623_v7  ;;  %v465_v19 = vshrl.u32 %v347_v2, 16  ;;  %v437_v25 = vsel %vm12577_vm5, %v429_v6, %v436_v9  ;;  %v348_v29 = vld [vmem:[%s12569_s30 + $0x30] sm:$0xf]  ;;  %v349_v34 = vld [vmem:[%s12569_s30 + $0x34] sm:$0xf] }
  0x30   : > { %720 = vst [vmem:[#allocation2 + $0x30] sm:$0xf] %v719_v14  ;;  %v726_v27 = vsel %vm12586_vm6, %v445_v10, %v725_v8  ;;  %721 = vst.msk [vmem:[#allocation2 + $0x34] sm:$0xf] %vm280_vm0, %v437_v25  ;;  %v462_v33 = vor.u32 %v460_v18, %v459_v12  ;;  %v350_v35 = vld [vmem:[%s12569_s30 + $0x38] sm:$0xf] }
  0x31   : > { %v10976_v13 = vld [vmem:[#allocation2 + $0x18] sm:$0xff]   ;;  %v454_v32 = vsel %vm12577_vm5, %v446_v11, %v453_v16  ;;  %727 = vst [vmem:[#allocation2 + $0x3c] sm:$0xf] %v726_v27  ;;  %v463_v37 = vrot.slane %v459_v12, 4  ;;  %v12643_v38 = vrot.slane %v465_v19, 7  ;;  %v468_v39 = vshll.u32 %v347_v2, 16 }
  0x32   : > { %v10790_v21 = vunpack.c.l.bf16 %v10976_v13  ;;  %v10791_v23 = vunpack.c.h.bf16 %v10976_v13  ;;  %v836_v24 = vld [vmem:[#allocation2 + $0xc] sm:$0xff]   ;;  %728 = vst.msk [vmem:[#allocation2 + $0x40] sm:$0xf] %vm280_vm0, %v454_v32  ;;  %v351_v40 = vld [vmem:[%s12569_s30 + $0x3c] sm:$0xf]  ;;  %v733_v42 = vsel %vm12586_vm6, %v462_v33, %v732_v28  ;;  %v474_v43 = vshrl.u32 %v348_v29, 16 }
  0x33   : > { %v868_v30 = vunpack.c.l.bf16 %v836_v24  ;;  %v869_v31 = vunpack.c.h.bf16 %v836_v24  ;;  %v477_v44 = vshll.u32 %v348_v29, 16  ;;  %v470_v45 = vor.u32 %v468_v39, %v12643_v38  ;;  %734 = vst [vmem:[#allocation2 + $0x48] sm:$0xf] %v733_v42  ;;  %v352_v50 = vld [vmem:[%s12569_s30 + $0x40] sm:$0xf] }
  0x34   : > { %v12640_v36 = vpack.i.bf16 %v10791_v23, %v10790_v21  ;;  %v482_v46 = vshrl.u32 %v349_v34, 16  ;;  %v485_v47 = vshll.u32 %v349_v34, 16  ;;  %v491_v48 = vshrl.u32 %v350_v35, 16  ;;  %v840_v51 = vld [vmem:[#allocation2 + $0x24] sm:$0xff]   ;;  %v739_v60 = vld [vmem:[#allocation2 + $0x54] sm:$0xf] }
  0x35   : > { %v11583_v41 = vpack.i.bf16 %v869_v31, %v868_v30  ;;  %v476_v52 = vrot.slane %v474_v43, 7  ;;  %v494_v53 = vshll.u32 %v350_v35, 16  ;;  %v499_v54 = vshrl.u32 %v351_v40, 16  ;;  %v746_v6 = vld [vmem:[#allocation2 + $0x60] sm:$0xf] }
  0x36   : > { %11590 = vperm.xlu1 %11588, %v12640_v36   ;;  %v502_v55 = vshll.u32 %v351_v40, 16  ;;  %v872_v56 = vunpack.c.l.bf16 %v840_v51  ;;  %v873_v57 = vunpack.c.h.bf16 %v840_v51  ;;  %v471_v58 = vsel %vm12577_vm5, %v463_v37, %v470_v45  ;;  %v353_v16 = vld [vmem:[%s12569_s30 + $0x44] sm:$0xf]  ;;  %v354_v18 = vld [vmem:[%s12569_s30 + $0x48] sm:$0xf] }
  0x37   : > { %11584 = vperm.xlu0 %11577, %v11583_v41   ;;  %v12653_v59 = vrot.slane %v482_v46, 7  ;;  %735 = vst.msk [vmem:[#allocation2 + $0x4c] sm:$0xf] %vm280_vm0, %v471_v58  ;;  %v479_v61 = vor.u32 %v477_v44, %v476_v52  ;;  %v480_v63 = vrot.slane %v476_v52, 4  ;;  %v493_v1 = vrot.slane %v491_v48, 7  ;;  %v10977_v4 = vld [vmem:[#allocation2 + $0x30] sm:$0xff]  }
  0x38   : > { %v12656_v2 = vrot.slane %v499_v54, 7  ;;  %v11594_v3 = vpack.i.bf16 %v873_v57, %v872_v56  ;;  %v508_v8 = vshrl.u32 %v352_v50, 16  ;;  %v511_v9 = vshll.u32 %v352_v50, 16  ;;  %v753_v30 = vld [vmem:[#allocation2 + $0x6c] sm:$0xf] }
  0x39   : > { %v487_v5 = vor.u32 %v485_v47, %v12653_v59  ;;  %v10794_v10 = vunpack.c.l.bf16 %v10977_v4  ;;  %v10795_v11 = vunpack.c.h.bf16 %v10977_v4  ;;  %v844_v12 = vld [vmem:[#allocation2 + $0x3c] sm:$0xff]   ;;  %v740_v13 = vsel %vm12586_vm6, %v479_v61, %v739_v60  ;;  %v355_v31 = vld [vmem:[%s12569_s30 + $0x4c] sm:$0xf]  ;;  %v356_v37 = vld [vmem:[%s12569_s30 + $0x50] sm:$0xf] }
  0x3a   : > { %v496_v14 = vor.u32 %v494_v53, %v493_v1  ;;  %11595 = vperm.xlu1 %11588, %v11594_v3   ;;  %v876_v19 = vunpack.c.l.bf16 %v844_v12  ;;  %v877_v21 = vunpack.c.h.bf16 %v844_v12  ;;  %741 = vst [vmem:[#allocation2 + $0x54] sm:$0xf] %v740_v13  ;;  %v497_v24 = vrot.slane %v493_v1, 4  ;;  %v357_v43 = vld [vmem:[%s12569_s30 + $0x54] sm:$0xf] }
  0x3b   : > { %v488_v23 = vsel %vm12577_vm5, %v480_v63, %v487_v5  ;;  %v12665_v25 = vpack.i.bf16 %v10795_v11, %v10794_v10  ;;  %v504_v27 = vor.u32 %v502_v55, %v12656_v2  ;;  %v510_v29 = vrot.slane %v508_v8, 7  ;;  %v760_v53 = vld [vmem:[#allocation2 + $0x78] sm:$0xf]  ;;  %v767_v10 = vld [vmem:[#allocation2 + $0x84] sm:$0xf] }
  0x3c   : > { %742 = vst.msk [vmem:[#allocation2 + $0x58] sm:$0xf] %vm280_vm0, %v488_v23  ;;  %v747_v28 = vsel %vm12586_vm6, %v496_v14, %v746_v6  ;;  %v11604_v32 = vpack.i.bf16 %v877_v21, %v876_v19  ;;  %v516_v33 = vshrl.u32 %v353_v16, 16  ;;  %v519_v34 = vshll.u32 %v353_v16, 16  ;;  %v358_v3 = vld [vmem:[%s12569_s30 + $0x58] sm:$0xf] }
  0x3d   : > { %748 = vst [vmem:[#allocation2 + $0x60] sm:$0xf] %v747_v28  ;;  %v525_v35 = vshrl.u32 %v354_v18, 16  ;;  %11600 = vperm.xlu0 %11577, %v12665_v25   ;;  %v505_v39 = vsel %vm12577_vm5, %v497_v24, %v504_v27  ;;  %v513_v40 = vor.u32 %v511_v9, %v510_v29  ;;  %v514_v41 = vrot.slane %v510_v29, 4  ;;  %v359_v11 = vld [vmem:[%s12569_s30 + $0x5c] sm:$0xf] }
  0x3e   : > { %v528_v42 = vshll.u32 %v354_v18, 16  ;;  %11605 = vperm.xlu1 %11588, %v11604_v32   ;;  %v10978_v44 = vld [vmem:[#allocation2 + $0x48] sm:$0xff]   ;;  %749 = vst.msk [vmem:[#allocation2 + $0x64] sm:$0xf] %vm280_vm0, %v505_v39  ;;  %v12678_v45 = vrot.slane %v516_v33, 7  ;;  %v533_v47 = vshrl.u32 %v355_v31, 16 }
  0x3f   : > { %v527_v46 = vrot.slane %v525_v35, 7  ;;  %v536_v48 = vshll.u32 %v355_v31, 16  ;;  %v10798_v50 = vunpack.c.l.bf16 %v10978_v44  ;;  %v10799_v51 = vunpack.c.h.bf16 %v10978_v44  ;;  %v360_v18 = vld [vmem:[%s12569_s30 + $0x60] sm:$0xf]  ;;  %v361_v27 = vld [vmem:[%s12569_s30 + $0x64] sm:$0xf] }
  0x40   : > { %v754_v52 = vsel %vm12586_vm6, %v513_v40, %v753_v30  ;;  %v542_v54 = vshrl.u32 %v356_v37, 16  ;;  %v521_v55 = vor.u32 %v519_v34, %v12678_v45  ;;  %v12683_v58 = vrot.slane %v533_v47, 7  ;;  %v774_v39 = vld [vmem:[#allocation2 + $0x90] sm:$0xf]  ;;  %v362_v40 = vld [vmem:[%s12569_s30 + $0x68] sm:$0xf] }
  0x41   : > { %755 = vst [vmem:[#allocation2 + $0x6c] sm:$0xf] %v754_v52  ;;  %v530_v56 = vor.u32 %v528_v42, %v527_v46  ;;  %v531_v57 = vrot.slane %v527_v46, 4  ;;  %v12685_v60 = vpack.i.bf16 %v10799_v51, %v10798_v50  ;;  %v545_v63 = vshll.u32 %v356_v37, 16  ;;  %v363_v46 = vld [vmem:[%s12569_s30 + $0x6c] sm:$0xf] }
  0x42   : > { %v544_v61 = vrot.slane %v542_v54, 7  ;;  %v550_v1 = vshrl.u32 %v357_v43, 16  ;;  %v522_v5 = vsel %vm12577_vm5, %v514_v41, %v521_v55  ;;  %v538_v6 = vor.u32 %v536_v48, %v12683_v58 }
  0x43   : > { %v848_v4 = vld [vmem:[#allocation2 + $0x54] sm:$0xff]   ;;  %v761_v8 = vsel %vm12586_vm6, %v530_v56, %v760_v53  ;;  %v553_v9 = vshll.u32 %v357_v43, 16  ;;  %11610 = vperm.xlu0 %11577, %v12685_v60   ;;  %756 = vst.msk [vmem:[#allocation2 + $0x70] sm:$0xf] %vm280_vm0, %v522_v5  ;;  %v559_v23 = vshrl.u32 %v358_v3, 16  ;;  %v562_v24 = vshll.u32 %v358_v3, 16 }
  0x44   : > { %v880_v12 = vunpack.c.l.bf16 %v848_v4  ;;  %v881_v13 = vunpack.c.h.bf16 %v848_v4  ;;  %762 = vst [vmem:[#allocation2 + $0x78] sm:$0xf] %v761_v8  ;;  %v547_v14 = vor.u32 %v545_v63, %v544_v61  ;;  %v548_v16 = vrot.slane %v544_v61, 4  ;;  %v781_v61 = vld [vmem:[#allocation2 + $0x9c] sm:$0xf] }
  0x45   : > { %v539_v19 = vsel %vm12577_vm5, %v531_v57, %v538_v6  ;;  %v12699_v21 = vrot.slane %v550_v1, 7  ;;  %v10979_v29 = vld [vmem:[#allocation2 + $0x60] sm:$0xff]   ;;  %v567_v31 = vshrl.u32 %v359_v11, 16  ;;  %v570_v32 = vshll.u32 %v359_v11, 16 }
  0x46   : > { %v11614_v28 = vpack.i.bf16 %v881_v13, %v880_v12  ;;  %763 = vst.msk [vmem:[#allocation2 + $0x7c] sm:$0xf] %vm280_vm0, %v539_v19  ;;  %v768_v30 = vsel %vm12586_vm6, %v547_v14, %v767_v10  ;;  %v10802_v33 = vunpack.c.l.bf16 %v10979_v29  ;;  %v10803_v34 = vunpack.c.h.bf16 %v10979_v29 }
  0x47   : > { %v555_v35 = vor.u32 %v553_v9, %v12699_v21  ;;  %769 = vst [vmem:[#allocation2 + $0x84] sm:$0xf] %v768_v30  ;;  %v561_v37 = vrot.slane %v559_v23, 7  ;;  %v12707_v41 = vrot.slane %v567_v31, 7  ;;  %v576_v42 = vshrl.u32 %v360_v18, 16 }
  0x48   : > { %11615 = vperm.xlu1 %11588, %v11614_v28   ;;  %v579_v43 = vshll.u32 %v360_v18, 16  ;;  %v584_v44 = vshrl.u32 %v361_v27, 16  ;;  %v12710_v47 = vpack.i.bf16 %v10803_v34, %v10802_v33  ;;  %v587_v55 = vshll.u32 %v361_v27, 16  ;;  %v364_v9 = vld [vmem:[%s12569_s30 + $0x70] sm:$0xf] }
  0x49   : > { %v556_v48 = vsel %vm12577_vm5, %v548_v16, %v555_v35  ;;  %v564_v50 = vor.u32 %v562_v24, %v561_v37  ;;  %v565_v51 = vrot.slane %v561_v37, 4  ;;  %v572_v52 = vor.u32 %v570_v32, %v12707_v41  ;;  %v365_v16 = vld [vmem:[%s12569_s30 + $0x74] sm:$0xf]  ;;  %v788_v27 = vld [vmem:[#allocation2 + $0xa8] sm:$0xf] }
  0x4a   : > { %770 = vst.msk [vmem:[#allocation2 + $0x88] sm:$0xf] %vm280_vm0, %v556_v48  ;;  %v578_v53 = vrot.slane %v576_v42, 7  ;;  %v12716_v54 = vrot.slane %v584_v44, 7  ;;  %11620 = vperm.xlu0 %11577, %v12710_v47   ;;  %v852_v56 = vld [vmem:[#allocation2 + $0x6c] sm:$0xff]   ;;  %v593_v63 = vshrl.u32 %v362_v40, 16 }
  0x4b   : > { %v775_v57 = vsel %vm12586_vm6, %v564_v50, %v774_v39  ;;  %v596_v1 = vshll.u32 %v362_v40, 16  ;;  %v601_v3 = vshrl.u32 %v363_v46, 16  ;;  %v884_v4 = vunpack.c.l.bf16 %v852_v56 }
  0x4c   : > { %v885_v5 = vunpack.c.h.bf16 %v852_v56  ;;  %v573_v6 = vsel %vm12577_vm5, %v565_v51, %v572_v52  ;;  %776 = vst [vmem:[#allocation2 + $0x90] sm:$0xf] %v775_v57  ;;  %v581_v8 = vor.u32 %v579_v43, %v578_v53  ;;  %v582_v11 = vrot.slane %v578_v53, 4  ;;  %v701_v51 = vld [vmem:[#allocation2 + $0x14] sm:$0x1] }
  0x4d   : > { %v10980_v10 = vld [vmem:[#allocation2 + $0x78] sm:$0xff]   ;;  %777 = vst.msk [vmem:[#allocation2 + $0x94] sm:$0xf] %vm280_vm0, %v573_v6  ;;  %v589_v12 = vor.u32 %v587_v55, %v12716_v54  ;;  %v595_v13 = vrot.slane %v593_v63, 7  ;;  %v12726_v14 = vrot.slane %v601_v3, 7  ;;  %v604_v31 = vshll.u32 %v363_v46, 16 }
  0x4e   : > { %v11624_v18 = vpack.i.bf16 %v885_v5, %v884_v4  ;;  %v10806_v19 = vunpack.c.l.bf16 %v10980_v10  ;;  %v10807_v23 = vunpack.c.h.bf16 %v10980_v10  ;;  %v782_v24 = vsel %vm12586_vm6, %v581_v8, %v781_v61  ;;  %v795_v53 = vld [vmem:[#allocation2 + $0xb4] sm:$0xf]  ;;  %v708_v6 = vld [vmem:[#allocation2 + $0x20] sm:$0x1]  ;;  %v715_v8 = vld [vmem:[#allocation2 + $0x2c] sm:$0x1] }
  0x4f   : > { %v590_v28 = vsel %vm12577_vm5, %v582_v11, %v589_v12  ;;  %783 = vst [vmem:[#allocation2 + $0x9c] sm:$0xf] %v782_v24  ;;  %v598_v29 = vor.u32 %v596_v1, %v595_v13  ;;  %v599_v30 = vrot.slane %v595_v13, 4  ;;  %v610_v33 = vshrl.u32 %v364_v9, 16  ;;  %v722_v11 = vld [vmem:[#allocation2 + $0x38] sm:$0x1] }
  0x50   : > { %11625 = vperm.xlu1 %11588, %v11624_v18   ;;  %v12733_v32 = vpack.i.bf16 %v10807_v23, %v10806_v19  ;;  %784 = vst.msk [vmem:[#allocation2 + $0xa0] sm:$0xf] %vm280_vm0, %v590_v28  ;;  %v613_v34 = vshll.u32 %v364_v9, 16  ;;  %v618_v35 = vshrl.u32 %v365_v16, 16  ;;  %v606_v39 = vor.u32 %v604_v31, %v12726_v14  ;;  %v729_v19 = vld [vmem:[#allocation2 + $0x44] sm:$0x1] }
  0x51   : > { %v856_v37 = vld [vmem:[#allocation2 + $0x84] sm:$0xff]   ;;  %v789_v40 = vsel %vm12586_vm6, %v598_v29, %v788_v27  ;;  %v621_v42 = vshll.u32 %v365_v16, 16  ;;  %v612_v46 = vrot.slane %v610_v33, 7  ;;  %v17231_v50 = vmov 0  ;;  %v736_v28 = vld [vmem:[#allocation2 + $0x50] sm:$0x1] }
  0x52   : > { %11630 = vperm.xlu0 %11577, %v12733_v32   ;;  %v888_v43 = vunpack.c.l.bf16 %v856_v37  ;;  %v889_v44 = vunpack.c.h.bf16 %v856_v37  ;;  %790 = vst [vmem:[#allocation2 + $0xa8] sm:$0xf] %v789_v40  ;;  %v12740_v48 = vrot.slane %v618_v35, 7  ;;  %v17232_v50 = vsel %vm12744_vm7, 4294967295, %v17231_v50  ;;  %v743_v29 = vld [vmem:[#allocation2 + $0x5c] sm:$0x1] }
  0x53   : > { %17233 = vst [vmem:[#allocation5_spill] sm:$0xff] %v17232_v50  ;;  %v607_v52 = vsel %vm12577_vm5, %v599_v30, %v606_v39  ;;  %v387_v55 = vrot.slane %v12590_v22, 4  ;;  %v615_v61 = vor.u32 %v613_v34, %v612_v46  ;;  %v616_v63 = vrot.slane %v612_v46, 4  ;;  %v12768_v30 = vld [vmem:[#allocation2 + $0xc] sm:$0xff]   ;;  %v750_v33 = vld [vmem:[#allocation2 + $0x68] sm:$0x1] }
  0x54   : > { %v11634_v56 = vpack.i.bf16 %v889_v44, %v888_v43  ;;  %v10981_v57 = vld [vmem:[#allocation2 + $0x90] sm:$0xff]   ;;  %791 = vst.msk [vmem:[#allocation2 + $0xac] sm:$0xf] %vm280_vm0, %v607_v52  ;;  %v623_v1 = vor.u32 %v621_v42, %v12740_v48  ;;  %v404_v10 = vrot.slane %v12581_v17, 4  ;;  %v421_v16 = vrot.slane %v12612_v49, 4 }
  0x55   : > { %v10810_v3 = vunpack.c.l.bf16 %v10981_v57  ;;  %v10811_v4 = vunpack.c.h.bf16 %v10981_v57  ;;  %v702_v5 = vsel %vm12744_vm7, %v387_v55, %v701_v51  ;;  %v796_v22 = vsel %vm12586_vm6, %v615_v61, %v795_v53  ;;  %v1128_v17 = vld [vmem:[#allocation2 + $0x8] sm:$0x1]  ;;  %v757_v39 = vld [vmem:[#allocation2 + $0x74] sm:$0x1]  ;;  %v764_v44 = vld [vmem:[#allocation2 + $0x80] sm:$0x1] }
  0x56   : > { %11635 = vperm.xlu1 %11588, %v11634_v56   ;;  %v624_v9 = vsel %vm12577_vm5, %v616_v63, %v623_v1  ;;  %703 = vst [vmem:[#allocation2 + $0x14] sm:$0x1] %v702_v5  ;;  %797 = vst [vmem:[#allocation2 + $0xb4] sm:$0xf] %v796_v22  ;;  %v438_v18 = vrot.slane %v12618_v62, 4  ;;  %v709_v27 = vsel %vm12744_vm7, %v404_v10, %v708_v6  ;;  %v455_v62 = vrot.slane %v12623_v7, 4 }
  0x57   : > { %v12760_v12 = vpack.i.bf16 %v10811_v4, %v10810_v3  ;;  %v860_v13 = vld [vmem:[#allocation2 + $0x9c] sm:$0xff]   ;;  %798 = vst.msk [vmem:[#allocation2 + $0xb8] sm:$0xf] %vm280_vm0, %v624_v9  ;;  %710 = vst [vmem:[#allocation2 + $0x20] sm:$0x1] %v709_v27  ;;  %v716_v31 = vsel %vm12744_vm7, %v421_v16, %v715_v8  ;;  %v472_v35 = vrot.slane %v12643_v38, 4  ;;  %v1176_v61 = vunpack.c.l.bf16 %v1128_v17 }
  0x58   : > { %v892_v23 = vunpack.c.l.bf16 %v860_v13  ;;  %v893_v24 = vunpack.c.h.bf16 %v860_v13  ;;  %v723_v49 = vsel %vm12744_vm7, %v438_v18, %v722_v11  ;;  %717 = vst [vmem:[#allocation2 + $0x2c] sm:$0x1] %v716_v31  ;;  %v489_v37 = vrot.slane %v12653_v59, 4  ;;  %v771_v55 = vld [vmem:[#allocation2 + $0x8c] sm:$0x1]  ;;  %v1135_v13 = vld [vmem:[#allocation2 + $0x24] sm:$0xff]  }
  0x59   : > { %11640 = vperm.xlu0 %11577, %v12760_v12   ;;  %724 = vst [vmem:[#allocation2 + $0x38] sm:$0x1] %v723_v49  ;;  %v730_v42 = vsel %vm12744_vm7, %v455_v62, %v729_v19  ;;  %v506_v43 = vrot.slane %v12656_v2, 4  ;;  %v737_v7 = vsel %vm12744_vm7, %v472_v35, %v736_v28  ;;  %v523_v53 = vrot.slane %v12678_v45, 4  ;;  %v778_v6 = vld [vmem:[#allocation2 + $0x98] sm:$0x1] }
  0x5a   : > { %v11644_v34 = vpack.i.bf16 %v893_v24, %v892_v23  ;;  %731 = vst [vmem:[#allocation2 + $0x44] sm:$0x1] %v730_v42  ;;  %v744_v38 = vsel %vm12744_vm7, %v489_v37, %v743_v29  ;;  %738 = vst [vmem:[#allocation2 + $0x50] sm:$0x1] %v737_v7  ;;  %v540_v2 = vrot.slane %v12683_v58, 4  ;;  %v1177_v63 = vunpack.c.l.bf16 %v12768_v30 }
  0x5b   : > { %v10982_v40 = vld [vmem:[#allocation2 + $0xa8] sm:$0xff]   ;;  %745 = vst [vmem:[#allocation2 + $0x5c] sm:$0x1] %v744_v38  ;;  %v751_v59 = vsel %vm12744_vm7, %v506_v43, %v750_v33  ;;  %v557_v1 = vrot.slane %v12699_v21, 4  ;;  %v758_v5 = vsel %vm12744_vm7, %v523_v53, %v757_v39  ;;  %v1178_v58 = vunpack.c.h.bf16 %v12768_v30  ;;  %v785_v22 = vld [vmem:[#allocation2 + $0xa4] sm:$0x1] }
  0x5c   : > { %11645 = vperm.xlu1 %11588, %v11644_v34   ;;  %v10814_v46 = vunpack.c.l.bf16 %v10982_v40  ;;  %v10815_v51 = vunpack.c.h.bf16 %v10982_v40  ;;  %752 = vst [vmem:[#allocation2 + $0x68] sm:$0x1] %v751_v59  ;;  %v765_v45 = vsel %vm12744_vm7, %v540_v2, %v764_v44  ;;  %759 = vst [vmem:[#allocation2 + $0x74] sm:$0x1] %v758_v5  ;;  %v574_v21 = vrot.slane %v12707_v41, 4  ;;  %v1141_v34 = vld [vmem:[#allocation2 + $0x3c] sm:$0xff]  }
  0x5d   : > { %v1131_v52 = vld [vmem:[#allocation2 + $0x14] sm:$0x1]  ;;  %766 = vst [vmem:[#allocation2 + $0x80] sm:$0x1] %v765_v45  ;;  %v772_v9 = vsel %vm12744_vm7, %v557_v1, %v771_v55  ;;  %v591_v16 = vrot.slane %v12716_v54, 4  ;;  %v11664_v23 = vpack.i.bf16 %v1177_v63, %v1176_v61  ;;  %v608_v27 = vrot.slane %v12726_v14, 4 }
  0x5e   : > { %v12788_v56 = vpack.i.bf16 %v10815_v51, %v10814_v46  ;;  %v864_v57 = vld [vmem:[#allocation2 + $0xb4] sm:$0xff]   ;;  %v1179_v8 = vunpack.c.l.bf16 %v1131_v52  ;;  %v1134_v11 = vld [vmem:[#allocation2 + $0x20] sm:$0x1]  ;;  %773 = vst [vmem:[#allocation2 + $0x8c] sm:$0x1] %v772_v9  ;;  %v779_v18 = vsel %vm12744_vm7, %v574_v21, %v778_v6  ;;  %v1183_v17 = vunpack.c.l.bf16 %v1135_v13  ;;  %v1159_v6 = vld [vmem:[#allocation2 + $0x84] sm:$0xff]  }
  0x5f   : > { %v896_v3 = vunpack.c.l.bf16 %v864_v57  ;;  %v897_v4 = vunpack.c.h.bf16 %v864_v57  ;;  %v792_v19 = vld [vmem:[#allocation2 + $0xb0] sm:$0x1]  ;;  %780 = vst [vmem:[#allocation2 + $0x98] sm:$0x1] %v779_v18  ;;  %v786_v24 = vsel %vm12744_vm7, %v591_v16, %v785_v22  ;;  %v799_v41 = vld [vmem:[#allocation2 + $0xbc] sm:$0x1]  ;;  %v1182_v29 = vunpack.c.l.bf16 %v1134_v11 }
  0x60   : > { %11650 = vperm.xlu0 %11577, %v12788_v56   ;;  %v11669_v28 = vpack.i.bf16 %v1179_v8, %v1178_v58  ;;  %v1137_v30 = vld [vmem:[#allocation2 + $0x2c] sm:$0x1]  ;;  %787 = vst [vmem:[#allocation2 + $0xa4] sm:$0x1] %v786_v24  ;;  %v625_v54 = vrot.slane %v12740_v48, 4  ;;  %v793_v31 = vsel %vm12744_vm7, %v608_v27, %v792_v19  ;;  %v1184_v62 = vunpack.c.h.bf16 %v1135_v13  ;;  %v1147_v40 = vld [vmem:[#allocation2 + $0x54] sm:$0xff]  }
  0x61   : > { %v11654_v10 = vpack.i.bf16 %v897_v4, %v896_v3  ;;  %794 = vst [vmem:[#allocation2 + $0xb0] sm:$0x1] %v793_v31  ;;  %v1185_v14 = vunpack.c.l.bf16 %v1137_v30  ;;  %v1140_v33 = vld [vmem:[#allocation2 + $0x38] sm:$0x1]  ;;  %v1143_v35 = vld [vmem:[#allocation2 + $0x44] sm:$0x1]  ;;  %v1189_v39 = vunpack.c.l.bf16 %v1141_v34  ;;  %v1190_v42 = vunpack.c.h.bf16 %v1141_v34 }
  0x62   : > { %v800_v49 = vsel %vm12744_vm7, %v625_v54, %v799_v41  ;;  %v1188_v48 = vunpack.c.l.bf16 %v1140_v33  ;;  %v1191_v43 = vunpack.c.l.bf16 %v1143_v35  ;;  %v1146_v44 = vld [vmem:[#allocation2 + $0x50] sm:$0x1]  ;;  %v1195_v38 = vunpack.c.l.bf16 %v1147_v40  ;;  %v1149_v52 = vld [vmem:[#allocation2 + $0x5c] sm:$0x1]  ;;  %v366_v57 = vld [vmem:[%s12569_s30 + $0x78] sm:$0xf] }
  0x63   : > { %11655 = vperm.xlu1 %11588, %v11654_v10   ;;  %801 = vst [vmem:[#allocation2 + $0xbc] sm:$0x1] %v800_v49  ;;  %v11684_v37 = vpack.i.bf16 %v1185_v14, %v1184_v62  ;;  %v1194_v7 = vunpack.c.l.bf16 %v1146_v44  ;;  %v1152_v59 = vld [vmem:[#allocation2 + $0x68] sm:$0x1]  ;;  %v1196_v53 = vunpack.c.h.bf16 %v1147_v40  ;;  %v1197_v2 = vunpack.c.l.bf16 %v1149_v52  ;;  %v1155_v55 = vld [vmem:[#allocation2 + $0x74] sm:$0x1] }
  0x64   : > { %11660 = vperm.xlu0 %11577, %v12593_v26   ;;  %v11679_v26 = vpack.i.bf16 %v1183_v17, %v1182_v29  ;;  %v11694_v46 = vpack.i.bf16 %v1189_v39, %v1188_v48  ;;  %v11699_v51 = vpack.i.bf16 %v1191_v43, %v1190_v42  ;;  %v367_v63 = vld [vmem:[%s12569_s30 + $0x7c] sm:$0xf]  ;;  %v1200_v3 = vunpack.c.l.bf16 %v1152_v59  ;;  %v802_v11 = vld [vmem:[#allocation2 + $0xc0] sm:$0xf]  ;;  %s10751_s30 = sshll.u32 %s17705_s25, 8 }
  0x65   : > { %v11709_v61 = vpack.i.bf16 %v1195_v38, %v1194_v7  ;;  %v11714_v1 = vpack.i.bf16 %v1197_v2, %v1196_v53  ;;  %v1203_v45 = vunpack.c.l.bf16 %v1155_v55  ;;  %v627_v58 = vshrl.u32 %v366_v57, 16  ;;  %v1161_v22 = vld [vmem:[#allocation2 + $0x8c] sm:$0x1]  ;;  %v1165_v54 = vld [vmem:[#allocation2 + $0x9c] sm:$0xff]   ;;  %v1710_v53 = vld [vmem:[#allocation2 + $0x24] sm:$0xe]  ;;  %s16970_s9 = scalar_lea.vmem %s17167_s7, %s10751_s30 }
  0x66   : > { %v630_v8 = vshll.u32 %v366_v57, 16  ;;  %v635_v9 = vshrl.u32 %v367_v63, 16  ;;  %v638_v21 = vshll.u32 %v367_v63, 16  ;;  %v1207_v16 = vunpack.c.l.bf16 %v1159_v6  ;;  %v1164_v30 = vld [vmem:[#allocation2 + $0x98] sm:$0x1] }
  0x67   : > { %11665 = vperm.xlu1 %11588, %v11664_v23   ;;  %v629_v10 = vrot.slane %v627_v58, 7  ;;  %v1208_v29 = vunpack.c.h.bf16 %v1159_v6  ;;  %v1209_v17 = vunpack.c.l.bf16 %v1161_v22  ;;  %v1167_v62 = vld [vmem:[#allocation2 + $0xa4] sm:$0x1]  ;;  %v1213_v20 = vunpack.c.l.bf16 %v1165_v54  ;;  %v1707_v44 = vld [vmem:[#allocation2] sm:$0xe] }
  0x68   : > { %11670 = vperm.xlu0 %11577, %v11669_v28   ;;  %v12818_v18 = vrot.slane %v635_v9, 7  ;;  %v1214_v33 = vunpack.c.h.bf16 %v1165_v54  ;;  %v1215_v34 = vunpack.c.l.bf16 %v1167_v62  ;;  %v1170_v35 = vld [vmem:[#allocation2 + $0xb0] sm:$0x1]  ;;  %v1723_v52 = vunpack.c.l.bf16 %v1707_v44  ;;  %v1711_v2 = vld [vmem:[#allocation2 + $0x30] sm:$0xe] }
  0x69   : > { %v632_v24 = vor.u32 %v630_v8, %v629_v10  ;;  %v633_v27 = vrot.slane %v629_v10, 4  ;;  %v11744_v14 = vpack.i.bf16 %v1209_v17, %v1208_v29  ;;  %v1218_v40 = vunpack.c.l.bf16 %v1170_v35  ;;  %v1712_v55 = vld [vmem:[#allocation2 + $0x3c] sm:$0xe]  ;;  %v1713_v57 = vld [vmem:[#allocation2 + $0x48] sm:$0xe] }
  0x6a   : > { %17234 = vst [vmem:[#allocation6_spill] sm:$0xff] %v12818_v18  ;;  %v640_v41 = vor.u32 %v638_v21, %v12818_v18  ;;  %v11759_v39 = vpack.i.bf16 %v1215_v34, %v1214_v33  ;;  %v1173_v43 = vld [vmem:[#allocation2 + $0xbc] sm:$0x1]  ;;  %v1715_v63 = vld [vmem:[#allocation2 + $0x60] sm:$0xe]  ;;  %v1728_v6 = vunpack.c.l.bf16 %v1712_v55  ;;  %v1729_v58 = vunpack.c.l.bf16 %v1713_v57  ;;  %v2076_v34 = vld [vmem:[#allocation2 + $0x54] sm:$0xff]  }
  0x6b   : > { %11675 = vperm.xlu1 %11588, %v12640_v36   ;;  %v1153_v36 = vld [vmem:[#allocation2 + $0x6c] sm:$0xff]   ;;  %v803_v28 = vsel %vm12586_vm6, %v632_v24, %v802_v11  ;;  %v1221_v7 = vunpack.c.l.bf16 %v1173_v43  ;;  %v1731_v9 = vunpack.c.l.bf16 %v1715_v63  ;;  %v1717_v22 = vld [vmem:[#allocation2 + $0x78] sm:$0xe]  ;;  %v1718_v10 = vld [vmem:[#allocation2 + $0x84] sm:$0xe]  ;;  %vm4569_vm11 = vcmask 519168  }
  0x6c   : > { %11680 = vperm.xlu0 %11577, %v11679_v26   ;;  %v1201_v4 = vunpack.c.l.bf16 %v1153_v36  ;;  %v1202_v5 = vunpack.c.h.bf16 %v1153_v36  ;;  %v641_v31 = vsel %vm12577_vm5, %v633_v27, %v640_v41  ;;  %804 = vst [vmem:[#allocation2 + $0xc0] sm:$0xf] %v803_v28  ;;  %v1212_v26 = vunpack.c.l.bf16 %v1164_v30  ;;  %v1709_v36 = vld [vmem:[#allocation2 + $0x18] sm:$0xe]  ;;  %v1719_v11 = vld [vmem:[#allocation2 + $0x90] sm:$0xe]  ;;  %vm14455_vm13 = vmand %vm4569_vm11, %vm693_vm4 }
  0x6d   : > { %805 = vst.msk [vmem:[#allocation2 + $0xc4] sm:$0xf] %vm280_vm0, %v641_v31  ;;  %v1722_v24 = vld [vmem:[#allocation2 + $0xb4] sm:$0xe]  ;;  %v1733_v41 = vunpack.c.l.bf16 %v1717_v22  ;;  %v10990_v28 = vld [vmem:[#allocation2 + $0x18] sm:$0xff]   ;;  %v1734_v30 = vunpack.c.l.bf16 %v1718_v10  ;;  %v1735_v54 = vunpack.c.l.bf16 %v1719_v11  ;;  %v2068_v31 = vld [vmem:[#allocation2 + $0x24] sm:$0xff]  }
  0x6e   : > { %v11724_v13 = vpack.i.bf16 %v1201_v4, %v1200_v3  ;;  %v11729_v19 = vpack.i.bf16 %v1203_v45, %v1202_v5  ;;  %v11754_v48 = vpack.i.bf16 %v1213_v20, %v1212_v26  ;;  %v1725_v4 = vunpack.c.l.bf16 %v1709_v36  ;;  %v2072_v33 = vld [vmem:[#allocation2 + $0x3c] sm:$0xff]  }
  0x6f   : > { %11685 = vperm.xlu1 %11588, %v11684_v37   ;;  %v1171_v37 = vld [vmem:[#allocation2 + $0xb4] sm:$0xff]   ;;  %v1727_v45 = vunpack.c.l.bf16 %v1711_v2  ;;  %v1738_v26 = vunpack.c.l.bf16 %v1722_v24  ;;  %v2100_v43 = vunpack.c.l.bf16 %v2068_v31  ;;  %v2101_v44 = vunpack.c.h.bf16 %v2068_v31  ;;  %v2088_v57 = vld [vmem:[#allocation2 + $0x9c] sm:$0xff]  }
  0x70   : > { %11690 = vperm.xlu0 %11577, %v12665_v25   ;;  %v1158_v25 = vld [vmem:[#allocation2 + $0x80] sm:$0x1]  ;;  %v1219_v42 = vunpack.c.l.bf16 %v1171_v37  ;;  %v2120_v10 = vunpack.c.l.bf16 %v2088_v57  ;;  %v2121_v11 = vunpack.c.h.bf16 %v2088_v57  ;;  %vm5293_vm14 = vcmask 523264  }
  0x71   : > { %v1206_v23 = vunpack.c.l.bf16 %v1158_v25  ;;  %v1726_v25 = vunpack.c.l.bf16 %v1710_v53  ;;  %v11789_v27 = vpack.i.bf16 %v1728_v6, %v1727_v45  ;;  %v12845_v6 = vpack.i.bf16 %v2101_v44, %v2100_v43 }
  0x72   : > { %v11769_v38 = vpack.i.bf16 %v1219_v42, %v1218_v40  ;;  %v2084_v40 = vld [vmem:[#allocation2 + $0x84] sm:$0xff]   ;;  %v1058_v42 = vlaneseq  ;;  %vm5583_vm15 = vsmask.f32 3328  ;;  %vm5584_vm0 = vsmask.f32 7440 }
  0x73   : > { %11695 = vperm.xlu1 %11588, %v11694_v46   ;;  %v11739_v49 = vpack.i.bf16 %v1207_v16, %v1206_v23  ;;  %v1708_v46 = vld [vmem:[#allocation2 + $0xc] sm:$0xe]  ;;  %v11784_v16 = vpack.i.bf16 %v1726_v25, %v1725_v4  ;;  %v1721_v23 = vld [vmem:[#allocation2 + $0xa8] sm:$0xe]  ;;  %v2116_v2 = vunpack.c.l.bf16 %v2084_v40  ;;  %v2117_v55 = vunpack.c.h.bf16 %v2084_v40  ;;  %v2092_v25 = vld [vmem:[#allocation2 + $0xb4] sm:$0xff]  }
  0x74   : > { %11700 = vperm.xlu0 %11577, %v11699_v51   ;;  %v1220_v51 = vunpack.c.h.bf16 %v1171_v37  ;;  %v1724_v59 = vunpack.c.l.bf16 %v1708_v46  ;;  %v12832_v37 = vunpack.c.l.bf16 %v10990_v28  ;;  %v1059_v4 = vshrl.u32 %v1058_v42, 7  ;;  %v2943_v40 = vld [vmem:[#allocation2 + $0x60] sm:$0xe]  ;;  %vm15340_vm1 = vmor %vm5583_vm15, %vm5584_vm0 }
  0x75   : > { %v12859_v24 = vpack.i.bf16 %v2117_v55, %v2116_v2  ;;  %v12863_v55 = vpack.i.bf16 %v2121_v11, %v2120_v10  ;;  %v3608_v11 = vld [vmem:[#allocation2 + $0x74] sm:$0x1]  ;;  %vm6356_vm2 = vcmask 1042432   ;;  %vm6357_vm3 = vcmask 1046532  }
  0x76   : > { %v11774_v3 = vpack.i.bf16 %v1221_v7, %v1220_v51  ;;  %v11779_v5 = vpack.i.bf16 %v1724_v59, %v1723_v52  ;;  %v2104_v7 = vunpack.c.l.bf16 %v2072_v33  ;;  %v2108_v52 = vunpack.c.l.bf16 %v2076_v34  ;;  %vm15381_vm4 = vmor %vm6356_vm2, %vm6357_vm3 }
  0x77   : > { %11705 = vperm.xlu1 %11588, %v12685_v60   ;;  %v2109_v59 = vunpack.c.h.bf16 %v2076_v34 }
  0x78   : > { %11710 = vperm.xlu0 %11577, %v11709_v61   ;;  %v1714_v61 = vld [vmem:[#allocation2 + $0x54] sm:$0xe] }
  0x79   : > { %v1730_v8 = vunpack.c.l.bf16 %v1714_v61  ;;  %v11804_v61 = vpack.i.bf16 %v1734_v30, %v1733_v41  ;;  %v12855_v22 = vpack.i.bf16 %v2109_v59, %v2108_v52  ;;  %v2124_v41 = vunpack.c.l.bf16 %v2092_v25  ;;  %v2944_v52 = vld [vmem:[#allocation2 + $0x6c] sm:$0xe] }
  0x7a   : > { %v12861_v30 = vsub.s32 0, %v1059_v4 }
  0x7b   : > { %11715 = vperm.xlu1 %11588, %v11714_v1   ;;  %v1716_v1 = vld [vmem:[#allocation2 + $0x6c] sm:$0xe]  ;;  %v11794_v29 = vpack.i.bf16 %v1730_v8, %v1729_v58 }
  0x7c   : > { %11720 = vperm.xlu0 %11577, %v12710_v47   ;;  %v1732_v21 = vunpack.c.l.bf16 %v1716_v1  ;;  %v2356_v8 = vld [vmem:[#allocation2 + $0xc] sm:$0xff]   ;;  %17236 = vst [vmem:[#allocation8_spill] sm:$0xff] %v12861_v30 }
  0x7d   : > { %v2404_v31 = vunpack.c.l.bf16 %v2356_v8 }
  0x7e   : > { %v11799_v17 = vpack.i.bf16 %v1732_v21, %v1731_v9  ;;  %v2362_v9 = vld [vmem:[#allocation2 + $0x24] sm:$0xff]  }
  0x7f   : > { %11725 = vperm.xlu1 %11588, %v11724_v13   ;;  %v2064_v13 = vld [vmem:[#allocation2 + $0xc] sm:$0xff]   ;;  %v2410_v34 = vunpack.c.l.bf16 %v2362_v9 }
  0x80   : > { %11730 = vperm.xlu0 %11577, %v11729_v19   ;;  %v1720_v19 = vld [vmem:[#allocation2 + $0x9c] sm:$0xe]  ;;  %v2096_v20 = vunpack.c.l.bf16 %v2064_v13  ;;  %v2097_v35 = vunpack.c.h.bf16 %v2064_v13  ;;  %v2358_v13 = vld [vmem:[#allocation2 + $0x14] sm:$0x1] }
  0x81   : > { %v1736_v62 = vunpack.c.l.bf16 %v1720_v19  ;;  %v11001_v19 = vld [vmem:[#allocation2 + $0x60] sm:$0xff]  }
  0x82   : > { %v10894_v44 = vunpack.c.l.bf16 %v11001_v19  ;;  %v10895_v59 = vunpack.c.h.bf16 %v11001_v19  ;;  %v810_v19 = vld [vmem:[%s17161_s1 + $0x1] sm:$0x1] }
  0x83   : > { %11735 = vperm.xlu1 %11588, %v12733_v32   ;;  %v11809_v63 = vpack.i.bf16 %v1736_v62, %v1735_v54  ;;  %v2125_v54 = vunpack.c.h.bf16 %v2092_v25  ;;  %v2405_v62 = vunpack.c.h.bf16 %v2356_v8  ;;  %v2960_v8 = vunpack.c.l.bf16 %v2944_v52  ;;  %v3587_v52 = vld [vmem:[#allocation2 + $0x20] sm:$0x1] }
  0x84   : > { %11740 = vperm.xlu0 %11577, %v11739_v49   ;;  %v12830_v49 = vld [vmem:[#allocation2 + $0x30] sm:$0xff]  }
  0x85   : > { %v10854_v46 = vunpack.c.l.bf16 %v12830_v49  ;;  %v10855_v51 = vunpack.c.h.bf16 %v12830_v49  ;;  %v12865_v57 = vpack.i.bf16 %v2125_v54, %v2124_v41  ;;  %v12870_v4 = vpack.i.bf16 %v2405_v62, %v2404_v31  ;;  %v3611_v54 = vld [vmem:[#allocation2 + $0x80] sm:$0x1]  ;;  %v4172_v49 = vld [vmem:[#allocation2 + $0x6c] sm:$0xe] }
  0x86   : > { %v10997_v31 = vld [vmem:[#allocation2 + $0xc0] sm:$0xff]  }
  0x87   : > { %11745 = vperm.xlu1 %11588, %v11744_v14   ;;  %v1737_v14 = vunpack.c.l.bf16 %v1721_v23  ;;  %v12851_v58 = vpack.i.bf16 %v10855_v51, %v10854_v46 }
  0x88   : > { %11750 = vperm.xlu0 %11577, %v12760_v12  }
  0x89   : > { %v11814_v1 = vpack.i.bf16 %v1738_v26, %v1737_v14  ;;  %v2379_v14 = vld [vmem:[#allocation2 + $0x68] sm:$0x1]  ;;  %v2380_v26 = vld [vmem:[#allocation2 + $0x6c] sm:$0xff]  }
  0x8a   : > { %v2429_v2 = vunpack.c.h.bf16 %v2380_v26 }
  0x8b   : > { %11755 = vperm.xlu1 %11588, %v11754_v48   ;;  %v12834_v48 = vunpack.c.h.bf16 %v10990_v28  ;;  %v2364_v28 = vld [vmem:[#allocation2 + $0x2c] sm:$0x1] }
  0x8c   : > { %11760 = vperm.xlu0 %11577, %v11759_v39   ;;  %v2080_v39 = vld [vmem:[#allocation2 + $0x6c] sm:$0xff]   ;;  %v2412_v42 = vunpack.c.l.bf16 %v2364_v28 }
  0x8d   : > { %v2112_v36 = vunpack.c.l.bf16 %v2080_v39  ;;  %v2113_v53 = vunpack.c.h.bf16 %v2080_v39  ;;  %v12843_v45 = vpack.i.bf16 %v12834_v48, %v12832_v37  ;;  %v2382_v39 = vld [vmem:[#allocation2 + $0x74] sm:$0x1] }
  0x8f   : > { %11765 = vperm.xlu1 %11588, %v12788_v56   ;;  %17235 = vst [vmem:[#allocation7_spill] sm:$0xff] %v12843_v45  ;;  %v12857_v23 = vpack.i.bf16 %v2113_v53, %v2112_v36  ;;  %v2427_v36 = vunpack.c.l.bf16 %v2379_v14  ;;  %v2428_v53 = vunpack.c.l.bf16 %v2380_v26 }
  0x90   : > { %11770 = vperm.xlu0 %11577, %v11769_v38   ;;  %v2105_v38 = vunpack.c.h.bf16 %v2072_v33 }
  0x92   : > { %v12853_v21 = vpack.i.bf16 %v2105_v38, %v2104_v7  ;;  %v2936_v38 = vld [vmem:[#allocation2 + $0xc] sm:$0xe] }
  0x93   : > { %11775 = vperm.xlu1 %11588, %v11774_v3   ;;  %v809_v3 = vld [vmem:[%s17161_s1] sm:$0x1]  ;;  %v2952_v25 = vunpack.c.l.bf16 %v2936_v38  ;;  %v3659_v38 = vunpack.c.l.bf16 %v3611_v54  ;;  %v2946_v54 = vld [vmem:[#allocation2 + $0x84] sm:$0xe] }
  0x94   : > { %11780 = vperm.xlu0 %11577, %v11779_v5   ;;  %v11819_v5 = vpack.i.bf16 %v2097_v35, %v2096_v20  ;;  %v2406_v20 = vunpack.c.l.bf16 %v2358_v13  ;;  %v2411_v35 = vunpack.c.h.bf16 %v2362_v9  ;;  %v3606_v9 = vld [vmem:[#allocation2 + $0x6c] sm:$0xff]  }
  0x95   : > { %v3307_v13 = vld [vmem:[#allocation2 + $0x6c] sm:$0xff]   ;;  %v3654_v14 = vunpack.c.l.bf16 %v3606_v9  ;;  %v3655_v26 = vunpack.c.h.bf16 %v3606_v9 }
  0x96   : > { %v12878_v10 = vpack.i.bf16 %v2411_v35, %v2410_v34  ;;  %v3656_v34 = vunpack.c.l.bf16 %v3608_v11  ;;  %v819_v35 = vunpack.c.l.bf16 %v810_v19  ;;  %v3635_v19 = vunpack.c.l.bf16 %v3587_v52 }
  0x97   : > { %11785 = vperm.xlu1 %11588, %v11784_v16   ;;  %v2361_v16 = vld [vmem:[#allocation2 + $0x20] sm:$0x1]  ;;  %v2962_v52 = vunpack.c.l.bf16 %v2946_v54  ;;  %v3617_v54 = vld [vmem:[#allocation2 + $0x98] sm:$0x1] }
  0x98   : > { %11790 = vperm.xlu0 %11577, %v11789_v27   ;;  %v818_v27 = vunpack.c.l.bf16 %v809_v3  ;;  %v2409_v33 = vunpack.c.l.bf16 %v2361_v16  ;;  %v12873_v16 = vpack.i.bf16 %v12832_v37, %v2406_v20  ;;  %v3339_v20 = vunpack.c.l.bf16 %v3307_v13 }
  0x9a   : > { %v12868_v3 = vrot.slane %v818_v27, %v12861_v30  ;;  %v811_v27 = vld [vmem:[%s17161_s1 + $0x2] sm:$0x1]  ;;  %v12916_v11 = vpack.i.bf16 %v3339_v20, %v3656_v34  ;;  %v2938_v20 = vld [vmem:[#allocation2 + $0x24] sm:$0xe] }
  0x9b   : > { %11795 = vperm.xlu1 %11588, %v11794_v29   ;;  %v2367_v29 = vld [vmem:[#allocation2 + $0x38] sm:$0x1]  ;;  %v2954_v0 = vunpack.c.l.bf16 %v2938_v20 }
  0x9c   : > { %11800 = vperm.xlu0 %11577, %v11799_v17   ;;  %v2368_v17 = vld [vmem:[#allocation2 + $0x3c] sm:$0xf]  ;;  %v2415_v43 = vunpack.c.l.bf16 %v2367_v29  ;;  %v12896_v29 = vpack.i.bf16 %v2427_v36, %v10895_v59  ;;  %v2945_v59 = vld [vmem:[#allocation2 + $0x78] sm:$0xe] }
  0x9d   : > { %v2416_v7 = vunpack.c.l.bf16 %v2368_v17  ;;  %v12898_v17 = vpack.i.bf16 %v2429_v2, %v2428_v53  ;;  %v4173_v36 = vld [vmem:[#allocation2 + $0x78] sm:$0xe]  ;;  %v10878_v53 = vunpack.c.l.bf16 %v10997_v31  ;;  %v10879_v2 = vunpack.c.h.bf16 %v10997_v31 }
  0x9e   : > { %v12892_v41 = vpack.i.bf16 %v2415_v43, %v10855_v51  ;;  %v12904_v51 = vpack.i.bf16 %v2952_v25, %v2960_v8  ;;  %v3340_v43 = vunpack.c.h.bf16 %v3307_v13  ;;  %v12913_v25 = vpack.i.bf16 %v3655_v26, %v3654_v14  ;;  %v4165_v31 = vld [vmem:[#allocation2 + $0x18] sm:$0xe] }
  0x9f   : > { %11805 = vperm.xlu1 %11588, %v11804_v61   ;;  %v2430_v61 = vunpack.c.l.bf16 %v2382_v39  ;;  %v12894_v28 = vpack.i.bf16 %v10894_v44, %v2416_v7  ;;  %v820_v39 = vunpack.c.l.bf16 %v811_v27  ;;  %v2961_v27 = vunpack.c.l.bf16 %v2945_v59 }
  0xa0   : > { %11810 = vperm.xlu0 %11577, %v11809_v63   ;;  %v2959_v63 = vunpack.c.l.bf16 %v2943_v40  ;;  %v2386_v40 = vld [vmem:[#allocation2 + $0x84] sm:$0xff]   ;;  %v4181_v59 = vunpack.c.l.bf16 %v4165_v31 }
  0xa1   : > { %v2434_v8 = vunpack.c.l.bf16 %v2386_v40  ;;  %v2435_v9 = vunpack.c.h.bf16 %v2386_v40 }
  0xa2   : > { %v12901_v62 = vpack.i.bf16 %v2959_v63, %v2430_v61  ;;  %v12911_v63 = vpop.permute.xlu0 %11579 }
  0xa3   : > { %11815 = vperm.xlu1 %11588, %v11814_v1   ;;  %v12876_v1 = vpack.i.bf16 %v2409_v33, %v12834_v48  ;;  %v2385_v33 = vld [vmem:[#allocation2 + $0x80] sm:$0x1] }
  0xa4   : > { %11820 = vperm.xlu0 %11577, %v11819_v5   ;;  %v12882_v5 = vpack.i.bf16 %v10854_v46, %v2412_v42  ;;  %v11016_v46 = vld [vmem:[#allocation2 + $0x78] sm:$0xff]   ;;  %v2388_v42 = vld [vmem:[#allocation2 + $0x8c] sm:$0x1]  ;;  %v2433_v61 = vunpack.c.l.bf16 %v2385_v33  ;;  %v12919_v33 = vrot.slane %v819_v35, %v12861_v30 }
  0xa5   : > { %v12906_v44 = vunpack.c.l.bf16 %v11016_v46  ;;  %v12908_v7 = vunpack.c.h.bf16 %v11016_v46  ;;  %v2436_v13 = vunpack.c.l.bf16 %v2388_v42  ;;  %v4189_v46 = vunpack.c.l.bf16 %v4173_v36  ;;  %v3311_v36 = vld [vmem:[#allocation2 + $0x84] sm:$0xff]  }
  0xa6   : > { %v12941_v42 = vpack.i.bf16 %v2435_v9, %v2434_v8  ;;  %v3343_v50 = vunpack.c.l.bf16 %v3311_v36 }
  0xa7   : > { %11825 = vperm.xlu1 %11588, %v12843_v45   ;;  %v12925_v14 = vpack.i.bf16 %v12906_v44, %v3340_v43  ;;  %v12932_v34 = vpack.i.bf16 %v3659_v38, %v12908_v7  ;;  %v12935_v40 = vpack.i.bf16 %v12906_v44, %v2433_v61  ;;  %v12944_v43 = vpack.i.bf16 %v12832_v37, %v2436_v13 }
  0xa8   : > { %11830 = vperm.xlu0 %11577, %v12845_v6   ;;  %v4188_v6 = vunpack.c.l.bf16 %v4172_v49  ;;  %v12929_v49 = vpack.i.bf16 %v10879_v2, %v10878_v53  ;;  %v3614_v53 = vld [vmem:[#allocation2 + $0x8c] sm:$0x1]  ;;  %v12948_v2 = vpack.i.bf16 %v3635_v19, %v12834_v48  ;;  %v12950_v61 = vpack.i.bf16 %v2961_v27, %v4189_v46  ;;  %v12961_v46 = vld [vmem:[%s17162_s2] ss:$0 sm:$0xff] }
  0xa9   : > { %v3662_v18 = vunpack.c.l.bf16 %v3614_v53  ;;  %v3344_v19 = vunpack.c.h.bf16 %v3311_v36  ;;  %v3588_v53 = vld [vmem:[#allocation2 + $0x24] sm:$0xff]  }
  0xaa   : > { %v12938_v35 = vpack.i.bf16 %v4188_v6, %v12908_v7 }
  0xab   : > { %11835 = vperm.xlu1 %11588, %v12851_v58   ;;  %v12922_v58 = vrot.slane %v820_v39, %v12861_v30  ;;  %v3612_v39 = vld [vmem:[#allocation2 + $0x84] sm:$0xff]   ;;  %v12985_v45 = vpack.i.bf16 %v3343_v50, %v3662_v18 }
  0xac   : > { %11840 = vperm.xlu0 %11577, %v12853_v21   ;;  %v2937_v21 = vld [vmem:[#allocation2 + $0x18] sm:$0xe]  ;;  %v3660_v37 = vunpack.c.l.bf16 %v3612_v39  ;;  %v3661_v13 = vunpack.c.h.bf16 %v3612_v39  ;;  %v2391_v39 = vld [vmem:[#allocation2 + $0x98] sm:$0x1] }
  0xad   : > { %v2953_v6 = vunpack.c.l.bf16 %v2937_v21  ;;  %17244 = vst [vmem:[#allocation16_spill] sm:$0xff] %v12985_v45 }
  0xaf   : > { %11845 = vperm.xlu1 %11588, %v12685_v60   ;;  %v11017_v60 = vld [vmem:[#allocation2 + $0x90] sm:$0xff]  }
  0xb0   : > { %11850 = vperm.xlu0 %11577, %v12855_v22   ;;  %v12955_v27 = vunpack.c.l.bf16 %v11017_v60  ;;  %v12965_v20 = vunpack.c.h.bf16 %v11017_v60 }
  0xb1   : > { %v11591_v38 = vpop.permute.xlu1 %11590 }
  0xb2   : > { %v11593_v8 = vunpack.i.h.bf16 %v11591_v38  ;;  %v11592_v9 = vunpack.i.l.bf16 %v11591_v38  ;;  %v11585_v26 = vpop.permute.xlu0 %11584  ;;  %17237 = vst [vmem:[#allocation9_spill] sm:$0xff] %v12955_v27  ;;  %17238 = vst [vmem:[#allocation10_spill] sm:$0xff] %v12965_v20 }
  0xb3   : > { %v11587_v31 = vunpack.i.h.bf16 %v11585_v26  ;;  %v11586_v15 = vunpack.i.l.bf16 %v11585_v26  ;;  %11855 = vperm.xlu1 %11588, %v12710_v47   ;;  %v3665_v47 = vunpack.c.l.bf16 %v3617_v54  ;;  %v12983_v54 = vpack.i.bf16 %v3661_v13, %v3660_v37 }
  0xb4   : > { %v1067_v48 = vmul.f32 %v11593_v8, %v12868_v3  ;;  %v1066_v22 = vmul.f32 %v11592_v9, %v12868_v3  ;;  %11860 = vperm.xlu0 %11577, %v12857_v23   ;;  %v12973_v23 = vpack.i.bf16 %v4181_v59, %v2962_v52  ;;  %v12975_v8 = vpack.i.bf16 %v2954_v0, %v2953_v6  ;;  %v3590_v9 = vld [vmem:[#allocation2 + $0x2c] sm:$0x1] }
  0xb5   : > { %v1065_v26 = vmul.f32 %v11587_v31, %v12868_v3  ;;  %v1064_v21 = vmul.f32 %v11586_v15, %v12868_v3  ;;  %v11596_v60 = vpop.permute.xlu1 %11595  ;;  %17243 = vst [vmem:[#allocation15_spill] sm:$0xff] %v12983_v54  ;;  %v2439_v0 = vunpack.c.l.bf16 %v2391_v39  ;;  %v3636_v6 = vunpack.c.l.bf16 %v3588_v53  ;;  %v3295_v39 = vld [vmem:[#allocation2 + $0x24] sm:$0xff]  }
  0xb6   : > { %v12968_v36 = vadd.f32 %v12961_v46, %v1067_v48  ;;  %v12971_v38 = vadd.f32 %v12961_v46, %v1066_v22  ;;  %v2392_v48 = vld [vmem:[#allocation2 + $0x9c] sm:$0xff]   ;;  %v11598_v52 = vunpack.i.h.bf16 %v11596_v60  ;;  %v11597_v59 = vunpack.i.l.bf16 %v11596_v60  ;;  %v2394_v22 = vld [vmem:[#allocation2 + $0xa4] sm:$0x1] }
  0xb7   : > { %v12978_v31 = vadd.f32 %v12961_v46, %v1065_v26  ;;  %v12981_v15 = vadd.f32 %v12961_v46, %v1064_v21  ;;  %11865 = vperm.xlu1 %11588, %v12733_v32   ;;  %v12990_v26 = vpack.i.bf16 %v12955_v27, %v3344_v19  ;;  %v12993_v21 = vpack.i.bf16 %v3665_v47, %v12965_v20  ;;  %v12997_v19 = vld [vmem:[#allocation2 + $0x30] sm:$0xff]  }
  0xb8   : > { %17239 = vst [vmem:[#allocation11_spill] sm:$0xff] %v12968_v36  ;;  %17240 = vst [vmem:[#allocation12_spill] sm:$0xff] %v12971_v38  ;;  %v4174_v36 = vld [vmem:[#allocation2 + $0x84] sm:$0xe]  ;;  %11870 = vperm.xlu0 %11577, %v12859_v24   ;;  %v3637_v37 = vunpack.c.h.bf16 %v3588_v53  ;;  %v3638_v50 = vunpack.c.l.bf16 %v3590_v9  ;;  %v1069_v18 = vmul.f32 %v11598_v52, %v12868_v3  ;;  %v1068_v13 = vmul.f32 %v11597_v59, %v12868_v3  ;;  %v11601_v32 = vpop.permute.xlu0 %11600 }
  0xb9   : > { %17241 = vst [vmem:[#allocation13_spill] sm:$0xff] %v12978_v31  ;;  %17242 = vst [vmem:[#allocation14_spill] sm:$0xff] %v12981_v15  ;;  %v2440_v38 = vunpack.c.l.bf16 %v2392_v48  ;;  %v4190_v60 = vunpack.c.l.bf16 %v4174_v36  ;;  %v11603_v31 = vunpack.i.h.bf16 %v11601_v32  ;;  %v11602_v15 = vunpack.i.l.bf16 %v11601_v32  ;;  %v11606_v45 = vpop.permute.xlu1 %11605 }
  0xba   : > { %17245 = vst [vmem:[#allocation17_spill] sm:$0xff] %v12993_v21  ;;  %v2441_v24 = vunpack.c.h.bf16 %v2392_v48  ;;  %v2442_v54 = vunpack.c.l.bf16 %v2394_v22  ;;  %v13001_v47 = vadd.f32 %v12961_v46, %v1069_v18  ;;  %v13004_v53 = vadd.f32 %v12961_v46, %v1068_v13 }
  0xbb   : > { %11875 = vperm.xlu1 %11588, %v12760_v12   ;;  %v11608_v9 = vunpack.i.h.bf16 %v11606_v45  ;;  %v11607_v52 = vunpack.i.l.bf16 %v11606_v45  ;;  %v1071_v36 = vmul.f32 %v11603_v31, %v12868_v3  ;;  %v1070_v59 = vmul.f32 %v11602_v15, %v12868_v3  ;;  %v3593_v15 = vld [vmem:[#allocation2 + $0x38] sm:$0x1] }
  0xbc   : > { %17246 = vst [vmem:[#allocation18_spill] sm:$0xff] %v13001_v47  ;;  %17247 = vst [vmem:[#allocation19_spill] sm:$0xff] %v13004_v53  ;;  %11880 = vperm.xlu0 %11577, %v12863_v55   ;;  %v3327_v48 = vunpack.c.l.bf16 %v3295_v39  ;;  %v3328_v22 = vunpack.c.h.bf16 %v3295_v39  ;;  %v13022_v31 = vpack.i.bf16 %v12955_v27, %v2439_v0  ;;  %v4175_v39 = vld [vmem:[#allocation2 + $0x90] sm:$0xe]  ;;  %v13034_v47 = vpack.i.bf16 %v3638_v50, %v3637_v37  ;;  %v2948_v53 = vld [vmem:[#allocation2 + $0x9c] sm:$0xe] }
  0xbd   : > { %v1073_v32 = vmul.f32 %v11608_v9, %v12868_v3  ;;  %v1072_v12 = vmul.f32 %v11607_v52, %v12868_v3  ;;  %v13014_v13 = vadd.f32 %v12961_v46, %v1071_v36  ;;  %v13017_v45 = vadd.f32 %v12961_v46, %v1070_v59  ;;  %v2947_v55 = vld [vmem:[#allocation2 + $0x90] sm:$0xe] }
  0xbe   : > { %17250 = vst [vmem:[#allocation22_spill] sm:$0xff] %v13022_v31  ;;  %v11611_v36 = vpop.permute.xlu0 %11610  ;;  %v13032_v59 = vpack.i.bf16 %v3636_v6, %v12965_v20  ;;  %17254 = vst [vmem:[#allocation26_spill] sm:$0xff] %v13034_v47  ;;  %v17258_v6 = vunpack.c.l.bf16 %v12997_v19  ;;  %v17259_v37 = vunpack.c.h.bf16 %v12997_v19  ;;  %v11018_v31 = vld [vmem:[#allocation2 + $0xa8] sm:$0xff]   ;;  %v17264_v27 = vunpack.c.l.bf16 %v12997_v19 }
  0xbf   : > { %17248 = vst [vmem:[#allocation20_spill] sm:$0xff] %v13014_v13  ;;  %17249 = vst [vmem:[#allocation21_spill] sm:$0xff] %v13017_v45  ;;  %11885 = vperm.xlu1 %11588, %v12788_v56   ;;  %v13026_v9 = vadd.f32 %v12961_v46, %v1073_v32  ;;  %v13029_v52 = vadd.f32 %v12961_v46, %v1072_v12  ;;  %v11613_v0 = vunpack.i.h.bf16 %v11611_v36  ;;  %v11612_v18 = vunpack.i.l.bf16 %v11611_v36  ;;  %v4166_v32 = vld [vmem:[#allocation2 + $0x24] sm:$0xe]  ;;  %v2370_v12 = vld [vmem:[#allocation2 + $0x44] sm:$0x1] }
  0xc0   : > { %17253 = vst [vmem:[#allocation25_spill] sm:$0xff] %v13032_v59  ;;  %11890 = vperm.xlu0 %11577, %v12865_v57   ;;  %v13037_v13 = vpack.i.bf16 %v2440_v38, %v4190_v60  ;;  %v13039_v56 = vpack.i.bf16 %v2442_v54, %v2441_v24  ;;  %v13049_v50 = vpack.i.bf16 %v17259_v37, %v17258_v6  ;;  %v3641_v45 = vunpack.c.l.bf16 %v3593_v15  ;;  %v4167_v36 = vld [vmem:[#allocation2 + $0x30] sm:$0xe]  ;;  %v3315_v37 = vld [vmem:[#allocation2 + $0x9c] sm:$0xff]  }
  0xc1   : > { %17251 = vst [vmem:[#allocation23_spill] sm:$0xff] %v13026_v9  ;;  %17252 = vst [vmem:[#allocation24_spill] sm:$0xff] %v13029_v52  ;;  %v13041_v9 = vld [vmem:[#allocation2 + $0x3c] sm:$0xff]   ;;  %v13043_v52 = vpack.i.bf16 %v3328_v22, %v3327_v48  ;;  %v4191_v57 = vunpack.c.l.bf16 %v4175_v39  ;;  %v11582_v38 = vunpack.i.h.bf16 %v12911_v63  ;;  %v11581_v54 = vunpack.i.l.bf16 %v12911_v63  ;;  %v2939_v48 = vld [vmem:[#allocation2 + $0x30] sm:$0xe] }
  0xc2   : > { %17255 = vst [vmem:[#allocation27_spill] sm:$0xff] %v13037_v13  ;;  %17256 = vst [vmem:[#allocation28_spill] sm:$0xff] %v13039_v56  ;;  %v1075_v60 = vmul.f32 %v11613_v0, %v12868_v3  ;;  %v1074_v24 = vmul.f32 %v11612_v18, %v12868_v3  ;;  %v2940_v22 = vld [vmem:[#allocation2 + $0x3c] sm:$0xe]  ;;  %v2963_v56 = vunpack.c.l.bf16 %v2947_v55  ;;  %v4182_v6 = vunpack.c.l.bf16 %v4166_v32 }
  0xc3   : > { %17257 = vst [vmem:[#allocation29_spill] sm:$0xff] %v13043_v52  ;;  %17260 = vst [vmem:[#allocation30_spill] sm:$0xff] %v13049_v50  ;;  %v3618_v52 = vld [vmem:[#allocation2 + $0x9c] sm:$0xff]   ;;  %11895 = vperm.xlu1 %11588, %v12929_v49   ;;  %v2417_v15 = vunpack.c.h.bf16 %v13041_v9  ;;  %v2418_v39 = vunpack.c.l.bf16 %v2370_v12  ;;  %v3620_v50 = vld [vmem:[#allocation2 + $0xa4] sm:$0x1]  ;;  %v2964_v18 = vunpack.c.l.bf16 %v2948_v53  ;;  %v4183_v13 = vunpack.c.l.bf16 %v4167_v36  ;;  %v13067_v55 = vpop.permute.xlu1 %11615 }
  0xc4   : > { %11900 = vperm.xlu0 %11577, %v12870_v4   ;;  %v13059_v63 = vadd.f32 %v12961_v46, %v1075_v60  ;;  %v13062_v0 = vadd.f32 %v12961_v46, %v1074_v24  ;;  %v812_v49 = vld [vmem:[%s17161_s1 + $0x3] sm:$0x1]  ;;  %v2955_v32 = vunpack.c.l.bf16 %v2939_v48  ;;  %v2956_v12 = vunpack.c.l.bf16 %v2940_v22  ;;  %v3623_v4 = vld [vmem:[#allocation2 + $0xb0] sm:$0x1] }
  0xc5   : > { %v3666_v47 = vunpack.c.l.bf16 %v3618_v52  ;;  %v3667_v59 = vunpack.c.h.bf16 %v3618_v52  ;;  %v1063_v60 = vmul.f32 %v11582_v38, %v12868_v3  ;;  %v3347_v24 = vunpack.c.l.bf16 %v3315_v37  ;;  %v13072_v53 = vpop.permute.xlu0 %11620  ;;  %v2397_v38 = vld [vmem:[#allocation2 + $0xb0] sm:$0x1] }
  0xc6   : > { %17261 = vst [vmem:[#allocation31_spill] sm:$0xff] %v13059_v63  ;;  %17262 = vst [vmem:[#allocation32_spill] sm:$0xff] %v13062_v0  ;;  %v1062_v63 = vmul.f32 %v11581_v54, %v12868_v3  ;;  %v3668_v0 = vunpack.c.l.bf16 %v3620_v50  ;;  %v13074_v36 = vpack.i.bf16 %v4191_v57, %v3641_v45  ;;  %v13078_v48 = vpack.i.bf16 %v17264_v27, %v2963_v56  ;;  %v13089_v45 = vld [vmem:[#allocation2 + $0x3c] sm:$0xff]   ;;  %v3596_v57 = vld [vmem:[#allocation2 + $0x44] sm:$0x1] }
  0xc7   : > { %11905 = vperm.xlu1 %11588, %v12873_v16   ;;  %v17265_v52 = vunpack.c.h.bf16 %v12997_v19  ;;  %v821_v20 = vunpack.c.l.bf16 %v812_v49  ;;  %v3348_v54 = vunpack.c.h.bf16 %v3315_v37  ;;  %v13085_v50 = vunpack.c.l.bf16 %v11018_v31  ;;  %v2398_v49 = vld [vmem:[#allocation2 + $0xb4] sm:$0xff]  }
  0xc8   : > { %17263 = vst [vmem:[#allocation33_spill] sm:$0xff] %v13074_v36  ;;  %11910 = vperm.xlu0 %11577, %v12876_v1   ;;  %v13087_v16 = vunpack.c.h.bf16 %v11018_v31  ;;  %v3671_v21 = vunpack.c.l.bf16 %v3623_v4  ;;  %v13091_v36 = vpack.i.bf16 %v2418_v39, %v2417_v15  ;;  %v13093_v27 = vpack.i.bf16 %v4183_v13, %v2964_v18  ;;  %v4176_v4 = vld [vmem:[#allocation2 + $0x9c] sm:$0xe] }
  0xc9   : > { %v13082_v22 = vpack.i.bf16 %v4182_v6, %v17265_v52  ;;  %v13095_v19 = vpack.i.bf16 %v2956_v12, %v2955_v32  ;;  %v13097_v56 = vpack.i.bf16 %v3667_v59, %v3666_v47  ;;  %v13100_v6 = vadd.f32 %v12961_v46, %v1063_v60  ;;  %v2400_v32 = vld [vmem:[#allocation2 + $0xbc] sm:$0x1] }
  0xca   : > { %v13103_v1 = vadd.f32 %v12961_v46, %v1062_v63  ;;  %v13105_v31 = vpack.i.bf16 %v3347_v24, %v3668_v0  ;;  %v2445_v37 = vunpack.c.l.bf16 %v2397_v38  ;;  %v13111_v13 = vrot.slane %v821_v20, %v12861_v30 }
  0xcb   : > { %11915 = vperm.xlu1 %11588, %v12878_v10   ;;  %v13108_v15 = vpop.permute.xlu1 %11625  ;;  %v3642_v47 = vunpack.c.l.bf16 %v13041_v9  ;;  %v3643_v59 = vunpack.c.h.bf16 %v13089_v45  ;;  %v3644_v39 = vunpack.c.l.bf16 %v3596_v57  ;;  %v11618_v63 = vunpack.i.h.bf16 %v13067_v55 }
  0xcc   : > { %17266 = vst [vmem:[#allocation34_spill] sm:$0xff] %v13111_v13  ;;  %11920 = vperm.xlu0 %11577, %v12882_v5   ;;  %v11627_v0 = vunpack.i.l.bf16 %v13108_v15  ;;  %v13119_v18 = vpack.i.bf16 %v13085_v50, %v3348_v54  ;;  %v13122_v10 = vpack.i.bf16 %v3671_v21, %v13087_v16  ;;  %v11617_v20 = vunpack.i.l.bf16 %v13067_v55 }
  0xcd   : > { %v11631_v12 = vpop.permute.xlu0 %11630  ;;  %v2446_v60 = vunpack.c.l.bf16 %v2398_v49  ;;  %v4192_v24 = vunpack.c.l.bf16 %v4176_v4  ;;  %v13129_v57 = vpack.i.bf16 %v13085_v50, %v2445_v37  ;;  %v13133_v21 = vpack.i.bf16 %v3642_v47, %v13087_v16 }
  0xce   : > { %v1080_v5 = vmul.f32 %v11627_v0, %v12868_v3  ;;  %v11633_v52 = vunpack.i.h.bf16 %v11631_v12  ;;  %v11632_v38 = vunpack.i.l.bf16 %v11631_v12  ;;  %v13135_v54 = vpack.i.bf16 %v3644_v39, %v3643_v59  ;;  %v3300_v12 = vld [vmem:[#allocation2 + $0x40] sm:$0xf] }
  0xcf   : > { %11925 = vperm.xlu1 %11588, %v12892_v41   ;;  %v2447_v55 = vunpack.c.h.bf16 %v2398_v49  ;;  %v2448_v13 = vunpack.c.l.bf16 %v2400_v32  ;;  %v1077_v9 = vmul.f32 %v11618_v63, %v12868_v3  ;;  %v1076_v41 = vmul.f32 %v11617_v20, %v12868_v3  ;;  %v11014_v63 = vld [vmem:[#allocation2 + $0x48] sm:$0xff]  }
  0xd0   : > { %11930 = vperm.xlu0 %11577, %v12894_v28   ;;  %v13140_v4 = vadd.f32 %v12961_v46, %v1080_v5  ;;  %v1083_v0 = vmul.f32 %v11633_v52, %v12868_v3  ;;  %v1082_v37 = vmul.f32 %v11632_v38, %v12868_v3  ;;  %v11623_v47 = vunpack.i.h.bf16 %v13072_v53 }
  0xd1   : > { %v11622_v59 = vunpack.i.l.bf16 %v13072_v53  ;;  %v11636_v49 = vpop.permute.xlu1 %11635  ;;  %v13147_v39 = vpack.i.bf16 %v2446_v60, %v4192_v24  ;;  %v11628_v38 = vunpack.i.h.bf16 %v13108_v15  ;;  %v13157_v20 = vpack.i.bf16 %v2448_v13, %v2447_v55 }
  0xd2   : > { %17267 = vst [vmem:[#allocation35_spill] sm:$0xff] %v13140_v4  ;;  %v13150_v28 = vadd.f32 %v12961_v46, %v1083_v0  ;;  %v13153_v32 = vadd.f32 %v12961_v46, %v1082_v37  ;;  %v11638_v5 = vunpack.i.h.bf16 %v11636_v49  ;;  %v11637_v52 = vunpack.i.l.bf16 %v11636_v49 }
  0xd3   : > { %11935 = vperm.xlu1 %11588, %v12896_v29   ;;  %17270 = vst [vmem:[#allocation38_spill] sm:$0xff] %v13157_v20  ;;  %v3331_v53 = vunpack.c.l.bf16 %v13089_v45  ;;  %v3332_v4 = vunpack.c.l.bf16 %v3300_v12  ;;  %v13161_v60 = vadd.f32 %v12961_v46, %v1077_v9  ;;  %v10954_v49 = vunpack.c.l.bf16 %v11014_v63  ;;  %v4177_v45 = vld [vmem:[#allocation2 + $0xa8] sm:$0xe]  ;;  %v4168_v20 = vld [vmem:[#allocation2 + $0x3c] sm:$0xe] }
  0xd4   : > { %17268 = vst [vmem:[#allocation36_spill] sm:$0xff] %v13150_v28  ;;  %17269 = vst [vmem:[#allocation37_spill] sm:$0xff] %v13153_v32  ;;  %11940 = vperm.xlu0 %11577, %v12898_v17   ;;  %v1085_v24 = vmul.f32 %v11638_v5, %v12868_v3  ;;  %v1084_v0 = vmul.f32 %v11637_v52, %v12868_v3  ;;  %v11641_v37 = vpop.permute.xlu0 %11640  ;;  %v13167_v15 = vadd.f32 %v12961_v46, %v1076_v41  ;;  %v3599_v28 = vld [vmem:[#allocation2 + $0x50] sm:$0x1]  ;;  %v2949_v32 = vld [vmem:[#allocation2 + $0xa8] sm:$0xe] }
  0xd5   : > { %17271 = vst [vmem:[#allocation39_spill] sm:$0xff] %v13161_v60  ;;  %v11643_v29 = vunpack.i.h.bf16 %v11641_v37  ;;  %v11642_v13 = vunpack.i.l.bf16 %v11641_v37  ;;  %v10955_v55 = vunpack.c.h.bf16 %v11014_v63  ;;  %v1079_v12 = vmul.f32 %v11623_v47, %v12868_v3  ;;  %v2373_v52 = vld [vmem:[#allocation2 + $0x50] sm:$0x1] }
  0xd6   : > { %17272 = vst [vmem:[#allocation40_spill] sm:$0xff] %v13167_v15  ;;  %v1078_v9 = vmul.f32 %v11622_v59, %v12868_v3  ;;  %v13172_v17 = vadd.f32 %v12961_v46, %v1085_v24  ;;  %v13175_v5 = vadd.f32 %v12961_v46, %v1084_v0  ;;  %v1081_v41 = vmul.f32 %v11628_v38, %v12868_v3 }
  0xd7   : > { %v1087_v60 = vmul.f32 %v11643_v29, %v12868_v3  ;;  %v1086_v63 = vmul.f32 %v11642_v13, %v12868_v3  ;;  %11945 = vperm.xlu1 %11588, %v12901_v62   ;;  %v11646_v37 = vpop.permute.xlu1 %11645  ;;  %v13181_v47 = vpack.i.bf16 %v3332_v4, %v3331_v53  ;;  %v4193_v0 = vunpack.c.l.bf16 %v4177_v45  ;;  %v2374_v13 = vld [vmem:[#allocation2 + $0x54] sm:$0xff]   ;;  %v2376_v62 = vld [vmem:[#allocation2 + $0x5c] sm:$0x1] }
  0xd8   : > { %17273 = vst [vmem:[#allocation41_spill] sm:$0xff] %v13172_v17  ;;  %17274 = vst [vmem:[#allocation42_spill] sm:$0xff] %v13175_v5  ;;  %11950 = vperm.xlu0 %11577, %v12904_v51   ;;  %v11648_v59 = vunpack.i.h.bf16 %v11646_v37  ;;  %v11647_v24 = vunpack.i.l.bf16 %v11646_v37  ;;  %v3647_v17 = vunpack.c.l.bf16 %v3599_v28  ;;  %v2421_v29 = vunpack.c.l.bf16 %v2373_v52 }
  0xd9   : > { %17275 = vst [vmem:[#allocation43_spill] sm:$0xff] %v13181_v47  ;;  %v13185_v5 = vadd.f32 %v12961_v46, %v1087_v60  ;;  %v13188_v38 = vadd.f32 %v12961_v46, %v1086_v63  ;;  %v2965_v15 = vunpack.c.l.bf16 %v2949_v32  ;;  %v2422_v51 = vunpack.c.l.bf16 %v2374_v13  ;;  %v813_v32 = vld [vmem:[%s17161_s1 + $0x4] sm:$0x1] }
  0xda   : > { %v1089_v4 = vmul.f32 %v11648_v59, %v12868_v3  ;;  %v1088_v53 = vmul.f32 %v11647_v24, %v12868_v3  ;;  %v4184_v47 = vunpack.c.l.bf16 %v4168_v20  ;;  %v13193_v28 = vadd.f32 %v12961_v46, %v1079_v12 }
  0xdb   : > { %17276 = vst [vmem:[#allocation44_spill] sm:$0xff] %v13185_v5  ;;  %17277 = vst [vmem:[#allocation45_spill] sm:$0xff] %v13188_v38  ;;  %v11651_v45 = vpop.permute.xlu0 %11650  ;;  %11955 = vperm.xlu1 %11588, %v12913_v25   ;;  %v13196_v60 = vpack.i.bf16 %v10955_v55, %v10954_v49  ;;  %v2423_v63 = vunpack.c.h.bf16 %v2374_v13  ;;  %v2424_v52 = vunpack.c.l.bf16 %v2376_v62  ;;  %v814_v25 = vld [vmem:[%s17161_s1 + $0x5] sm:$0x1]  ;;  %v13212_v49 = vadd.f32 %v12961_v46, %v1078_v9 }
  0xdc   : > { %17278 = vst [vmem:[#allocation46_spill] sm:$0xff] %v13193_v28  ;;  %v13202_v37 = vadd.f32 %v12961_v46, %v1089_v4  ;;  %v13205_v59 = vadd.f32 %v12961_v46, %v1088_v53  ;;  %v11653_v20 = vunpack.i.h.bf16 %v11651_v45  ;;  %v11652_v12 = vunpack.i.l.bf16 %v11651_v45  ;;  %11960 = vperm.xlu0 %11577, %v12916_v11  }
  0xdd   : > { %17281 = vst [vmem:[#allocation49_spill] sm:$0xff] %v13212_v49  ;;  %v13215_v55 = vadd.f32 %v12961_v46, %v1081_v41  ;;  %v13217_v24 = vpack.i.bf16 %v4193_v0, %v3647_v17  ;;  %v822_v13 = vunpack.c.l.bf16 %v813_v32  ;;  %v13221_v11 = vpack.i.bf16 %v2965_v15, %v2421_v29  ;;  %v2950_v15 = vld [vmem:[#allocation2 + $0xb4] sm:$0xe] }
  0xde   : > { %17279 = vst [vmem:[#allocation47_spill] sm:$0xff] %v13202_v37  ;;  %17280 = vst [vmem:[#allocation48_spill] sm:$0xff] %v13205_v59  ;;  %v1091_v62 = vmul.f32 %v11653_v20, %v12868_v3  ;;  %v1090_v4 = vmul.f32 %v11652_v12, %v12868_v3  ;;  %v11656_v53 = vpop.permute.xlu1 %11655  ;;  %v13223_v45 = vpack.i.bf16 %v2422_v51, %v4184_v47  ;;  %v823_v41 = vunpack.c.l.bf16 %v814_v25  ;;  %v4169_v47 = vld [vmem:[#allocation2 + $0x48] sm:$0xe] }
  0xdf   : > { %17282 = vst [vmem:[#allocation50_spill] sm:$0xff] %v13215_v55  ;;  %17283 = vst [vmem:[#allocation51_spill] sm:$0xff] %v13221_v11  ;;  %v11658_v37 = vunpack.i.h.bf16 %v11656_v53  ;;  %v11657_v59 = vunpack.i.l.bf16 %v11656_v53  ;;  %v11661_v5 = vpop.permute.xlu0 %11660  ;;  %11965 = vperm.xlu1 %11588, %v12925_v14   ;;  %v13226_v9 = vpack.i.bf16 %v2424_v52, %v2423_v63  ;;  %v13238_v14 = vrot.slane %v822_v13, %v12861_v30  ;;  %v13254_v53 = vld [vmem:[#allocation2 + $0x48] sm:$0xe]  ;;  %v17303_v11 = vld [vmem:[#allocation16_spill] sm:$0xff] }
  0xe0   : > { %17284 = vst [vmem:[#allocation52_spill] sm:$0xff] %v13223_v45  ;;  %v13229_v17 = vadd.f32 %v12961_v46, %v1091_v62  ;;  %v13232_v0 = vadd.f32 %v12961_v46, %v1090_v4  ;;  %v11663_v32 = vunpack.i.h.bf16 %v11661_v5  ;;  %v11662_v20 = vunpack.i.l.bf16 %v11661_v5  ;;  %11970 = vperm.xlu0 %11577, %v12932_v34   ;;  %17292 = vst [vmem:[#allocation59_spill] sm:$0xff] %v13254_v53 }
  0xe1   : > { %17285 = vst [vmem:[#allocation53_spill] sm:$0xff] %v13226_v9  ;;  %v1093_v29 = vmul.f32 %v11658_v37, %v12868_v3  ;;  %v1092_v51 = vmul.f32 %v11657_v59, %v12868_v3  ;;  %17288 = vst [vmem:[#allocation56_spill] sm:$0xff] %v13238_v14  ;;  %v2966_v63 = vunpack.c.l.bf16 %v2950_v15  ;;  %v4185_v62 = vunpack.c.l.bf16 %v4169_v47 }
  0xe2   : > { %17286 = vst [vmem:[#allocation54_spill] sm:$0xff] %v13229_v17  ;;  %17287 = vst [vmem:[#allocation55_spill] sm:$0xff] %v13232_v0  ;;  %v1467_v52 = vmul.f32 %v11663_v32, %v12919_v33  ;;  %v13242_v12 = vmul.f32 %v11663_v32, %v12922_v58  ;;  %v1466_v25 = vmul.f32 %v11662_v20, %v12919_v33  ;;  %v11666_v5 = vpop.permute.xlu1 %11665 }
  0xe3   : > { %v13246_v34 = vadd.f32 %v12961_v46, %v1093_v29  ;;  %v13249_v37 = vadd.f32 %v12961_v46, %v1092_v51  ;;  %v11668_v3 = vunpack.i.h.bf16 %v11666_v5  ;;  %v11667_v59 = vunpack.i.l.bf16 %v11666_v5  ;;  %v11671_v13 = vpop.permute.xlu0 %11670 }
  0xe4   : > { %v17291_v4 = vpack.i.bf16 %v12908_v7, %v12906_v44  ;;  %v1564_v32 = vrot.slane %v1467_v52, 1  ;;  %v1563_v15 = vrot.slane %v1466_v25, 1  ;;  %v11673_v20 = vunpack.i.h.bf16 %v11671_v13  ;;  %11980 = vperm.xlu0 %11577, %v12935_v40  }
  0xe5   : > { %17289 = vst [vmem:[#allocation57_spill] sm:$0xff] %v13246_v34  ;;  %17290 = vst [vmem:[#allocation58_spill] sm:$0xff] %v13249_v37  ;;  %v13258_v47 = vrot.slane %v823_v41, %v12861_v30  ;;  %v1469_v46 = vmul.f32 %v11668_v3, %v12919_v33  ;;  %v1468_v29 = vmul.f32 %v11667_v59, %v12919_v33  ;;  %v11672_v5 = vunpack.i.l.bf16 %v11671_v13 }
  0xe6   : > { %11975 = vperm.xlu1 %11588, %v17291_v4   ;;  %v13263_v51 = vmul.f32 %v11667_v59, %v12922_v58  ;;  %v1471_v7 = vmul.f32 %v11673_v20, %v12919_v33  ;;  %v13268_v52 = vmul.f32 %v11673_v20, %v12922_v58  ;;  %v11676_v25 = vpop.permute.xlu1 %11675  ;;  %v13272_v41 = vsel %vm1562_vm8, %v1563_v15, %v1564_v32 }
  0xe7   : > { %17293 = vst [vmem:[#allocation60_spill] sm:$0xff] %v13258_v47  ;;  %v1566_v3 = vrot.slane %v1468_v29, 1  ;;  %v1470_v4 = vmul.f32 %v11672_v5, %v12919_v33  ;;  %v11681_v30 = vpop.permute.xlu0 %11680  ;;  %v13276_v59 = vpack.i.bf16 %v4185_v62, %v2966_v63  ;;  %v1568_v13 = vrot.slane %v1469_v46, 1 }
  0xe8   : > { %v1571_v44 = vrot.slane %v1471_v7, 1  ;;  %v13279_v47 = vmul.f32 %v11672_v5, %v12922_v58  ;;  %v11678_v20 = vunpack.i.h.bf16 %v11676_v25  ;;  %11990 = vperm.xlu0 %11577, %v12941_v42   ;;  %v11677_v53 = vunpack.i.l.bf16 %v11676_v25 }
  0xe9   : > { %17294 = vst [vmem:[#allocation61_spill] sm:$0xff] %v13276_v59  ;;  %v1569_v15 = vrot.slane %v1470_v4, 1  ;;  %v11683_v29 = vunpack.i.h.bf16 %v11681_v30  ;;  %v11682_v63 = vunpack.i.l.bf16 %v11681_v30  ;;  %v13289_v46 = vsel %vm1562_vm8, %v1564_v32, %v1566_v3 }
  0xea   : > { %11985 = vperm.xlu1 %11588, %v12938_v35   ;;  %v1473_v34 = vmul.f32 %v11678_v20, %v12919_v33  ;;  %v13286_v35 = vmul.f32 %v11678_v20, %v12922_v58  ;;  %v11686_v62 = vpop.permute.xlu1 %11685  ;;  %v1472_v42 = vmul.f32 %v11677_v53, %v12919_v33 }
  0xeb   : > { %v1475_v7 = vmul.f32 %v11683_v29, %v12919_v33  ;;  %v11691_v25 = vpop.permute.xlu0 %11690  ;;  %v13296_v4 = vsel %vm1562_vm8, %v1568_v13, %v1569_v15  ;;  %v13299_v20 = vsel %vm1562_vm8, %v1569_v15, %v1571_v44  ;;  %v1474_v30 = vmul.f32 %v11682_v63, %v12919_v33 }
  0xec   : > { %v13303_v32 = vmul.f32 %v11682_v63, %v12922_v58  ;;  %12000 = vperm.xlu0 %11577, %v12948_v2   ;;  %v1574_v3 = vrot.slane %v1473_v34, 1  ;;  %v1573_v53 = vrot.slane %v1472_v42, 1  ;;  %v11688_v14 = vunpack.i.h.bf16 %v11686_v62 }
  0xed   : > { %v11687_v29 = vunpack.i.l.bf16 %v11686_v62  ;;  %v11693_v40 = vunpack.i.h.bf16 %v11691_v25  ;;  %v11692_v13 = vunpack.i.l.bf16 %v11691_v25  ;;  %v1578_v17 = vrot.slane %v1475_v7, 1  ;;  %v17297_v7 = vld [vmem:[#allocation7_spill] sm:$0xff] }
  0xee   : > { %11995 = vperm.xlu1 %11588, %v12944_v43   ;;  %v1576_v43 = vrot.slane %v1474_v30, 1  ;;  %v11696_v37 = vpop.permute.xlu1 %11695  ;;  %v1477_v44 = vmul.f32 %v11688_v14, %v12919_v33  ;;  %v13309_v15 = vmul.f32 %v11688_v14, %v12922_v58  ;;  %v13323_v14 = vsel %vm1562_vm8, %v1573_v53, %v1574_v3 }
  0xef   : > { %v1476_v63 = vmul.f32 %v11687_v29, %v12919_v33  ;;  %v11701_v0 = vpop.permute.xlu0 %11700  ;;  %v13315_v34 = vmul.f32 %v11687_v29, %v12922_v58  ;;  %v1479_v62 = vmul.f32 %v11693_v40, %v12919_v33  ;;  %v13319_v42 = vmul.f32 %v11693_v40, %v12922_v58 }
  0xf0   : > { %17295 = vst [vmem:[#allocation62_spill] sm:$0xff] %v13309_v15  ;;  %12010 = vperm.xlu0 %11577, %v17297_v7   ;;  %v13326_v25 = vsel %vm1562_vm8, %v1574_v3, %v1576_v43  ;;  %v1581_v2 = vrot.slane %v1477_v44, 1  ;;  %v11698_v38 = vunpack.i.h.bf16 %v11696_v37  ;;  %v11697_v49 = vunpack.i.l.bf16 %v11696_v37  ;;  %v17316_v15 = vld [vmem:[#allocation22_spill] sm:$0xff] }
  0xf1   : > { %17296 = vst [vmem:[#allocation63_spill] sm:$0xff] %v13319_v42  ;;  %v1579_v30 = vrot.slane %v1476_v63, 1  ;;  %v1584_v40 = vrot.slane %v1479_v62, 1  ;;  %v11703_v43 = vunpack.i.h.bf16 %v11701_v0  ;;  %v11702_v63 = vunpack.i.l.bf16 %v11701_v0 }
  0xf2   : > { %12005 = vperm.xlu1 %11588, %v12950_v61   ;;  %v1478_v61 = vmul.f32 %v11692_v13, %v12919_v33  ;;  %v11706_v55 = vpop.permute.xlu1 %11705  ;;  %v1481_v3 = vmul.f32 %v11698_v38, %v12919_v33  ;;  %v1480_v29 = vmul.f32 %v11697_v49, %v12919_v33  ;;  %v13340_v62 = vmul.f32 %v11697_v49, %v12922_v58 }
  0xf3   : > { %v11711_v53 = vpop.permute.xlu0 %11710  ;;  %v11708_v13 = vunpack.i.h.bf16 %v11706_v55  ;;  %v13336_v44 = vsel %vm1562_vm8, %v1578_v17, %v1579_v30  ;;  %v1483_v28 = vmul.f32 %v11703_v43, %v12919_v33  ;;  %v1482_v38 = vmul.f32 %v11702_v63, %v12919_v33 }
  0xf4   : > { %v1583_v7 = vrot.slane %v1478_v61, 1  ;;  %12020 = vperm.xlu0 %11577, %v12975_v8   ;;  %17298 = vst [vmem:[#allocation7_spill] sm:$0xff] %v13340_v62  ;;  %v11707_v61 = vunpack.i.l.bf16 %v11706_v55  ;;  %v1588_v37 = vrot.slane %v1481_v3, 1  ;;  %v13348_v8 = vsel %vm1562_vm8, %v1579_v30, %v1581_v2  ;;  %v17301_v55 = vld [vmem:[#allocation15_spill] sm:$0xff] }
  0xf5   : > { %v1586_v17 = vrot.slane %v1480_v29, 1  ;;  %v13351_v5 = vmul.f32 %v11702_v63, %v12922_v58  ;;  %v1485_v49 = vmul.f32 %v11708_v13, %v12919_v33  ;;  %v1591_v9 = vrot.slane %v1483_v28, 1 }
  0xf6   : > { %12015 = vperm.xlu1 %11588, %v12973_v23   ;;  %v13344_v23 = vmul.f32 %v11703_v43, %v12922_v58  ;;  %v11716_v0 = vpop.permute.xlu1 %11715  ;;  %v13356_v3 = vsel %vm1562_vm8, %v1583_v7, %v1584_v40  ;;  %v1589_v45 = vrot.slane %v1482_v38, 1  ;;  %v13365_v29 = vmul.f32 %v11708_v13, %v12922_v58 }
  0xf7   : > { %17300 = vst [vmem:[#allocation65_spill] sm:$0xff] %v13351_v5  ;;  %v11721_v59 = vpop.permute.xlu0 %11720  ;;  %17302 = vst [vmem:[#allocation15_spill] sm:$0xff] %v13356_v3  ;;  %v13361_v2 = vsel %vm1562_vm8, %v1584_v40, %v1586_v17  ;;  %v1484_v63 = vmul.f32 %v11707_v61, %v12919_v33  ;;  %v1594_v43 = vrot.slane %v1485_v49, 1  ;;  %v11713_v28 = vunpack.i.h.bf16 %v11711_v53 }
  0xf8   : > { %17299 = vst [vmem:[#allocation64_spill] sm:$0xff] %v13344_v23  ;;  %12030 = vperm.xlu0 %11577, %v17303_v11   ;;  %17304 = vst [vmem:[#allocation16_spill] sm:$0xff] %v13361_v2  ;;  %v11712_v11 = vunpack.i.l.bf16 %v11711_v53  ;;  %v11718_v42 = vunpack.i.h.bf16 %v11716_v0  ;;  %v11717_v40 = vunpack.i.l.bf16 %v11716_v0  ;;  %v13374_v13 = vsel %vm1562_vm8, %v1589_v45, %v1591_v9  ;;  %v17308_v23 = vld [vmem:[#allocation17_spill] sm:$0xff] }
  0xf9   : > { %17305 = vst [vmem:[#allocation66_spill] sm:$0xff] %v13365_v29  ;;  %v1593_v62 = vrot.slane %v1484_v63, 1  ;;  %17307 = vst [vmem:[#allocation68_spill] sm:$0xff] %v13374_v13  ;;  %v1487_v61 = vmul.f32 %v11713_v28, %v12919_v33  ;;  %v11723_v30 = vunpack.i.h.bf16 %v11721_v59  ;;  %v17314_v63 = vld [vmem:[#allocation9_spill] sm:$0xff] }
  0xfa   : > { %12025 = vperm.xlu1 %11588, %v17301_v55   ;;  %v13369_v55 = vsel %vm1562_vm8, %v1588_v37, %v1589_v45  ;;  %v11726_v38 = vpop.permute.xlu1 %11725  ;;  %v11722_v37 = vunpack.i.l.bf16 %v11721_v59  ;;  %v1486_v49 = vmul.f32 %v11712_v11, %v12919_v33  ;;  %v13380_v7 = vmul.f32 %v11712_v11, %v12922_v58 }
  0xfb   : > { %17306 = vst [vmem:[#allocation67_spill] sm:$0xff] %v13369_v55  ;;  %v11731_v17 = vpop.permute.xlu0 %11730  ;;  %v1489_v53 = vmul.f32 %v11718_v42, %v12919_v33  ;;  %v11728_v0 = vunpack.i.h.bf16 %v11726_v38  ;;  %v1488_v45 = vmul.f32 %v11717_v40, %v12919_v33  ;;  %v13389_v9 = vmul.f32 %v11717_v40, %v12922_v58  ;;  %v17313_v55 = vld [vmem:[#allocation10_spill] sm:$0xff] }
  0xfc   : > { %12040 = vperm.xlu0 %11577, %v17308_v23   ;;  %17309 = vst [vmem:[#allocation17_spill] sm:$0xff] %v13380_v7  ;;  %v13392_v23 = vsel %vm1562_vm8, %v1593_v62, %v1594_v43  ;;  %v1596_v28 = vrot.slane %v1486_v49, 1  ;;  %v1491_v5 = vmul.f32 %v11723_v30, %v12919_v33  ;;  %v17315_v29 = vpack.i.bf16 %v17313_v55, %v17314_v63 }
  0xfd   : > { %17311 = vst [vmem:[#allocation70_spill] sm:$0xff] %v13389_v9  ;;  %17312 = vst [vmem:[#allocation71_spill] sm:$0xff] %v13392_v23  ;;  %v1601_v11 = vrot.slane %v1489_v53, 1  ;;  %v1599_v3 = vrot.slane %v1488_v45, 1  ;;  %v13405_v49 = vmul.f32 %v11723_v30, %v12922_v58  ;;  %v1490_v53 = vmul.f32 %v11722_v37, %v12919_v33  ;;  %v17321_v37 = vld [vmem:[#allocation25_spill] sm:$0xff] }
  0xfe   : > { %12035 = vperm.xlu1 %11588, %v12990_v26   ;;  %v13385_v26 = vmul.f32 %v11718_v42, %v12922_v58  ;;  %v11736_v59 = vpop.permute.xlu1 %11735  ;;  %v1598_v42 = vrot.slane %v1487_v61, 1  ;;  %v1493_v23 = vmul.f32 %v11728_v0, %v12919_v33  ;;  %v13410_v55 = vsel %vm1562_vm8, %v1594_v43, %v1596_v28 }
  0xff   : > { %v13395_v13 = vpop.permute.xlu0 %11740  ;;  %17317 = vst [vmem:[#allocation10_spill] sm:$0xff] %v13405_v49  ;;  %17318 = vst [vmem:[#allocation9_spill] sm:$0xff] %v13410_v55  ;;  %v1604_v61 = vrot.slane %v1491_v5, 1  ;;  %v11727_v63 = vunpack.i.l.bf16 %v11726_v38  ;;  %v1603_v40 = vrot.slane %v1490_v53, 1  ;;  %v11733_v62 = vunpack.i.h.bf16 %v11731_v17  ;;  %v17323_v5 = vld [vmem:[#allocation26_spill] sm:$0xff]  ;;  %v17337_v55 = vld [vmem:[#allocation33_spill] sm:$0xff] }
 0x100   : > { %17310 = vst [vmem:[#allocation69_spill] sm:$0xff] %v13385_v26  ;;  %12050 = vperm.xlu0 %11577, %v17316_v15   ;;  %v13416_v15 = vsel %vm1562_vm8, %v1599_v3, %v1601_v11  ;;  %v11732_v30 = vunpack.i.l.bf16 %v11731_v17  ;;  %v11738_v28 = vunpack.i.h.bf16 %v11736_v59  ;;  %v1608_v38 = vrot.slane %v1493_v23, 1 }
 0x101   : > { %17320 = vst [vmem:[#allocation72_spill] sm:$0xff] %v13416_v15  ;;  %v1492_v0 = vmul.f32 %v11727_v63, %v12919_v33  ;;  %v13423_v43 = vmul.f32 %v11727_v63, %v12922_v58  ;;  %v13428_v11 = vmul.f32 %v11733_v62, %v12922_v58 }
 0x102   : > { %12045 = vperm.xlu1 %11588, %v17315_v29   ;;  %v13413_v29 = vsel %vm1562_vm8, %v1598_v42, %v1599_v3  ;;  %v11746_v45 = vpop.permute.xlu1 %11745  ;;  %v11737_v42 = vunpack.i.l.bf16 %v11736_v59  ;;  %v1495_v3 = vmul.f32 %v11733_v62, %v12919_v33  ;;  %v1494_v17 = vmul.f32 %v11732_v30, %v12919_v33 }
 0x103   : > { %17319 = vst [vmem:[#allocation22_spill] sm:$0xff] %v13413_v29  ;;  %v13418_v2 = vpop.permute.xlu0 %11750  ;;  %17322 = vst [vmem:[#allocation25_spill] sm:$0xff] %v13423_v43  ;;  %v13433_v26 = vmul.f32 %v11732_v30, %v12922_v58  ;;  %v1497_v63 = vmul.f32 %v11738_v28, %v12919_v33  ;;  %v13439_v59 = vsel %vm1562_vm8, %v1603_v40, %v1604_v61  ;;  %v17327_v29 = vld [vmem:[#allocation27_spill] sm:$0xff]  ;;  %v17330_v40 = vld [vmem:[#allocation28_spill] sm:$0xff]  ;;  %v11747_v30 = vunpack.i.l.bf16 %v11746_v45 }
 0x104   : > { %12060 = vperm.xlu0 %11577, %v17323_v5   ;;  %17324 = vst [vmem:[#allocation26_spill] sm:$0xff] %v13428_v11  ;;  %17326 = vst [vmem:[#allocation74_spill] sm:$0xff] %v13439_v59  ;;  %v1611_v5 = vrot.slane %v1495_v3, 1  ;;  %v1609_v62 = vrot.slane %v1494_v17, 1  ;;  %v13450_v53 = vmul.f32 %v11738_v28, %v12922_v58  ;;  %v1496_v49 = vmul.f32 %v11737_v42, %v12919_v33 }
 0x105   : > { %17325 = vst [vmem:[#allocation73_spill] sm:$0xff] %v13433_v26  ;;  %v1614_v17 = vrot.slane %v1497_v63, 1  ;;  %v17333_v63 = vld [vmem:[#allocation29_spill] sm:$0xff] }
 0x106   : > { %12055 = vperm.xlu1 %11588, %v17321_v37   ;;  %v1606_v37 = vrot.slane %v1492_v0, 1  ;;  %v13436_v9 = vpop.permute.xlu1 %11755  ;;  %17329 = vst [vmem:[#allocation75_spill] sm:$0xff] %v13450_v53  ;;  %v13455_v23 = vsel %vm1562_vm8, %v1608_v38, %v1609_v62  ;;  %v1613_v43 = vrot.slane %v1496_v49, 1  ;;  %v13463_v28 = vsel %vm1562_vm8, %v1609_v62, %v1611_v5  ;;  %v17334_v62 = vld [vmem:[#allocation30_spill] sm:$0xff] }
 0x107   : > { %v13442_v15 = vpop.permute.xlu0 %11760  ;;  %17331 = vst [vmem:[#allocation28_spill] sm:$0xff] %v13455_v23  ;;  %17332 = vst [vmem:[#allocation76_spill] sm:$0xff] %v13463_v28  ;;  %v11753_v38 = vunpack.i.h.bf16 %v13418_v2  ;;  %v11758_v5 = vunpack.i.h.bf16 %v13436_v9 }
 0x108   : > { %v13446_v0 = vsel %vm1562_vm8, %v1604_v61, %v1606_v37  ;;  %12070 = vperm.xlu0 %11577, %v17330_v40   ;;  %v11742_v61 = vunpack.i.l.bf16 %v13395_v13  ;;  %v11748_v37 = vunpack.i.h.bf16 %v11746_v45  ;;  %v11752_v40 = vunpack.i.l.bf16 %v13418_v2 }
 0x109   : > { %17328 = vst [vmem:[#allocation27_spill] sm:$0xff] %v13446_v0  ;;  %v1500_v2 = vmul.f32 %v11747_v30, %v12919_v33  ;;  %v13487_v28 = vsel %vm1562_vm8, %v1613_v43, %v1614_v17  ;;  %v1503_v0 = vmul.f32 %v11753_v38, %v12919_v33  ;;  %v13499_v43 = vmul.f32 %v11753_v38, %v12922_v58 }
 0x10a   : > { %12065 = vperm.xlu1 %11588, %v17327_v29   ;;  %v11743_v29 = vunpack.i.h.bf16 %v13395_v13  ;;  %v13460_v11 = vpop.permute.xlu1 %11765  ;;  %v1498_v49 = vmul.f32 %v11742_v61, %v12919_v33  ;;  %v13473_v13 = vmul.f32 %v11742_v61, %v12922_v58  ;;  %v1501_v45 = vmul.f32 %v11748_v37, %v12919_v33 }
 0x10b   : > { %v13468_v3 = vpop.permute.xlu0 %11770  ;;  %v13480_v26 = vmul.f32 %v11748_v37, %v12922_v58  ;;  %v1619_v53 = vrot.slane %v1500_v2, 1  ;;  %17338 = vst [vmem:[#allocation33_spill] sm:$0xff] %v13499_v43  ;;  %v1624_v37 = vrot.slane %v1503_v0, 1  ;;  %v11767_v0 = vunpack.i.l.bf16 %v13460_v11 }
 0x10c   : > { %v1499_v42 = vmul.f32 %v11743_v29, %v12919_v33  ;;  %12080 = vperm.xlu0 %11577, %v17334_v62   ;;  %v1616_v61 = vrot.slane %v1498_v49, 1  ;;  %v1621_v23 = vrot.slane %v1501_v45, 1  ;;  %v1502_v49 = vmul.f32 %v11752_v40, %v12919_v33 }
 0x10d   : > { %17335 = vst [vmem:[#allocation29_spill] sm:$0xff] %v13480_v26  ;;  %v1505_v45 = vmul.f32 %v11758_v5, %v12919_v33  ;;  %v11763_v29 = vunpack.i.h.bf16 %v13442_v15  ;;  %v11762_v40 = vunpack.i.l.bf16 %v13442_v15 }
 0x10e   : > { %12075 = vperm.xlu1 %11588, %v17333_v63   ;;  %v13484_v63 = vmul.f32 %v11747_v30, %v12922_v58  ;;  %v13490_v59 = vpop.permute.xlu1 %11775  ;;  %v1618_v62 = vrot.slane %v1499_v42, 1  ;;  %v13505_v42 = vsel %vm1562_vm8, %v1614_v17, %v1616_v61  ;;  %v13512_v30 = vsel %vm1562_vm8, %v1619_v53, %v1621_v23 }
 0x10f   : > { %v13494_v7 = vpop.permute.xlu0 %11780  ;;  %17339 = vst [vmem:[#allocation77_spill] sm:$0xff] %v13512_v30  ;;  %v1623_v38 = vrot.slane %v1502_v49, 1  ;;  %v11768_v61 = vunpack.i.h.bf16 %v13460_v11  ;;  %v1507_v23 = vmul.f32 %v11763_v29, %v12919_v33  ;;  %v13529_v15 = vmul.f32 %v11763_v29, %v12922_v58 }
 0x110   : > { %17336 = vst [vmem:[#allocation30_spill] sm:$0xff] %v13484_v63  ;;  %12090 = vperm.xlu0 %11577, %v13078_v48   ;;  %v13508_v2 = vsel %vm1562_vm8, %v1618_v62, %v1619_v53  ;;  %v1628_v53 = vrot.slane %v1505_v45, 1  ;;  %v1506_v62 = vmul.f32 %v11762_v40, %v12919_v33  ;;  %v13535_v26 = vmul.f32 %v11762_v40, %v12922_v58 }
 0x111   : > { %17340 = vst [vmem:[#allocation78_spill] sm:$0xff] %v13529_v15  ;;  %v1509_v11 = vmul.f32 %v11768_v61, %v12919_v33  ;;  %v1631_v45 = vrot.slane %v1507_v23, 1  ;;  %v13542_v29 = vmul.f32 %v11768_v61, %v12922_v58  ;;  %v1508_v49 = vmul.f32 %v11767_v0, %v12919_v33 }
 0x112   : > { %12085 = vperm.xlu1 %11588, %v17337_v55   ;;  %v11757_v55 = vunpack.i.l.bf16 %v13436_v9  ;;  %v13516_v5 = vpop.permute.xlu1 %11785  ;;  %17341 = vst [vmem:[#allocation79_spill] sm:$0xff] %v13535_v26  ;;  %v1629_v63 = vrot.slane %v1506_v62, 1  ;;  %v11773_v62 = vunpack.i.h.bf16 %v13468_v3  ;;  %v11778_v40 = vunpack.i.h.bf16 %v13490_v59 }
 0x113   : > { %v13524_v9 = vpop.permute.xlu0 %11790  ;;  %17342 = vst [vmem:[#allocation80_spill] sm:$0xff] %v13542_v29  ;;  %v1634_v23 = vrot.slane %v1509_v11, 1  ;;  %v11777_v0 = vunpack.i.l.bf16 %v13490_v59  ;;  %v11783_v11 = vunpack.i.h.bf16 %v13494_v7 }
 0x114   : > { %v1504_v48 = vmul.f32 %v11757_v55, %v12919_v33  ;;  %v13520_v17 = vmul.f32 %v11757_v55, %v12922_v58  ;;  %12100 = vperm.xlu0 %11577, %v13091_v36   ;;  %v13578_v59 = vmul.f32 %v11778_v40, %v12922_v58 }
 0x116   : > { %12095 = vperm.xlu1 %11588, %v13082_v22   ;;  %v1626_v55 = vrot.slane %v1504_v48, 1  ;;  %v13539_v22 = vsel %vm1562_vm8, %v1623_v38, %v1624_v37  ;;  %v13544_v30 = vpop.permute.xlu1 %11795  ;;  %v13556_v38 = vsel %vm1562_vm8, %v1628_v53, %v1629_v63  ;;  %v13565_v48 = vsel %vm1562_vm8, %v1629_v63, %v1631_v45  ;;  %17345 = vst [vmem:[#allocation83_spill] sm:$0xff] %v13578_v59 }
 0x117   : > { %v13552_v43 = vpop.permute.xlu0 %11800  ;;  %17343 = vst [vmem:[#allocation81_spill] sm:$0xff] %v13556_v38  ;;  %17344 = vst [vmem:[#allocation82_spill] sm:$0xff] %v13565_v48  ;;  %v1511_v53 = vmul.f32 %v11773_v62, %v12919_v33  ;;  %v1512_v63 = vmul.f32 %v11777_v0, %v12919_v33  ;;  %v13582_v45 = vmul.f32 %v11777_v0, %v12922_v58  ;;  %v11788_v62 = vunpack.i.h.bf16 %v13516_v5 }
 0x118   : > { %v13547_v36 = vsel %vm1562_vm8, %v1624_v37, %v1626_v55  ;;  %12110 = vperm.xlu0 %11577, %v13095_v19   ;;  %v1633_v37 = vrot.slane %v1508_v49, 1  ;;  %v11772_v55 = vunpack.i.l.bf16 %v13468_v3  ;;  %v1513_v3 = vmul.f32 %v11778_v40, %v12919_v33 }
 0x119   : > { %v11782_v49 = vunpack.i.l.bf16 %v13494_v7  ;;  %v1638_v40 = vrot.slane %v1511_v53, 1  ;;  %v1639_v26 = vrot.slane %v1512_v63, 1  ;;  %v17346_v38 = vpack.i.bf16 %v13087_v16, %v13085_v50 }
 0x11a   : > { %12105 = vperm.xlu1 %11588, %v13093_v27   ;;  %v1510_v61 = vmul.f32 %v11772_v55, %v12919_v33  ;;  %v13572_v19 = vmul.f32 %v11772_v55, %v12922_v58  ;;  %v11806_v15 = vpop.permute.xlu1 %11805  ;;  %v13589_v55 = vsel %vm1562_vm8, %v1633_v37, %v1634_v23  ;;  %v1641_v29 = vrot.slane %v1513_v3, 1 }
 0x11b   : > { %v13585_v27 = vpop.permute.xlu0 %11810  ;;  %v11787_v37 = vunpack.i.l.bf16 %v13516_v5  ;;  %v11793_v3 = vunpack.i.h.bf16 %v13524_v9  ;;  %v11798_v5 = vunpack.i.h.bf16 %v13544_v30  ;;  %v11808_v0 = vunpack.i.h.bf16 %v11806_v15 }
 0x11c   : > { %12120 = vperm.xlu0 %11577, %v13105_v31   ;;  %v1636_v7 = vrot.slane %v1510_v61, 1  ;;  %v1823_v31 = vmul.f32 %v11782_v49, %v12922_v58  ;;  %v13604_v61 = vsel %vm1562_vm8, %v1638_v40, %v1639_v26  ;;  %v11803_v40 = vunpack.i.h.bf16 %v13552_v43 }
 0x11d   : > { %v13616_v49 = vmul.f32 %v11787_v37, %v12922_v58  ;;  %v13649_v50 = vmul.f32 %v11808_v0, %v12922_v58  ;;  %v11807_v16 = vunpack.i.l.bf16 %v11806_v15  ;;  %v11813_v33 = vunpack.i.h.bf16 %v13585_v27 }
 0x11e   : > { %12115 = vperm.xlu1 %11588, %v13097_v56   ;;  %v13592_v56 = vmul.f32 %v11783_v11, %v12922_v58  ;;  %v13597_v48 = vsel %vm1562_vm8, %v1634_v23, %v1636_v7  ;;  %v13608_v11 = vmul.f32 %v11788_v62, %v12922_v58  ;;  %v13613_v23 = vsel %vm1562_vm8, %v1639_v26, %v1641_v29  ;;  %v11816_v63 = vpop.permute.xlu1 %11815 }
 0x11f   : > { %v13621_v7 = vmul.f32 %v11793_v3, %v12922_v58  ;;  %v11797_v62 = vunpack.i.l.bf16 %v13544_v30  ;;  %v11821_v26 = vpop.permute.xlu0 %11820  ;;  %v1920_v29 = vrot.slane %v1823_v31, 2  ;;  %v13663_v0 = vmul.f32 %v11813_v33, %v12922_v58 }
 0x120   : > { %12130 = vperm.xlu0 %11577, %v13122_v10   ;;  %v11802_v10 = vunpack.i.l.bf16 %v13552_v43  ;;  %v13640_v43 = vmul.f32 %v11803_v40, %v12922_v58  ;;  %v11823_v40 = vunpack.i.h.bf16 %v11821_v26  ;;  %v11822_v53 = vunpack.i.l.bf16 %v11821_v26 }
 0x121   : > { %v13637_v30 = vmul.f32 %v11797_v62, %v12922_v58  ;;  %v11817_v62 = vunpack.i.l.bf16 %v11816_v63  ;;  %v1675_v33 = vadd.f32 %v13272_v41, %v13103_v1  ;;  %v17348_v26 = vrot.slane %v13242_v12, 2 }
 0x122   : > { %12125 = vperm.xlu1 %11588, %v13119_v18   ;;  %v11792_v18 = vunpack.i.l.bf16 %v13524_v9  ;;  %v13630_v9 = vmul.f32 %v11798_v5, %v12922_v58  ;;  %v13643_v31 = vmul.f32 %v11802_v10, %v12922_v58  ;;  %v11818_v5 = vunpack.i.h.bf16 %v11816_v63  ;;  %v11826_v3 = vpop.permute.xlu1 %11825  ;;  %v17347_v10 = vld [vmem:[#allocation34_spill] sm:$0xff] }
 0x123   : > { %v13675_v15 = vmul.f32 %v11817_v62, %v12922_v58  ;;  %v13684_v59 = vmul.f32 %v11823_v40, %v17347_v10  ;;  %v17349_v41 = vrot.slane %v13263_v51, 2  ;;  %v17351_v40 = vld [vmem:[#allocation38_spill] sm:$0xff]  ;;  %v11828_v63 = vunpack.i.h.bf16 %v11826_v3 }
 0x124   : > { %v13627_v37 = vmul.f32 %v11792_v18, %v12922_v58  ;;  %12140 = vperm.xlu0 %11577, %v13129_v57   ;;  %v1930_v18 = vrot.slane %v13616_v49, 2  ;;  %v13657_v57 = vmul.f32 %v11807_v16, %v12922_v58  ;;  %v11812_v49 = vunpack.i.l.bf16 %v13585_v27 }
 0x125   : > { %v13671_v27 = vmul.f32 %v11818_v5, %v12922_v58  ;;  %v1922_v5 = vsel %vm1919_vm9, %v1920_v29, %v17348_v26  ;;  %v13707_v51 = vmul.f32 %v11822_v53, %v17347_v10  ;;  %v17354_v12 = vrot.slane %v13279_v47, 2 }
 0x126   : > { %12135 = vperm.xlu1 %11588, %v17346_v38   ;;  %v11831_v38 = vpop.permute.xlu0 %11830  ;;  %v13668_v16 = vmul.f32 %v11812_v49, %v12922_v58  ;;  %v13697_v62 = vadd.f32 %v1922_v5, %v1675_v33  ;;  %v11827_v49 = vunpack.i.l.bf16 %v11826_v3  ;;  %v11836_v58 = vpop.permute.xlu1 %11835  ;;  %v17355_v33 = vrot.slane %v13592_v56, 2 }
 0x127   : > { %v17356_v3 = vrot.slane %v13268_v52, 2  ;;  %v11832_v47 = vunpack.i.l.bf16 %v11831_v38 }
 0x128   : > { %12150 = vperm.xlu0 %11577, %v13135_v54   ;;  %v1676_v54 = vadd.f32 %v13289_v46, %v13100_v6  ;;  %v17350_v6 = vmov %v17348_v26  ;;  %v1927_v5 = vsel %vm1919_vm9, %v17355_v33, %v17354_v12  ;;  %v2294_v53 = vmul.f32 %v11827_v49, %v17347_v10 }
 0x129   : > { %v1924_v46 = vsel %vm1919_vm9, %v17350_v6, %v17349_v41  ;;  %v17357_v41 = vmov %v17354_v12  ;;  %v11833_v12 = vunpack.i.h.bf16 %v11831_v38  ;;  %v2296_v38 = vmul.f32 %v11832_v47, %v17347_v10 }
 0x12a   : > { %12145 = vperm.xlu1 %11588, %v13133_v21   ;;  %v17352_v21 = vld [vmem:[#allocation14_spill] sm:$0xff]  ;;  %v13704_v1 = vadd.f32 %v1924_v46, %v1676_v54  ;;  %v17358_v46 = vld [vmem:[#allocation43_spill] sm:$0xff] }
 0x12b   : > { %v1677_v29 = vadd.f32 %v13296_v4, %v17352_v21  ;;  %v1929_v4 = vsel %vm1919_vm9, %v17357_v41, %v17356_v3  ;;  %v11841_v21 = vpop.permute.xlu0 %11840  ;;  %v11838_v41 = vunpack.i.h.bf16 %v11836_v58 }
 0x12c   : > { %12160 = vperm.xlu0 %11577, %v17351_v40   ;;  %v17359_v40 = vld [vmem:[#allocation12_spill] sm:$0xff] }
 0x12d   : > { %v2034_v54 = vadd.f32 %v1927_v5, %v1677_v29  ;;  %v1679_v56 = vadd.f32 %v13323_v14, %v17359_v40  ;;  %v17361_v29 = vld [vmem:[#allocation11_spill] sm:$0xff]  ;;  %v17366_v40 = vrot.slane %v13315_v34, 2 }
 0x12e   : > { %12155 = vperm.xlu1 %11588, %v13147_v39   ;;  %v17353_v39 = vld [vmem:[#allocation13_spill] sm:$0xff]  ;;  %v1680_v49 = vadd.f32 %v13326_v25, %v17361_v29 }
 0x12f   : > { %v1678_v26 = vadd.f32 %v13299_v20, %v17353_v39  ;;  %v2295_v20 = vmul.f32 %v11828_v63, %v17347_v10  ;;  %v17360_v39 = vrot.slane %v13286_v35, 2  ;;  %v13728_v33 = vadd.f32 %v2294_v53, %v2034_v54  ;;  %v17364_v53 = vld [vmem:[#allocation19_spill] sm:$0xff] }
 0x130   : > { %12170 = vperm.xlu0 %11577, %v13196_v60   ;;  %v11837_v54 = vunpack.i.l.bf16 %v11836_v58  ;;  %v17368_v58 = vld [vmem:[#allocation62_spill] sm:$0xff] }
 0x131   : > { %v2035_v6 = vadd.f32 %v1929_v4, %v1678_v26  ;;  %v1932_v52 = vsel %vm1919_vm9, %v1930_v18, %v17360_v39  ;;  %v17362_v26 = vrot.slane %v13303_v32, 2  ;;  %v17363_v5 = vmov %v17360_v39 }
 0x132   : > { %12165 = vperm.xlu1 %11588, %v17358_v46   ;;  %v2036_v3 = vadd.f32 %v1932_v52, %v1679_v56  ;;  %v2297_v18 = vmul.f32 %v11833_v12, %v17347_v10  ;;  %v11846_v46 = vpop.permute.xlu1 %11845  ;;  %v2299_v32 = vmul.f32 %v11838_v41, %v17347_v10  ;;  %v17367_v56 = vrot.slane %v13608_v11, 2  ;;  %v17372_v11 = vld [vmem:[#allocation21_spill] sm:$0xff]  ;;  %v17375_v41 = vld [vmem:[#allocation16_spill] sm:$0xff] }
 0x133   : > { %v13730_v63 = vadd.f32 %v2295_v20, %v2035_v6  ;;  %v1934_v14 = vsel %vm1919_vm9, %v17363_v5, %v17362_v26  ;;  %v1681_v20 = vadd.f32 %v13336_v44, %v17364_v53  ;;  %v17365_v6 = vld [vmem:[#allocation18_spill] sm:$0xff]  ;;  %v17369_v52 = vrot.slane %v17368_v58, 2 }
 0x134   : > { %v2037_v4 = vadd.f32 %v1934_v14, %v1680_v49  ;;  %v1682_v25 = vadd.f32 %v13348_v8, %v17365_v6  ;;  %v13746_v35 = vadd.f32 %v2296_v38, %v2036_v3  ;;  %v1937_v39 = vsel %vm1919_vm9, %v17367_v56, %v17366_v40  ;;  %v11851_v8 = vpop.permute.xlu0 %11850  ;;  %12180 = vperm.xlu0 %11577, %v13196_v60   ;;  %v17373_v14 = vld [vmem:[#allocation15_spill] sm:$0xff]  ;;  %v17374_v38 = vld [vmem:[#allocation20_spill] sm:$0xff] }
 0x135   : > { %v17370_v44 = vmov %v17366_v40  ;;  %v2038_v47 = vadd.f32 %v1937_v39, %v1681_v20  ;;  %v2298_v49 = vmul.f32 %v11837_v54, %v17347_v10  ;;  %v11843_v26 = vunpack.i.h.bf16 %v11841_v21  ;;  %v17378_v40 = vld [vmem:[#allocation63_spill] sm:$0xff] }
 0x136   : > { %12175 = vperm.xlu1 %11588, %v13217_v24   ;;  %v1939_v12 = vsel %vm1919_vm9, %v17370_v44, %v17369_v52  ;;  %v13760_v24 = vadd.f32 %v2297_v18, %v2037_v4  ;;  %v11842_v5 = vunpack.i.l.bf16 %v11841_v21  ;;  %v1683_v3 = vadd.f32 %v17373_v14, %v17372_v11  ;;  %v17381_v20 = vld [vmem:[#allocation7_spill] sm:$0xff]  ;;  %v17388_v14 = vld [vmem:[#allocation68_spill] sm:$0xff] }
 0x137   : > { %v2039_v29 = vadd.f32 %v1939_v12, %v1682_v25  ;;  %v1684_v53 = vadd.f32 %v17375_v41, %v17374_v38  ;;  %v13767_v34 = vadd.f32 %v2298_v49, %v2038_v47  ;;  %v17379_v56 = vrot.slane %v17378_v40, 2  ;;  %v17384_v39 = vld [vmem:[#allocation51_spill] sm:$0xff]  ;;  %v17385_v47 = vld [vmem:[#allocation24_spill] sm:$0xff]  ;;  %v11856_v41 = vpop.permute.xlu1 %11855 }
 0x138   : > { %17371 = vst [vmem:[#allocation34_spill] sm:$0xff] %v13760_v24  ;;  %v17380_v18 = vrot.slane %v13627_v37, 2  ;;  %v17382_v54 = vrot.slane %v17381_v20, 2  ;;  %v2301_v58 = vmul.f32 %v11843_v26, %v17347_v10  ;;  %12190 = vperm.xlu0 %11577, %v13196_v60   ;;  %v11848_v12 = vunpack.i.h.bf16 %v11846_v46  ;;  %v17387_v11 = vld [vmem:[#allocation23_spill] sm:$0xff]  ;;  %v17391_v26 = vld [vmem:[#allocation65_spill] sm:$0xff]  ;;  %v17394_v60 = vld [vmem:[#allocation64_spill] sm:$0xff]  ;;  %v11861_v20 = vpop.permute.xlu0 %11860 }
 0x139   : > { %17376 = vst [vmem:[#allocation38_spill] sm:$0xff] %v13767_v34  ;;  %v13769_v6 = vadd.f32 %v2299_v32, %v2039_v29  ;;  %v17383_v21 = vmov %v17379_v56  ;;  %v2300_v32 = vmul.f32 %v11842_v5, %v17347_v10  ;;  %v11847_v37 = vunpack.i.l.bf16 %v11846_v46  ;;  %v17386_v29 = vld [vmem:[#allocation67_spill] sm:$0xff] }
 0x13a   : > { %v1942_v4 = vsel %vm1919_vm9, %v17380_v18, %v17379_v56  ;;  %v1944_v25 = vsel %vm1919_vm9, %v17383_v21, %v17382_v54  ;;  %12185 = vperm.xlu1 %11588, %v17384_v39   ;;  %v1685_v49 = vadd.f32 %v17386_v29, %v17385_v47  ;;  %v1686_v38 = vadd.f32 %v17388_v14, %v17387_v11  ;;  %v17401_v11 = vld [vmem:[#allocation32_spill] sm:$0xff]  ;;  %v17402_v14 = vld [vmem:[#allocation71_spill] sm:$0xff] }
 0x13b   : > { %17377 = vst [vmem:[#allocation14_spill] sm:$0xff] %v13769_v6  ;;  %v2040_v52 = vadd.f32 %v1942_v4, %v1683_v3  ;;  %v2041_v44 = vadd.f32 %v1944_v25, %v1684_v53  ;;  %v17392_v3 = vrot.slane %v17391_v26, 2  ;;  %v17393_v53 = vrot.slane %v13621_v7, 2 }
 0x13c   : > { %v17395_v18 = vrot.slane %v17394_v60, 2  ;;  %v2303_v54 = vmul.f32 %v11848_v12, %v17347_v10  ;;  %v2302_v39 = vmul.f32 %v11847_v37, %v17347_v10  ;;  %v17400_v7 = vrot.slane %v13637_v30, 2  ;;  %v17406_v37 = vld [vmem:[#allocation31_spill] sm:$0xff] }
 0x13d   : > { %v13789_v40 = vadd.f32 %v2300_v32, %v2040_v52  ;;  %v13791_v56 = vadd.f32 %v2301_v58, %v2041_v44  ;;  %v1947_v5 = vsel %vm1919_vm9, %v17393_v53, %v17392_v3  ;;  %v17396_v46 = vmov %v17392_v3  ;;  %v17397_v58 = vld [vmem:[#allocation52_spill] sm:$0xff]  ;;  %v17398_v52 = vld [vmem:[#allocation66_spill] sm:$0xff]  ;;  %v17403_v3 = vld [vmem:[#allocation53_spill] sm:$0xff] }
 0x13e   : > { %v1949_v4 = vsel %vm1919_vm9, %v17396_v46, %v17395_v18  ;;  %v2042_v21 = vadd.f32 %v1947_v5, %v1685_v49  ;;  %12195 = vperm.xlu1 %11588, %v17397_v58   ;;  %v17399_v44 = vrot.slane %v17398_v52, 2  ;;  %v11853_v47 = vunpack.i.h.bf16 %v11851_v8  ;;  %12200 = vperm.xlu0 %11577, %v17403_v3   ;;  %v17408_v5 = vld [vmem:[#allocation17_spill] sm:$0xff]  ;;  %v11866_v3 = vpop.permute.xlu1 %11865 }
 0x13f   : > { %17389 = vst [vmem:[#allocation13_spill] sm:$0xff] %v13789_v40  ;;  %17390 = vst [vmem:[#allocation43_spill] sm:$0xff] %v13791_v56  ;;  %v2043_v25 = vadd.f32 %v1949_v4, %v1686_v38  ;;  %v11852_v29 = vunpack.i.l.bf16 %v11851_v8  ;;  %v1687_v26 = vadd.f32 %v17402_v14, %v17401_v11  ;;  %v17407_v38 = vld [vmem:[#allocation9_spill] sm:$0xff]  ;;  %v17409_v60 = vrot.slane %v17408_v5, 2  ;;  %v17414_v11 = vld [vmem:[#allocation72_spill] sm:$0xff] }
 0x140   : > { %v1952_v32 = vsel %vm1919_vm9, %v17400_v7, %v17399_v44  ;;  %v13814_v12 = vadd.f32 %v2302_v39, %v2042_v21  ;;  %v1688_v53 = vadd.f32 %v17407_v38, %v17406_v37  ;;  %v17410_v30 = vmov %v17399_v44  ;;  %v17411_v39 = vld [vmem:[#allocation40_spill] sm:$0xff]  ;;  %v17413_v7 = vld [vmem:[#allocation39_spill] sm:$0xff]  ;;  %v17415_v37 = vld [vmem:[#allocation61_spill] sm:$0xff] }
 0x141   : > { %v13816_v49 = vadd.f32 %v2303_v54, %v2043_v25  ;;  %v1954_v18 = vsel %vm1919_vm9, %v17410_v30, %v17409_v60  ;;  %v2305_v8 = vmul.f32 %v11853_v47, %v17347_v10  ;;  %v2044_v46 = vadd.f32 %v1952_v32, %v1687_v26  ;;  %v17412_v54 = vld [vmem:[#allocation22_spill] sm:$0xff]  ;;  %v11871_v30 = vpop.permute.xlu0 %11870 }
 0x142   : > { %17404 = vst [vmem:[#allocation12_spill] sm:$0xff] %v13814_v12  ;;  %v2304_v4 = vmul.f32 %v11852_v29, %v17347_v10  ;;  %v11858_v58 = vunpack.i.h.bf16 %v11856_v41  ;;  %v2045_v44 = vadd.f32 %v1954_v18, %v1688_v53  ;;  %v11857_v21 = vunpack.i.l.bf16 %v11856_v41  ;;  %12205 = vperm.xlu1 %11588, %v17415_v37   ;;  %v17417_v47 = vld [vmem:[#allocation70_spill] sm:$0xff]  ;;  %v17420_v41 = vld [vmem:[#allocation69_spill] sm:$0xff] }
 0x143   : > { %17405 = vst [vmem:[#allocation11_spill] sm:$0xff] %v13816_v49  ;;  %v1689_v25 = vadd.f32 %v17412_v54, %v17411_v39  ;;  %v1690_v14 = vadd.f32 %v17414_v11, %v17413_v7  ;;  %v17418_v32 = vrot.slane %v17417_v47, 2  ;;  %v17419_v29 = vrot.slane %v13630_v9, 2  ;;  %v17424_v7 = vld [vmem:[#allocation49_spill] sm:$0xff]  ;;  %v17425_v11 = vld [vmem:[#allocation74_spill] sm:$0xff] }
 0x144   : > { %v13832_v52 = vadd.f32 %v2304_v4, %v2044_v46  ;;  %v2307_v38 = vmul.f32 %v11858_v58, %v17347_v10  ;;  %v17421_v53 = vrot.slane %v17420_v41, 2  ;;  %v13845_v18 = vadd.f32 %v2305_v8, %v2045_v44  ;;  %v17426_v37 = vld [vmem:[#allocation46_spill] sm:$0xff]  ;;  %v17431_v41 = vld [vmem:[#allocation25_spill] sm:$0xff] }
 0x145   : > { %v1957_v26 = vsel %vm1919_vm9, %v17419_v29, %v17418_v32  ;;  %v17422_v5 = vmov %v17418_v32  ;;  %v2306_v4 = vmul.f32 %v11857_v21, %v17347_v10  ;;  %v11863_v58 = vunpack.i.h.bf16 %v11861_v20  ;;  %v17427_v32 = vld [vmem:[#allocation27_spill] sm:$0xff] }
 0x146   : > { %17416 = vst [vmem:[#allocation19_spill] sm:$0xff] %v13832_v52  ;;  %v1959_v60 = vsel %vm1919_vm9, %v17422_v5, %v17421_v53  ;;  %17423 = vst [vmem:[#allocation18_spill] sm:$0xff] %v13845_v18  ;;  %v2046_v39 = vadd.f32 %v1957_v26, %v1689_v25  ;;  %v11862_v54 = vunpack.i.l.bf16 %v11861_v20  ;;  %v1691_v9 = vadd.f32 %v17425_v11, %v17424_v7  ;;  %v17428_v25 = vld [vmem:[#allocation10_spill] sm:$0xff] }
 0x147   : > { %v2047_v46 = vadd.f32 %v1959_v60, %v1690_v14  ;;  %v1692_v29 = vadd.f32 %v17427_v32, %v17426_v37  ;;  %v13854_v47 = vadd.f32 %v13707_v51, %v13697_v62  ;;  %v13858_v8 = vadd.f32 %v13684_v59, %v13704_v1  ;;  %v17436_v11 = vld [vmem:[#allocation50_spill] sm:$0xff]  ;;  %v11876_v32 = vpop.permute.xlu1 %11875 }
 0x148   : > { %v13860_v44 = vadd.f32 %v2306_v4, %v2046_v39  ;;  %v17429_v21 = vrot.slane %v17428_v25, 2  ;;  %v17430_v20 = vrot.slane %v13643_v31, 2  ;;  %v17432_v53 = vrot.slane %v17431_v41, 2  ;;  %v17434_v39 = vld [vmem:[#allocation35_spill] sm:$0xff]  ;;  %v17435_v4 = vld [vmem:[#allocation28_spill] sm:$0xff]  ;;  %v17441_v41 = vld [vmem:[#allocation26_spill] sm:$0xff] }
 0x149   : > { %v13867_v26 = vadd.f32 %v2307_v38, %v2047_v46  ;;  %v2308_v59 = vmul.f32 %v11862_v54, %v17347_v10  ;;  %v11868_v1 = vunpack.i.h.bf16 %v11866_v3  ;;  %v11867_v60 = vunpack.i.l.bf16 %v11866_v3  ;;  %v17437_v31 = vld [vmem:[#allocation76_spill] sm:$0xff] }
 0x14a   : > { %v1962_v14 = vsel %vm1919_vm9, %v17430_v20, %v17429_v21  ;;  %v17433_v5 = vmov %v17429_v21  ;;  %v1693_v7 = vadd.f32 %v17435_v4, %v17434_v39  ;;  %v1694_v37 = vadd.f32 %v17437_v31, %v17436_v11  ;;  %v17438_v21 = vld [vmem:[#allocation73_spill] sm:$0xff]  ;;  %v11881_v20 = vpop.permute.xlu0 %11880 }
 0x14b   : > { %v1964_v62 = vsel %vm1919_vm9, %v17433_v5, %v17432_v53  ;;  %v2048_v51 = vadd.f32 %v1962_v14, %v1691_v9  ;;  %v13880_v38 = vmul.f32 %v11863_v58, %v17347_v10  ;;  %v17439_v9 = vrot.slane %v17438_v21, 2  ;;  %v17447_v31 = vld [vmem:[#allocation37_spill] sm:$0xff]  ;;  %v17448_v21 = vld [vmem:[#allocation36_spill] sm:$0xff] }
 0x14c   : > { %v13882_v46 = vadd.f32 %v1964_v62, %v1692_v29  ;;  %v17440_v54 = vrot.slane %v13640_v43, 2  ;;  %v13892_v14 = vmul.f32 %v11868_v1, %v17347_v10  ;;  %v17442_v53 = vrot.slane %v17441_v41, 2 }
 0x14d   : > { %v13884_v25 = vadd.f32 %v2308_v59, %v2048_v51  ;;  %v17443_v5 = vmov %v17439_v9  ;;  %v2310_v62 = vmul.f32 %v11867_v60, %v17347_v10  ;;  %v17444_v51 = vld [vmem:[#allocation75_spill] sm:$0xff]  ;;  %v17446_v39 = vrot.slane %v13657_v57, 2 }
 0x14e   : > { %v1967_v3 = vsel %vm1919_vm9, %v17440_v54, %v17439_v9  ;;  %v1969_v58 = vsel %vm1919_vm9, %v17443_v5, %v17442_v53  ;;  %v17445_v59 = vrot.slane %v17444_v51, 2  ;;  %v11873_v4 = vunpack.i.h.bf16 %v11871_v30 }
 0x14f   : > { %v2050_v29 = vadd.f32 %v1967_v3, %v1693_v7  ;;  %v11872_v11 = vunpack.i.l.bf16 %v11871_v30  ;;  %v1695_v1 = vadd.f32 %v13487_v28, %v17447_v31  ;;  %v13907_v9 = vadd.f32 %v1969_v58, %v1694_v37  ;;  %v17451_v58 = vld [vmem:[#allocation42_spill] sm:$0xff] }
 0x150   : > { %v1972_v43 = vsel %vm1919_vm9, %v17446_v39, %v17445_v59  ;;  %v1696_v7 = vadd.f32 %v13505_v42, %v17448_v21  ;;  %v17449_v60 = vrot.slane %v13473_v13, 2  ;;  %v17450_v3 = vmov %v17445_v59  ;;  %v17453_v59 = vld [vmem:[#allocation77_spill] sm:$0xff]  ;;  %v11886_v39 = vpop.permute.xlu1 %11885  ;;  %v17454_v31 = vld [vmem:[#allocation30_spill] sm:$0xff] }
 0x151   : > { %v13909_v54 = vadd.f32 %v2310_v62, %v2050_v29  ;;  %v2313_v41 = vmul.f32 %v11873_v4, %v17347_v10  ;;  %v2052_v53 = vadd.f32 %v1972_v43, %v1695_v1  ;;  %v2312_v30 = vmul.f32 %v11872_v11, %v17347_v10  ;;  %v17452_v62 = vld [vmem:[#allocation41_spill] sm:$0xff] }
 0x152   : > { %v1974_v57 = vsel %vm1919_vm9, %v17450_v3, %v17449_v60  ;;  %v11878_v5 = vunpack.i.h.bf16 %v11876_v32  ;;  %v11877_v37 = vunpack.i.l.bf16 %v11876_v32  ;;  %v1697_v29 = vadd.f32 %v13508_v2, %v17451_v58  ;;  %v17457_v11 = vld [vmem:[#allocation29_spill] sm:$0xff] }
 0x153   : > { %v2053_v28 = vadd.f32 %v1974_v57, %v1696_v7  ;;  %v1698_v42 = vadd.f32 %v17453_v59, %v17452_v62  ;;  %v13924_v13 = vadd.f32 %v2312_v30, %v2052_v53  ;;  %v17455_v21 = vrot.slane %v17454_v31, 2  ;;  %v11891_v7 = vpop.permute.xlu0 %11890  ;;  %v17460_v58 = vld [vmem:[#allocation45_spill] sm:$0xff]  ;;  %v17461_v62 = vld [vmem:[#allocation44_spill] sm:$0xff] }
 0x154   : > { %v2315_v51 = vmul.f32 %v11878_v5, %v17347_v10  ;;  %v17456_v43 = vrot.slane %v13649_v50, 2  ;;  %v17458_v1 = vrot.slane %v17457_v11, 2  ;;  %v2314_v53 = vmul.f32 %v11877_v37, %v17347_v10  ;;  %v12299_v31 = vld [vmem:[%s17163_s3 + $0x18] sm:$0xff]  }
 0x155   : > { %v17459_v32 = vmov %v17455_v21  ;;  %v13937_v60 = vadd.f32 %v2313_v41, %v2053_v28  ;;  %v11883_v30 = vunpack.i.h.bf16 %v11881_v20  ;;  %v11882_v5 = vunpack.i.l.bf16 %v11881_v20  ;;  %v12300_v41 = vld [vmem:[%s17163_s3 + $0x10] sm:$0xff]   ;;  %v17464_v37 = vld [vmem:[#allocation33_spill] sm:$0xff]  ;;  %11560 = vmatprep.subr.bf16.mxu1 %v12299_v31  ;;  %11200 = vmatprep.subr.bf16.mxu0 %v12299_v31 }
 0x156   : > { %v1977_v4 = vsel %vm1919_vm9, %v17456_v43, %v17455_v21  ;;  %v1979_v2 = vsel %vm1919_vm9, %v17459_v32, %v17458_v1  ;;  %v1699_v50 = vadd.f32 %v13539_v22, %v17460_v58  ;;  %v1700_v59 = vadd.f32 %v13547_v36, %v17461_v62  ;;  %v17472_v58 = vld [vmem:[#allocation82_spill] sm:$0xff]  ;;  %11564 = vmatpush3.bf16.msra.mxu1 %v12299_v31 }
 0x157   : > { %v2054_v3 = vadd.f32 %v1977_v4, %v1697_v29  ;;  %v2055_v57 = vadd.f32 %v1979_v2, %v1698_v42  ;;  %v17465_v20 = vrot.slane %v17464_v37, 2  ;;  %v17466_v42 = vrot.slane %v13668_v16, 2  ;;  %11561 = vmatprep.subr.bf16.mxu1 %v12300_v41  ;;  %11201 = vmatpush3.bf16.msra.mxu0 %v12299_v31 }
 0x158   : > { %v17467_v36 = vrot.slane %v13520_v17, 2  ;;  %v2317_v4 = vmul.f32 %v11883_v30, %v17347_v10  ;;  %v2316_v32 = vmul.f32 %v11882_v5, %v17347_v10  ;;  %v11887_v2 = vunpack.i.l.bf16 %v11886_v39  ;;  %v11896_v17 = vpop.permute.xlu1 %11895  ;;  %v17475_v30 = vld [vmem:[#allocation79_spill] sm:$0xff]  ;;  %11202 = vmatprep.subr.bf16.mxu0 %v12300_v41 }
 0x159   : > { %v13950_v28 = vadd.f32 %v2314_v53, %v2054_v3  ;;  %v13952_v29 = vadd.f32 %v2315_v51, %v2055_v57  ;;  %v1982_v22 = vsel %vm1919_vm9, %v17466_v42, %v17465_v20  ;;  %v17468_v21 = vmov %v17465_v20  ;;  %v17469_v3 = vld [vmem:[#allocation48_spill] sm:$0xff]  ;;  %v17470_v57 = vld [vmem:[#allocation81_spill] sm:$0xff]  ;;  %v17471_v53 = vld [vmem:[#allocation47_spill] sm:$0xff] }
 0x15a   : > { %v1984_v43 = vsel %vm1919_vm9, %v17468_v21, %v17467_v36  ;;  %v2056_v11 = vadd.f32 %v1982_v22, %v1699_v50  ;;  %v11888_v51 = vunpack.i.h.bf16 %v11886_v39  ;;  %v1701_v16 = vadd.f32 %v17470_v57, %v17469_v3  ;;  %v17478_v39 = vld [vmem:[#allocation78_spill] sm:$0xff]  ;;  %v11901_v21 = vpop.permute.xlu0 %11900  ;;  %11565 = vmatpush3.bf16.msra.mxu1 %v12300_v41 }
 0x15b   : > { %17462 = vst [vmem:[#allocation62_spill] sm:$0xff] %v13950_v28  ;;  %17463 = vst [vmem:[#allocation21_spill] sm:$0xff] %v13952_v29  ;;  %v2057_v1 = vadd.f32 %v1984_v43, %v1700_v59  ;;  %v1702_v62 = vadd.f32 %v17472_v58, %v17471_v53  ;;  %v17476_v50 = vrot.slane %v17475_v30, 2  ;;  %v17477_v5 = vrot.slane %v13663_v0, 2  ;;  %v17484_v30 = vld [vmem:[#allocation55_spill] sm:$0xff]  ;;  %11203 = vmatpush3.bf16.msra.mxu0 %v12300_v41 }
 0x15c   : > { %v13970_v37 = vadd.f32 %v2316_v32, %v2056_v11  ;;  %v17479_v42 = vrot.slane %v17478_v39, 2  ;;  %v2319_v43 = vmul.f32 %v11888_v51, %v17347_v10  ;;  %v17483_v0 = vrot.slane %v13675_v15, 2  ;;  %v4179_v29 = vld [vmem:[#allocation2 + $0xc0] sm:$0xe] }
 0x15d   : > { %v13972_v20 = vadd.f32 %v2317_v4, %v2057_v1  ;;  %v1987_v59 = vsel %vm1919_vm9, %v17477_v5, %v17476_v50  ;;  %v17480_v22 = vmov %v17476_v50  ;;  %v2318_v4 = vmul.f32 %v11887_v2, %v17347_v10  ;;  %v17481_v1 = vld [vmem:[#allocation80_spill] sm:$0xff] }
 0x15e   : > { %17473 = vst [vmem:[#allocation15_spill] sm:$0xff] %v13970_v37  ;;  %v1989_v36 = vsel %vm1919_vm9, %v17480_v22, %v17479_v42  ;;  %v2058_v11 = vadd.f32 %v1987_v59, %v1701_v16  ;;  %v17482_v3 = vrot.slane %v17481_v1, 2  ;;  %v11893_v53 = vunpack.i.h.bf16 %v11891_v7  ;;  %v17487_v16 = vld [vmem:[#allocation54_spill] sm:$0xff] }
 0x15f   : > { %17474 = vst [vmem:[#allocation20_spill] sm:$0xff] %v13972_v20  ;;  %v2059_v32 = vadd.f32 %v1989_v36, %v1702_v62  ;;  %v11892_v58 = vunpack.i.l.bf16 %v11891_v7  ;;  %v1703_v50 = vadd.f32 %v13589_v55, %v17484_v30  ;;  %v1704_v2 = vadd.f32 %v13597_v48, %v17487_v16  ;;  %v17490_v36 = vld [vmem:[#allocation58_spill] sm:$0xff] }
 0x160   : > { %v1992_v57 = vsel %vm1919_vm9, %v17483_v0, %v17482_v3  ;;  %v13993_v5 = vadd.f32 %v2318_v4, %v2058_v11  ;;  %v17488_v31 = vrot.slane %v13572_v19, 2  ;;  %v17489_v62 = vmov %v17482_v3  ;;  %v17491_v11 = vld [vmem:[#allocation57_spill] sm:$0xff]  ;;  %v2942_v19 = vld [vmem:[#allocation2 + $0x54] sm:$0xe] }
 0x161   : > { %v13995_v51 = vadd.f32 %v2319_v43, %v2059_v32  ;;  %v2321_v7 = vmul.f32 %v11893_v53, %v17347_v10  ;;  %v2060_v59 = vadd.f32 %v1992_v57, %v1703_v50  ;;  %v2320_v55 = vmul.f32 %v11892_v58, %v17347_v10  ;;  %v11906_v32 = vpop.permute.xlu1 %11905 }
 0x162   : > { %17485 = vst [vmem:[#allocation16_spill] sm:$0xff] %v13993_v5  ;;  %v1994_v15 = vsel %vm1919_vm9, %v17489_v62, %v17488_v31  ;;  %v11898_v39 = vunpack.i.h.bf16 %v11896_v17  ;;  %v11897_v22 = vunpack.i.l.bf16 %v11896_v17  ;;  %v1705_v43 = vadd.f32 %v13604_v61, %v17490_v36  ;;  %v17495_v17 = vld [vmem:[#allocation83_spill] sm:$0xff]  ;;  %v17502_v36 = vld [vmem:[#allocation60_spill] sm:$0xff] }
 0x163   : > { %17486 = vst [vmem:[#allocation63_spill] sm:$0xff] %v13995_v51  ;;  %v2061_v42 = vadd.f32 %v1994_v15, %v1704_v2  ;;  %v1706_v48 = vadd.f32 %v13613_v23, %v17491_v11  ;;  %v14010_v4 = vadd.f32 %v2320_v55, %v2060_v59  ;;  %v17493_v3 = vrot.slane %v13582_v45, 2  ;;  %v11911_v23 = vpop.permute.xlu0 %11910  ;;  %v12301_v2 = vld [vmem:[%s17163_s3 + $0x8] sm:$0xff]   ;;  %v3303_v5 = vld [vmem:[#allocation2 + $0x54] sm:$0xff]  }
 0x164   : > { %v2323_v1 = vmul.f32 %v11898_v39, %v17347_v10  ;;  %v17494_v0 = vrot.slane %v13671_v27, 2  ;;  %v17496_v53 = vrot.slane %v17495_v17, 2  ;;  %v2322_v16 = vmul.f32 %v11897_v22, %v17347_v10  ;;  %11562 = vmatprep.subr.bf16.mxu1 %v12301_v2  ;;  %11204 = vmatprep.subr.bf16.mxu0 %v12301_v2 }
 0x165   : > { %17492 = vst [vmem:[#allocation7_spill] sm:$0xff] %v14010_v4  ;;  %v17497_v61 = vmov %v17493_v3  ;;  %v14023_v30 = vadd.f32 %v2321_v7, %v2061_v42  ;;  %v11903_v27 = vunpack.i.h.bf16 %v11901_v21  ;;  %v11902_v31 = vunpack.i.l.bf16 %v11901_v21  ;;  %v17501_v7 = vld [vmem:[#allocation56_spill] sm:$0xff]  ;;  %11566 = vmatpush3.bf16.msra.mxu1 %v12301_v2  ;;  %11205 = vmatpush3.bf16.msra.mxu0 %v12301_v2  ;;  %v11916_v2 = vpop.permute.xlu1 %11915 }
 0x166   : > { %v1997_v57 = vsel %vm1919_vm9, %v17494_v0, %v17493_v3  ;;  %v1999_v58 = vsel %vm1919_vm9, %v17497_v61, %v17496_v53  ;;  %v2958_v62 = vunpack.c.l.bf16 %v2942_v19  ;;  %v11908_v15 = vunpack.i.h.bf16 %v11906_v32  ;;  %v3624_v3 = vld [vmem:[#allocation2 + $0xb4] sm:$0xff]  }
 0x167   : > { %17498 = vst [vmem:[#allocation51_spill] sm:$0xff] %v14023_v30  ;;  %v2062_v41 = vadd.f32 %v1997_v57, %v1705_v43  ;;  %v2063_v50 = vadd.f32 %v1999_v58, %v1706_v48  ;;  %v11907_v55 = vunpack.i.l.bf16 %v11906_v32  ;;  %v11913_v39 = vunpack.i.h.bf16 %v11911_v23  ;;  %v17503_v43 = vld [vmem:[#allocation59_spill] sm:$0xff]  ;;  %v3319_v61 = vld [vmem:[#allocation2 + $0xb4] sm:$0xff]   ;;  %v3626_v58 = vld [vmem:[#allocation2 + $0xbc] sm:$0x1] }
 0x168   : > { %v2697_v42 = vmul.f32 %v11903_v27, %v17501_v7  ;;  %v14035_v10 = vmul.f32 %v11903_v27, %v17502_v36  ;;  %v2696_v22 = vmul.f32 %v11902_v31, %v17501_v7  ;;  %v17504_v11 = vunpack.c.l.bf16 %v17503_v43  ;;  %v11921_v31 = vpop.permute.xlu0 %11920 }
 0x169   : > { %v14029_v59 = vadd.f32 %v2322_v16, %v2062_v41  ;;  %v14031_v45 = vadd.f32 %v2323_v1, %v2063_v50  ;;  %v2699_v48 = vmul.f32 %v11908_v15, %v17501_v7  ;;  %v2698_v19 = vmul.f32 %v11907_v55, %v17501_v7 }
 0x16a   : > { %v12209_v21 = vpack.i.bf16 %v2958_v62, %v17504_v11  ;;  %v14043_v32 = vmul.f32 %v11907_v55, %v17502_v36  ;;  %v2701_v1 = vmul.f32 %v11913_v39, %v17501_v7  ;;  %v14048_v0 = vadd.f32 %v13880_v38, %v13882_v46  ;;  %v12303_v38 = vld [vmem:[%s17163_s3] sm:$0xff]  }
 0x16b   : > { %17499 = vst [vmem:[#allocation24_spill] sm:$0xff] %v14029_v59  ;;  %17500 = vst [vmem:[#allocation67_spill] sm:$0xff] %v14031_v45  ;;  %v14052_v57 = vadd.f32 %v13892_v14, %v13907_v9  ;;  %v2793_v17 = vrot.slane %v2697_v42, 1  ;;  %v2792_v53 = vrot.slane %v2696_v22, 1  ;;  %v2797_v50 = vrot.slane %v2699_v48, 1  ;;  %11563 = vmatprep.subr.bf16.mxu1 %v12303_v38  ;;  %11206 = vmatprep.subr.bf16.mxu0 %v12303_v38  ;;  %v17507_v45 = vld [vmem:[#allocation6_spill] sm:$0xff] }
 0x16c   : > { %12210 = vperm.xlu0 %11577, %v12209_v21   ;;  %v2795_v16 = vrot.slane %v2698_v19, 1  ;;  %v14056_v27 = vmul.f32 %v11913_v39, %v17502_v36  ;;  %v2800_v14 = vrot.slane %v2701_v1, 1  ;;  %v11912_v9 = vunpack.i.l.bf16 %v11911_v23  ;;  %11567 = vmatpush3.bf16.msra.mxu1 %v12303_v38 }
 0x16d   : > { %v3672_v62 = vunpack.c.l.bf16 %v3624_v3  ;;  %v14063_v15 = vsel %vm1562_vm8, %v2792_v53, %v2793_v17  ;;  %v3673_v55 = vunpack.c.h.bf16 %v3624_v3  ;;  %v3351_v42 = vunpack.c.l.bf16 %v3319_v61  ;;  %11207 = vmatpush3.bf16.msra.mxu0 %v12303_v38 }
 0x16e   : > { %v3674_v22 = vunpack.c.l.bf16 %v3626_v58  ;;  %v2700_v39 = vmul.f32 %v11912_v9, %v17501_v7  ;;  %v14067_v43 = vmul.f32 %v11912_v9, %v17502_v36  ;;  %v11918_v11 = vunpack.i.h.bf16 %v11916_v2 }
 0x16f   : > { %v11917_v21 = vunpack.i.l.bf16 %v11916_v2  ;;  %v12214_v48 = vpack.i.bf16 %v3673_v55, %v3672_v62  ;;  %v11923_v19 = vunpack.i.h.bf16 %v11921_v31  ;;  %v11922_v1 = vunpack.i.l.bf16 %v11921_v31  ;;  %v14080_v31 = vld [vmem:[#allocation2 + $0xc0] sm:$0xff]  }
 0x170   : > { %v12219_v23 = vpack.i.bf16 %v3351_v42, %v3674_v22  ;;  %v14070_v53 = vsel %vm1562_vm8, %v2793_v17, %v2795_v16  ;;  %v2798_v3 = vrot.slane %v2700_v39, 1  ;;  %v2703_v58 = vmul.f32 %v11918_v11, %v17501_v7  ;;  %v11926_v17 = vpop.permute.xlu1 %11925  ;;  %v11931_v16 = vpop.permute.xlu0 %11930  ;;  %v3600_v42 = vld [vmem:[#allocation2 + $0x54] sm:$0xff]  }
 0x171   : > { %v14074_v46 = vmul.f32 %v11918_v11, %v17502_v36  ;;  %12215 = vperm.xlu1 %11588, %v12214_v48   ;;  %v2702_v2 = vmul.f32 %v11917_v21, %v17501_v7  ;;  %v2705_v38 = vmul.f32 %v11923_v19, %v17501_v7  ;;  %v2704_v62 = vmul.f32 %v11922_v1, %v17501_v7  ;;  %v806_v19 = vld [vmem:[#allocation2 + $0xc8] sm:$0x1] }
 0x172   : > { %12220 = vperm.xlu0 %11577, %v12219_v23   ;;  %v14083_v55 = vsel %vm1562_vm8, %v2797_v50, %v2798_v3  ;;  %v2803_v22 = vrot.slane %v2703_v58, 1  ;;  %v3352_v39 = vunpack.c.h.bf16 %v3319_v61  ;;  %v14087_v11 = vsel %vm1562_vm8, %v2798_v3, %v2800_v14 }
 0x173   : > { %17505 = vst [vmem:[#allocation23_spill] sm:$0xff] %v14074_v46  ;;  %v2802_v48 = vrot.slane %v2702_v2, 1  ;;  %v2805_v23 = vrot.slane %v2704_v62, 1  ;;  %v14091_v9 = vmul.f32 %v11922_v1, %v17502_v36  ;;  %v10974_v41 = vunpack.c.l.bf16 %v14080_v31 }
 0x174   : > { %v642_v50 = vrot.slane %v17507_v45, 4  ;;  %v11928_v59 = vunpack.i.h.bf16 %v11926_v17  ;;  %v2807_v18 = vrot.slane %v2705_v38, 1  ;;  %v10975_v61 = vunpack.c.h.bf16 %v14080_v31  ;;  %v11936_v31 = vpop.permute.xlu1 %11935 }
 0x175   : > { %17506 = vst [vmem:[#allocation68_spill] sm:$0xff] %v14091_v9  ;;  %v14096_v58 = vsel %vm1562_vm8, %v2803_v22, %v2805_v23  ;;  %v11927_v14 = vunpack.i.l.bf16 %v11926_v17  ;;  %v12224_v3 = vpack.i.bf16 %v10974_v41, %v3352_v39  ;;  %v11933_v23 = vunpack.i.h.bf16 %v11931_v16  ;;  %v11941_v17 = vpop.permute.xlu0 %11940 }
 0x176   : > { %17508 = vst [vmem:[#allocation65_spill] sm:$0xff] %v14096_v58  ;;  %v807_v2 = vsel %vm12744_vm7, %v642_v50, %v806_v19  ;;  %v2707_v62 = vmul.f32 %v11928_v59, %v17501_v7  ;;  %v14103_v1 = vmul.f32 %v11928_v59, %v17502_v36  ;;  %v11932_v52 = vunpack.i.l.bf16 %v11931_v16 }
 0x177   : > { %808 = vst [vmem:[#allocation2 + $0xc8] sm:$0x1] %v807_v2  ;;  %v2706_v45 = vmul.f32 %v11927_v14, %v17501_v7  ;;  %v14107_v38 = vmul.f32 %v11927_v14, %v17502_v36  ;;  %v14110_v39 = vsel %vm1562_vm8, %v2802_v48, %v2803_v22  ;;  %12225 = vperm.xlu1 %11588, %v12224_v3   ;;  %v3648_v14 = vunpack.c.l.bf16 %v3600_v42 }
 0x178   : > { %17510 = vst [vmem:[#allocation64_spill] sm:$0xff] %v14103_v1  ;;  %17512 = vst [vmem:[#allocation66_spill] sm:$0xff] %v14110_v39  ;;  %v2810_v19 = vrot.slane %v2707_v62, 1  ;;  %v14113_v59 = vpack.i.bf16 %v10975_v61, %v10974_v41  ;;  %v2717_v2 = vmul.f32 %v11933_v23, %v17501_v7  ;;  %v14117_v49 = vmul.f32 %v11932_v52, %v17501_v7  ;;  %v3602_v62 = vld [vmem:[#allocation2 + $0x5c] sm:$0x1]  ;;  %v11946_v56 = vpop.permute.xlu1 %11945  ;;  %v11015_v41 = vld [vmem:[#allocation2 + $0x60] sm:$0xff]  }
 0x179   : > { %17511 = vst [vmem:[#allocation52_spill] sm:$0xff] %v14107_v38  ;;  %v2808_v50 = vrot.slane %v2706_v45, 1  ;;  %v3649_v12 = vunpack.c.h.bf16 %v3600_v42  ;;  %v11938_v16 = vunpack.i.h.bf16 %v11936_v31  ;;  %v11937_v4 = vunpack.i.l.bf16 %v11936_v31 }
 0x17a   : > { %17513 = vst [vmem:[#allocation32_spill] sm:$0xff] %v14117_v49  ;;  %v11943_v30 = vunpack.i.h.bf16 %v11941_v17  ;;  %v2827_v45 = vrot.slane %v2717_v2, 1  ;;  %v4178_v2 = vld [vmem:[#allocation2 + $0xb4] sm:$0xe]  ;;  %v11947_v20 = vunpack.i.l.bf16 %v11946_v56  ;;  %v2905_v46 = vadd.f32 %v14070_v53, %v13858_v8 }
 0x17b   : > { %v14121_v48 = vsel %vm1562_vm8, %v2807_v18, %v2808_v50  ;;  %v14124_v3 = vsel %vm1562_vm8, %v2808_v50, %v2810_v19  ;;  %12235 = vperm.xlu1 %11588, %v14113_v59   ;;  %v2719_v52 = vmul.f32 %v11938_v16, %v17501_v7  ;;  %v14130_v42 = vmul.f32 %v11938_v16, %v17502_v36 }
 0x17c   : > { %17514 = vst [vmem:[#allocation71_spill] sm:$0xff] %v14121_v48  ;;  %17515 = vst [vmem:[#allocation53_spill] sm:$0xff] %v14124_v3  ;;  %v2718_v23 = vmul.f32 %v11937_v4, %v17501_v7  ;;  %v14134_v31 = vmul.f32 %v11937_v4, %v17502_v36  ;;  %v14137_v18 = vmul.f32 %v11943_v30, %v17501_v7  ;;  %v11942_v50 = vunpack.i.l.bf16 %v11941_v17  ;;  %v11951_v3 = vpop.permute.xlu0 %11950 }
 0x17d   : > { %v14140_v19 = vmul.f32 %v11943_v30, %v17502_v36  ;;  %v12239_v21 = vpack.i.bf16 %v3649_v12, %v3648_v14  ;;  %v2830_v51 = vrot.slane %v2719_v52, 1  ;;  %v3650_v16 = vunpack.c.l.bf16 %v3602_v62 }
 0x17e   : > { %v3629_v22 = vld [vmem:[#allocation2 + $0xc8] sm:$0x1]  ;;  %v2828_v1 = vrot.slane %v2718_v23, 1  ;;  %v2720_v6 = vmul.f32 %v11942_v50, %v17501_v7  ;;  %v4194_v48 = vunpack.c.l.bf16 %v4178_v2  ;;  %v3335_v14 = vunpack.c.l.bf16 %v3303_v5 }
 0x17f   : > { %v3677_v40 = vunpack.c.l.bf16 %v3629_v22  ;;  %v3336_v62 = vunpack.c.h.bf16 %v3303_v5  ;;  %v11948_v52 = vunpack.i.h.bf16 %v11946_v56  ;;  %v11953_v4 = vunpack.i.h.bf16 %v11951_v3  ;;  %v3605_v23 = vld [vmem:[#allocation2 + $0x68] sm:$0x1]  ;;  %v816_v5 = vld [vmem:[%s17161_s1 + $0x7] sm:$0x1] }
 0x180   : > { %v2832_v34 = vrot.slane %v2720_v6, 1  ;;  %v12244_v22 = vpack.i.bf16 %v4194_v48, %v3650_v16  ;;  %v2829_v38 = vsel %vm1562_vm8, %v2827_v45, %v2828_v1  ;;  %v11952_v37 = vunpack.i.l.bf16 %v11951_v3  ;;  %v11956_v45 = vpop.permute.xlu1 %11955 }
 0x181   : > { %v12229_v12 = vpack.i.bf16 %v3677_v40, %v10975_v61  ;;  %v3073_v30 = vmul.f32 %v11948_v52, %v17502_v36  ;;  %v10958_v17 = vunpack.c.l.bf16 %v11015_v41  ;;  %v14151_v50 = vsel %vm1562_vm8, %v2828_v1, %v2830_v51  ;;  %v817_v61 = vld [vmem:[%s17161_s1 + $0x8] sm:$0x1]  ;;  %v815_v52 = vld [vmem:[%s17161_s1 + $0x6] sm:$0x1] }
 0x182   : > { %12245 = vperm.xlu1 %11588, %v12244_v22   ;;  %v2722_v40 = vmul.f32 %v11947_v20, %v17501_v7  ;;  %v14155_v6 = vmul.f32 %v11947_v20, %v17502_v36  ;;  %v14158_v56 = vmul.f32 %v11953_v4, %v17502_v36  ;;  %v12249_v48 = vpack.i.bf16 %v3336_v62, %v3335_v14  ;;  %v11961_v22 = vpop.permute.xlu0 %11960 }
 0x183   : > { %12230 = vperm.xlu0 %11577, %v12229_v12   ;;  %v3183_v51 = vrot.slane %v3073_v30, 2  ;;  %v10959_v1 = vunpack.c.h.bf16 %v11015_v41  ;;  %v3653_v3 = vunpack.c.l.bf16 %v3605_v23  ;;  %v17516_v2 = vrot.slane %v14137_v18, 1  ;;  %v4170_v23 = vld [vmem:[#allocation2 + $0x54] sm:$0xe] }
 0x184   : > { %v2835_v16 = vrot.slane %v2722_v40, 1  ;;  %v14172_v4 = vmul.f32 %v11952_v37, %v17502_v36  ;;  %v4195_v12 = vunpack.c.l.bf16 %v4179_v29  ;;  %v825_v14 = vunpack.c.l.bf16 %v816_v5  ;;  %v17517_v37 = vld [vmem:[#allocation8_spill] sm:$0xff]  ;;  %v4171_v5 = vld [vmem:[#allocation2 + $0x60] sm:$0xe] }
 0x185   : > { %v14169_v20 = vsel %vm1562_vm8, %v2832_v34, %v17516_v2  ;;  %v12254_v41 = vpack.i.bf16 %v10959_v1, %v10958_v17  ;;  %v826_v62 = vunpack.c.l.bf16 %v817_v61  ;;  %v11958_v40 = vunpack.i.h.bf16 %v11956_v45 }
 0x186   : > { %v12259_v2 = vpack.i.bf16 %v4195_v12, %v3653_v3  ;;  %v11957_v28 = vunpack.i.l.bf16 %v11956_v45  ;;  %v14180_v29 = vrot.slane %v825_v14, %v17517_v37  ;;  %v17518_v30 = vrot.slane %v14134_v31, 2 }
 0x187   : > { %12240 = vperm.xlu0 %11577, %v12239_v21   ;;  %12255 = vperm.xlu1 %11588, %v12254_v41   ;;  %v14183_v49 = vrot.slane %v826_v62, %v17517_v37  ;;  %v824_v21 = vunpack.c.l.bf16 %v815_v52  ;;  %v11963_v61 = vunpack.i.h.bf16 %v11961_v22  ;;  %v11962_v1 = vunpack.i.l.bf16 %v11961_v22  ;;  %v11966_v62 = vpop.permute.xlu1 %11965 }
 0x188   : > { %v3185_v17 = vsel %vm1919_vm9, %v3183_v51, %v17518_v30  ;;  %v2918_v34 = vadd.f32 %v2829_v38, %v13860_v44  ;;  %v4186_v3 = vunpack.c.l.bf16 %v4170_v23  ;;  %v3947_v45 = vmul.f32 %v11958_v40, %v14180_v29 }
 0x189   : > { %v14191_v12 = vmul.f32 %v11958_v40, %v14183_v49  ;;  %v3946_v14 = vmul.f32 %v11957_v28, %v14180_v29  ;;  %v14195_v52 = vrot.slane %v824_v21, %v17517_v37  ;;  %v3948_v51 = vmul.f32 %v11962_v1, %v14180_v29  ;;  %v11971_v21 = vpop.permute.xlu0 %11970 }
 0x18a   : > { %v3274_v9 = vadd.f32 %v3185_v17, %v2918_v34  ;;  %v4304_v30 = vmul.f32 %v11962_v1, %v14183_v49  ;;  %v4187_v22 = vunpack.c.l.bf16 %v4171_v5  ;;  %v4057_v44 = vrot.slane %v3947_v45, 1 }
 0x18b   : > { %12250 = vperm.xlu0 %11577, %v12249_v48   ;;  %v17221_v38 = vrot.slane %v14191_v12, 2  ;;  %v4056_v48 = vrot.slane %v3946_v14, 1  ;;  %v3535_v23 = vmul.f32 %v11963_v61, %v14195_v52  ;;  %12265 = vperm.xlu1 %11588, %v12254_v41   ;;  %v17519_v40 = vrot.slane %v14137_v18, 1  ;;  %v2403_v18 = vld [vmem:[#allocation2 + $0xc8] sm:$0x1] }
 0x18c   : > { %v4415_v34 = vrot.slane %v4304_v30, 2  ;;  %v4059_v17 = vrot.slane %v3948_v51, 1  ;;  %v12269_v5 = vpack.i.bf16 %v4187_v22, %v4186_v3  ;;  %v17520_v1 = vmov 0   ;;  %v2951_v3 = vld [vmem:[#allocation2 + $0xc0] sm:$0xe] }
 0x18d   : > { %v14204_v28 = vsel %vm1562_vm8, %v17519_v40, %v2835_v16  ;;  %4597 = vst.msk [vmem:[#allocation3 + $0x68] sm:$0x1] %vm4572_vm10, %v17520_v1  ;;  %v11968_v45 = vunpack.i.h.bf16 %v11966_v62  ;;  %v11967_v14 = vunpack.i.l.bf16 %v11966_v62  ;;  %4573 = vst.msk [vmem:[#allocation3 + $0x8] sm:$0x1] %vm4572_vm10, %v17520_v1  ;;  %v4058_v16 = vsel %vm1562_vm8, %v4056_v48, %v4057_v44 }
 0x18e   : > { %4576 = vst.msk [vmem:[#allocation3 + $0x14] sm:$0x1] %vm4572_vm10, %v17520_v1  ;;  %4579 = vst.msk [vmem:[#allocation3 + $0x20] sm:$0x1] %vm4572_vm10, %v17520_v1  ;;  %v3567_v41 = vadd.f32 %v3535_v23, %v3274_v9  ;;  %v2919_v61 = vadd.f32 %v14151_v50, %v13867_v26  ;;  %v17521_v51 = vrot.slane %v14130_v42, 2  ;;  %v17522_v30 = vrot.slane %v14134_v31, 2  ;;  %v11976_v9 = vpop.permute.xlu1 %11975 }
 0x18f   : > { %12260 = vperm.xlu0 %11577, %v12259_v2   ;;  %4582 = vst.msk [vmem:[#allocation3 + $0x2c] sm:$0x1] %vm4572_vm10, %v17520_v1  ;;  %4585 = vst.msk [vmem:[#allocation3 + $0x38] sm:$0x1] %vm4572_vm10, %v17520_v1  ;;  %v4416_v2 = vsel %vm1919_vm9, %v17221_v38, %v4415_v34  ;;  %v3949_v62 = vmul.f32 %v11968_v45, %v14180_v29  ;;  %v3536_v40 = vmul.f32 %v11967_v14, %v14195_v52 }
 0x190   : > { %4588 = vst.msk [vmem:[#allocation3 + $0x44] sm:$0x1] %vm4572_vm10, %v17520_v1  ;;  %4591 = vst.msk [vmem:[#allocation3 + $0x50] sm:$0x1] %vm4572_vm10, %v17520_v1  ;;  %v3187_v22 = vsel %vm1919_vm9, %v17522_v30, %v17521_v51  ;;  %v11973_v48 = vunpack.i.h.bf16 %v11971_v21  ;;  %v11972_v37 = vunpack.i.l.bf16 %v11971_v21  ;;  %v2451_v58 = vunpack.c.l.bf16 %v2403_v18  ;;  %12275 = vperm.xlu1 %11588, %v14113_v59   ;;  %v11981_v18 = vpop.permute.xlu0 %11980 }
 0x191   : > { %4594 = vst.msk [vmem:[#allocation3 + $0x5c] sm:$0x1] %vm4572_vm10, %v17520_v1  ;;  %4600 = vst.msk [vmem:[#allocation3 + $0x74] sm:$0x1] %vm4572_vm10, %v17520_v1  ;;  %v3275_v23 = vadd.f32 %v3187_v22, %v2919_v61  ;;  %v4060_v34 = vsel %vm1562_vm8, %v4057_v44, %v4059_v17  ;;  %v2967_v42 = vunpack.c.l.bf16 %v2951_v3  ;;  %v11978_v21 = vunpack.i.h.bf16 %v11976_v9 }
 0x192   : > { %4603 = vst.msk [vmem:[#allocation3 + $0x80] sm:$0x1] %vm4572_vm10, %v17520_v1  ;;  %4606 = vst.msk [vmem:[#allocation3 + $0x8c] sm:$0x1] %vm4572_vm10, %v17520_v1  ;;  %v14258_v26 = vmul.f32 %v11973_v48, %v14180_v29  ;;  %v4307_v50 = vmul.f32 %v11973_v48, %v14183_v49  ;;  %v14262_v31 = vmul.f32 %v11972_v37, %v14180_v29  ;;  %v11977_v17 = vunpack.i.l.bf16 %v11976_v9 }
 0x193   : > { %4609 = vst.msk [vmem:[#allocation3 + $0x98] sm:$0x1] %vm4572_vm10, %v17520_v1  ;;  %4612 = vst.msk [vmem:[#allocation3 + $0xa4] sm:$0x1] %vm4572_vm10, %v17520_v1  ;;  %12270 = vperm.xlu0 %11577, %v12269_v5   ;;  %v3568_v45 = vadd.f32 %v3536_v40, %v3275_v23  ;;  %v14265_v14 = vmul.f32 %v11972_v37, %v14183_v49  ;;  %v4061_v5 = vrot.slane %v3949_v62, 1  ;;  %v11983_v59 = vunpack.i.h.bf16 %v11981_v18 }
 0x194   : > { %4615 = vst.msk [vmem:[#allocation3 + $0xb0] sm:$0x1] %vm4572_vm10, %v17520_v1  ;;  %4618 = vst.msk [vmem:[#allocation3 + $0xbc] sm:$0x1] %vm4572_vm10, %v17520_v1  ;;  %v4420_v61 = vrot.slane %v4307_v50, 2  ;;  %v12279_v44 = vpack.i.bf16 %v2967_v42, %v2451_v58  ;;  %v4062_v30 = vrot.slane %v14262_v31, 1  ;;  %v2724_v22 = vmul.f32 %v11978_v21, %v17501_v7 }
 0x195   : > { %4621 = vst.msk [vmem:[#allocation3 + $0xc8] sm:$0x1] %vm4572_vm10, %v17520_v1  ;;  %4624 = vst.msk [vmem:[#allocation3 + $0xd4] sm:$0x1] %vm4572_vm10, %v17520_v1  ;;  %v4148_v51 = vadd.f32 %v4060_v34, %v3568_v45  ;;  %v17220_v3 = vrot.slane %v14265_v14, 2  ;;  %v14272_v40 = vmul.f32 %v11978_v21, %v17502_v36  ;;  %v2723_v37 = vmul.f32 %v11977_v17, %v17501_v7  ;;  %v3630_v34 = vld [vmem:[#allocation2 + $0xcc] sm:$0xff]  }
 0x196   : > { %v11982_v48 = vunpack.i.l.bf16 %v11981_v18  ;;  %v14275_v23 = vadd.f32 %v4058_v16, %v3567_v41  ;;  %v4064_v58 = vrot.slane %v14258_v26, 1  ;;  %v2838_v9 = vrot.slane %v2724_v22, 1  ;;  %4595 = vst.msk [vmem:[#allocation3 + $0x60] sm:$0xf] %vm4569_vm11, %v17520_v1  ;;  %4596 = vst.msk [vmem:[#allocation3 + $0x64] sm:$0xf] %vm4569_vm11, %v17520_v1 }
 0x197   : > { %12280 = vperm.xlu0 %11577, %v12279_v44   ;;  %v4504_v62 = vadd.f32 %v4416_v2, %v4148_v51  ;;  %v14281_v50 = vsel %vm1919_vm9, %v17220_v3, %v4420_v61  ;;  %v2837_v42 = vrot.slane %v2723_v37, 1  ;;  %v2920_v21 = vadd.f32 %v14169_v20, %v13884_v25  ;;  %v14286_v44 = vld [vmem:[#allocation2 + $0xcc] sm:$0xff]   ;;  %v3632_v51 = vld [vmem:[#allocation2 + $0xd4] sm:$0x1]  ;;  %4570 = vst.msk [vmem:[#allocation3] sm:$0xf] %vm4569_vm11, %v17520_v1 }
 0x198   : > { %v2725_v45 = vmul.f32 %v11982_v48, %v17501_v7  ;;  %v14290_v2 = vmul.f32 %v11982_v48, %v17502_v36  ;;  %v17523_v18 = vrot.slane %v14140_v19, 2  ;;  %v17524_v17 = vrot.slane %v14172_v4, 2  ;;  %4571 = vst.msk [vmem:[#allocation3 + $0x4] sm:$0xf] %vm4569_vm11, %v17520_v1  ;;  %4574 = vst.msk [vmem:[#allocation3 + $0xc] sm:$0xf] %vm4569_vm11, %v17520_v1 }
 0x199   : > { %v4536_v16 = vmax.f32 %v4504_v62, 0.0  ;;  %v3537_v22 = vmul.f32 %v11983_v59, %v14195_v52  ;;  %v14301_v25 = vsel %vm1562_vm8, %v4061_v5, %v4062_v30  ;;  %v3678_v20 = vunpack.c.l.bf16 %v3630_v34  ;;  %v14303_v62 = vpop.permute.xlu1 %11985  ;;  %4575 = vst.msk [vmem:[#allocation3 + $0x10] sm:$0xf] %vm4569_vm11, %v17520_v1  ;;  %4577 = vst.msk [vmem:[#allocation3 + $0x18] sm:$0xf] %vm4569_vm11, %v17520_v1 }
 0x19a   : > { %v3190_v61 = vsel %vm1919_vm9, %v17524_v17, %v17523_v18  ;;  %v2840_v37 = vrot.slane %v2725_v45, 1  ;;  %v14308_v41 = vsel %vm1562_vm8, %v2837_v42, %v2838_v9  ;;  %v3679_v4 = vunpack.c.h.bf16 %v3630_v34  ;;  %4578 = vst.msk [vmem:[#allocation3 + $0x1c] sm:$0xf] %vm4569_vm11, %v17520_v1  ;;  %4580 = vst.msk [vmem:[#allocation3 + $0x24] sm:$0xf] %vm4569_vm11, %v17520_v1 }
 0x19b   : > { %v14305_v48 = vpack.c.bf16 %v4536_v16, %v4536_v16  ;;  %v3355_v18 = vunpack.c.l.bf16 %v14286_v44  ;;  %v3276_v59 = vadd.f32 %v3190_v61, %v2920_v21  ;;  %v3680_v45 = vunpack.c.l.bf16 %v3632_v51  ;;  %4581 = vst.msk [vmem:[#allocation3 + $0x28] sm:$0xf] %vm4569_vm11, %v17520_v1  ;;  %4583 = vst.msk [vmem:[#allocation3 + $0x30] sm:$0xf] %vm4569_vm11, %v17520_v1 }
 0x19c   : > { %v14314_v5 = vsel %vm1562_vm8, %v2838_v9, %v2840_v37  ;;  %v12284_v38 = vpack.i.bf16 %v3679_v4, %v3678_v20  ;;  %v11988_v34 = vunpack.i.h.bf16 %v14303_v62  ;;  %4584 = vst.msk [vmem:[#allocation3 + $0x34] sm:$0xf] %vm4569_vm11, %v17520_v1  ;;  %4586 = vst.msk [vmem:[#allocation3 + $0x3c] sm:$0xf] %vm4569_vm11, %v17520_v1  ;;  %v11991_v9 = vpop.permute.xlu0 %11990  ;;  %v11987_v16 = vunpack.i.l.bf16 %v14303_v62  ;;  %v5083_v62 = vld [vmem:[#allocation3 + $0x68] sm:$0x1] }
 0x19d   : > { %v4833_v3 = vshrl.u32 %v14305_v48, 16  ;;  %4587 = vst.msk [vmem:[#allocation3 + $0x40] sm:$0xf] %vm4569_vm11, %v17520_v1  ;;  %4589 = vst.msk [vmem:[#allocation3 + $0x48] sm:$0xf] %vm4569_vm11, %v17520_v1  ;;  %v3569_v42 = vadd.f32 %v3537_v22, %v3276_v59  ;;  %v12289_v21 = vpack.i.bf16 %v3355_v18, %v3680_v45  ;;  %v2921_v61 = vadd.f32 %v14204_v28, %v14048_v0  ;;  %v11996_v18 = vpop.permute.xlu1 %11995 }
 0x19e   : > { %4590 = vst.msk [vmem:[#allocation3 + $0x4c] sm:$0xf] %vm4569_vm11, %v17520_v1  ;;  %4592 = vst.msk [vmem:[#allocation3 + $0x54] sm:$0xf] %vm4569_vm11, %v17520_v1  ;;  %v4836_v37 = vshll.u32 %v14305_v48, 16  ;;  %12285 = vperm.xlu1 %11588, %v12284_v38   ;;  %v4302_v20 = vmul.f32 %v11988_v34, %v14183_v49  ;;  %v17525_v4 = vrot.slane %v14155_v6, 2  ;;  %v3538_v28 = vmul.f32 %v11987_v16, %v14195_v52 }
 0x19f   : > { %4593 = vst.msk [vmem:[#allocation3 + $0x58] sm:$0xf] %vm4569_vm11, %v17520_v1  ;;  %4598 = vst.msk [vmem:[#allocation3 + $0x6c] sm:$0xf] %vm4569_vm11, %v17520_v1  ;;  %v4835_v51 = vrot.slane %v4833_v3, 7  ;;  %v17526_v17 = vrot.slane %v14140_v19, 2  ;;  %12290 = vperm.xlu0 %11577, %v12289_v21   ;;  %v11993_v38 = vunpack.i.h.bf16 %v11991_v9  ;;  %v11992_v3 = vunpack.i.l.bf16 %v11991_v9 }
 0x1a0   : > { %4599 = vst.msk [vmem:[#allocation3 + $0x70] sm:$0xf] %vm4569_vm11, %v17520_v1  ;;  %4601 = vst.msk [vmem:[#allocation3 + $0x78] sm:$0xf] %vm4569_vm11, %v17520_v1  ;;  %v4180_v48 = vld [vmem:[#allocation2 + $0xcc] sm:$0xe]  ;;  %v4065_v19 = vsel %vm1562_vm8, %v4062_v30, %v4064_v58  ;;  %v12001_v30 = vpop.permute.xlu0 %12000  ;;  %v14423_v58 = vadd.f32 %v14301_v25, %v3569_v42 }
 0x1a1   : > { %4602 = vst.msk [vmem:[#allocation3 + $0x7c] sm:$0xf] %vm4569_vm11, %v17520_v1  ;;  %4604 = vst.msk [vmem:[#allocation3 + $0x84] sm:$0xf] %vm4569_vm11, %v17520_v1  ;;  %v4840_v6 = vrot.slane %v4835_v51, 4  ;;  %v4412_v59 = vrot.slane %v4302_v20, 2  ;;  %v2727_v34 = vmul.f32 %v11993_v38, %v17501_v7  ;;  %v14414_v21 = vmul.f32 %v11993_v38, %v17502_v36 }
 0x1a2   : > { %4605 = vst.msk [vmem:[#allocation3 + $0x88] sm:$0xf] %vm4569_vm11, %v17520_v1  ;;  %4607 = vst.msk [vmem:[#allocation3 + $0x90] sm:$0xf] %vm4569_vm11, %v17520_v1  ;;  %v2726_v9 = vmul.f32 %v11992_v3, %v17501_v7  ;;  %v4196_v31 = vunpack.c.l.bf16 %v4180_v48  ;;  %v11998_v20 = vunpack.i.h.bf16 %v11996_v18  ;;  %v12003_v48 = vunpack.i.h.bf16 %v12001_v30 }
 0x1a3   : > { %4608 = vst.msk [vmem:[#allocation3 + $0x94] sm:$0xf] %vm4569_vm11, %v17520_v1  ;;  %4610 = vst.msk [vmem:[#allocation3 + $0x9c] sm:$0xf] %vm4569_vm11, %v17520_v1  ;;  %v5084_v16 = vsel %vm14401_vm12, %v4840_v6, %v5083_v62  ;;  %v11997_v62 = vunpack.i.l.bf16 %v11996_v18  ;;  %v12002_v6 = vunpack.i.l.bf16 %v12001_v30  ;;  %v17534_v8 = vrot.slane %v14158_v56, 2 }
 0x1a4   : > { %4611 = vst.msk [vmem:[#allocation3 + $0xa0] sm:$0xf] %vm4569_vm11, %v17520_v1  ;;  %4613 = vst.msk [vmem:[#allocation3 + $0xa8] sm:$0xf] %vm4569_vm11, %v17520_v1  ;;  %v14427_v38 = vmul.f32 %v11998_v20, %v14180_v29  ;;  %v4283_v18 = vmul.f32 %v12003_v48, %v14183_v49  ;;  %v12011_v20 = vpop.permute.xlu0 %12010  ;;  %v17537_v56 = vrot.slane %v14265_v14, 2 }
 0x1a5   : > { %4614 = vst.msk [vmem:[#allocation3 + $0xac] sm:$0xf] %vm4569_vm11, %v17520_v1  ;;  %4616 = vst.msk [vmem:[#allocation3 + $0xb4] sm:$0xf] %vm4569_vm11, %v17520_v1  ;;  %v2728_v42 = vmul.f32 %v11997_v62, %v17501_v7  ;;  %v12012_v25 = vunpack.i.l.bf16 %v12011_v20 }
 0x1a6   : > { %4617 = vst.msk [vmem:[#allocation3 + $0xb8] sm:$0xf] %vm4569_vm11, %v17520_v1  ;;  %4619 = vst.msk [vmem:[#allocation3 + $0xc0] sm:$0xf] %vm4569_vm11, %v17520_v1 }
 0x1a7   : > { %4620 = vst.msk [vmem:[#allocation3 + $0xc4] sm:$0xf] %vm4569_vm11, %v17520_v1  ;;  %4622 = vst.msk [vmem:[#allocation3 + $0xcc] sm:$0xf] %vm4569_vm11, %v17520_v1 }
 0x1a8   : > { %4623 = vst.msk [vmem:[#allocation3 + $0xd0] sm:$0xf] %vm4569_vm11, %v17520_v1  ;;  %v3192_v1 = vsel %vm1919_vm9, %v17526_v17, %v17525_v4  ;;  %v3356_v17 = vunpack.c.h.bf16 %v14286_v44  ;;  %5085 = vst [vmem:[#allocation3 + $0x68] sm:$0x1] %v5084_v16  ;;  %v4838_v16 = vor.u32 %v4836_v37, %v4835_v51  ;;  %v14441_v51 = vmul.f32 %v12002_v6, %v14180_v29 }
 0x1a9   : > { %v3277_v0 = vadd.f32 %v3192_v1, %v2921_v61  ;;  %v17529_v61 = vrot.slane %v14191_v12, 2  ;;  %v2843_v1 = vrot.slane %v2727_v34, 1  ;;  %v2845_v34 = vrot.slane %v2728_v42, 1 }
 0x1aa   : > { %v14444_v37 = vmul.f32 %v12002_v6, %v14183_v49  ;;  %v5079_v6 = vld [vmem:[#allocation3 + $0x60] sm:$0xf] }
 0x1ab   : > { %v3570_v45 = vadd.f32 %v3538_v28, %v3277_v0  ;;  %v4414_v26 = vsel %vm1919_vm9, %v4412_v59, %v17529_v61  ;;  %v2842_v0 = vrot.slane %v2726_v9, 1  ;;  %v12294_v28 = vpack.i.bf16 %v4196_v31, %v3356_v17  ;;  %v12006_v59 = vpop.permute.xlu1 %12005 }
 0x1ac   : > { %v4503_v4 = vadd.f32 %v4414_v26, %v14275_v23  ;;  %v14433_v23 = vmul.f32 %v11997_v62, %v17502_v36  ;;  %v4021_v26 = vrot.slane %v14427_v38, 1 }
 0x1ad   : > { %v4150_v44 = vadd.f32 %v4065_v19, %v3570_v45  ;;  %12295 = vperm.xlu1 %11588, %v12294_v28   ;;  %v3927_v45 = vmul.f32 %v12003_v48, %v14180_v29 }
 0x1ae   : > { %v4535_v3 = vmax.f32 %v4503_v4, 0.0  ;;  %v4380_v4 = vrot.slane %v4283_v18, 2 }
 0x1af   : > { %v4506_v12 = vadd.f32 %v14281_v50, %v4150_v44  ;;  %v14438_v50 = vsel %vm1562_vm8, %v2842_v0, %v2843_v1  ;;  %v4024_v44 = vrot.slane %v3927_v45, 1  ;;  %v4378_v0 = vrot.slane %v14444_v37, 2  ;;  %v12016_v48 = vpop.permute.xlu1 %12015 }
 0x1b0   : > { %v10766_v17 = vpack.c.bf16 %v4535_v3, %v4535_v3  ;;  %v4022_v3 = vrot.slane %v14441_v51, 1  ;;  %v12013_v45 = vunpack.i.h.bf16 %v12011_v20  ;;  %v2904_v20 = vadd.f32 %v14063_v15, %v13854_v47 }
 0x1b1   : > { %v4538_v19 = vmax.f32 %v4506_v12, 0.0  ;;  %v14450_v12 = vsel %vm1562_vm8, %v2843_v1, %v2845_v34  ;;  %v5090_v1 = vld [vmem:[#allocation3 + $0x74] sm:$0x1]  ;;  %v4381_v34 = vsel %vm1919_vm9, %v4378_v0, %v4380_v4 }
 0x1b2   : > { %v4825_v61 = vshrl.u32 %v10766_v17, 16  ;;  %v4828_v30 = vshll.u32 %v10766_v17, 16  ;;  %v12007_v17 = vunpack.i.l.bf16 %v12006_v59  ;;  %v3522_v24 = vmul.f32 %v12013_v45, %v14195_v52 }
 0x1b3   : > { %v10769_v9 = vpack.c.bf16 %v4538_v19, %v4538_v19  ;;  %v12008_v19 = vunpack.i.h.bf16 %v12006_v59 }
 0x1b4   : > { %v4827_v28 = vrot.slane %v4825_v61, 7  ;;  %v4305_v51 = vmul.f32 %v12007_v17, %v14183_v49 }
 0x1b5   : > { %v4850_v62 = vshrl.u32 %v10769_v9, 16  ;;  %v4853_v42 = vshll.u32 %v10769_v9, 16  ;;  %v3079_v4 = vmul.f32 %v12008_v19, %v17502_v36  ;;  %v3521_v19 = vmul.f32 %v12012_v25, %v14195_v52 }
 0x1b6   : > { %v4830_v18 = vor.u32 %v4828_v30, %v4827_v28  ;;  %v4831_v61 = vrot.slane %v4827_v28, 4  ;;  %v4417_v28 = vrot.slane %v4305_v51, 2 }
 0x1b7   : > { %v4852_v31 = vrot.slane %v4850_v62, 7  ;;  %v17533_v62 = vrot.slane %v14035_v10, 2  ;;  %v12018_v10 = vunpack.i.h.bf16 %v12016_v48 }
 0x1b8   : > { %v4839_v59 = vsel %vm12577_vm5, %v4831_v61, %v4838_v16  ;;  %v5080_v30 = vsel %vm14455_vm13, %v4830_v18, %v5079_v6  ;;  %v17535_v16 = vrot.slane %v14043_v32, 2  ;;  %v12021_v18 = vpop.permute.xlu0 %12020  ;;  %v12026_v61 = vpop.permute.xlu1 %12025  ;;  %v4025_v32 = vsel %vm1562_vm8, %v4022_v3, %v4024_v44 }
 0x1b9   : > { %v4857_v39 = vrot.slane %v4852_v31, 4  ;;  %5081 = vst [vmem:[#allocation3 + $0x60] sm:$0xf] %v5080_v30  ;;  %5082 = vst.msk [vmem:[#allocation3 + $0x64] sm:$0xf] %vm4569_vm11, %v4839_v59  ;;  %v3150_v53 = vsel %vm1919_vm9, %v17534_v8, %v17533_v62  ;;  %v17536_v17 = vmov %v17533_v62  ;;  %v4855_v51 = vor.u32 %v4853_v42, %v4852_v31 }
 0x1ba   : > { %v3152_v6 = vsel %vm1919_vm9, %v17536_v17, %v17535_v16  ;;  %v3260_v15 = vadd.f32 %v3150_v53, %v2904_v20  ;;  %v4419_v59 = vsel %vm1919_vm9, %v4417_v28, %v17537_v56  ;;  %v12022_v25 = vunpack.i.l.bf16 %v12021_v18 }
 0x1bb   : > { %v5091_v47 = vsel %vm14401_vm12, %v4857_v39, %v5090_v1  ;;  %v3261_v45 = vadd.f32 %v3152_v6, %v2905_v46  ;;  %v4505_v30 = vadd.f32 %v4419_v59, %v14423_v58  ;;  %v12017_v39 = vunpack.i.l.bf16 %v12016_v48 }
 0x1bc   : > { %5092 = vst [vmem:[#allocation3 + $0x74] sm:$0x1] %v5091_v47  ;;  %v3553_v62 = vadd.f32 %v3521_v19, %v3260_v15  ;;  %v4281_v46 = vmul.f32 %v12018_v10, %v14183_v49  ;;  %v12023_v1 = vunpack.i.h.bf16 %v12021_v18  ;;  %v12028_v20 = vunpack.i.h.bf16 %v12026_v61  ;;  %v12036_v37 = vpop.permute.xlu1 %12035 }
 0x1bd   : > { %v3554_v8 = vadd.f32 %v3522_v24, %v3261_v45  ;;  %v3193_v53 = vrot.slane %v3079_v4, 2  ;;  %v4537_v31 = vmax.f32 %v4505_v30, 0.0  ;;  %v14494_v14 = vmul.f32 %v12017_v39, %v17502_v36  ;;  %v12031_v4 = vpop.permute.xlu0 %12030 }
 0x1be   : > { %v4023_v28 = vsel %vm1562_vm8, %v4021_v26, %v4022_v3  ;;  %v4377_v44 = vrot.slane %v4281_v46, 2  ;;  %v14498_v16 = vmul.f32 %v12023_v1, %v17502_v36  ;;  %v14501_v24 = vmul.f32 %v12022_v25, %v17502_v36  ;;  %v5086_v46 = vld [vmem:[#allocation3 + $0x6c] sm:$0xf] }
 0x1bf   : > { %v4134_v42 = vadd.f32 %v4025_v32, %v3554_v8  ;;  %v10768_v58 = vpack.c.bf16 %v4537_v31, %v4537_v31  ;;  %v4133_v48 = vadd.f32 %v4023_v28, %v3553_v62  ;;  %v14504_v6 = vmul.f32 %v12028_v20, %v14180_v29 }
 0x1c0   : > { %v3198_v47 = vrot.slane %v14494_v14, 2  ;;  %v4379_v26 = vsel %vm1919_vm9, %v4377_v44, %v4378_v0  ;;  %v3158_v3 = vrot.slane %v14498_v16, 2  ;;  %v14512_v15 = vmul.f32 %v12028_v20, %v14183_v49 }
 0x1c1   : > { %v4490_v17 = vadd.f32 %v4381_v34, %v4134_v42  ;;  %v4842_v45 = vshrl.u32 %v10768_v58, 16  ;;  %v4489_v18 = vadd.f32 %v4379_v26, %v4133_v48  ;;  %v3153_v34 = vrot.slane %v14501_v24, 2 }
 0x1c2   : > { %v4845_v56 = vshll.u32 %v10768_v58, 16  ;;  %v12027_v59 = vunpack.i.l.bf16 %v12026_v61  ;;  %v17538_v32 = vrot.slane %v14272_v40, 2  ;;  %v12033_v30 = vunpack.i.h.bf16 %v12031_v4 }
 0x1c3   : > { %v4522_v19 = vmax.f32 %v4490_v17, 0.0  ;;  %v4844_v62 = vrot.slane %v4842_v45, 7  ;;  %v4521_v8 = vmax.f32 %v4489_v18, 0.0  ;;  %v12032_v39 = vunpack.i.l.bf16 %v12031_v4 }
 0x1c4   : > { %v3195_v10 = vsel %vm1919_vm9, %v3193_v53, %v17538_v32  ;;  %v4067_v1 = vrot.slane %v14504_v6, 1  ;;  %v3952_v25 = vmul.f32 %v12027_v59, %v14180_v29  ;;  %v3539_v20 = vmul.f32 %v12033_v30, %v14195_v52 }
 0x1c5   : > { %v10753_v0 = vpack.c.bf16 %v4522_v19, %v4522_v19  ;;  %v2922_v61 = vadd.f32 %v14308_v41, %v13909_v54  ;;  %v4847_v31 = vor.u32 %v4845_v56, %v4844_v62  ;;  %v4848_v42 = vrot.slane %v4844_v62, 4  ;;  %v5034_v54 = vld [vmem:[#allocation3 + $0x14] sm:$0x1] }
 0x1c6   : > { %v12038_v53 = vunpack.i.h.bf16 %v12036_v37  ;;  %v10752_v44 = vpack.c.bf16 %v4521_v8, %v4521_v8  ;;  %v4066_v58 = vrot.slane %v3952_v25, 1  ;;  %v3954_v17 = vmul.f32 %v12032_v39, %v14180_v29  ;;  %v12041_v25 = vpop.permute.xlu0 %12040 }
 0x1c7   : > { %v4714_v28 = vshrl.u32 %v10753_v0, 16  ;;  %v3278_v48 = vadd.f32 %v3195_v10, %v2922_v61  ;;  %v4856_v4 = vsel %vm12577_vm5, %v4848_v42, %v4855_v51  ;;  %v5087_v6 = vsel %vm14455_vm13, %v4847_v31, %v5086_v46  ;;  %v5028_v61 = vld [vmem:[#allocation3 + $0xc] sm:$0xf]  ;;  %v12046_v42 = vpop.permute.xlu1 %12045 }
 0x1c8   : > { %v4310_v45 = vmul.f32 %v12032_v39, %v14183_v49  ;;  %5088 = vst [vmem:[#allocation3 + $0x6c] sm:$0xf] %v5087_v6  ;;  %5089 = vst.msk [vmem:[#allocation3 + $0x70] sm:$0xf] %vm4569_vm11, %v4856_v4  ;;  %v4717_v41 = vshll.u32 %v10753_v0, 16  ;;  %v4706_v19 = vshrl.u32 %v10752_v44, 16  ;;  %v4068_v18 = vsel %vm1562_vm8, %v4066_v58, %v4067_v1 }
 0x1c9   : > { %v4716_v26 = vrot.slane %v4714_v28, 7  ;;  %v3571_v56 = vadd.f32 %v3539_v20, %v3278_v48  ;;  %v4709_v32 = vshll.u32 %v10752_v44, 16  ;;  %v4423_v10 = vrot.slane %v14512_v15, 2 }
 0x1ca   : > { %v4069_v51 = vrot.slane %v3954_v17, 1  ;;  %v4708_v62 = vrot.slane %v4706_v19, 7  ;;  %v4425_v8 = vrot.slane %v4310_v45, 2  ;;  %v12037_v46 = vunpack.i.l.bf16 %v12036_v37 }
 0x1cb   : > { %v4721_v59 = vrot.slane %v4716_v26, 4  ;;  %v4719_v30 = vor.u32 %v4717_v41, %v4716_v26  ;;  %v14534_v31 = vadd.f32 %v4068_v18, %v3571_v56  ;;  %v3955_v0 = vmul.f32 %v12038_v53, %v14180_v29 }
 0x1cc   : > { %v2923_v20 = vadd.f32 %v14314_v5, %v14052_v57  ;;  %v4711_v28 = vor.u32 %v4709_v32, %v4708_v62  ;;  %v4712_v44 = vrot.slane %v4708_v62, 4  ;;  %v17539_v58 = vrot.slane %v14290_v2, 2  ;;  %v12051_v32 = vpop.permute.xlu0 %12050 }
 0x1cd   : > { %v5035_v39 = vsel %vm14401_vm12, %v4721_v59, %v5034_v54  ;;  %v17540_v37 = vrot.slane %v14272_v40, 2  ;;  %v3540_v17 = vmul.f32 %v12037_v46, %v14195_v52  ;;  %v4070_v6 = vsel %vm1562_vm8, %v4067_v1, %v4069_v51 }
 0x1ce   : > { %5036 = vst [vmem:[#allocation3 + $0x14] sm:$0x1] %v5035_v39  ;;  %v12043_v26 = vunpack.i.h.bf16 %v12041_v25  ;;  %v12042_v53 = vunpack.i.l.bf16 %v12041_v25  ;;  %v4720_v57 = vsel %vm12577_vm5, %v4712_v44, %v4719_v30  ;;  %v5029_v5 = vsel %vm14455_vm13, %v4711_v28, %v5028_v61 }
 0x1cf   : > { %v3197_v48 = vsel %vm1919_vm9, %v17540_v37, %v17539_v58  ;;  %v12048_v45 = vunpack.i.h.bf16 %v12046_v42  ;;  %v12047_v54 = vunpack.i.l.bf16 %v12046_v42  ;;  %5030 = vst [vmem:[#allocation3 + $0xc] sm:$0xf] %v5029_v5  ;;  %5031 = vst.msk [vmem:[#allocation3 + $0x10] sm:$0xf] %vm4569_vm11, %v4720_v57  ;;  %v4426_v51 = vsel %vm1919_vm9, %v4423_v10, %v4425_v8  ;;  %v12056_v42 = vpop.permute.xlu1 %12055 }
 0x1d0   : > { %v3279_v4 = vadd.f32 %v3197_v48, %v2923_v20  ;;  %v3957_v2 = vmul.f32 %v12043_v26, %v14180_v29  ;;  %v4313_v41 = vmul.f32 %v12043_v26, %v14183_v49  ;;  %v3956_v1 = vmul.f32 %v12042_v53, %v14180_v29 }
 0x1d1   : > { %v14555_v19 = vmul.f32 %v12042_v53, %v14183_v49  ;;  %v2730_v18 = vmul.f32 %v12048_v45, %v17501_v7  ;;  %v14559_v56 = vmul.f32 %v12048_v45, %v17502_v36  ;;  %v2729_v59 = vmul.f32 %v12047_v54, %v17501_v7 }
 0x1d2   : > { %v3572_v40 = vadd.f32 %v3540_v17, %v3279_v4  ;;  %v4071_v30 = vrot.slane %v3955_v0, 1  ;;  %v4430_v46 = vrot.slane %v4313_v41, 2  ;;  %v4074_v25 = vrot.slane %v3957_v2, 1 }
 0x1d3   : > { %v4428_v39 = vrot.slane %v14555_v19, 2  ;;  %v2848_v61 = vrot.slane %v2730_v18, 1  ;;  %v2847_v20 = vrot.slane %v2729_v59, 1  ;;  %v4072_v44 = vrot.slane %v3956_v1, 1  ;;  %v12061_v1 = vpop.permute.xlu0 %12060 }
 0x1d4   : > { %v4152_v62 = vadd.f32 %v4070_v6, %v3572_v40  ;;  %v12053_v58 = vunpack.i.h.bf16 %v12051_v32  ;;  %v12052_v37 = vunpack.i.l.bf16 %v12051_v32  ;;  %v3204_v17 = vrot.slane %v14559_v56, 2 }
 0x1d5   : > { %v4431_v48 = vsel %vm1919_vm9, %v4428_v39, %v4430_v46  ;;  %v2924_v8 = vadd.f32 %v14438_v50, %v13924_v13  ;;  %v17541_v0 = vrot.slane %v14414_v21, 2  ;;  %v14583_v5 = vsel %vm1562_vm8, %v2847_v20, %v2848_v61  ;;  %v12066_v46 = vpop.permute.xlu1 %12065  ;;  %v12304_v21 = vld [vmem:[#allocation3 + $0x6c] sm:$0xff]  }
 0x1d6   : > { %v4508_v28 = vadd.f32 %v4426_v51, %v4152_v62  ;;  %v3541_v26 = vmul.f32 %v12053_v58, %v14195_v52  ;;  %v2731_v53 = vmul.f32 %v12052_v37, %v17501_v7  ;;  %v14580_v57 = vmul.f32 %v12052_v37, %v17502_v36  ;;  %v12302_v62 = vld [vmem:[#allocation3 + $0x60] sm:$0xff]  }
 0x1d7   : > { %v3200_v4 = vsel %vm1919_vm9, %v3198_v47, %v17541_v0  ;;  %v12058_v45 = vunpack.i.h.bf16 %v12056_v42  ;;  %v12057_v54 = vunpack.i.l.bf16 %v12056_v42  ;;  %v2925_v13 = vadd.f32 %v14450_v12, %v13937_v60  ;;  %v12305_v60 = vld [vmem:[#allocation3] sm:$0xff]   ;;  %11224 = vmatprep.mubr.msk.bf16.mxu1 %vm5293_vm14, %v12302_v62 }
 0x1d8   : > { %v4540_v6 = vmax.f32 %v4508_v28, 0.0  ;;  %v2850_v14 = vrot.slane %v2731_v53, 1  ;;  %v3280_v40 = vadd.f32 %v3200_v4, %v2924_v8  ;;  %v17542_v47 = vrot.slane %v14433_v23, 2  ;;  %v12306_v28 = vld [vmem:[#allocation3 + $0xc] sm:$0xff]   ;;  %v5097_v53 = vld [vmem:[#allocation3 + $0x80] sm:$0x1]  ;;  %11208 = vmatprep.mubr.msk.bf16.mxu0 %vm5293_vm14, %v12305_v60  ;;  %11225 = vmatmul.mubr.msk.bf16.vlgmr.msra.gmra.mxu1 %vm5293_vm14, %v12304_v21 }
 0x1d9   : > { %v17543_v2 = vmov %v17541_v0  ;;  %v3206_v18 = vrot.slane %v14580_v57, 2  ;;  %v4073_v59 = vsel %vm1562_vm8, %v4071_v30, %v4072_v44  ;;  %v3542_v51 = vmul.f32 %v12057_v54, %v14195_v52  ;;  %11209 = vmatmul.mubr.msk.bf16.vlgmr.msra.gmra.mxu0 %vm5293_vm14, %v12306_v28 }
 0x1da   : > { %v10771_v50 = vpack.c.bf16 %v4540_v6, %v4540_v6  ;;  %v3202_v41 = vsel %vm1919_vm9, %v17543_v2, %v17542_v47  ;;  %v3573_v42 = vadd.f32 %v3541_v26, %v3280_v40  ;;  %v14596_v23 = vmul.f32 %v12058_v45, %v14180_v29 }
 0x1db   : > { %v3281_v32 = vadd.f32 %v3202_v41, %v2925_v13  ;;  %v14599_v58 = vsel %vm1562_vm8, %v2848_v61, %v2850_v14  ;;  %v4075_v30 = vsel %vm1562_vm8, %v4072_v44, %v4074_v25  ;;  %v12063_v8 = vunpack.i.h.bf16 %v12061_v1  ;;  %v12071_v14 = vpop.permute.xlu0 %12070 }
 0x1dc   : > { %v4867_v12 = vshrl.u32 %v10771_v50, 16  ;;  %v4870_v20 = vshll.u32 %v10771_v50, 16  ;;  %v12062_v4 = vunpack.i.l.bf16 %v12061_v1  ;;  %v12068_v6 = vunpack.i.h.bf16 %v12066_v46  ;;  %v12076_v1 = vpop.permute.xlu1 %12075 }
 0x1dd   : > { %v3574_v37 = vadd.f32 %v3542_v51, %v3281_v32  ;;  %v14603_v26 = vmul.f32 %v12063_v8, %v14180_v29  ;;  %v4286_v45 = vmul.f32 %v12063_v8, %v14183_v49  ;;  %v12067_v13 = vunpack.i.l.bf16 %v12066_v46 }
 0x1de   : > { %v4869_v0 = vrot.slane %v4867_v12, 7  ;;  %v14608_v50 = vadd.f32 %v4073_v59, %v3573_v42  ;;  %v14611_v25 = vmul.f32 %v12062_v4, %v14180_v29  ;;  %v14614_v44 = vmul.f32 %v12062_v4, %v14183_v49 }
 0x1df   : > { %v4154_v54 = vadd.f32 %v4075_v30, %v3574_v37  ;;  %v4026_v40 = vrot.slane %v14596_v23, 1  ;;  %v4385_v2 = vrot.slane %v4286_v45, 2  ;;  %v2732_v41 = vmul.f32 %v12068_v6, %v17501_v7 }
 0x1e0   : > { %v4874_v61 = vrot.slane %v4869_v0, 4  ;;  %v14620_v59 = vor.u32 %v4870_v20, %v4869_v0  ;;  %v4383_v51 = vrot.slane %v14614_v44, 2  ;;  %v4308_v62 = vmul.f32 %v12067_v13, %v14183_v49 }
 0x1e1   : > { %v4510_v47 = vadd.f32 %v4431_v48, %v4154_v54  ;;  %v4029_v60 = vrot.slane %v14603_v26, 1  ;;  %v12073_v12 = vunpack.i.h.bf16 %v12071_v14  ;;  %v12072_v42 = vunpack.i.l.bf16 %v12071_v14 }
 0x1e2   : > { %v5098_v32 = vsel %vm14401_vm12, %v4874_v61, %v5097_v53  ;;  %v4027_v48 = vrot.slane %v14611_v25, 1  ;;  %v2852_v23 = vrot.slane %v2732_v41, 1  ;;  %v4422_v21 = vrot.slane %v4308_v62, 2 }
 0x1e3   : > { %5099 = vst [vmem:[#allocation3 + $0x80] sm:$0x1] %v5098_v32  ;;  %v4542_v46 = vmax.f32 %v4510_v47, 0.0  ;;  %v12078_v28 = vunpack.i.h.bf16 %v12076_v1  ;;  %v4386_v37 = vsel %vm1919_vm9, %v4383_v51, %v4385_v2  ;;  %v2734_v30 = vmul.f32 %v12073_v12, %v17501_v7  ;;  %v5104_v32 = vld [vmem:[#allocation3 + $0x8c] sm:$0x1] }
 0x1e4   : > { %v2733_v8 = vmul.f32 %v12072_v42, %v17501_v7  ;;  %v4424_v0 = vsel %vm1919_vm9, %v4422_v21, %v4423_v10  ;;  %v14637_v4 = vmul.f32 %v12073_v12, %v17502_v36  ;;  %v14640_v6 = vmul.f32 %v12072_v42, %v17502_v36 }
 0x1e5   : > { %v10773_v20 = vpack.c.bf16 %v4542_v46, %v4542_v46  ;;  %v2906_v53 = vadd.f32 %v14083_v55, %v13728_v33  ;;  %v4507_v26 = vadd.f32 %v4424_v0, %v14534_v31  ;;  %v3524_v45 = vmul.f32 %v12078_v28, %v14195_v52 }
 0x1e6   : > { %v12077_v13 = vunpack.i.l.bf16 %v12076_v1  ;;  %v2855_v25 = vrot.slane %v2734_v30, 1  ;;  %v2853_v15 = vrot.slane %v2733_v8, 1  ;;  %v2907_v10 = vadd.f32 %v14087_v11, %v13730_v63  ;;  %v12081_v1 = vpop.permute.xlu0 %12080 }
 0x1e7   : > { %v4884_v54 = vshrl.u32 %v10773_v20, 16  ;;  %v4887_v61 = vshll.u32 %v10773_v20, 16  ;;  %v4539_v47 = vmax.f32 %v4507_v26, 0.0  ;;  %v17544_v2 = vrot.slane %v14067_v43, 2  ;;  %v12086_v20 = vpop.permute.xlu1 %12085 }
 0x1e8   : > { %v17545_v55 = vrot.slane %v14056_v27, 2  ;;  %v3211_v62 = vrot.slane %v14637_v4, 2  ;;  %v3209_v63 = vrot.slane %v14640_v6, 2  ;;  %v14661_v24 = vsel %vm1562_vm8, %v2852_v23, %v2853_v15 }
 0x1e9   : > { %v4886_v14 = vrot.slane %v4884_v54, 7  ;;  %v3155_v33 = vsel %vm1919_vm9, %v3153_v34, %v17544_v2  ;;  %v17546_v31 = vmov %v17544_v2  ;;  %v10770_v42 = vpack.c.bf16 %v4539_v47, %v4539_v47 }
 0x1ea   : > { %v3157_v41 = vsel %vm1919_vm9, %v17546_v31, %v17545_v55  ;;  %v3262_v11 = vadd.f32 %v3155_v33, %v2906_v53  ;;  %v3523_v34 = vmul.f32 %v12077_v13, %v14195_v52  ;;  %v14667_v43 = vsel %vm1562_vm8, %v2853_v15, %v2855_v25 }
 0x1eb   : > { %v3263_v46 = vadd.f32 %v3157_v41, %v2907_v10  ;;  %v4891_v12 = vrot.slane %v4886_v14, 4  ;;  %v14664_v27 = vor.u32 %v4887_v61, %v4886_v14  ;;  %v12083_v28 = vunpack.i.h.bf16 %v12081_v1  ;;  %v12091_v10 = vpop.permute.xlu0 %12090  ;;  %v5093_v14 = vld [vmem:[#allocation3 + $0x78] sm:$0xf] }
 0x1ec   : > { %v4859_v8 = vshrl.u32 %v10770_v42, 16  ;;  %v4028_v0 = vsel %vm1562_vm8, %v4026_v40, %v4027_v48  ;;  %v4030_v53 = vsel %vm1562_vm8, %v4027_v48, %v4029_v60  ;;  %v4862_v23 = vshll.u32 %v10770_v42, 16 }
 0x1ed   : > { %v3556_v21 = vadd.f32 %v3524_v45, %v3263_v46  ;;  %v5105_v30 = vsel %vm14401_vm12, %v4891_v12, %v5104_v32  ;;  %v14674_v26 = vmul.f32 %v12083_v28, %v14180_v29  ;;  %v12082_v13 = vunpack.i.l.bf16 %v12081_v1 }
 0x1ee   : > { %5106 = vst [vmem:[#allocation3 + $0x8c] sm:$0x1] %v5105_v30  ;;  %v4861_v61 = vrot.slane %v4859_v8, 7  ;;  %v3555_v25 = vadd.f32 %v3523_v34, %v3262_v11  ;;  %v12088_v45 = vunpack.i.h.bf16 %v12086_v20  ;;  %v12087_v15 = vunpack.i.l.bf16 %v12086_v20  ;;  %v12096_v30 = vpop.permute.xlu1 %12095 }
 0x1ef   : > { %v4136_v54 = vadd.f32 %v4030_v53, %v3556_v21  ;;  %v4032_v2 = vrot.slane %v14674_v26, 1  ;;  %v14678_v40 = vmul.f32 %v12083_v28, %v14183_v49  ;;  %v3931_v60 = vmul.f32 %v12082_v13, %v14180_v29 }
 0x1f0   : > { %v4864_v48 = vor.u32 %v4862_v23, %v4861_v61  ;;  %v4865_v33 = vrot.slane %v4861_v61, 4  ;;  %v4311_v55 = vmul.f32 %v12088_v45, %v14183_v49  ;;  %v3933_v31 = vmul.f32 %v12087_v15, %v14180_v29 }
 0x1f1   : > { %v4492_v47 = vadd.f32 %v4386_v37, %v4136_v54  ;;  %v4031_v1 = vrot.slane %v3931_v60, 1  ;;  %v4289_v32 = vmul.f32 %v12087_v15, %v14183_v49  ;;  %v12093_v11 = vunpack.i.h.bf16 %v12091_v10  ;;  %v17548_v54 = vld [vmem:[#allocation23_spill] sm:$0xff]  ;;  %v17551_v60 = vld [vmem:[#allocation65_spill] sm:$0xff] }
 0x1f2   : > { %v4873_v37 = vsel %vm12577_vm5, %v4865_v33, %v14620_v59  ;;  %v5094_v46 = vsel %vm14455_vm13, %v4864_v48, %v5093_v14  ;;  %v4135_v12 = vadd.f32 %v4028_v0, %v3555_v25  ;;  %v4427_v42 = vrot.slane %v4311_v55, 2  ;;  %v17547_v59 = vld [vmem:[#allocation66_spill] sm:$0xff]  ;;  %v17552_v48 = vld [vmem:[#allocation68_spill] sm:$0xff]  ;;  %v12101_v55 = vpop.permute.xlu0 %12100 }
 0x1f3   : > { %v4524_v41 = vmax.f32 %v4492_v47, 0.0  ;;  %5095 = vst [vmem:[#allocation3 + $0x78] sm:$0xf] %v5094_v46  ;;  %5096 = vst.msk [vmem:[#allocation3 + $0x7c] sm:$0xf] %vm4569_vm11, %v4873_v37  ;;  %v4388_v21 = vrot.slane %v14678_v40, 2  ;;  %v12092_v20 = vunpack.i.l.bf16 %v12091_v10  ;;  %v2908_v23 = vadd.f32 %v17547_v59, %v13746_v35 }
 0x1f4   : > { %v4034_v28 = vrot.slane %v3933_v31, 1  ;;  %v4390_v8 = vrot.slane %v4289_v32, 2  ;;  %v4429_v53 = vsel %vm1919_vm9, %v4427_v42, %v4428_v39  ;;  %v17549_v0 = vrot.slane %v17548_v54, 2  ;;  %v17550_v47 = vld [vmem:[#allocation34_spill] sm:$0xff]  ;;  %v5041_v31 = vld [vmem:[#allocation3 + $0x20] sm:$0x1]  ;;  %v12106_v54 = vpop.permute.xlu1 %12105 }
 0x1f5   : > { %v10755_v34 = vpack.c.bf16 %v4524_v41, %v4524_v41  ;;  %v4509_v61 = vadd.f32 %v4429_v53, %v14608_v50  ;;  %v3525_v25 = vmul.f32 %v12093_v11, %v14195_v52  ;;  %v4033_v45 = vsel %vm1562_vm8, %v4031_v1, %v4032_v2 }
 0x1f6   : > { %v3160_v26 = vsel %vm1919_vm9, %v3158_v3, %v17549_v0  ;;  %v14705_v19 = vmul.f32 %v12092_v20, %v17502_v36  ;;  %v12098_v15 = vunpack.i.h.bf16 %v12096_v30  ;;  %v12097_v10 = vunpack.i.l.bf16 %v12096_v30 }
 0x1f7   : > { %v4731_v13 = vshrl.u32 %v10755_v34, 16  ;;  %v3264_v39 = vadd.f32 %v3160_v26, %v2908_v23  ;;  %v4541_v14 = vmax.f32 %v4509_v61, 0.0  ;;  %v2909_v16 = vadd.f32 %v17551_v60, %v17550_v47  ;;  %v5100_v60 = vld [vmem:[#allocation3 + $0x84] sm:$0xf] }
 0x1f8   : > { %v17553_v3 = vrot.slane %v17552_v48, 2  ;;  %v17554_v33 = vmov %v17549_v0  ;;  %v4734_v41 = vshll.u32 %v10755_v34, 16  ;;  %v4391_v1 = vsel %vm1919_vm9, %v4388_v21, %v4390_v8 }
 0x1f9   : > { %v4733_v35 = vrot.slane %v4731_v13, 7  ;;  %v4284_v32 = vmul.f32 %v12098_v15, %v14183_v49  ;;  %v3526_v11 = vmul.f32 %v12097_v10, %v14195_v52  ;;  %v10772_v46 = vpack.c.bf16 %v4541_v14, %v4541_v14 }
 0x1fa   : > { %v3162_v50 = vsel %vm1919_vm9, %v17554_v33, %v17553_v3  ;;  %v3203_v42 = vrot.slane %v14705_v19, 2  ;;  %v3557_v53 = vadd.f32 %v3525_v25, %v3264_v39  ;;  %v12103_v23 = vunpack.i.h.bf16 %v12101_v55  ;;  %v12307_v34 = vld [vmem:[#allocation3 + $0x78] sm:$0xff]  }
 0x1fb   : > { %v4738_v37 = vrot.slane %v4733_v35, 4  ;;  %v3265_v20 = vadd.f32 %v3162_v50, %v2909_v16  ;;  %v14720_v30 = vor.u32 %v4734_v41, %v4733_v35  ;;  %v4382_v59 = vrot.slane %v4284_v32, 2  ;;  %11228 = vmatprep.mubr.msk.bf16.mxu1 %vm5293_vm14, %v12307_v34  ;;  %v12111_v50 = vpop.permute.xlu0 %12110 }
 0x1fc   : > { %v4876_v8 = vshrl.u32 %v10772_v46, 16  ;;  %v4035_v13 = vsel %vm1562_vm8, %v4032_v2, %v4034_v28  ;;  %v4879_v61 = vshll.u32 %v10772_v46, 16  ;;  %v2710_v10 = vmul.f32 %v12103_v23, %v17501_v7  ;;  %v12116_v46 = vpop.permute.xlu1 %12115 }
 0x1fd   : > { %v5042_v0 = vsel %vm14401_vm12, %v4738_v37, %v5041_v31  ;;  %v3558_v26 = vadd.f32 %v3526_v11, %v3265_v20  ;;  %v4384_v15 = vsel %vm1919_vm9, %v4382_v59, %v4383_v51  ;;  %v12102_v25 = vunpack.i.l.bf16 %v12101_v55 }
 0x1fe   : > { %5043 = vst [vmem:[#allocation3 + $0x20] sm:$0x1] %v5042_v0  ;;  %v4878_v39 = vrot.slane %v4876_v8, 7  ;;  %v4491_v14 = vadd.f32 %v4384_v15, %v4135_v12  ;;  %v12108_v47 = vunpack.i.h.bf16 %v12106_v54  ;;  %v4137_v16 = vadd.f32 %v4033_v45, %v3557_v53 }
 0x1ff   : > { %v4138_v35 = vadd.f32 %v4035_v13, %v3558_v26  ;;  %v14731_v48 = vmul.f32 %v12103_v23, %v17502_v36  ;;  %v2709_v2 = vmul.f32 %v12102_v25, %v17501_v7  ;;  %v14735_v44 = vmul.f32 %v12102_v25, %v17502_v36 }
 0x200   : > { %v4881_v51 = vor.u32 %v4879_v61, %v4878_v39  ;;  %v4882_v28 = vrot.slane %v4878_v39, 4  ;;  %v4523_v33 = vmax.f32 %v4491_v14, 0.0  ;;  %v2815_v55 = vrot.slane %v2710_v10, 1  ;;  %v12121_v14 = vpop.permute.xlu0 %12120 }
 0x201   : > { %v4494_v3 = vadd.f32 %v4391_v1, %v4138_v35  ;;  %v2813_v31 = vrot.slane %v2709_v2, 1  ;;  %v4287_v12 = vmul.f32 %v12108_v47, %v14183_v49  ;;  %v12107_v41 = vunpack.i.l.bf16 %v12106_v54  ;;  %v5037_v47 = vld [vmem:[#allocation3 + $0x18] sm:$0xf] }
 0x202   : > { %v4890_v45 = vsel %vm12577_vm5, %v4882_v28, %v14664_v27  ;;  %v5101_v32 = vsel %vm14455_vm13, %v4881_v51, %v5100_v60  ;;  %v10754_v37 = vpack.c.bf16 %v4523_v33, %v4523_v33  ;;  %v3169_v20 = vrot.slane %v14735_v44, 2  ;;  %v17555_v27 = vld [vmem:[#allocation32_spill] sm:$0xff] }
 0x203   : > { %v4526_v11 = vmax.f32 %v4494_v3, 0.0  ;;  %5102 = vst [vmem:[#allocation3 + $0x84] sm:$0xf] %v5101_v32  ;;  %5103 = vst.msk [vmem:[#allocation3 + $0x88] sm:$0xf] %vm4569_vm11, %v4890_v45  ;;  %v4387_v53 = vrot.slane %v4287_v12, 2  ;;  %v14747_v59 = vmul.f32 %v12107_v41, %v17502_v36  ;;  %v12113_v8 = vunpack.i.h.bf16 %v12111_v50  ;;  %v12126_v41 = vpop.permute.xlu1 %12125 }
 0x204   : > { %v4723_v54 = vshrl.u32 %v10754_v37, 16  ;;  %v17556_v34 = vrot.slane %v17555_v27, 1  ;;  %v14755_v26 = vsel %vm1562_vm8, %v2813_v31, %v2815_v55  ;;  %v12112_v61 = vunpack.i.l.bf16 %v12111_v50  ;;  %v5048_v50 = vld [vmem:[#allocation3 + $0x2c] sm:$0x1] }
 0x205   : > { %v10757_v23 = vpack.c.bf16 %v4526_v11, %v4526_v11  ;;  %v4389_v13 = vsel %vm1919_vm9, %v4387_v53, %v4388_v21  ;;  %v12118_v15 = vunpack.i.h.bf16 %v12116_v46  ;;  %v4726_v25 = vshll.u32 %v10754_v37, 16 }
 0x206   : > { %v14752_v0 = vsel %vm1562_vm8, %v17556_v34, %v2813_v31  ;;  %v4725_v10 = vrot.slane %v4723_v54, 7  ;;  %v4493_v35 = vadd.f32 %v4389_v13, %v4137_v16  ;;  %v3208_v60 = vrot.slane %v14747_v59, 2  ;;  %v17557_v13 = vld [vmem:[#allocation62_spill] sm:$0xff] }
 0x207   : > { %v4748_v39 = vshrl.u32 %v10757_v23, 16  ;;  %v14762_v2 = vmul.f32 %v12113_v8, %v17502_v36  ;;  %v14765_v51 = vmul.f32 %v12112_v61, %v17502_v36  ;;  %v14768_v40 = vmul.f32 %v12118_v15, %v14180_v29 }
 0x208   : > { %v4728_v21 = vor.u32 %v4726_v25, %v4725_v10  ;;  %v4729_v28 = vrot.slane %v4725_v10, 4  ;;  %v4525_v33 = vmax.f32 %v4493_v35, 0.0  ;;  %v4751_v55 = vshll.u32 %v10757_v23, 16  ;;  %v12131_v10 = vpop.permute.xlu0 %12130 }
 0x209   : > { %v4750_v3 = vrot.slane %v4748_v39, 7  ;;  %v3163_v31 = vrot.slane %v14765_v51, 2  ;;  %v4077_v12 = vrot.slane %v14768_v40, 1  ;;  %v14779_v37 = vmul.f32 %v12118_v15, %v14183_v49 }
 0x20a   : > { %v4737_v45 = vsel %vm12577_vm5, %v4729_v28, %v14720_v30  ;;  %v5038_v11 = vsel %vm14455_vm13, %v4728_v21, %v5037_v47  ;;  %v12308_v53 = vld [vmem:[#allocation3 + $0x84] sm:$0xff]   ;;  %v10756_v23 = vpack.c.bf16 %v4525_v33, %v4525_v33  ;;  %v12117_v54 = vunpack.i.l.bf16 %v12116_v46 }
 0x20b   : > { %v4755_v32 = vrot.slane %v4750_v3, 4  ;;  %5039 = vst [vmem:[#allocation3 + $0x18] sm:$0xf] %v5038_v11  ;;  %5040 = vst.msk [vmem:[#allocation3 + $0x1c] sm:$0xf] %vm4569_vm11, %v4737_v45  ;;  %v12123_v27 = vunpack.i.h.bf16 %v12121_v14  ;;  %v12122_v34 = vunpack.i.l.bf16 %v12121_v14  ;;  %v2926_v30 = vadd.f32 %v14583_v5, %v17557_v13  ;;  %11229 = vmatmul.mubr.msk.bf16.gmra.mxu1 %vm5293_vm14, %v12308_v53  ;;  %v17558_v28 = vld [vmem:[#allocation21_spill] sm:$0xff] }
 0x20c   : > { %v3205_v61 = vsel %vm1919_vm9, %v3203_v42, %v3204_v17  ;;  %v12128_v15 = vunpack.i.h.bf16 %v12126_v41  ;;  %v4740_v46 = vshrl.u32 %v10756_v23, 16  ;;  %v4743_v25 = vshll.u32 %v10756_v23, 16  ;;  %v5044_v45 = vld [vmem:[#allocation3 + $0x24] sm:$0xf] }
 0x20d   : > { %v5049_v8 = vsel %vm14401_vm12, %v4755_v32, %v5048_v50  ;;  %v3958_v39 = vmul.f32 %v12117_v54, %v14180_v29  ;;  %v3543_v35 = vmul.f32 %v12123_v27, %v14195_v52  ;;  %v3282_v14 = vadd.f32 %v3205_v61, %v2926_v30  ;;  %v12314_v23 = vld [vmem:[%s17163_s3 + $0x38] sm:$0xff]   ;;  %v12141_v61 = vpop.permute.xlu0 %12140 }
 0x20e   : > { %5050 = vst [vmem:[#allocation3 + $0x2c] sm:$0x1] %v5049_v8  ;;  %v3960_v5 = vmul.f32 %v12122_v34, %v14180_v29  ;;  %v4316_v47 = vmul.f32 %v12122_v34, %v14183_v49  ;;  %v14797_v19 = vmul.f32 %v12128_v15, %v14180_v29  ;;  %v4742_v42 = vrot.slane %v4740_v46, 7  ;;  %v12316_v54 = vld [vmem:[%s17163_s3 + $0x58] sm:$0xff]   ;;  %11240 = vmatprep.subr.bf16.mxu1 %v12314_v23 }
 0x20f   : > { %v4076_v40 = vrot.slane %v3958_v39, 1  ;;  %v12127_v21 = vunpack.i.l.bf16 %v12126_v41  ;;  %v2927_v33 = vadd.f32 %v14599_v58, %v17558_v28  ;;  %v4753_v50 = vor.u32 %v4751_v55, %v4750_v3  ;;  %v12136_v3 = vpop.permute.xlu1 %12135  ;;  %11241 = vmatpush3.bf16.msra.mxu1 %v12314_v23  ;;  %11280 = vmatprep.subr.bf16.mxu0 %v12316_v54 }
 0x210   : > { %v4433_v32 = vrot.slane %v14779_v37, 2  ;;  %v3575_v11 = vadd.f32 %v3543_v35, %v3282_v14  ;;  %v4079_v53 = vrot.slane %v3960_v5, 1  ;;  %v4745_v27 = vor.u32 %v4743_v25, %v4742_v42  ;;  %11281 = vmatpush3.bf16.msra.mxu0 %v12316_v54  ;;  %v12325_v37 = vld [vmem:[%s17163_s3 + $0x40] sm:$0xff]  }
 0x211   : > { %v4746_v34 = vrot.slane %v4742_v42, 4  ;;  %v4435_v41 = vrot.slane %v4316_v47, 2  ;;  %v3207_v58 = vsel %vm1919_vm9, %v3204_v17, %v3206_v18  ;;  %v4078_v55 = vsel %vm1562_vm8, %v4076_v40, %v4077_v12 }
 0x212   : > { %v4081_v8 = vrot.slane %v14797_v19, 1  ;;  %v3283_v13 = vadd.f32 %v3207_v58, %v2927_v33  ;;  %v3544_v30 = vmul.f32 %v12127_v21, %v14195_v52  ;;  %v12309_v15 = vld [vmem:[#allocation3 + $0x18] sm:$0xff]   ;;  %v5045_v57 = vsel %vm14455_vm13, %v4745_v27, %v5044_v45 }
 0x213   : > { %v4754_v46 = vsel %vm12577_vm5, %v4746_v34, %v4753_v50  ;;  %v4080_v56 = vsel %vm1562_vm8, %v4077_v12, %v4079_v53  ;;  %v12133_v17 = vunpack.i.h.bf16 %v12131_v10  ;;  %5046 = vst [vmem:[#allocation3 + $0x24] sm:$0xf] %v5045_v57  ;;  %v12132_v25 = vunpack.i.l.bf16 %v12131_v10  ;;  %11212 = vmatprep.mubr.msk.bf16.mxu0 %vm5293_vm14, %v12309_v15  ;;  %v12146_v45 = vpop.permute.xlu1 %12145 }
 0x214   : > { %5047 = vst.msk [vmem:[#allocation3 + $0x28] sm:$0xf] %vm4569_vm11, %v4754_v46  ;;  %v3576_v18 = vadd.f32 %v3544_v30, %v3283_v13  ;;  %v12138_v39 = vunpack.i.h.bf16 %v12136_v3  ;;  %v12137_v35 = vunpack.i.l.bf16 %v12136_v3  ;;  %v12143_v47 = vunpack.i.h.bf16 %v12141_v61 }
 0x215   : > { %v3963_v14 = vmul.f32 %v12133_v17, %v14180_v29  ;;  %v4319_v5 = vmul.f32 %v12133_v17, %v14183_v49  ;;  %v12142_v19 = vunpack.i.l.bf16 %v12141_v61  ;;  %v3962_v42 = vmul.f32 %v12132_v25, %v14180_v29  ;;  %v17559_v61 = vld [vmem:[#allocation15_spill] sm:$0xff] }
 0x216   : > { %v4156_v12 = vadd.f32 %v4080_v56, %v3576_v18  ;;  %v14827_v40 = vmul.f32 %v12132_v25, %v14183_v49  ;;  %v2736_v21 = vmul.f32 %v12138_v39, %v17501_v7  ;;  %v4436_v10 = vsel %vm1919_vm9, %v4433_v32, %v4435_v41 }
 0x217   : > { %v4440_v28 = vrot.slane %v4319_v5, 2  ;;  %v14834_v33 = vmul.f32 %v12138_v39, %v17502_v36  ;;  %v2735_v50 = vmul.f32 %v12137_v35, %v17501_v7  ;;  %v4084_v23 = vrot.slane %v3963_v14, 1 }
 0x218   : > { %v4512_v53 = vadd.f32 %v4436_v10, %v4156_v12  ;;  %v4438_v54 = vrot.slane %v14827_v40, 2  ;;  %v2858_v27 = vrot.slane %v2736_v21, 1  ;;  %v4082_v34 = vrot.slane %v3962_v42, 1  ;;  %v12156_v42 = vpop.permute.xlu1 %12155 }
 0x219   : > { %v2857_v3 = vrot.slane %v2735_v50, 1  ;;  %v2737_v13 = vmul.f32 %v12142_v19, %v17501_v7  ;;  %v3545_v41 = vmul.f32 %v12143_v47, %v14195_v52  ;;  %v2928_v15 = vadd.f32 %v14661_v24, %v17559_v61 }
 0x21a   : > { %v4544_v30 = vmax.f32 %v4512_v53, 0.0  ;;  %v14844_v46 = vmul.f32 %v12142_v19, %v17502_v36  ;;  %v14846_v57 = vadd.f32 %v4078_v55, %v3575_v11  ;;  %v4441_v56 = vsel %vm1919_vm9, %v4438_v54, %v4440_v28  ;;  %v12151_v11 = vpop.permute.xlu0 %12150  ;;  %v17560_v19 = vld [vmem:[#allocation20_spill] sm:$0xff] }
 0x21b   : > { %v2860_v17 = vrot.slane %v2737_v13, 1  ;;  %v3210_v18 = vsel %vm1919_vm9, %v3208_v60, %v3209_v63  ;;  %v12310_v25 = vld [vmem:[#allocation3 + $0x24] sm:$0xff]   ;;  %v14857_v24 = vsel %vm1562_vm8, %v2857_v3, %v2858_v27  ;;  %v12148_v14 = vunpack.i.h.bf16 %v12146_v45  ;;  %v5111_v13 = vld [vmem:[#allocation3 + $0x98] sm:$0x1] }
 0x21c   : > { %v10775_v39 = vpack.c.bf16 %v4544_v30, %v4544_v30  ;;  %v3284_v35 = vadd.f32 %v3210_v18, %v2928_v15  ;;  %v4083_v5 = vsel %vm1562_vm8, %v4081_v8, %v4082_v34  ;;  %v12147_v47 = vunpack.i.l.bf16 %v12146_v45  ;;  %11213 = vmatmul.mubr.msk.bf16.gmra.mxu0 %vm5293_vm14, %v12310_v25 }
 0x21d   : > { %v2929_v12 = vadd.f32 %v14667_v43, %v17560_v19  ;;  %v14865_v60 = vsel %vm1562_vm8, %v2858_v27, %v2860_v17  ;;  %v3212_v10 = vsel %vm1919_vm9, %v3209_v63, %v3211_v62  ;;  %v14873_v8 = vmul.f32 %v12148_v14, %v14180_v29 }
 0x21e   : > { %v4901_v59 = vshrl.u32 %v10775_v39, 16  ;;  %v3577_v21 = vadd.f32 %v3545_v41, %v3284_v35  ;;  %v3546_v43 = vmul.f32 %v12147_v47, %v14195_v52  ;;  %v12153_v50 = vunpack.i.h.bf16 %v12151_v11  ;;  %v12161_v17 = vpop.permute.xlu0 %12160 }
 0x21f   : > { %v3285_v28 = vadd.f32 %v3212_v10, %v2929_v12  ;;  %v4904_v53 = vshll.u32 %v10775_v39, 16  ;;  %v4085_v3 = vsel %vm1562_vm8, %v4082_v34, %v4084_v23  ;;  %v12152_v27 = vunpack.i.l.bf16 %v12151_v11  ;;  %v12166_v39 = vpop.permute.xlu1 %12165 }
 0x220   : > { %v4903_v45 = vrot.slane %v4901_v59, 7  ;;  %v14878_v4 = vmul.f32 %v12153_v50, %v14180_v29  ;;  %v4292_v6 = vmul.f32 %v12153_v50, %v14183_v49  ;;  %v12158_v62 = vunpack.i.h.bf16 %v12156_v42  ;;  %v12317_v50 = vld [vmem:[%s17163_s3 + $0x30] sm:$0xff]  }
 0x221   : > { %v3578_v30 = vadd.f32 %v3546_v43, %v3285_v28  ;;  %v14881_v41 = vadd.f32 %v4083_v5, %v3577_v21  ;;  %v14884_v61 = vmul.f32 %v12152_v27, %v14180_v29  ;;  %v14887_v15 = vmul.f32 %v12152_v27, %v14183_v49  ;;  %11242 = vmatprep.subr.bf16.mxu1 %v12317_v50 }
 0x222   : > { %v4908_v63 = vrot.slane %v4903_v45, 4  ;;  %v14889_v23 = vor.u32 %v4904_v53, %v4903_v45  ;;  %v4036_v34 = vrot.slane %v14873_v8, 1  ;;  %v2738_v25 = vmul.f32 %v12158_v62, %v17501_v7  ;;  %11243 = vmatpush3.bf16.msra.mxu1 %v12317_v50 }
 0x223   : > { %v4158_v18 = vadd.f32 %v4085_v3, %v3578_v30  ;;  %v4039_v14 = vrot.slane %v14878_v4, 1  ;;  %v4395_v11 = vrot.slane %v4292_v6, 2  ;;  %v12157_v5 = vunpack.i.l.bf16 %v12156_v42  ;;  %v12318_v42 = vld [vmem:[%s17163_s3 + $0x50] sm:$0xff]  }
 0x224   : > { %v5112_v35 = vsel %vm14401_vm12, %v4908_v63, %v5111_v13  ;;  %v17224_v19 = vrot.slane %v14887_v15, 2  ;;  %v12163_v12 = vunpack.i.h.bf16 %v12161_v17  ;;  %v12162_v59 = vunpack.i.l.bf16 %v12161_v17  ;;  %v12321_v13 = vld [vmem:[%s17163_s3 + $0x48] sm:$0xff]   ;;  %v17561_v63 = vld [vmem:[#allocation38_spill] sm:$0xff]  ;;  %11282 = vmatprep.subr.bf16.mxu0 %v12318_v42 }
 0x225   : > { %5113 = vst [vmem:[#allocation3 + $0x98] sm:$0x1] %v5112_v35  ;;  %v4514_v47 = vadd.f32 %v4441_v56, %v4158_v18  ;;  %v4037_v21 = vrot.slane %v14884_v61, 1  ;;  %v2862_v10 = vrot.slane %v2738_v25, 1  ;;  %v4314_v28 = vmul.f32 %v12157_v5, %v14183_v49  ;;  %v12319_v56 = vld [vmem:[%s17163_s3 + $0x28] sm:$0xff]   ;;  %11283 = vmatpush3.bf16.msra.mxu0 %v12318_v42 }
 0x226   : > { %v12168_v43 = vunpack.i.h.bf16 %v12166_v39  ;;  %v2740_v53 = vmul.f32 %v12163_v12, %v17501_v7  ;;  %v14910_v3 = vmul.f32 %v12163_v12, %v17502_v36  ;;  %v2739_v27 = vmul.f32 %v12162_v59, %v17501_v7  ;;  %v17562_v17 = vld [vmem:[#allocation71_spill] sm:$0xff]  ;;  %11244 = vmatprep.subr.bf16.mxu1 %v12319_v56  ;;  %11284 = vmatprep.subr.bf16.mxu0 %v12321_v13 }
 0x227   : > { %v4546_v45 = vmax.f32 %v4514_v47, 0.0  ;;  %v4432_v30 = vrot.slane %v4314_v28, 2  ;;  %v14917_v6 = vmul.f32 %v12162_v59, %v17502_v36  ;;  %v12167_v62 = vunpack.i.l.bf16 %v12166_v39  ;;  %v17563_v59 = vld [vmem:[#allocation14_spill] sm:$0xff]  ;;  %v17564_v28 = vld [vmem:[#allocation53_spill] sm:$0xff]  ;;  %11245 = vmatpush3.bf16.msra.mxu1 %v12319_v56 }
 0x228   : > { %v2910_v18 = vadd.f32 %v17562_v17, %v17561_v63  ;;  %v4396_v35 = vsel %vm1919_vm9, %v17224_v19, %v4395_v11  ;;  %v2863_v5 = vrot.slane %v2739_v27, 1  ;;  %v3528_v47 = vmul.f32 %v12168_v43, %v14195_v52  ;;  %v17565_v17 = vld [vmem:[#allocation52_spill] sm:$0xff]  ;;  %v12171_v11 = vpop.permute.xlu0 %12170  ;;  %v12323_v43 = vld [vmem:[%s17163_s3 + $0x20] sm:$0xff]   ;;  %v12327_v56 = vld [vmem:[%s17163_s3 + $0x78] sm:$0xff]  }
 0x229   : > { %v10777_v25 = vpack.c.bf16 %v4546_v45, %v4546_v45  ;;  %v4434_v12 = vsel %vm1919_vm9, %v4432_v30, %v4433_v32  ;;  %v2865_v39 = vrot.slane %v2740_v53, 1  ;;  %v2911_v63 = vadd.f32 %v17564_v28, %v17563_v59  ;;  %v12176_v53 = vpop.permute.xlu1 %12175  ;;  %11285 = vmatpush3.bf16.msra.mxu0 %v12321_v13  ;;  %11246 = vmatprep.subr.bf16.mxu1 %v12323_v43 }
 0x22a   : > { %v17566_v55 = vrot.slane %v17565_v17, 2  ;;  %v4511_v50 = vadd.f32 %v4434_v12, %v14846_v57  ;;  %v3219_v51 = vrot.slane %v14917_v6, 2  ;;  %v17569_v30 = vrot.slane %v17565_v17, 2  ;;  %v5118_v12 = vld [vmem:[#allocation3 + $0xa4] sm:$0x1]  ;;  %11286 = vmatprep.subr.bf16.mxu0 %v12325_v37 }
 0x22b   : > { %v4918_v32 = vshrl.u32 %v10777_v25, 16  ;;  %v3527_v58 = vmul.f32 %v12167_v62, %v14195_v52  ;;  %v14951_v16 = vsel %vm1562_vm8, %v2862_v10, %v2863_v5  ;;  %v12173_v42 = vunpack.i.h.bf16 %v12171_v11  ;;  %11247 = vmatpush3.bf16.msra.mxu1 %v12323_v43 }
 0x22c   : > { %v3165_v45 = vsel %vm1919_vm9, %v3163_v31, %v17566_v55  ;;  %v4921_v31 = vshll.u32 %v10777_v25, 16  ;;  %v17567_v55 = vld [vmem:[#allocation64_spill] sm:$0xff]  ;;  %v4543_v1 = vmax.f32 %v4511_v50, 0.0  ;;  %v14954_v25 = vsel %vm1562_vm8, %v2863_v5, %v2865_v39  ;;  %11320 = vmatprep.subr.bf16.mxu1 %v12327_v56 }
 0x22d   : > { %v17568_v27 = vrot.slane %v17567_v55, 2  ;;  %v3266_v28 = vadd.f32 %v3165_v45, %v2910_v18  ;;  %v4920_v19 = vrot.slane %v4918_v32, 7  ;;  %v12172_v17 = vunpack.i.l.bf16 %v12171_v11  ;;  %v12186_v11 = vpop.permute.xlu1 %12185  ;;  %11287 = vmatpush3.bf16.msra.mxu0 %v12325_v37 }
 0x22e   : > { %v10774_v45 = vpack.c.bf16 %v4543_v1, %v4543_v1  ;;  %v4038_v10 = vsel %vm1562_vm8, %v4036_v34, %v4037_v21  ;;  %v4040_v1 = vsel %vm1562_vm8, %v4037_v21, %v4039_v14  ;;  %v14977_v8 = vmul.f32 %v12173_v42, %v14180_v29  ;;  %v12181_v34 = vpop.permute.xlu0 %12180 }
 0x22f   : > { %v3167_v59 = vsel %vm1919_vm9, %v17569_v30, %v17568_v27  ;;  %v3559_v55 = vadd.f32 %v3527_v58, %v3266_v28  ;;  %v4925_v18 = vrot.slane %v4920_v19, 4  ;;  %v12328_v58 = vld [vmem:[%s17163_s3 + $0x98] sm:$0xff]   ;;  %v14967_v13 = vor.u32 %v4921_v31, %v4920_v19  ;;  %v5107_v30 = vld [vmem:[#allocation3 + $0x90] sm:$0xf] }
 0x230   : > { %v3267_v57 = vadd.f32 %v3167_v59, %v2911_v63  ;;  %v4893_v39 = vshrl.u32 %v10774_v45, 16  ;;  %v14982_v19 = vmul.f32 %v12173_v42, %v14183_v49  ;;  %v4896_v4 = vshll.u32 %v10774_v45, 16  ;;  %11360 = vmatprep.subr.bf16.mxu0 %v12328_v58 }
 0x231   : > { %v14974_v5 = vadd.f32 %v4038_v10, %v3559_v55  ;;  %v4042_v61 = vrot.slane %v14977_v8, 1  ;;  %v14986_v14 = vmul.f32 %v12172_v17, %v14180_v29  ;;  %v12178_v21 = vunpack.i.h.bf16 %v12176_v53 }
 0x232   : > { %v3560_v62 = vadd.f32 %v3528_v47, %v3267_v57  ;;  %v5119_v47 = vsel %vm14401_vm12, %v4925_v18, %v5118_v12  ;;  %v4895_v32 = vrot.slane %v4893_v39, 7  ;;  %v12177_v31 = vunpack.i.l.bf16 %v12176_v53  ;;  %v12191_v39 = vpop.permute.xlu0 %12190 }
 0x233   : > { %5120 = vst [vmem:[#allocation3 + $0xa4] sm:$0x1] %v5119_v47  ;;  %v12183_v27 = vunpack.i.h.bf16 %v12181_v34  ;;  %v4317_v42 = vmul.f32 %v12178_v21, %v14183_v49  ;;  %v12182_v59 = vunpack.i.l.bf16 %v12181_v34  ;;  %v12188_v43 = vunpack.i.h.bf16 %v12186_v11 }
 0x234   : > { %v4140_v63 = vadd.f32 %v4040_v1, %v3560_v62  ;;  %v12187_v37 = vunpack.i.l.bf16 %v12186_v11  ;;  %v4898_v28 = vor.u32 %v4896_v4, %v4895_v32  ;;  %v4899_v57 = vrot.slane %v4895_v32, 4 }
 0x235   : > { %v14990_v55 = vmul.f32 %v12177_v31, %v14180_v29  ;;  %v4437_v17 = vrot.slane %v4317_v42, 2  ;;  %v4295_v18 = vmul.f32 %v12177_v31, %v14183_v49  ;;  %v2712_v45 = vmul.f32 %v12183_v27, %v17501_v7 }
 0x236   : > { %v4496_v50 = vadd.f32 %v4396_v35, %v4140_v63  ;;  %v14995_v35 = vmul.f32 %v12183_v27, %v17502_v36  ;;  %v4907_v53 = vsel %vm12577_vm5, %v4899_v57, %v14889_v23  ;;  %v5108_v62 = vsel %vm14455_vm13, %v4898_v28, %v5107_v30  ;;  %v5055_v30 = vld [vmem:[#allocation3 + $0x38] sm:$0x1] }
 0x237   : > { %v4398_v56 = vrot.slane %v14982_v19, 2  ;;  %5109 = vst [vmem:[#allocation3 + $0x90] sm:$0xf] %v5108_v62  ;;  %5110 = vst.msk [vmem:[#allocation3 + $0x94] sm:$0xf] %vm4569_vm11, %v4907_v53  ;;  %v4041_v58 = vrot.slane %v14986_v14, 1  ;;  %v4439_v47 = vsel %vm1919_vm9, %v4437_v17, %v4438_v54  ;;  %v2711_v4 = vmul.f32 %v12182_v59, %v17501_v7 }
 0x238   : > { %v4528_v12 = vmax.f32 %v4496_v50, 0.0  ;;  %v4044_v1 = vrot.slane %v14990_v55, 1  ;;  %v4400_v34 = vrot.slane %v4295_v18, 2  ;;  %v4513_v63 = vadd.f32 %v4439_v47, %v14881_v41  ;;  %v17571_v62 = vld [vmem:[#allocation43_spill] sm:$0xff] }
 0x239   : > { %v2818_v11 = vrot.slane %v2712_v45, 1  ;;  %v3174_v21 = vrot.slane %v14995_v35, 2  ;;  %v15013_v32 = vmul.f32 %v12188_v43, %v17502_v36  ;;  %v2713_v14 = vmul.f32 %v12187_v37, %v17501_v7  ;;  %v17570_v45 = vld [vmem:[#allocation13_spill] sm:$0xff] }
 0x23a   : > { %v10759_v10 = vpack.c.bf16 %v4528_v12, %v4528_v12  ;;  %v15017_v50 = vmul.f32 %v12187_v37, %v17502_v36  ;;  %v4545_v31 = vmax.f32 %v4513_v63, 0.0  ;;  %v2817_v54 = vrot.slane %v2711_v4, 1  ;;  %v12196_v37 = vpop.permute.xlu1 %12195  ;;  %v12201_v4 = vpop.permute.xlu0 %12200 }
 0x23b   : > { %v12193_v27 = vunpack.i.h.bf16 %v12191_v39  ;;  %v4401_v41 = vsel %vm1919_vm9, %v4398_v56, %v4400_v34  ;;  %v2820_v59 = vrot.slane %v2713_v14, 1  ;;  %v12192_v28 = vunpack.i.l.bf16 %v12191_v39 }
 0x23c   : > { %v4765_v23 = vshrl.u32 %v10759_v10, 16  ;;  %v4768_v42 = vshll.u32 %v10759_v10, 16  ;;  %v10776_v43 = vpack.c.bf16 %v4545_v31, %v4545_v31  ;;  %v3213_v12 = vrot.slane %v15013_v32, 2 }
 0x23d   : > { %v3176_v55 = vrot.slane %v15017_v50, 2  ;;  %v15027_v18 = vsel %vm1562_vm8, %v2817_v54, %v2818_v11  ;;  %v2912_v53 = vadd.f32 %v14752_v0, %v17570_v45  ;;  %v2913_v10 = vadd.f32 %v14755_v26, %v17571_v62 }
 0x23e   : > { %v4767_v40 = vrot.slane %v4765_v23, 7  ;;  %v4910_v47 = vshrl.u32 %v10776_v43, 16  ;;  %v3530_v39 = vmul.f32 %v12193_v27, %v14195_v52  ;;  %v17572_v23 = vrot.slane %v14762_v2, 2  ;;  %v12311_v54 = vld [vmem:[#allocation3 + $0x90] sm:$0xff]   ;;  %v12206_v62 = vpop.permute.xlu1 %12205 }
 0x23f   : > { %v4913_v14 = vshll.u32 %v10776_v43, 16  ;;  %v15042_v0 = vsel %vm1562_vm8, %v2818_v11, %v2820_v59  ;;  %v17573_v26 = vrot.slane %v14731_v48, 2  ;;  %v3529_v31 = vmul.f32 %v12192_v28, %v14195_v52  ;;  %11232 = vmatprep.mubr.msk.bf16.mxu1 %vm5293_vm14, %v12311_v54 }
 0x240   : > { %v4772_v57 = vrot.slane %v4767_v40, 4  ;;  %v15024_v17 = vor.u32 %v4768_v42, %v4767_v40  ;;  %v3170_v63 = vsel %vm1919_vm9, %v17572_v23, %v3169_v20  ;;  %v4912_v27 = vrot.slane %v4910_v47, 7 }
 0x241   : > { %v3172_v40 = vsel %vm1919_vm9, %v3169_v20, %v17573_v26  ;;  %v12198_v42 = vunpack.i.h.bf16 %v12196_v37  ;;  %v4043_v43 = vsel %vm1562_vm8, %v4041_v58, %v4042_v61  ;;  %v12197_v11 = vunpack.i.l.bf16 %v12196_v37 }
 0x242   : > { %v5056_v34 = vsel %vm14401_vm12, %v4772_v57, %v5055_v30  ;;  %v3268_v30 = vadd.f32 %v3170_v63, %v2912_v53  ;;  %v3269_v2 = vadd.f32 %v3172_v40, %v2913_v10  ;;  %v5114_v57 = vld [vmem:[#allocation3 + $0x9c] sm:$0xf]  ;;  %v12203_v59 = vunpack.i.h.bf16 %v12201_v4  ;;  %v12211_v63 = vpop.permute.xlu0 %12210 }
 0x243   : > { %5057 = vst [vmem:[#allocation3 + $0x38] sm:$0x1] %v5056_v34  ;;  %v12202_v45 = vunpack.i.l.bf16 %v12201_v4  ;;  %v4915_v48 = vor.u32 %v4913_v14, %v4912_v27  ;;  %v4916_v44 = vrot.slane %v4912_v27, 4  ;;  %v2714_v28 = vmul.f32 %v12198_v42, %v17501_v7 }
 0x244   : > { %v3562_v20 = vadd.f32 %v3530_v39, %v3269_v2  ;;  %v3561_v34 = vadd.f32 %v3529_v31, %v3268_v30  ;;  %v4045_v53 = vsel %vm1562_vm8, %v4042_v61, %v4044_v1  ;;  %v4290_v10 = vmul.f32 %v12197_v11, %v14183_v49 }
 0x245   : > { %v2716_v58 = vmul.f32 %v12203_v59, %v17501_v7  ;;  %v4924_v37 = vsel %vm12577_vm5, %v4916_v44, %v14967_v13  ;;  %v5115_v47 = vsel %vm14455_vm13, %v4915_v48, %v5114_v57  ;;  %v15066_v23 = vmul.f32 %v12203_v59, %v17502_v36  ;;  %v12216_v48 = vpop.permute.xlu1 %12215 }
 0x246   : > { %v4142_v39 = vadd.f32 %v4045_v53, %v3562_v20  ;;  %5116 = vst [vmem:[#allocation3 + $0x9c] sm:$0xf] %v5115_v47  ;;  %5117 = vst.msk [vmem:[#allocation3 + $0xa0] sm:$0xf] %vm4569_vm11, %v4924_v37  ;;  %v2822_v8 = vrot.slane %v2714_v28, 1  ;;  %v4392_v61 = vrot.slane %v4290_v10, 2  ;;  %v2715_v4 = vmul.f32 %v12202_v45, %v17501_v7 }
 0x247   : > { %v2825_v1 = vrot.slane %v2716_v58, 1  ;;  %v15071_v26 = vmul.f32 %v12202_v45, %v17502_v36  ;;  %v12208_v13 = vunpack.i.h.bf16 %v12206_v62  ;;  %v12207_v40 = vunpack.i.l.bf16 %v12206_v62 }
 0x248   : > { %v4498_v14 = vadd.f32 %v4401_v41, %v4142_v39  ;;  %v17574_v31 = vrot.slane %v14887_v15, 2  ;;  %v2823_v27 = vrot.slane %v2715_v4, 1  ;;  %v12213_v30 = vunpack.i.h.bf16 %v12211_v63 }
 0x249   : > { %v12212_v2 = vunpack.i.l.bf16 %v12211_v63  ;;  %v4141_v42 = vadd.f32 %v4043_v43, %v3561_v34  ;;  %v4293_v59 = vmul.f32 %v12208_v13, %v14183_v49  ;;  %v3181_v41 = vrot.slane %v15066_v23, 2 }
 0x24a   : > { %v4394_v54 = vsel %vm1919_vm9, %v4392_v61, %v17574_v31  ;;  %v4530_v57 = vmax.f32 %v4498_v14, 0.0  ;;  %v3179_v45 = vrot.slane %v15071_v26, 2  ;;  %v15081_v44 = vmul.f32 %v12207_v40, %v17502_v36  ;;  %v5062_v14 = vld [vmem:[#allocation3 + $0x44] sm:$0x1] }
 0x24b   : > { %v4495_v11 = vadd.f32 %v4394_v54, %v14974_v5  ;;  %v15084_v15 = vmul.f32 %v12213_v30, %v17502_v36  ;;  %v15087_v43 = vsel %vm1562_vm8, %v2822_v8, %v2823_v27  ;;  %v4397_v62 = vrot.slane %v4293_v59, 2 }
 0x24c   : > { %v10761_v20 = vpack.c.bf16 %v4530_v57, %v4530_v57  ;;  %v15090_v5 = vsel %vm1562_vm8, %v2823_v27, %v2825_v1  ;;  %v15093_v34 = vmul.f32 %v12212_v2, %v17502_v36  ;;  %v12218_v53 = vunpack.i.h.bf16 %v12216_v48  ;;  %v12221_v27 = vpop.permute.xlu0 %12220 }
 0x24d   : > { %v4527_v28 = vmax.f32 %v4495_v11, 0.0  ;;  %v12217_v10 = vunpack.i.l.bf16 %v12216_v48  ;;  %v3218_v47 = vrot.slane %v15081_v44, 2  ;;  %v4399_v39 = vsel %vm1919_vm9, %v4397_v62, %v4398_v56  ;;  %v12312_v4 = vld [vmem:[#allocation3 + $0x9c] sm:$0xff]   ;;  %v5051_v48 = vld [vmem:[#allocation3 + $0x30] sm:$0xf] }
 0x24e   : > { %v4782_v58 = vshrl.u32 %v10761_v20, 16  ;;  %v4497_v63 = vadd.f32 %v4399_v39, %v4141_v42  ;;  %v3178_v8 = vrot.slane %v15084_v15, 2  ;;  %v3965_v61 = vmul.f32 %v12218_v53, %v14180_v29  ;;  %11233 = vmatmul.mubr.msk.bf16.gmra.mxu1 %vm5293_vm14, %v12312_v4 }
 0x24f   : > { %v10758_v37 = vpack.c.bf16 %v4527_v28, %v4527_v28  ;;  %v15102_v1 = vmul.f32 %v12218_v53, %v14183_v49  ;;  %v4785_v40 = vshll.u32 %v10761_v20, 16  ;;  %v3964_v54 = vmul.f32 %v12217_v10, %v14180_v29  ;;  %v17575_v53 = vld [vmem:[#allocation16_spill] sm:$0xff] }
 0x250   : > { %v4784_v13 = vrot.slane %v4782_v58, 7  ;;  %v4529_v19 = vmax.f32 %v4497_v63, 0.0  ;;  %v3173_v56 = vrot.slane %v15093_v34, 2  ;;  %v4087_v2 = vrot.slane %v3965_v61, 1  ;;  %v12226_v58 = vpop.permute.xlu1 %12225 }
 0x251   : > { %v4757_v31 = vshrl.u32 %v10758_v37, 16  ;;  %v4760_v30 = vshll.u32 %v10758_v37, 16  ;;  %v4443_v11 = vrot.slane %v15102_v1, 2  ;;  %v4086_v59 = vrot.slane %v3964_v54, 1 }
 0x252   : > { %v4789_v42 = vrot.slane %v4784_v13, 4  ;;  %v10760_v28 = vpack.c.bf16 %v4529_v19, %v4529_v19  ;;  %v12223_v62 = vunpack.i.h.bf16 %v12221_v27  ;;  %v12222_v20 = vunpack.i.l.bf16 %v12221_v27 }
 0x253   : > { %v4759_v57 = vrot.slane %v4757_v31, 7  ;;  %v2930_v10 = vadd.f32 %v14857_v24, %v17575_v53  ;;  %v17576_v61 = vrot.slane %v14834_v33, 2  ;;  %v4787_v31 = vor.u32 %v4785_v40, %v4784_v13 }
 0x254   : > { %v5063_v37 = vsel %vm14401_vm12, %v4789_v42, %v5062_v14  ;;  %v4774_v54 = vshrl.u32 %v10760_v28, 16  ;;  %v4088_v27 = vsel %vm1562_vm8, %v4086_v59, %v4087_v2  ;;  %v3547_v19 = vmul.f32 %v12223_v62, %v14195_v52 }
 0x255   : > { %v4762_v39 = vor.u32 %v4760_v30, %v4759_v57  ;;  %v4763_v63 = vrot.slane %v4759_v57, 4  ;;  %v3215_v4 = vsel %vm1919_vm9, %v3213_v12, %v17576_v61  ;;  %5064 = vst [vmem:[#allocation3 + $0x44] sm:$0x1] %v5063_v37  ;;  %v3966_v30 = vmul.f32 %v12222_v20, %v14180_v29  ;;  %v5058_v57 = vld [vmem:[#allocation3 + $0x3c] sm:$0xf]  ;;  %v17577_v37 = vld [vmem:[#allocation63_spill] sm:$0xff] }
 0x256   : > { %v4322_v32 = vmul.f32 %v12222_v20, %v14183_v49  ;;  %v4776_v12 = vrot.slane %v4774_v54, 7  ;;  %v4777_v13 = vshll.u32 %v10760_v28, 16  ;;  %v12228_v40 = vunpack.i.h.bf16 %v12226_v58  ;;  %v12236_v54 = vpop.permute.xlu1 %12235 }
 0x257   : > { %v4771_v24 = vsel %vm12577_vm5, %v4763_v63, %v15024_v17  ;;  %v5052_v14 = vsel %vm14455_vm13, %v4762_v39, %v5051_v48  ;;  %v12227_v42 = vunpack.i.l.bf16 %v12226_v58  ;;  %v3286_v59 = vadd.f32 %v3215_v4, %v2930_v10  ;;  %v12231_v63 = vpop.permute.xlu0 %12230 }
 0x258   : > { %5053 = vst [vmem:[#allocation3 + $0x30] sm:$0xf] %v5052_v14  ;;  %5054 = vst.msk [vmem:[#allocation3 + $0x34] sm:$0xf] %vm4569_vm11, %v4771_v24  ;;  %v4089_v62 = vrot.slane %v3966_v30, 1  ;;  %v4445_v53 = vrot.slane %v4322_v32, 2  ;;  %v2931_v17 = vadd.f32 %v14865_v60, %v17577_v37  ;;  %v4779_v48 = vor.u32 %v4777_v13, %v4776_v12 }
 0x259   : > { %v4780_v39 = vrot.slane %v4776_v12, 4  ;;  %v3967_v61 = vmul.f32 %v12228_v40, %v14180_v29  ;;  %v17578_v20 = vrot.slane %v14844_v46, 2  ;;  %v17579_v24 = vrot.slane %v14834_v33, 2 }
 0x25a   : > { %v3579_v58 = vadd.f32 %v3547_v19, %v3286_v59  ;;  %v4446_v10 = vsel %vm1919_vm9, %v4443_v11, %v4445_v53  ;;  %v3548_v60 = vmul.f32 %v12227_v42, %v14195_v52  ;;  %v5059_v30 = vsel %vm14455_vm13, %v4779_v48, %v5058_v57  ;;  %v17580_v53 = vld [vmem:[#allocation51_spill] sm:$0xff]  ;;  %v12246_v44 = vpop.permute.xlu1 %12245 }
 0x25b   : > { %v3217_v28 = vsel %vm1919_vm9, %v17579_v24, %v17578_v20  ;;  %v4788_v14 = vsel %vm12577_vm5, %v4780_v39, %v4787_v31  ;;  %v4090_v46 = vsel %vm1562_vm8, %v4087_v2, %v4089_v62  ;;  %v12233_v33 = vunpack.i.h.bf16 %v12231_v63  ;;  %5060 = vst [vmem:[#allocation3 + $0x3c] sm:$0xf] %v5059_v30  ;;  %v17581_v62 = vld [vmem:[#allocation7_spill] sm:$0xff]  ;;  %v12241_v48 = vpop.permute.xlu0 %12240 }
 0x25c   : > { %v3287_v4 = vadd.f32 %v3217_v28, %v2931_v17  ;;  %5061 = vst.msk [vmem:[#allocation3 + $0x40] sm:$0xf] %vm4569_vm11, %v4788_v14  ;;  %v4091_v19 = vrot.slane %v3967_v61, 1  ;;  %v12232_v12 = vunpack.i.l.bf16 %v12231_v63  ;;  %v12238_v13 = vunpack.i.h.bf16 %v12236_v54 }
 0x25d   : > { %v3969_v40 = vmul.f32 %v12233_v33, %v14180_v29  ;;  %v4325_v42 = vmul.f32 %v12233_v33, %v14183_v49  ;;  %v12237_v59 = vunpack.i.l.bf16 %v12236_v54  ;;  %v2933_v31 = vadd.f32 %v14954_v25, %v17580_v53 }
 0x25e   : > { %v3580_v32 = vadd.f32 %v3548_v60, %v3287_v4  ;;  %v3968_v57 = vmul.f32 %v12232_v12, %v14180_v29  ;;  %v15151_v2 = vmul.f32 %v12232_v12, %v14183_v49  ;;  %v2932_v17 = vadd.f32 %v14951_v16, %v17581_v62 }
 0x25f   : > { %v12313_v63 = vld [vmem:[#allocation3 + $0x30] sm:$0xff]   ;;  %v4094_v39 = vrot.slane %v3969_v40, 1  ;;  %v4450_v61 = vrot.slane %v4325_v42, 2  ;;  %v3550_v20 = vmul.f32 %v12238_v13, %v14195_v52  ;;  %v3220_v25 = vsel %vm1919_vm9, %v3218_v47, %v3219_v51 }
 0x260   : > { %v4160_v37 = vadd.f32 %v4090_v46, %v3580_v32  ;;  %v4092_v28 = vrot.slane %v3968_v57, 1  ;;  %v4448_v54 = vrot.slane %v15151_v2, 2  ;;  %v17582_v4 = vrot.slane %v14910_v3, 2  ;;  %11216 = vmatprep.mubr.msk.bf16.mxu0 %vm5293_vm14, %v12313_v63 }
 0x261   : > { %v3549_v14 = vmul.f32 %v12237_v59, %v14195_v52  ;;  %v12243_v30 = vunpack.i.h.bf16 %v12241_v48  ;;  %v12242_v46 = vunpack.i.l.bf16 %v12241_v48  ;;  %v4159_v33 = vadd.f32 %v4088_v27, %v3579_v58  ;;  %v12251_v27 = vpop.permute.xlu0 %12250 }
 0x262   : > { %v4516_v24 = vadd.f32 %v4446_v10, %v4160_v37  ;;  %v3222_v16 = vsel %vm1919_vm9, %v3219_v51, %v17582_v4  ;;  %v4451_v10 = vsel %vm1919_vm9, %v4448_v54, %v4450_v61  ;;  %v3288_v32 = vadd.f32 %v3220_v25, %v2932_v17 }
 0x263   : > { %v3289_v60 = vadd.f32 %v3222_v16, %v2933_v31  ;;  %v4095_v6 = vsel %vm1562_vm8, %v4092_v28, %v4094_v39  ;;  %v3941_v51 = vmul.f32 %v12243_v30, %v14180_v29  ;;  %v15175_v12 = vmul.f32 %v12243_v30, %v14183_v49  ;;  %v12315_v13 = vld [vmem:[#allocation3 + $0x3c] sm:$0xff]   ;;  %v5125_v16 = vld [vmem:[#allocation3 + $0xb0] sm:$0x1] }
 0x264   : > { %v4548_v47 = vmax.f32 %v4516_v24, 0.0  ;;  %v3581_v42 = vadd.f32 %v3549_v14, %v3288_v32  ;;  %v12248_v59 = vunpack.i.h.bf16 %v12246_v44  ;;  %v12247_v53 = vunpack.i.l.bf16 %v12246_v44  ;;  %11217 = vmatmul.mubr.msk.bf16.gmra.mxu0 %vm5293_vm14, %v12315_v13 }
 0x265   : > { %v3582_v3 = vadd.f32 %v3550_v20, %v3289_v60  ;;  %v4093_v58 = vsel %vm1562_vm8, %v4091_v19, %v4092_v28  ;;  %v4047_v37 = vrot.slane %v3941_v51, 1  ;;  %v3940_v57 = vmul.f32 %v12242_v46, %v14180_v29  ;;  %v17583_v46 = vld [vmem:[#allocation12_spill] sm:$0xff] }
 0x266   : > { %v10779_v40 = vpack.c.bf16 %v4548_v47, %v4548_v47  ;;  %v4403_v48 = vrot.slane %v15175_v12, 2  ;;  %v4320_v63 = vmul.f32 %v12248_v59, %v14183_v49  ;;  %v3942_v61 = vmul.f32 %v12247_v53, %v14180_v29 }
 0x267   : > { %v4162_v31 = vadd.f32 %v4095_v6, %v3582_v3  ;;  %v4298_v20 = vmul.f32 %v12247_v53, %v14183_v49  ;;  %v12253_v25 = vunpack.i.h.bf16 %v12251_v27  ;;  %v15184_v19 = vadd.f32 %v4093_v58, %v3581_v42  ;;  %v17584_v3 = vld [vmem:[#allocation11_spill] sm:$0xff]  ;;  %v12261_v58 = vpop.permute.xlu0 %12260 }
 0x268   : > { %v4935_v62 = vshrl.u32 %v10779_v40, 16  ;;  %v4938_v17 = vshll.u32 %v10779_v40, 16  ;;  %v4442_v28 = vrot.slane %v4320_v63, 2  ;;  %v12252_v4 = vunpack.i.l.bf16 %v12251_v27  ;;  %v5132_v63 = vld [vmem:[#allocation3 + $0xbc] sm:$0x1] }
 0x269   : > { %v4518_v39 = vadd.f32 %v4451_v10, %v4162_v31  ;;  %v4046_v14 = vrot.slane %v3940_v57, 1  ;;  %v4049_v30 = vrot.slane %v3942_v61, 1  ;;  %v2914_v44 = vadd.f32 %v15027_v18, %v17583_v46  ;;  %v12256_v18 = vpop.permute.xlu1 %12255 }
 0x26a   : > { %v4937_v24 = vrot.slane %v4935_v62, 7  ;;  %v4405_v32 = vrot.slane %v4298_v20, 2  ;;  %v4444_v10 = vsel %vm1919_vm9, %v4442_v28, %v4443_v11  ;;  %v2915_v6 = vadd.f32 %v15042_v0, %v17584_v3 }
 0x26b   : > { %v4550_v60 = vmax.f32 %v4518_v39, 0.0  ;;  %v4515_v13 = vadd.f32 %v4444_v10, %v4159_v33  ;;  %v3532_v40 = vmul.f32 %v12253_v25, %v14195_v52  ;;  %v3175_v42 = vsel %vm1919_vm9, %v3173_v56, %v3174_v21  ;;  %v5121_v10 = vld [vmem:[#allocation3 + $0xa8] sm:$0xf] }
 0x26c   : > { %v4942_v47 = vrot.slane %v4937_v24, 4  ;;  %v3177_v0 = vsel %vm1919_vm9, %v3174_v21, %v3176_v55  ;;  %v3270_v1 = vadd.f32 %v3175_v42, %v2914_v44  ;;  %v3531_v11 = vmul.f32 %v12252_v4, %v14195_v52 }
 0x26d   : > { %v10781_v51 = vpack.c.bf16 %v4550_v60, %v4550_v60  ;;  %v4940_v33 = vor.u32 %v4938_v17, %v4937_v24  ;;  %v4547_v27 = vmax.f32 %v4515_v13, 0.0  ;;  %v3271_v34 = vadd.f32 %v3177_v0, %v2915_v6 }
 0x26e   : > { %v5126_v59 = vsel %vm14401_vm12, %v4942_v47, %v5125_v16  ;;  %v4406_v56 = vsel %vm1919_vm9, %v4403_v48, %v4405_v32  ;;  %v3563_v31 = vadd.f32 %v3531_v11, %v3270_v1  ;;  %v4050_v50 = vsel %vm1562_vm8, %v4047_v37, %v4049_v30  ;;  %v12266_v16 = vpop.permute.xlu1 %12265 }
 0x26f   : > { %5127 = vst [vmem:[#allocation3 + $0xb0] sm:$0x1] %v5126_v59  ;;  %v4952_v53 = vshrl.u32 %v10781_v51, 16  ;;  %v12258_v57 = vunpack.i.h.bf16 %v12256_v18  ;;  %v10778_v62 = vpack.c.bf16 %v4547_v27, %v4547_v27  ;;  %v3564_v21 = vadd.f32 %v3532_v40, %v3271_v34 }
 0x270   : > { %v12257_v55 = vunpack.i.l.bf16 %v12256_v18  ;;  %v4955_v39 = vshll.u32 %v10781_v51, 16  ;;  %v4048_v17 = vsel %vm1562_vm8, %v4046_v14, %v4047_v37  ;;  %v12263_v20 = vunpack.i.h.bf16 %v12261_v58 }
 0x271   : > { %v4954_v35 = vrot.slane %v4952_v53, 7  ;;  %v15213_v61 = vmul.f32 %v12258_v57, %v14180_v29  ;;  %v4927_v24 = vshrl.u32 %v10778_v62, 16  ;;  %v15215_v28 = vadd.f32 %v4048_v17, %v3563_v31 }
 0x272   : > { %v15218_v4 = vmul.f32 %v12258_v57, %v14183_v49  ;;  %v4930_v30 = vshll.u32 %v10778_v62, 16  ;;  %v4144_v46 = vadd.f32 %v4050_v50, %v3564_v21  ;;  %v3943_v44 = vmul.f32 %v12257_v55, %v14180_v29  ;;  %v17585_v57 = vld [vmem:[#allocation19_spill] sm:$0xff]  ;;  %v17586_v62 = vld [vmem:[#allocation18_spill] sm:$0xff]  ;;  %v12271_v21 = vpop.permute.xlu0 %12270 }
 0x273   : > { %v4959_v25 = vrot.slane %v4954_v35, 4  ;;  %v15220_v60 = vor.u32 %v4955_v39, %v4954_v35  ;;  %v4929_v14 = vrot.slane %v4927_v24, 7  ;;  %v4323_v47 = vmul.f32 %v12263_v20, %v14183_v49  ;;  %v12276_v39 = vpop.permute.xlu1 %12275 }
 0x274   : > { %v12262_v32 = vunpack.i.l.bf16 %v12261_v58  ;;  %v4500_v3 = vadd.f32 %v4406_v56, %v4144_v46  ;;  %v4052_v6 = vrot.slane %v15213_v61, 1  ;;  %v12268_v51 = vunpack.i.h.bf16 %v12266_v16 }
 0x275   : > { %v5133_v37 = vsel %vm14401_vm12, %v4959_v25, %v5132_v63  ;;  %v12267_v13 = vunpack.i.l.bf16 %v12266_v16  ;;  %v4932_v40 = vor.u32 %v4930_v30, %v4929_v14  ;;  %v4933_v42 = vrot.slane %v4929_v14, 4  ;;  %v5069_v30 = vld [vmem:[#allocation3 + $0x50] sm:$0x1] }
 0x276   : > { %5134 = vst [vmem:[#allocation3 + $0xbc] sm:$0x1] %v5133_v37  ;;  %v4447_v18 = vrot.slane %v4323_v47, 2  ;;  %v3945_v59 = vmul.f32 %v12262_v32, %v14180_v29  ;;  %v4532_v0 = vmax.f32 %v4500_v3, 0.0  ;;  %v4408_v1 = vrot.slane %v15218_v4, 2 }
 0x277   : > { %v4051_v11 = vrot.slane %v3943_v44, 1  ;;  %v4301_v53 = vmul.f32 %v12262_v32, %v14183_v49  ;;  %v4941_v27 = vsel %vm12577_vm5, %v4933_v42, %v4940_v33  ;;  %v5122_v34 = vsel %vm14455_vm13, %v4932_v40, %v5121_v10 }
 0x278   : > { %v4449_v58 = vsel %vm1919_vm9, %v4447_v18, %v4448_v54  ;;  %v3534_v56 = vmul.f32 %v12268_v51, %v14195_v52  ;;  %5123 = vst [vmem:[#allocation3 + $0xa8] sm:$0xf] %v5122_v34  ;;  %5124 = vst.msk [vmem:[#allocation3 + $0xac] sm:$0xf] %vm4569_vm11, %v4941_v27  ;;  %v10763_v31 = vpack.c.bf16 %v4532_v0, %v4532_v0  ;;  %v4054_v55 = vrot.slane %v3945_v59, 1 }
 0x279   : > { %v4517_v50 = vadd.f32 %v4449_v58, %v15184_v19  ;;  %v2916_v35 = vadd.f32 %v15087_v43, %v17585_v57  ;;  %v2917_v33 = vadd.f32 %v15090_v5, %v17586_v62  ;;  %v4410_v63 = vrot.slane %v4301_v53, 2  ;;  %v5128_v59 = vld [vmem:[#allocation3 + $0xb4] sm:$0xf]  ;;  %v12286_v62 = vpop.permute.xlu1 %12285 }
 0x27a   : > { %v3180_v2 = vsel %vm1919_vm9, %v3178_v8, %v3179_v45  ;;  %v3533_v54 = vmul.f32 %v12267_v13, %v14195_v52  ;;  %v4799_v17 = vshrl.u32 %v10763_v31, 16  ;;  %v3182_v43 = vsel %vm1919_vm9, %v3179_v45, %v3181_v41 }
 0x27b   : > { %v4549_v19 = vmax.f32 %v4517_v50, 0.0  ;;  %v4053_v5 = vsel %vm1562_vm8, %v4051_v11, %v4052_v6  ;;  %v4802_v61 = vshll.u32 %v10763_v31, 16  ;;  %v3272_v20 = vadd.f32 %v3180_v2, %v2916_v35  ;;  %v12281_v31 = vpop.permute.xlu0 %12280 }
 0x27c   : > { %v3273_v25 = vadd.f32 %v3182_v43, %v2917_v33  ;;  %v12273_v24 = vunpack.i.h.bf16 %v12271_v21  ;;  %v4801_v15 = vrot.slane %v4799_v17, 7  ;;  %v12272_v8 = vunpack.i.l.bf16 %v12271_v21 }
 0x27d   : > { %v10780_v4 = vpack.c.bf16 %v4549_v19, %v4549_v19  ;;  %v12278_v16 = vunpack.i.h.bf16 %v12276_v39  ;;  %v3565_v46 = vadd.f32 %v3533_v54, %v3272_v20  ;;  %v12277_v23 = vunpack.i.l.bf16 %v12276_v39 }
 0x27e   : > { %v3566_v44 = vadd.f32 %v3534_v56, %v3273_v25  ;;  %v4299_v37 = vmul.f32 %v12273_v24, %v14183_v49  ;;  %v4806_v14 = vrot.slane %v4801_v15, 4  ;;  %v4411_v26 = vsel %vm1919_vm9, %v4408_v1, %v4410_v63 }
 0x27f   : > { %v4944_v41 = vshrl.u32 %v10780_v4, 16  ;;  %v4055_v45 = vsel %vm1562_vm8, %v4052_v6, %v4054_v55  ;;  %v4145_v47 = vadd.f32 %v4053_v5, %v3565_v46  ;;  %v4296_v3 = vmul.f32 %v12272_v8, %v14183_v49  ;;  %v12320_v51 = vld [vmem:[#allocation3 + $0xa8] sm:$0xff]   ;;  %v5076_v46 = vld [vmem:[#allocation3 + $0x5c] sm:$0x1] }
 0x280   : > { %v4146_v32 = vadd.f32 %v4055_v45, %v3566_v44  ;;  %v4407_v10 = vrot.slane %v4299_v37, 2  ;;  %v5070_v13 = vsel %vm14401_vm12, %v4806_v14, %v5069_v30  ;;  %v4947_v42 = vshll.u32 %v10780_v4, 16  ;;  %11236 = vmatprep.mubr.msk.bf16.mxu1 %vm5293_vm14, %v12320_v51 }
 0x281   : > { %v4946_v40 = vrot.slane %v4944_v41, 7  ;;  %v15263_v18 = vmul.f32 %v12278_v16, %v17501_v7  ;;  %5071 = vst [vmem:[#allocation3 + $0x50] sm:$0x1] %v5070_v13  ;;  %v4402_v6 = vrot.slane %v4296_v3, 2  ;;  %v2741_v53 = vmul.f32 %v12277_v23, %v17501_v7 }
 0x282   : > { %v4502_v0 = vadd.f32 %v4411_v26, %v4146_v32  ;;  %v4409_v11 = vsel %vm1919_vm9, %v4407_v10, %v4408_v1  ;;  %v15269_v56 = vmul.f32 %v12278_v16, %v17502_v36  ;;  %v4804_v2 = vor.u32 %v4802_v61, %v4801_v15  ;;  %v12291_v26 = vpop.permute.xlu0 %12290 }
 0x283   : > { %v4949_v27 = vor.u32 %v4947_v42, %v4946_v40  ;;  %v4950_v34 = vrot.slane %v4946_v40, 4  ;;  %v4501_v58 = vadd.f32 %v4409_v11, %v4145_v47  ;;  %v4404_v57 = vsel %vm1919_vm9, %v4402_v6, %v4403_v48  ;;  %v5065_v40 = vld [vmem:[#allocation3 + $0x48] sm:$0xf] }
 0x284   : > { %v4534_v50 = vmax.f32 %v4502_v0, 0.0  ;;  %v2868_v35 = vrot.slane %v15263_v18, 1  ;;  %v2867_v1 = vrot.slane %v2741_v53, 1  ;;  %v4499_v55 = vadd.f32 %v4404_v57, %v15215_v28  ;;  %v17587_v57 = vld [vmem:[#allocation24_spill] sm:$0xff] }
 0x285   : > { %v4958_v33 = vsel %vm12577_vm5, %v4950_v34, %v15220_v60  ;;  %v5129_v21 = vsel %vm14455_vm13, %v4949_v27, %v5128_v59  ;;  %v4533_v63 = vmax.f32 %v4501_v58, 0.0  ;;  %v12283_v48 = vunpack.i.h.bf16 %v12281_v31  ;;  %v12296_v34 = vpop.permute.xlu1 %12295 }
 0x286   : > { %5130 = vst [vmem:[#allocation3 + $0xb4] sm:$0xf] %v5129_v21  ;;  %5131 = vst.msk [vmem:[#allocation3 + $0xb8] sm:$0xf] %vm4569_vm11, %v4958_v33  ;;  %v10765_v12 = vpack.c.bf16 %v4534_v50, %v4534_v50  ;;  %v12282_v54 = vunpack.i.l.bf16 %v12281_v31  ;;  %v4531_v39 = vmax.f32 %v4499_v55, 0.0  ;;  %v3224_v19 = vrot.slane %v15269_v56, 2 }
 0x287   : > { %v10764_v17 = vpack.c.bf16 %v4533_v63, %v4533_v63  ;;  %v12288_v43 = vunpack.i.h.bf16 %v12286_v62  ;;  %v2869_v60 = vsel %vm1562_vm8, %v2867_v1, %v2868_v35  ;;  %v3097_v20 = vmul.f32 %v12283_v48, %v17502_v36 }
 0x288   : > { %v4816_v5 = vshrl.u32 %v10765_v12, 16  ;;  %v2743_v28 = vmul.f32 %v12282_v54, %v17501_v7  ;;  %v10762_v25 = vpack.c.bf16 %v4531_v39, %v4531_v39  ;;  %v3099_v24 = vmul.f32 %v12282_v54, %v17502_v36  ;;  %v5072_v7 = vld [vmem:[#allocation3 + $0x54] sm:$0xf] }
 0x289   : > { %v4808_v61 = vshrl.u32 %v10764_v17, 16  ;;  %v12287_v15 = vunpack.i.l.bf16 %v12286_v62  ;;  %v4819_v8 = vshll.u32 %v10765_v12, 16  ;;  %v4811_v16 = vshll.u32 %v10764_v17, 16  ;;  %v17588_v17 = vld [vmem:[#allocation67_spill] sm:$0xff] }
 0x28a   : > { %v4818_v4 = vrot.slane %v4816_v5, 7  ;;  %v3223_v30 = vrot.slane %v3097_v20, 2  ;;  %v4791_v44 = vshrl.u32 %v10762_v25, 16  ;;  %v2870_v23 = vrot.slane %v2743_v28, 1  ;;  %v5535_v5 = vld [vmem:[#allocation3] sm:$0xf] }
 0x28b   : > { %v4810_v37 = vrot.slane %v4808_v61, 7  ;;  %v15288_v14 = vmul.f32 %v12288_v43, %v14180_v29  ;;  %v4794_v47 = vshll.u32 %v10762_v25, 16  ;;  %v3226_v32 = vrot.slane %v3099_v24, 2 }
 0x28c   : > { %v4821_v41 = vor.u32 %v4819_v8, %v4818_v4  ;;  %v4823_v45 = vrot.slane %v4818_v4, 4  ;;  %v4793_v10 = vrot.slane %v4791_v44, 7  ;;  %v4327_v51 = vmul.f32 %v12288_v43, %v14183_v49  ;;  %v5538_v4 = vld [vmem:[#allocation3 + $0xc] sm:$0xf] }
 0x28d   : > { %v4813_v36 = vor.u32 %v4811_v16, %v4810_v37  ;;  %v4814_v3 = vrot.slane %v4810_v37, 4  ;;  %v3970_v42 = vmul.f32 %v12287_v15, %v14180_v29  ;;  %v12293_v18 = vunpack.i.h.bf16 %v12291_v26  ;;  %v12322_v0 = vld [vmem:[#allocation3 + $0xb4] sm:$0xff]   ;;  %v15321_v15 = vld [vmem:[#allocation3 + $0x4] sm:$0xf] }
 0x28e   : > { %v5077_v13 = vsel %vm14401_vm12, %v4823_v45, %v5076_v46  ;;  %v12292_v59 = vunpack.i.l.bf16 %v12291_v26  ;;  %v4796_v11 = vor.u32 %v4794_v47, %v4793_v10  ;;  %v4797_v6 = vrot.slane %v4793_v10, 4  ;;  %11237 = vmatmul.mubr.msk.bf16.gmra.mxu1 %vm5293_vm14, %v12322_v0  ;;  %v15329_v26 = vld [vmem:[#allocation3 + $0x10] sm:$0xf] }
 0x28f   : > { %5078 = vst [vmem:[#allocation3 + $0x5c] sm:$0x1] %v5077_v13  ;;  %v4822_v53 = vsel %vm12577_vm5, %v4814_v3, %v4821_v41  ;;  %v5073_v27 = vsel %vm14455_vm13, %v4813_v36, %v5072_v7  ;;  %v2871_v58 = vsel %vm1562_vm8, %v2868_v35, %v2870_v23  ;;  %v4097_v31 = vrot.slane %v15288_v14, 1 }
 0x290   : > { %5074 = vst [vmem:[#allocation3 + $0x54] sm:$0xf] %v5073_v27  ;;  %5075 = vst.msk [vmem:[#allocation3 + $0x58] sm:$0xf] %vm4569_vm11, %v4822_v53  ;;  %v4096_v50 = vrot.slane %v3970_v42, 1  ;;  %v2934_v1 = vadd.f32 %v2869_v60, %v17587_v57  ;;  %v4805_v62 = vsel %vm12577_vm5, %v4797_v6, %v4804_v2  ;;  %v5066_v33 = vsel %vm14455_vm13, %v4796_v11, %v5065_v40 }
 0x291   : > { %v3225_v21 = vsel %vm1919_vm9, %v3223_v30, %v3224_v19  ;;  %v3972_v55 = vmul.f32 %v12292_v59, %v14180_v29  ;;  %5067 = vst [vmem:[#allocation3 + $0x48] sm:$0xf] %v5066_v33  ;;  %5068 = vst.msk [vmem:[#allocation3 + $0x4c] sm:$0xf] %vm4569_vm11, %v4805_v62  ;;  %v3551_v35 = vmul.f32 %v12293_v18, %v14195_v52  ;;  %v12298_v48 = vunpack.i.h.bf16 %v12296_v34  ;;  %v15323_v30 = vld [vmem:[#allocation3 + $0x8] sm:$0x1] }
 0x292   : > { %v3290_v63 = vadd.f32 %v3225_v21, %v2934_v1  ;;  %v4328_v12 = vmul.f32 %v12292_v59, %v14183_v49  ;;  %v4453_v54 = vrot.slane %v4327_v51, 2  ;;  %v12297_v39 = vunpack.i.l.bf16 %v12296_v34  ;;  %v15334_v18 = vld [vmem:[#allocation3 + $0x14] sm:$0x1]  ;;  %v5541_v21 = vld [vmem:[#allocation3 + $0x18] sm:$0xf] }
 0x293   : > { %v4099_v2 = vrot.slane %v3972_v55, 1  ;;  %v2935_v43 = vadd.f32 %v2871_v58, %v17588_v17  ;;  %v4098_v60 = vsel %vm1562_vm8, %v4096_v50, %v4097_v31  ;;  %v4326_v29 = vmul.f32 %v12298_v48, %v14183_v49  ;;  %v15348_v48 = vld [vmem:[#allocation3 + $0x1c] sm:$0xf] }
 0x294   : > { %v3583_v20 = vadd.f32 %v3551_v35, %v3290_v63  ;;  %v3227_v28 = vsel %vm1919_vm9, %v3224_v19, %v3226_v32  ;;  %v4455_v25 = vrot.slane %v4328_v12, 2  ;;  %v3552_v24 = vmul.f32 %v12297_v39, %v14195_v52 }
 0x295   : > { %v3291_v61 = vadd.f32 %v3227_v28, %v2935_v43  ;;  %v4452_v16 = vrot.slane %v4326_v29, 2  ;;  %v5587_v46 = vshrl.u32 %v5535_v5, 16  ;;  %v4100_v49 = vsel %vm1562_vm8, %v4097_v31, %v4099_v2  ;;  %v5135_v29 = vld [vmem:[#allocation3 + $0xc0] sm:$0xf] }
 0x296   : > { %v4163_v8 = vadd.f32 %v4098_v60, %v3583_v20  ;;  %v5590_v56 = vshll.u32 %v5535_v5, 16  ;;  %v5596_v52 = vshll.u32 %v15321_v15, 16  ;;  %v5600_v14 = vshrl.u32 %v15321_v15, 16 }
 0x297   : > { %v3584_v44 = vadd.f32 %v3552_v24, %v3291_v61  ;;  %v4454_v19 = vsel %vm1919_vm9, %v4452_v16, %v4453_v54  ;;  %v12326_v37 = vld [vmem:[#allocation3 + $0x54] sm:$0xff]   ;;  %v5589_v23 = vrot.slane %v5587_v46, 4  ;;  %v4456_v41 = vsel %vm1919_vm9, %v4453_v54, %v4455_v25  ;;  %v15353_v46 = vld [vmem:[#allocation3 + $0x20] sm:$0x1] }
 0x298   : > { %v4519_v7 = vadd.f32 %v4454_v19, %v4163_v8  ;;  %v12324_v47 = vld [vmem:[#allocation3 + $0x48] sm:$0xff]   ;;  %v5592_v32 = vrot.slane %v5590_v56, 5  ;;  %v5598_v10 = vrot.slane %v5596_v52, 5  ;;  %v5602_v36 = vrot.slane %v5600_v14, 4 }
 0x299   : > { %v4164_v45 = vadd.f32 %v4100_v49, %v3584_v44  ;;  %v5606_v3 = vshll.u32 %v15323_v30, 16  ;;  %v5611_v51 = vshrl.u32 %v5538_v4, 16  ;;  %11220 = vmatprep.mubr.msk.bf16.mxu0 %vm5293_vm14, %v12324_v47  ;;  %v5614_v59 = vshll.u32 %v5538_v4, 16  ;;  %v5139_v49 = vld [vmem:[#allocation3 + $0xc8] sm:$0x1] }
 0x29a   : > { %v4551_v40 = vmax.f32 %v4519_v7, 0.0  ;;  %v5593_v42 = vor.u32 %v5592_v32, %v5589_v23  ;;  %11221 = vmatmul.mubr.msk.bf16.gmra.mxu0 %vm5293_vm14, %v12326_v37  ;;  %v5603_v0 = vor.u32 %v5602_v36, %v5598_v10  ;;  %v5620_v53 = vshll.u32 %v15329_v26, 16  ;;  %v6292_v36 = vld [vmem:[#allocation3] sm:$0xe] }
 0x29b   : > { %v4520_v13 = vadd.f32 %v4456_v41, %v4164_v45  ;;  %v5608_v11 = vrot.slane %v5606_v3, 5  ;;  %v5613_v6 = vrot.slane %v5611_v51, 4  ;;  %v5616_v31 = vrot.slane %v5614_v59, 5  ;;  %v6293_v3 = vld [vmem:[#allocation3 + $0xc] sm:$0xe] }
 0x29c   : > { %v10782_v34 = vpack.c.bf16 %v4551_v40, %v4551_v40  ;;  %v5594_v58 = vrot.slane %v5593_v42, 4  ;;  %v5604_v57 = vrot.slane %v5603_v0, 4  ;;  %v5622_v1 = vrot.slane %v5620_v53, 5  ;;  %v12329_v40 = vld [vmem:[%s17163_s3 + $0x70] sm:$0xff]  }
 0x29d   : > { %v4552_v27 = vmax.f32 %v4520_v13, 0.0  ;;  %v5624_v62 = vshrl.u32 %v15329_v26, 16  ;;  %v5630_v33 = vshll.u32 %v15334_v18, 16  ;;  %v5617_v2 = vor.u32 %v5616_v31, %v5613_v6  ;;  %v12383_v31 = vld [vmem:[%s17163_s3 + $0x78] sm:$0xff]  }
 0x29e   : > { %v4961_v35 = vshrl.u32 %v10782_v34, 16  ;;  %v4964_v63 = vshll.u32 %v10782_v34, 16  ;;  %v5599_v12 = vsel %vm15340_vm1, %v5594_v58, %v5598_v10  ;;  %v5609_v54 = vsel %vm15340_vm1, %v5604_v57, %v5608_v11  ;;  %v6294_v11 = vld [vmem:[#allocation3 + $0x18] sm:$0xe] }
 0x29f   : > { %v10783_v55 = vpack.c.bf16 %v4552_v27, %v4552_v27  ;;  %v5626_v39 = vrot.slane %v5624_v62, 4  ;;  %v5632_v17 = vrot.slane %v5630_v33, 5  ;;  %v10354_v20 = vcombine.low %v5599_v12, %v5609_v54  ;;  %v5544_v27 = vld [vmem:[#allocation3 + $0x24] sm:$0xf] }
 0x2a0   : > { %v4963_v43 = vrot.slane %v4961_v35, 7  ;;  %v5618_v28 = vrot.slane %v5617_v2, 4  ;;  %v5635_v61 = vshrl.u32 %v5541_v21, 16  ;;  %v5638_v24 = vshll.u32 %v5541_v21, 16 }
 0x2a1   : > { %v4969_v5 = vshrl.u32 %v10783_v55, 16  ;;  %v4972_v60 = vshll.u32 %v10783_v55, 16  ;;  %v5627_v25 = vor.u32 %v5626_v39, %v5622_v1  ;;  %11248 = vmatprep.mubr.msk.bf16.mxu1 %vm5293_vm14, %v10354_v20  ;;  %v5644_v44 = vshll.u32 %v15348_v48, 16  ;;  %v12331_v55 = vld [vmem:[%s17163_s3 + $0x68] sm:$0xff]   ;;  %v15402_v39 = vld [vmem:[#allocation3 + $0x2c] sm:$0x1] }
 0x2a2   : > { %v4966_v4 = vor.u32 %v4964_v63, %v4963_v43  ;;  %v4967_v8 = vrot.slane %v4963_v43, 4  ;;  %v5623_v56 = vsel %vm15340_vm1, %v5618_v28, %v5622_v1  ;;  %v5637_v37 = vrot.slane %v5635_v61, 4  ;;  %v5547_v43 = vld [vmem:[#allocation3 + $0x30] sm:$0xf]  ;;  %v15408_v28 = vld [vmem:[#allocation3 + $0x34] sm:$0xf] }
 0x2a3   : > { %v4971_v16 = vrot.slane %v4969_v5, 7  ;;  %v5628_v19 = vrot.slane %v5627_v25, 4  ;;  %v5640_v23 = vrot.slane %v5638_v24, 5  ;;  %v5646_v45 = vrot.slane %v5644_v44, 5 }
 0x2a4   : > { %v5136_v41 = vsel %vm14455_vm13, %v4966_v4, %v5135_v29  ;;  %v5648_v32 = vshrl.u32 %v15348_v48, 16  ;;  %v5654_v10 = vshll.u32 %v15353_v46, 16  ;;  %v10390_v9 = vrot.slane %v6292_v36, 9  ;;  %v12332_v36 = vld [vmem:[%s17163_s3 + $0x88] sm:$0xff]  }
 0x2a5   : > { %v4974_v52 = vor.u32 %v4972_v60, %v4971_v16  ;;  %v4976_v14 = vrot.slane %v4971_v16, 4  ;;  %5137 = vst [vmem:[#allocation3 + $0xc0] sm:$0xf] %v5136_v41  ;;  %v5633_v7 = vsel %vm15340_vm1, %v5628_v19, %v5632_v17  ;;  %v5641_v47 = vor.u32 %v5640_v23, %v5637_v37  ;;  %v15424_v37 = vld [vmem:[#allocation3 + $0x38] sm:$0x1]  ;;  %v12384_v41 = vld [vmem:[%s17163_s3 + $0x98] sm:$0xff]  }
 0x2a6   : > { %v10355_v38 = vcombine.low %v5623_v56, %v5633_v7  ;;  %v5650_v59 = vrot.slane %v5648_v32, 4  ;;  %v5656_v0 = vrot.slane %v5654_v10, 5  ;;  %v6361_v22 = vrot.slane %v15321_v15, 5  ;;  %v12333_v56 = vld [vmem:[%s17163_s3 + $0x60] sm:$0xff]   ;;  %v6295_v10 = vld [vmem:[#allocation3 + $0x24] sm:$0xe] }
 0x2a7   : > { %v4975_v51 = vsel %vm12577_vm5, %v4967_v8, %v4974_v52  ;;  %v5140_v13 = vsel %vm14401_vm12, %v4976_v14, %v5139_v49  ;;  %v5642_v42 = vrot.slane %v5641_v47, 4  ;;  %v6364_v6 = vrot.slane %v15323_v30, 5  ;;  %v12330_v8 = vld [vmem:[%s17163_s3 + $0x90] sm:$0xff]  }
 0x2a8   : > { %5138 = vst.msk [vmem:[#allocation3 + $0xc4] sm:$0xf] %vm4569_vm11, %v4975_v51  ;;  %5141 = vst [vmem:[#allocation3 + $0xc8] sm:$0x1] %v5140_v13  ;;  %11249 = vmatmul.mubr.msk.bf16.vlgmr.msra.gmra.mxu1 %vm5293_vm14, %v10355_v38  ;;  %v10391_v53 = vrot.slane %v6293_v3, 9  ;;  %v5651_v58 = vor.u32 %v5650_v59, %v5646_v45  ;;  %v6368_v15 = vrot.slane %v15329_v26, 5  ;;  %v6362_v1 = vsel %vm15381_vm4, %v10390_v9, %v6361_v22 }
 0x2a9   : > { %v5647_v34 = vsel %vm15340_vm1, %v5642_v42, %v5646_v45  ;;  %11321 = vmatpush3.bf16.msra.mxu1 %v12383_v31  ;;  %v6371_v30 = vrot.slane %v15334_v18, 5  ;;  %v6363_v62 = vrot.slane %v6361_v22, 4  ;;  %v10392_v33 = vrot.slane %v6294_v11, 9  ;;  %v15396_v18 = vld [vmem:[#allocation3 + $0x28] sm:$0xf]  ;;  %v15439_v9 = vld [vmem:[%s17163_s3 + $0xb8] sm:$0xff]  }
 0x2aa   : > { %v6375_v21 = vrot.slane %v15348_v48, 5  ;;  %11322 = vmatprep.subr.bf16.mxu1 %v12329_v40  ;;  %v5652_v35 = vrot.slane %v5651_v58, 4  ;;  %v6369_v63 = vsel %vm15381_vm4, %v10391_v53, %v6368_v15  ;;  %v6370_v12 = vrot.slane %v6368_v15, 4  ;;  %v6296_v11 = vld [vmem:[#allocation3 + $0x30] sm:$0xe] }
 0x2ab   : > { %v6378_v26 = vrot.slane %v15353_v46, 5  ;;  %v6365_v54 = vsel %vm15381_vm4, %v6363_v62, %v6364_v6  ;;  %v5659_v17 = vshrl.u32 %v5544_v27, 16  ;;  %v5662_v29 = vshll.u32 %v5544_v27, 16 }
 0x2ac   : > { %v6376_v48 = vsel %vm15381_vm4, %v10392_v33, %v6375_v21  ;;  %v6377_v2 = vrot.slane %v6375_v21, 4  ;;  %v5657_v5 = vsel %vm15340_vm1, %v5652_v35, %v5656_v0  ;;  %v10414_v60 = vcombine.low %v6362_v1, %v6365_v54 }
 0x2ad   : > { %v6372_v20 = vsel %vm15381_vm4, %v6370_v12, %v6371_v30  ;;  %11323 = vmatpush3.bf16.msra.mxu1 %v12329_v40  ;;  %v10356_v25 = vcombine.low %v5647_v34, %v5657_v5  ;;  %v5661_v4 = vrot.slane %v5659_v17, 4  ;;  %v5664_v46 = vrot.slane %v5662_v29, 5  ;;  %v5550_v30 = vld [vmem:[#allocation3 + $0x3c] sm:$0xf] }
 0x2ae   : > { %v10415_v61 = vcombine.low %v6369_v63, %v6372_v20  ;;  %v6379_v24 = vsel %vm15381_vm4, %v6377_v2, %v6378_v26  ;;  %11324 = vmatprep.subr.bf16.mxu1 %v12331_v55  ;;  %11288 = vmatprep.mubr.msk.bf16.mxu0 %vm5293_vm14, %v10414_v60  ;;  %v5668_v44 = vshll.u32 %v15396_v18, 16  ;;  %v5672_v49 = vshrl.u32 %v15396_v18, 16 }
 0x2af   : > { %v10416_v16 = vcombine.low %v6376_v48, %v6379_v24  ;;  %11252 = vmatprep.mubr.msk.bf16.mxu1 %vm5293_vm14, %v10356_v25  ;;  %v5678_v19 = vshll.u32 %v15402_v39, 16  ;;  %v5683_v23 = vshrl.u32 %v5547_v43, 16  ;;  %v5686_v52 = vshll.u32 %v5547_v43, 16  ;;  %v5553_v43 = vld [vmem:[#allocation3 + $0x48] sm:$0xf] }
 0x2b0   : > { %11289 = vmatmul.mubr.msk.bf16.vlgmr.msra.gmra.mxu0 %vm5293_vm14, %v10415_v61  ;;  %v5692_v14 = vshll.u32 %v15408_v28, 16  ;;  %v5665_v45 = vor.u32 %v5664_v46, %v5661_v4  ;;  %v5670_v7 = vrot.slane %v5668_v44, 5  ;;  %v5674_v47 = vrot.slane %v5672_v49, 4  ;;  %v5554_v4 = vld [vmem:[#allocation3 + $0x4c] sm:$0xf] }
 0x2b1   : > { %11361 = vmatpush3.bf16.msra.mxu0 %v12384_v41  ;;  %11292 = vmatprep.mubr.msk.bf16.mxu0 %vm5293_vm14, %v10416_v16  ;;  %v5696_v32 = vshrl.u32 %v15408_v28, 16  ;;  %v5680_v3 = vrot.slane %v5678_v19, 5  ;;  %v5685_v51 = vrot.slane %v5683_v23, 4  ;;  %v5688_v13 = vrot.slane %v5686_v52, 5  ;;  %v5555_v49 = vld [vmem:[#allocation3 + $0x50] sm:$0x1] }
 0x2b2   : > { %v5694_v38 = vrot.slane %v5692_v14, 5  ;;  %11362 = vmatprep.subr.bf16.mxu0 %v12330_v8  ;;  %11325 = vmatpush3.bf16.msra.mxu1 %v12331_v55  ;;  %v5666_v40 = vrot.slane %v5665_v45, 4  ;;  %v5675_v42 = vor.u32 %v5674_v47, %v5670_v7  ;;  %v5702_v0 = vshll.u32 %v15424_v37, 16  ;;  %v12334_v55 = vld [vmem:[%s17163_s3 + $0x80] sm:$0xff]   ;;  %v6297_v14 = vld [vmem:[#allocation3 + $0x3c] sm:$0xe] }
 0x2b3   : > { %v5698_v59 = vrot.slane %v5696_v32, 4  ;;  %11326 = vmatprep.subr.bf16.mxu1 %v12333_v56  ;;  %v5689_v22 = vor.u32 %v5688_v13, %v5685_v51  ;;  %v10393_v6 = vrot.slane %v6295_v10, 9  ;;  %v6382_v53 = vrot.slane %v15396_v18, 5  ;;  %v5551_v18 = vld [vmem:[#allocation3 + $0x40] sm:$0xf] }
 0x2b4   : > { %v6385_v27 = vrot.slane %v15402_v39, 5  ;;  %v5671_v34 = vsel %vm15340_vm1, %v5666_v40, %v5670_v7  ;;  %v5676_v58 = vrot.slane %v5675_v42, 4  ;;  %v5704_v15 = vrot.slane %v5702_v0, 5  ;;  %v5552_v39 = vld [vmem:[#allocation3 + $0x44] sm:$0x1] }
 0x2b5   : > { %v5699_v31 = vor.u32 %v5698_v59, %v5694_v38  ;;  %11363 = vmatpush3.bf16.msra.mxu0 %v12330_v8  ;;  %v5690_v1 = vrot.slane %v5689_v22, 4  ;;  %v6383_v62 = vsel %vm15381_vm4, %v10393_v6, %v6382_v53  ;;  %v6384_v33 = vrot.slane %v6382_v53, 4  ;;  %v15467_v8 = vld [vmem:[%s17163_s3 + $0xd8] sm:$0xff]   ;;  %v6298_v42 = vld [vmem:[#allocation3 + $0x48] sm:$0xe] }
 0x2b6   : > { %v10394_v21 = vrot.slane %v6296_v11, 9  ;;  %11364 = vmatprep.subr.bf16.mxu0 %v12332_v36  ;;  %11327 = vmatpush3.bf16.msra.mxu1 %v12333_v56  ;;  %v5681_v35 = vsel %vm15340_vm1, %v5676_v58, %v5680_v3  ;;  %v6389_v12 = vrot.slane %v15408_v28, 5  ;;  %v6392_v26 = vrot.slane %v15424_v37, 5 }
 0x2b7   : > { %v5700_v63 = vrot.slane %v5699_v31, 4  ;;  %11400 = vmatprep.subr.bf16.mxu1 %v15439_v9  ;;  %v10357_v54 = vcombine.low %v5671_v34, %v5681_v35  ;;  %v5695_v48 = vsel %vm15340_vm1, %v5690_v1, %v5694_v38  ;;  %v6386_v2 = vsel %vm15381_vm4, %v6384_v33, %v6385_v27  ;;  %v5556_v1 = vld [vmem:[#allocation3 + $0x54] sm:$0xf]  ;;  %v5557_v35 = vld [vmem:[#allocation3 + $0x58] sm:$0xf] }
 0x2b8   : > { %v5707_v17 = vshrl.u32 %v5550_v30, 16  ;;  %v10417_v60 = vcombine.low %v6383_v62, %v6386_v2  ;;  %v6390_v20 = vsel %vm15381_vm4, %v10394_v21, %v6389_v12  ;;  %v6391_v29 = vrot.slane %v6389_v12, 4 }
 0x2b9   : > { %v5705_v5 = vsel %vm15340_vm1, %v5700_v63, %v5704_v15  ;;  %11365 = vmatpush3.bf16.msra.mxu0 %v12332_v36  ;;  %11253 = vmatmul.mubr.msk.bf16.gmra.mxu1 %vm5293_vm14, %v10357_v54  ;;  %v5710_v61 = vshll.u32 %v5550_v30, 16  ;;  %v5716_v24 = vshll.u32 %v5551_v18, 16  ;;  %v5720_v46 = vshrl.u32 %v5551_v18, 16  ;;  %v15483_v63 = vld [vmem:[#allocation3 + $0x5c] sm:$0x1] }
 0x2ba   : > { %v10358_v28 = vcombine.low %v5695_v48, %v5705_v5  ;;  %v5709_v25 = vrot.slane %v5707_v17, 4  ;;  %11366 = vmatprep.subr.bf16.mxu0 %v12334_v55  ;;  %11293 = vmatmul.mubr.msk.bf16.gmra.mxu0 %vm5293_vm14, %v10417_v60  ;;  %v6393_v16 = vsel %vm15381_vm4, %v6391_v29, %v6392_v26  ;;  %v5726_v44 = vshll.u32 %v5552_v39, 16 }
 0x2bb   : > { %v5731_v56 = vshrl.u32 %v5553_v43, 16  ;;  %v10418_v19 = vcombine.low %v6390_v20, %v6393_v16  ;;  %v5712_v37 = vrot.slane %v5710_v61, 5  ;;  %v5718_v23 = vrot.slane %v5716_v24, 5  ;;  %v5561_v16 = vld [vmem:[#allocation3 + $0x68] sm:$0x1] }
 0x2bc   : > { %11256 = vmatprep.mubr.msk.bf16.mxu1 %vm5293_vm14, %v10358_v28  ;;  %v5734_v52 = vshll.u32 %v5553_v43, 16  ;;  %v5722_v41 = vrot.slane %v5720_v46, 4  ;;  %v5728_v45 = vrot.slane %v5726_v44, 5  ;;  %v5740_v47 = vshll.u32 %v5554_v4, 16  ;;  %v5559_v43 = vld [vmem:[#allocation3 + $0x60] sm:$0xf] }
 0x2bd   : > { %v5733_v7 = vrot.slane %v5731_v56, 4  ;;  %11367 = vmatpush3.bf16.msra.mxu0 %v12334_v55  ;;  %11296 = vmatprep.mubr.msk.bf16.mxu0 %vm5293_vm14, %v10418_v19  ;;  %v5713_v32 = vor.u32 %v5712_v37, %v5709_v25  ;;  %v5744_v36 = vshrl.u32 %v5554_v4, 16  ;;  %v5750_v3 = vshll.u32 %v5555_v49, 16  ;;  %v5560_v28 = vld [vmem:[#allocation3 + $0x64] sm:$0xf] }
 0x2be   : > { %v5736_v10 = vrot.slane %v5734_v52, 5  ;;  %11440 = vmatprep.subr.bf16.mxu0 %v15467_v8  ;;  %v5723_v51 = vor.u32 %v5722_v41, %v5718_v23  ;;  %v5742_v13 = vrot.slane %v5740_v47, 5  ;;  %v10395_v38 = vrot.slane %v6297_v14, 9  ;;  %v6299_v46 = vld [vmem:[#allocation3 + $0x54] sm:$0xe] }
 0x2bf   : > { %v6396_v40 = vrot.slane %v5551_v18, 5  ;;  %v5714_v59 = vrot.slane %v5713_v32, 4  ;;  %v5746_v11 = vrot.slane %v5744_v36, 4  ;;  %v5752_v22 = vrot.slane %v5750_v3, 5  ;;  %v6300_v32 = vld [vmem:[#allocation3 + $0x60] sm:$0xe] }
 0x2c0   : > { %v5737_v0 = vor.u32 %v5736_v10, %v5733_v7  ;;  %v5724_v6 = vrot.slane %v5723_v51, 4  ;;  %v6399_v34 = vrot.slane %v5552_v39, 5  ;;  %v10396_v30 = vrot.slane %v6298_v42, 9 }
 0x2c1   : > { %v6397_v53 = vsel %vm15381_vm4, %v10395_v38, %v6396_v40  ;;  %v6398_v27 = vrot.slane %v6396_v40, 4  ;;  %v5719_v58 = vsel %vm15340_vm1, %v5714_v59, %v5718_v23  ;;  %v5747_v15 = vor.u32 %v5746_v11, %v5742_v13 }
 0x2c2   : > { %v5738_v31 = vrot.slane %v5737_v0, 4  ;;  %v5729_v62 = vsel %vm15340_vm1, %v5724_v6, %v5728_v45  ;;  %v6403_v21 = vrot.slane %v5554_v4, 5  ;;  %v6406_v55 = vrot.slane %v5555_v49, 5  ;;  %v5562_v6 = vld [vmem:[#allocation3 + $0x6c] sm:$0xf] }
 0x2c3   : > { %v6400_v33 = vsel %vm15381_vm4, %v6398_v27, %v6399_v34  ;;  %v10359_v12 = vcombine.low %v5719_v58, %v5729_v62  ;;  %v5748_v18 = vrot.slane %v5747_v15, 4  ;;  %v5755_v39 = vshrl.u32 %v5556_v1, 16  ;;  %v5563_v62 = vld [vmem:[#allocation3 + $0x70] sm:$0xf] }
 0x2c4   : > { %v5743_v26 = vsel %vm15340_vm1, %v5738_v31, %v5742_v13  ;;  %v10419_v54 = vcombine.low %v6397_v53, %v6400_v33  ;;  %v6404_v48 = vsel %vm15381_vm4, %v10396_v30, %v6403_v21  ;;  %v6405_v2 = vrot.slane %v6403_v21, 4 }
 0x2c5   : > { %v5758_v17 = vshll.u32 %v5556_v1, 16  ;;  %11257 = vmatmul.mubr.msk.bf16.gmra.mxu1 %vm5293_vm14, %v10359_v12  ;;  %v5753_v5 = vsel %vm15340_vm1, %v5748_v18, %v5752_v22  ;;  %v5764_v60 = vshll.u32 %v5557_v35, 16  ;;  %v5768_v20 = vshrl.u32 %v5557_v35, 16 }
 0x2c6   : > { %11297 = vmatmul.mubr.msk.bf16.gmra.mxu0 %vm5293_vm14, %v10419_v54  ;;  %v5774_v29 = vshll.u32 %v15483_v63, 16  ;;  %v10360_v25 = vcombine.low %v5743_v26, %v5753_v5  ;;  %v6407_v61 = vsel %vm15381_vm4, %v6405_v2, %v6406_v55  ;;  %v5757_v24 = vrot.slane %v5755_v39, 4  ;;  %v5564_v55 = vld [vmem:[#allocation3 + $0x74] sm:$0x1]  ;;  %v5566_v5 = vld [vmem:[#allocation3 + $0x7c] sm:$0xf] }
 0x2c7   : > { %v5760_v4 = vrot.slane %v5758_v17, 5  ;;  %v10420_v44 = vcombine.low %v6404_v48, %v6407_v61  ;;  %v5766_v49 = vrot.slane %v5764_v60, 5  ;;  %v5770_v56 = vrot.slane %v5768_v20, 4  ;;  %v5565_v48 = vld [vmem:[#allocation3 + $0x78] sm:$0xf] }
 0x2c8   : > { %v5776_v19 = vrot.slane %v5774_v29, 5  ;;  %11260 = vmatprep.mubr.msk.bf16.mxu1 %vm5293_vm14, %v10360_v25  ;;  %v5779_v23 = vshrl.u32 %v5559_v43, 16  ;;  %v5782_v52 = vshll.u32 %v5559_v43, 16  ;;  %v5788_v14 = vshll.u32 %v5560_v28, 16  ;;  %v5567_v25 = vld [vmem:[#allocation3 + $0x80] sm:$0x1] }
 0x2c9   : > { %v5761_v37 = vor.u32 %v5760_v4, %v5757_v24  ;;  %11300 = vmatprep.mubr.msk.bf16.mxu0 %vm5293_vm14, %v10420_v44  ;;  %v5771_v41 = vor.u32 %v5770_v56, %v5766_v49  ;;  %v5792_v45 = vshrl.u32 %v5560_v28, 16  ;;  %v5798_v7 = vshll.u32 %v5561_v16, 16 }
 0x2ca   : > { %v10397_v47 = vrot.slane %v6299_v46, 9  ;;  %v5781_v36 = vrot.slane %v5779_v23, 4  ;;  %v5784_v3 = vrot.slane %v5782_v52, 5  ;;  %v5790_v51 = vrot.slane %v5788_v14, 5  ;;  %v6301_v46 = vld [vmem:[#allocation3 + $0x6c] sm:$0xe] }
 0x2cb   : > { %v5762_v10 = vrot.slane %v5761_v37, 4  ;;  %v5772_v13 = vrot.slane %v5771_v41, 4  ;;  %v5794_v38 = vrot.slane %v5792_v45, 4  ;;  %v5800_v40 = vrot.slane %v5798_v7, 5  ;;  %v6302_v41 = vld [vmem:[#allocation3 + $0x78] sm:$0xe] }
 0x2cc   : > { %v6410_v42 = vrot.slane %v5557_v35, 5  ;;  %v5785_v0 = vor.u32 %v5784_v3, %v5781_v36  ;;  %v6413_v11 = vrot.slane %v15483_v63, 5  ;;  %v10398_v22 = vrot.slane %v6300_v32, 9 }
 0x2cd   : > { %v5767_v59 = vsel %vm15340_vm1, %v5762_v10, %v5766_v49  ;;  %v5777_v53 = vsel %vm15340_vm1, %v5772_v13, %v5776_v19  ;;  %v5795_v27 = vor.u32 %v5794_v38, %v5790_v51  ;;  %v6417_v30 = vrot.slane %v5560_v28, 5  ;;  %v5568_v13 = vld [vmem:[#allocation3 + $0x84] sm:$0xf] }
 0x2ce   : > { %v6411_v34 = vsel %vm15381_vm4, %v10397_v47, %v6410_v42  ;;  %v6412_v58 = vrot.slane %v6410_v42, 4  ;;  %v10361_v31 = vcombine.low %v5767_v59, %v5777_v53  ;;  %v5786_v15 = vrot.slane %v5785_v0, 4 }
 0x2cf   : > { %v6420_v1 = vrot.slane %v5561_v16, 5  ;;  %v5796_v33 = vrot.slane %v5795_v27, 4  ;;  %v5803_v35 = vshrl.u32 %v5562_v6, 16  ;;  %v5806_v63 = vshll.u32 %v5562_v6, 16 }
 0x2d0   : > { %v6414_v21 = vsel %vm15381_vm4, %v6412_v58, %v6413_v11  ;;  %11261 = vmatmul.mubr.msk.bf16.gmra.mxu1 %vm5293_vm14, %v10361_v31  ;;  %v5791_v12 = vsel %vm15340_vm1, %v5786_v15, %v5790_v51  ;;  %v6418_v18 = vsel %vm15381_vm4, %v10398_v22, %v6417_v30  ;;  %v6419_v54 = vrot.slane %v6417_v30, 4  ;;  %v5569_v58 = vld [vmem:[#allocation3 + $0x88] sm:$0xf] }
 0x2d1   : > { %v10421_v26 = vcombine.low %v6411_v34, %v6414_v21  ;;  %v5801_v2 = vsel %vm15340_vm1, %v5796_v33, %v5800_v40  ;;  %v5805_v39 = vrot.slane %v5803_v35, 4  ;;  %v5808_v17 = vrot.slane %v5806_v63, 5  ;;  %v5570_v33 = vld [vmem:[#allocation3 + $0x8c] sm:$0x1]  ;;  %v5571_v21 = vld [vmem:[#allocation3 + $0x90] sm:$0xf] }
 0x2d2   : > { %v5812_v43 = vshll.u32 %v5563_v62, 16  ;;  %v10362_v60 = vcombine.low %v5791_v12, %v5801_v2  ;;  %v6421_v20 = vsel %vm15381_vm4, %v6419_v54, %v6420_v1  ;;  %v5816_v29 = vshrl.u32 %v5563_v62, 16  ;;  %v5572_v2 = vld [vmem:[#allocation3 + $0x94] sm:$0xf] }
 0x2d3   : > { %11301 = vmatmul.mubr.msk.bf16.gmra.mxu0 %vm5293_vm14, %v10421_v26  ;;  %v5822_v28 = vshll.u32 %v5564_v55, 16  ;;  %v10422_v61 = vcombine.low %v6418_v18, %v6421_v20  ;;  %v5809_v24 = vor.u32 %v5808_v17, %v5805_v39  ;;  %v5827_v16 = vshrl.u32 %v5565_v48, 16 }
 0x2d4   : > { %v5814_v4 = vrot.slane %v5812_v43, 5  ;;  %11264 = vmatprep.mubr.msk.bf16.mxu1 %vm5293_vm14, %v10362_v60  ;;  %v5818_v44 = vrot.slane %v5816_v29, 4  ;;  %v5830_v56 = vshll.u32 %v5565_v48, 16  ;;  %v5836_v19 = vshll.u32 %v5566_v5, 16 }
 0x2d5   : > { %v5824_v49 = vrot.slane %v5822_v28, 5  ;;  %11304 = vmatprep.mubr.msk.bf16.mxu0 %vm5293_vm14, %v10422_v61  ;;  %v5810_v37 = vrot.slane %v5809_v24, 4  ;;  %v5829_v23 = vrot.slane %v5827_v16, 4  ;;  %v5840_v52 = vshrl.u32 %v5566_v5, 16  ;;  %v6303_v61 = vld [vmem:[#allocation3 + $0x84] sm:$0xe] }
 0x2d6   : > { %v5846_v14 = vshll.u32 %v5567_v25, 16  ;;  %v5819_v45 = vor.u32 %v5818_v44, %v5814_v4  ;;  %v5832_v7 = vrot.slane %v5830_v56, 5  ;;  %v5838_v47 = vrot.slane %v5836_v19, 5 }
 0x2d7   : > { %v10399_v32 = vrot.slane %v6301_v46, 9  ;;  %v5815_v10 = vsel %vm15340_vm1, %v5810_v37, %v5814_v4  ;;  %v5842_v36 = vrot.slane %v5840_v52, 4  ;;  %v6424_v51 = vrot.slane %v5563_v62, 5 }
 0x2d8   : > { %v5848_v3 = vrot.slane %v5846_v14, 5  ;;  %v5820_v38 = vrot.slane %v5819_v45, 4  ;;  %v5833_v40 = vor.u32 %v5832_v7, %v5829_v23  ;;  %v6427_v42 = vrot.slane %v5564_v55, 5 }
 0x2d9   : > { %v10400_v59 = vrot.slane %v6302_v41, 9  ;;  %v5843_v0 = vor.u32 %v5842_v36, %v5838_v47  ;;  %v6425_v11 = vsel %vm15381_vm4, %v10399_v32, %v6424_v51  ;;  %v6426_v22 = vrot.slane %v6424_v51, 4  ;;  %v6304_v41 = vld [vmem:[#allocation3 + $0x90] sm:$0xe] }
 0x2da   : > { %v6431_v6 = vrot.slane %v5566_v5, 5  ;;  %v5825_v53 = vsel %vm15340_vm1, %v5820_v38, %v5824_v49  ;;  %v5834_v27 = vrot.slane %v5833_v40, 4  ;;  %v6434_v34 = vrot.slane %v5567_v25, 5  ;;  %v5573_v5 = vld [vmem:[#allocation3 + $0x98] sm:$0x1] }
 0x2db   : > { %v5851_v31 = vshrl.u32 %v5568_v13, 16  ;;  %v10363_v15 = vcombine.low %v5815_v10, %v5825_v53  ;;  %v5844_v30 = vrot.slane %v5843_v0, 4  ;;  %v6428_v1 = vsel %vm15381_vm4, %v6426_v22, %v6427_v42  ;;  %v5575_v53 = vld [vmem:[#allocation3 + $0xa0] sm:$0xf] }
 0x2dc   : > { %v6432_v62 = vsel %vm15381_vm4, %v10400_v59, %v6431_v6  ;;  %v5839_v55 = vsel %vm15340_vm1, %v5834_v27, %v5838_v47  ;;  %v10423_v35 = vcombine.low %v6425_v11, %v6428_v1  ;;  %v6433_v63 = vrot.slane %v6431_v6, 4 }
 0x2dd   : > { %v5853_v12 = vrot.slane %v5851_v31, 4  ;;  %11265 = vmatmul.mubr.msk.bf16.gmra.mxu1 %vm5293_vm14, %v10363_v15  ;;  %v5849_v26 = vsel %vm15340_vm1, %v5844_v30, %v5848_v3  ;;  %v5854_v18 = vshll.u32 %v5568_v13, 16  ;;  %v5860_v54 = vshll.u32 %v5569_v58, 16  ;;  %v5574_v13 = vld [vmem:[#allocation3 + $0x9c] sm:$0xf] }
 0x2de   : > { %v5864_v48 = vshrl.u32 %v5569_v58, 16  ;;  %v10364_v39 = vcombine.low %v5839_v55, %v5849_v26  ;;  %11305 = vmatmul.mubr.msk.bf16.gmra.mxu0 %vm5293_vm14, %v10423_v35  ;;  %v6435_v17 = vsel %vm15381_vm4, %v6433_v63, %v6434_v34  ;;  %v5870_v43 = vshll.u32 %v5570_v33, 16  ;;  %v5576_v31 = vld [vmem:[#allocation3 + $0xa4] sm:$0x1]  ;;  %v5578_v26 = vld [vmem:[#allocation3 + $0xac] sm:$0xf] }
 0x2df   : > { %v5875_v60 = vshrl.u32 %v5571_v21, 16  ;;  %v10424_v20 = vcombine.low %v6432_v62, %v6435_v17  ;;  %v5856_v29 = vrot.slane %v5854_v18, 5  ;;  %v5862_v28 = vrot.slane %v5860_v54, 5 }
 0x2e0   : > { %v5866_v25 = vrot.slane %v5864_v48, 4  ;;  %11268 = vmatprep.mubr.msk.bf16.mxu1 %vm5293_vm14, %v10364_v39  ;;  %v5872_v24 = vrot.slane %v5870_v43, 5  ;;  %v5878_v16 = vshll.u32 %v5571_v21, 16  ;;  %v5884_v46 = vshll.u32 %v5572_v2, 16  ;;  %v5577_v21 = vld [vmem:[#allocation3 + $0xa8] sm:$0xf] }
 0x2e1   : > { %v5877_v4 = vrot.slane %v5875_v60, 4  ;;  %11308 = vmatprep.mubr.msk.bf16.mxu0 %vm5293_vm14, %v10424_v20  ;;  %v5857_v44 = vor.u32 %v5856_v29, %v5853_v12  ;;  %v5888_v56 = vshrl.u32 %v5572_v2, 16  ;;  %v5894_v19 = vshll.u32 %v5573_v5, 16  ;;  %v5579_v39 = vld [vmem:[#allocation3 + $0xb0] sm:$0x1] }
 0x2e2   : > { %v5867_v49 = vor.u32 %v5866_v25, %v5862_v28  ;;  %v5880_v37 = vrot.slane %v5878_v16, 5  ;;  %v5886_v23 = vrot.slane %v5884_v46, 5  ;;  %v10401_v52 = vrot.slane %v6303_v61, 9  ;;  %v6305_v20 = vld [vmem:[#allocation3 + $0x9c] sm:$0xe] }
 0x2e3   : > { %v6438_v14 = vrot.slane %v5569_v58, 5  ;;  %v5858_v45 = vrot.slane %v5857_v44, 4  ;;  %v5890_v47 = vrot.slane %v5888_v56, 4  ;;  %v5896_v32 = vrot.slane %v5894_v19, 5  ;;  %v6306_v44 = vld [vmem:[#allocation3 + $0xa8] sm:$0xe] }
 0x2e4   : > { %v5868_v7 = vrot.slane %v5867_v49, 4  ;;  %v5881_v10 = vor.u32 %v5880_v37, %v5877_v4  ;;  %v6441_v51 = vrot.slane %v5570_v33, 5  ;;  %v10402_v59 = vrot.slane %v6304_v41, 9 }
 0x2e5   : > { %v6439_v36 = vsel %vm15381_vm4, %v10401_v52, %v6438_v14  ;;  %v6440_v3 = vrot.slane %v6438_v14, 4  ;;  %v5863_v38 = vsel %vm15340_vm1, %v5858_v45, %v5862_v28  ;;  %v5891_v42 = vor.u32 %v5890_v47, %v5886_v23 }
 0x2e6   : > { %v5873_v40 = vsel %vm15340_vm1, %v5868_v7, %v5872_v24  ;;  %v5882_v11 = vrot.slane %v5881_v10, 4  ;;  %v6445_v6 = vrot.slane %v5572_v2, 5  ;;  %v6448_v58 = vrot.slane %v5573_v5, 5  ;;  %v5580_v10 = vld [vmem:[#allocation3 + $0xb4] sm:$0xf] }
 0x2e7   : > { %v10365_v0 = vcombine.low %v5863_v38, %v5873_v40  ;;  %v6442_v22 = vsel %vm15381_vm4, %v6440_v3, %v6441_v51  ;;  %v5892_v27 = vrot.slane %v5891_v42, 4  ;;  %v5899_v15 = vshrl.u32 %v5574_v13, 16 }
 0x2e8   : > { %v10425_v34 = vcombine.low %v6439_v36, %v6442_v22  ;;  %v5887_v30 = vsel %vm15340_vm1, %v5882_v11, %v5886_v23  ;;  %v6446_v1 = vsel %vm15381_vm4, %v10402_v59, %v6445_v6  ;;  %v6447_v62 = vrot.slane %v6445_v6, 4  ;;  %v5582_v6 = vld [vmem:[#allocation3 + $0xbc] sm:$0x1] }
 0x2e9   : > { %11269 = vmatmul.mubr.msk.bf16.gmra.mxu1 %vm5293_vm14, %v10365_v0  ;;  %v5902_v33 = vshll.u32 %v5574_v13, 16  ;;  %v5897_v55 = vsel %vm15340_vm1, %v5892_v27, %v5896_v32  ;;  %v5901_v35 = vrot.slane %v5899_v15, 4  ;;  %v5908_v63 = vshll.u32 %v5575_v53, 16  ;;  %v5581_v0 = vld [vmem:[#allocation3 + $0xb8] sm:$0xf] }
 0x2ea   : > { %11309 = vmatmul.mubr.msk.bf16.gmra.mxu0 %vm5293_vm14, %v10425_v34  ;;  %v5912_v12 = vshrl.u32 %v5575_v53, 16  ;;  %v10366_v18 = vcombine.low %v5887_v30, %v5897_v55  ;;  %v6449_v54 = vsel %vm15381_vm4, %v6447_v62, %v6448_v58  ;;  %v5918_v2 = vshll.u32 %v5576_v31, 16  ;;  %v6307_v30 = vld [vmem:[#allocation3 + $0xb4] sm:$0xe] }
 0x2eb   : > { %v5904_v48 = vrot.slane %v5902_v33, 5  ;;  %v10426_v17 = vcombine.low %v6446_v1, %v6449_v54  ;;  %v5910_v43 = vrot.slane %v5908_v63, 5  ;;  %v5923_v60 = vshrl.u32 %v5577_v21, 16 }
 0x2ec   : > { %v5914_v5 = vrot.slane %v5912_v12, 4  ;;  %11272 = vmatprep.mubr.msk.bf16.mxu1 %vm5293_vm14, %v10366_v18  ;;  %v5920_v28 = vrot.slane %v5918_v2, 5  ;;  %v5926_v25 = vshll.u32 %v5577_v21, 16  ;;  %v5932_v61 = vshll.u32 %v5578_v26, 16  ;;  %v15577_v18 = vld [vmem:[#allocation3 + $0x10] sm:$0xf] }
 0x2ed   : > { %v5905_v29 = vor.u32 %v5904_v48, %v5901_v35  ;;  %11312 = vmatprep.mubr.msk.bf16.mxu0 %vm5293_vm14, %v10426_v17  ;;  %v5925_v4 = vrot.slane %v5923_v60, 4  ;;  %v5936_v16 = vshrl.u32 %v5578_v26, 16  ;;  %v5942_v46 = vshll.u32 %v5579_v39, 16 }
 0x2ee   : > { %v5915_v24 = vor.u32 %v5914_v5, %v5910_v43  ;;  %v5928_v56 = vrot.slane %v5926_v25, 5  ;;  %v5934_v19 = vrot.slane %v5932_v61, 5  ;;  %v10403_v37 = vrot.slane %v6305_v20, 9 }
 0x2ef   : > { %v5906_v49 = vrot.slane %v5905_v29, 4  ;;  %v5938_v52 = vrot.slane %v5936_v16, 4  ;;  %v5944_v14 = vrot.slane %v5942_v46, 5  ;;  %v6452_v41 = vrot.slane %v5575_v53, 5  ;;  %v15581_v29 = vld [vmem:[#allocation3 + $0x14] sm:$0x1] }
 0x2f0   : > { %v5916_v23 = vrot.slane %v5915_v24, 4  ;;  %v5929_v7 = vor.u32 %v5928_v56, %v5925_v4  ;;  %v6455_v47 = vrot.slane %v5576_v31, 5  ;;  %v10404_v32 = vrot.slane %v6306_v44, 9  ;;  %v7182_v44 = vld [vmem:[#allocation3 + $0x18] sm:$0xf] }
 0x2f1   : > { %v5911_v45 = vsel %vm15340_vm1, %v5906_v49, %v5910_v43  ;;  %v5939_v3 = vor.u32 %v5938_v52, %v5934_v19  ;;  %v6453_v51 = vsel %vm15381_vm4, %v10403_v37, %v6452_v41  ;;  %v6454_v13 = vrot.slane %v6452_v41, 4 }
 0x2f2   : > { %v5921_v36 = vsel %vm15340_vm1, %v5916_v23, %v5920_v28  ;;  %v5930_v40 = vrot.slane %v5929_v7, 4  ;;  %v6459_v42 = vrot.slane %v5578_v26, 5  ;;  %v6462_v59 = vrot.slane %v5579_v39, 5  ;;  %v7179_v26 = vld [vmem:[#allocation3 + $0xc] sm:$0xf] }
 0x2f3   : > { %v10367_v38 = vcombine.low %v5911_v45, %v5921_v36  ;;  %v5940_v11 = vrot.slane %v5939_v3, 4  ;;  %v6456_v22 = vsel %vm15381_vm4, %v6454_v13, %v6455_v47  ;;  %v5947_v53 = vshrl.u32 %v5580_v10, 16  ;;  %v15589_v23 = vld [vmem:[#allocation3 + $0x1c] sm:$0xf] }
 0x2f4   : > { %v5950_v27 = vshll.u32 %v5580_v10, 16  ;;  %v5935_v34 = vsel %vm15340_vm1, %v5930_v40, %v5934_v19  ;;  %v10427_v58 = vcombine.low %v6453_v51, %v6456_v22  ;;  %v6460_v31 = vsel %vm15381_vm4, %v10404_v32, %v6459_v42  ;;  %v15594_v32 = vld [vmem:[#allocation3 + $0x20] sm:$0x1]  ;;  %v7185_v40 = vld [vmem:[#allocation3 + $0x24] sm:$0xf] }
 0x2f5   : > { %11273 = vmatmul.mubr.msk.bf16.gmra.mxu1 %vm5293_vm14, %v10367_v38  ;;  %v6461_v15 = vrot.slane %v6459_v42, 4  ;;  %v5945_v1 = vsel %vm15340_vm1, %v5940_v11, %v5944_v14  ;;  %v5949_v62 = vrot.slane %v5947_v53, 4  ;;  %v5956_v21 = vshll.u32 %v5581_v0, 16  ;;  %v15600_v22 = vld [vmem:[#allocation3 + $0x28] sm:$0xf] }
 0x2f6   : > { %v5952_v33 = vrot.slane %v5950_v27, 5  ;;  %v10368_v55 = vcombine.low %v5935_v34, %v5945_v1  ;;  %11313 = vmatmul.mubr.msk.bf16.gmra.mxu0 %vm5293_vm14, %v10427_v58  ;;  %v5960_v63 = vshrl.u32 %v5581_v0, 16  ;;  %v5966_v12 = vshll.u32 %v5582_v6, 16 }
 0x2f7   : > { %v6463_v35 = vsel %vm15381_vm4, %v6461_v15, %v6462_v59  ;;  %v5958_v2 = vrot.slane %v5956_v21, 5  ;;  %v10405_v39 = vrot.slane %v6307_v30, 9  ;;  %v6466_v5 = vrot.slane %v5581_v0, 5  ;;  %v15607_v30 = vld [vmem:[#allocation3 + $0x2c] sm:$0x1] }
 0x2f8   : > { %v10428_v54 = vcombine.low %v6460_v31, %v6463_v35  ;;  %v5953_v48 = vor.u32 %v5952_v33, %v5949_v62  ;;  %11276 = vmatprep.mubr.msk.bf16.mxu1 %vm5293_vm14, %v10368_v55  ;;  %v5962_v17 = vrot.slane %v5960_v63, 4  ;;  %v5968_v43 = vrot.slane %v5966_v12, 5  ;;  %v7188_v63 = vld [vmem:[#allocation3 + $0x30] sm:$0xf] }
 0x2f9   : > { %v6469_v60 = vrot.slane %v5582_v6, 5  ;;  %v7228_v28 = vshrl.u32 %v7179_v26, 16  ;;  %v7231_v25 = vshll.u32 %v7179_v26, 16  ;;  %v7237_v61 = vshll.u32 %v15577_v18, 16  ;;  %v12335_v6 = vld [vmem:[#allocation3 + $0xc] sm:$0xff]  }
 0x2fa   : > { %11316 = vmatprep.mubr.msk.bf16.mxu0 %vm5293_vm14, %v10428_v54  ;;  %v5954_v20 = vrot.slane %v5953_v48, 4  ;;  %v5963_v24 = vor.u32 %v5962_v17, %v5958_v2  ;;  %v6467_v4 = vsel %vm15381_vm4, %v10405_v39, %v6466_v5  ;;  %v6468_v16 = vrot.slane %v6466_v5, 4 }
 0x2fb   : > { %v7241_v46 = vshrl.u32 %v15577_v18, 16  ;;  %v7230_v56 = vrot.slane %v7228_v28, 4  ;;  %v7233_v19 = vrot.slane %v7231_v25, 5  ;;  %v7239_v37 = vrot.slane %v7237_v61, 5  ;;  %v15620_v28 = vld [vmem:[#allocation3 + $0x38] sm:$0x1] }
 0x2fc   : > { %v5959_v49 = vsel %vm15340_vm1, %v5954_v20, %v5958_v2  ;;  %v5964_v52 = vrot.slane %v5963_v24, 4  ;;  %v6470_v14 = vsel %vm15381_vm4, %v6468_v16, %v6469_v60  ;;  %v7247_v45 = vshll.u32 %v15581_v29, 16  ;;  %v15613_v2 = vld [vmem:[#allocation3 + $0x34] sm:$0xf] }
 0x2fd   : > { %v7243_v41 = vrot.slane %v7241_v46, 4  ;;  %v10429_v7 = vcombine.low %v6467_v4, %v6470_v14  ;;  %v7234_v47 = vor.u32 %v7233_v19, %v7230_v56  ;;  %v7252_v10 = vshrl.u32 %v7182_v44, 16  ;;  %v12344_v14 = vld [vmem:[%s17163_s3 + $0xb0] sm:$0xff]  }
 0x2fe   : > { %v7255_v36 = vshll.u32 %v7182_v44, 16  ;;  %v5969_v3 = vsel %vm15340_vm1, %v5964_v52, %v5968_v43  ;;  %v7249_v13 = vrot.slane %v7247_v45, 5  ;;  %v7261_v38 = vshll.u32 %v15589_v23, 16  ;;  %v7191_v44 = vld [vmem:[#allocation3 + $0x3c] sm:$0xf] }
 0x2ff   : > { %v7244_v51 = vor.u32 %v7243_v41, %v7239_v37  ;;  %v10369_v42 = vcombine.low %v5959_v49, %v5969_v3  ;;  %11317 = vmatmul.mubr.msk.bf16.gmra.mxu0 %vm5293_vm14, %v10429_v7  ;;  %v7235_v59 = vrot.slane %v7234_v47, 4  ;;  %v7254_v0 = vrot.slane %v7252_v10, 4  ;;  %v12336_v49 = vld [vmem:[#allocation3 + $0x18] sm:$0xff]   ;;  %v12337_v41 = vld [vmem:[#allocation3 + $0x24] sm:$0xff]  }
 0x300   : > { %v7257_v11 = vrot.slane %v7255_v36, 5  ;;  %v7263_v27 = vrot.slane %v7261_v38, 5  ;;  %v7265_v34 = vshrl.u32 %v15589_v23, 16  ;;  %v7271_v58 = vshll.u32 %v15594_v32, 16  ;;  %v15630_v36 = vld [vmem:[#allocation3 + $0x40] sm:$0xf] }
 0x301   : > { %v7245_v53 = vrot.slane %v7244_v51, 4  ;;  %11277 = vmatmul.mubr.msk.bf16.gmra.mxu1 %vm5293_vm14, %v10369_v42  ;;  %v7240_v31 = vsel %vm15340_vm1, %v7235_v59, %v7239_v37  ;;  %v7276_v1 = vshrl.u32 %v7185_v40, 16  ;;  %v7279_v62 = vshll.u32 %v7185_v40, 16  ;;  %v15635_v40 = vld [vmem:[#allocation3 + $0x44] sm:$0x1]  ;;  %v12345_v42 = vld [vmem:[%s17163_s3 + $0xd0] sm:$0xff]  }
 0x302   : > { %v7258_v15 = vor.u32 %v7257_v11, %v7254_v0  ;;  %11328 = vmatprep.mubr.msk.bf16.mxu1 %vm5293_vm14, %v12335_v6  ;;  %v7267_v21 = vrot.slane %v7265_v34, 4  ;;  %v7273_v55 = vrot.slane %v7271_v58, 5  ;;  %v7285_v35 = vshll.u32 %v15600_v22, 16 }
 0x303   : > { %v7250_v33 = vsel %vm15340_vm1, %v7245_v53, %v7249_v13  ;;  %v7278_v54 = vrot.slane %v7276_v1, 4  ;;  %v7281_v48 = vrot.slane %v7279_v62, 5  ;;  %v7289_v43 = vshrl.u32 %v15600_v22, 16  ;;  %v15645_v53 = vld [vmem:[%s17164_s4] ss:$0 sm:$0xff]  ;;  %v12350_v1 = vld [vmem:[%s17163_s3 + $0xa8] sm:$0xff]  }
 0x304   : > { %v10502_v12 = vcombine.low %v7240_v31, %v7250_v33  ;;  %v7259_v26 = vrot.slane %v7258_v15, 4  ;;  %v7268_v39 = vor.u32 %v7267_v21, %v7263_v27  ;;  %v7287_v17 = vrot.slane %v7285_v35, 5  ;;  %v15657_v35 = vld [vmem:[#allocation3 + $0x4c] sm:$0xf] }
 0x305   : > { %v7295_v5 = vshll.u32 %v15607_v30, 16  ;;  %v7282_v20 = vor.u32 %v7281_v48, %v7278_v54  ;;  %v7300_v25 = vshrl.u32 %v7188_v63, 16  ;;  %v7303_v61 = vshll.u32 %v7188_v63, 16  ;;  %v15659_v63 = vpop.f32.mrf.mxu0 }
 0x306   : > { %11368 = vmatprep.mubr.msk.bf16.mxu0 %vm5293_vm14, %v10502_v12  ;;  %v7264_v60 = vsel %vm15340_vm1, %v7259_v26, %v7263_v27  ;;  %v7269_v24 = vrot.slane %v7268_v39, 4  ;;  %v7291_v4 = vrot.slane %v7289_v43, 4  ;;  %v7309_v46 = vshll.u32 %v15613_v2, 16  ;;  %v11226_v27 = vpop.f32.mrf.mxu1 }
 0x307   : > { %v7297_v16 = vrot.slane %v7295_v5, 5  ;;  %v7283_v56 = vrot.slane %v7282_v20, 4  ;;  %v7302_v19 = vrot.slane %v7300_v25, 4  ;;  %v7305_v37 = vrot.slane %v7303_v61, 5  ;;  %v12340_v25 = vld [vmem:[#allocation3 + $0x30] sm:$0xff]   ;;  %v12341_v61 = vld [vmem:[#allocation3 + $0x3c] sm:$0xff]  }
 0x308   : > { %v7313_v52 = vshrl.u32 %v15613_v2, 16  ;;  %v7274_v45 = vsel %vm15340_vm1, %v7269_v24, %v7273_v55  ;;  %v7292_v7 = vor.u32 %v7291_v4, %v7287_v17  ;;  %v7311_v47 = vrot.slane %v7309_v46, 5  ;;  %v5440_v20 = vpop.f32.mrf.mxu1 }
 0x309   : > { %v7319_v10 = vshll.u32 %v15620_v28, 16  ;;  %11329 = vmatmul.mubr.msk.bf16.vlgmr.msra.gmra.mxu1 %vm5293_vm14, %v12336_v49  ;;  %v10503_v3 = vcombine.low %v7264_v60, %v7274_v45  ;;  %v7288_v51 = vsel %vm15340_vm1, %v7283_v56, %v7287_v17  ;;  %v7306_v13 = vor.u32 %v7305_v37, %v7302_v19  ;;  %v15669_v60 = vld [vmem:[#allocation3 + $0x50] sm:$0x1] }
 0x30a   : > { %v7315_v38 = vrot.slane %v7313_v52, 4  ;;  %11332 = vmatprep.mubr.msk.bf16.mxu1 %vm5293_vm14, %v12337_v41  ;;  %11401 = vmatpush3.bf16.msra.mxu1 %v15439_v9  ;;  %v7293_v59 = vrot.slane %v7292_v7, 4  ;;  %v7324_v11 = vshrl.u32 %v7191_v44, 16  ;;  %v7327_v6 = vshll.u32 %v7191_v44, 16  ;;  %v7194_v9 = vld [vmem:[#allocation3 + $0x48] sm:$0xf]  ;;  %v5376_v41 = vpop.f32.mrf.mxu0 }
 0x30b   : > { %v7321_v0 = vrot.slane %v7319_v10, 5  ;;  %11369 = vmatmul.mubr.msk.bf16.vlgmr.msra.gmra.mxu0 %vm5293_vm14, %v10503_v3  ;;  %v7307_v34 = vrot.slane %v7306_v13, 4  ;;  %v7333_v31 = vshll.u32 %v15630_v36, 16  ;;  %v7337_v15 = vshrl.u32 %v15630_v36, 16  ;;  %11402 = vmatprep.subr.bf16.mxu1 %v12344_v14  ;;  %v12356_v44 = vld [vmem:[%s17163_s3 + $0xa0] sm:$0xff]  }
 0x30c   : > { %v7316_v58 = vor.u32 %v7315_v38, %v7311_v47  ;;  %11441 = vmatpush3.bf16.msra.mxu0 %v15467_v8  ;;  %v7298_v62 = vsel %vm15340_vm1, %v7293_v59, %v7297_v16  ;;  %v7326_v33 = vrot.slane %v7324_v11, 4  ;;  %v7329_v21 = vrot.slane %v7327_v6, 5  ;;  %v12351_v8 = vld [vmem:[%s17163_s3 + $0xc8] sm:$0xff]   ;;  %v12357_v3 = vld [vmem:[%s17163_s3 + $0xc0] sm:$0xff]   ;;  %v11227_v59 = vpop.f32.mrf.mxu1  ;;  %v15693_v6 = vld [vmem:[#allocation3 + $0x5c] sm:$0x1] }
 0x30d   : > { %v7343_v55 = vshll.u32 %v15635_v40, 16  ;;  %v10504_v12 = vcombine.low %v7288_v51, %v7298_v62  ;;  %v7312_v26 = vsel %vm15340_vm1, %v7307_v34, %v7311_v47  ;;  %v7335_v48 = vrot.slane %v7333_v31, 5  ;;  %11442 = vmatprep.subr.bf16.mxu0 %v12345_v42  ;;  %v7197_v52 = vld [vmem:[#allocation3 + $0x54] sm:$0xf]  ;;  %v11211_v62 = vpop.f32.mrf.mxu0 }
 0x30e   : > { %v7317_v54 = vrot.slane %v7316_v58, 4  ;;  %v7330_v39 = vor.u32 %v7329_v21, %v7326_v33  ;;  %v7339_v17 = vrot.slane %v7337_v15, 4  ;;  %11403 = vmatpush3.bf16.msra.mxu1 %v12344_v14  ;;  %v15667_v5 = vadd.f32 %v11226_v27, %v15645_v53  ;;  %v15679_v14 = vld [vmem:[#allocation3 + $0x58] sm:$0xf] }
 0x30f   : > { %v7345_v43 = vrot.slane %v7343_v55, 5  ;;  %11372 = vmatprep.mubr.msk.bf16.mxu0 %vm5293_vm14, %v10504_v12  ;;  %v7348_v4 = vshrl.u32 %v7194_v9, 16  ;;  %v7351_v16 = vshll.u32 %v7194_v9, 16  ;;  %v7357_v46 = vshll.u32 %v15657_v35, 16  ;;  %11404 = vmatprep.subr.bf16.mxu1 %v12350_v1 }
 0x310   : > { %17593 = vst [vmem:[#allocation31_spill] sm:$0xff] %v15667_v5  ;;  %v7322_v24 = vsel %vm15340_vm1, %v7317_v54, %v7321_v0  ;;  %v7331_v56 = vrot.slane %v7330_v39, 4  ;;  %v7340_v19 = vor.u32 %v7339_v17, %v7335_v48  ;;  %v7361_v37 = vshrl.u32 %v15657_v35, 16  ;;  %11443 = vmatpush3.bf16.msra.mxu0 %v12345_v42  ;;  %v5443_v17 = vpop.f32.mrf.mxu1 }
 0x311   : > { %v10505_v49 = vcombine.low %v7312_v26, %v7322_v24  ;;  %11333 = vmatmul.mubr.msk.bf16.gmra.mxu1 %vm5293_vm14, %v12340_v25  ;;  %v7350_v45 = vrot.slane %v7348_v4, 4  ;;  %v7353_v7 = vrot.slane %v7351_v16, 5  ;;  %v7359_v47 = vrot.slane %v7357_v46, 5  ;;  %11444 = vmatprep.subr.bf16.mxu0 %v12351_v8  ;;  %v15707_v26 = vld [vmem:[%s17163_s3 + $0x118] sm:$0xff]   ;;  %v12343_v46 = vld [vmem:[#allocation3 + $0x54] sm:$0xff]  }
 0x312   : > { %v7367_v10 = vshll.u32 %v15669_v60, 16  ;;  %11336 = vmatprep.mubr.msk.bf16.mxu1 %vm5293_vm14, %v12341_v61  ;;  %v7336_v51 = vsel %vm15340_vm1, %v7331_v56, %v7335_v48  ;;  %v7341_v13 = vrot.slane %v7340_v19, 4  ;;  %v7363_v38 = vrot.slane %v7361_v37, 4  ;;  %11405 = vmatpush3.bf16.msra.mxu1 %v12350_v1  ;;  %v15702_v1 = vld [vmem:[%s17163_s3 + $0xf8] sm:$0xff]   ;;  %v15727_v37 = vld [vmem:[#allocation3 + $0x68] sm:$0x1] }
 0x313   : > { %v15690_v42 = vadd.f32 %v15645_v53, %v5440_v20  ;;  %11373 = vmatmul.mubr.msk.bf16.gmra.mxu0 %vm5293_vm14, %v10505_v49  ;;  %v7354_v0 = vor.u32 %v7353_v7, %v7350_v45  ;;  %v7372_v27 = vshrl.u32 %v7197_v52, 16  ;;  %v7375_v34 = vshll.u32 %v7197_v52, 16  ;;  %11406 = vmatprep.subr.bf16.mxu1 %v12356_v44  ;;  %v7200_v4 = vld [vmem:[#allocation3 + $0x60] sm:$0xf]  ;;  %v15720_v16 = vld [vmem:[#allocation3 + $0x64] sm:$0xf]  ;;  %v5379_v52 = vpop.f32.mrf.mxu0 }
 0x314   : > { %v7369_v11 = vrot.slane %v7367_v10, 5  ;;  %v7346_v58 = vsel %vm15340_vm1, %v7341_v13, %v7345_v43  ;;  %v7364_v31 = vor.u32 %v7363_v38, %v7359_v47  ;;  %v7381_v15 = vshll.u32 %v15679_v14, 16  ;;  %11445 = vmatpush3.bf16.msra.mxu0 %v12351_v8  ;;  %v12342_v43 = vld [vmem:[#allocation3 + $0x48] sm:$0xff]  }
 0x315   : > { %17594 = vst [vmem:[#allocation9_spill] sm:$0xff] %v15690_v42  ;;  %v7385_v9 = vshrl.u32 %v15679_v14, 16  ;;  %v10506_v33 = vcombine.low %v7336_v51, %v7346_v58  ;;  %v7355_v21 = vrot.slane %v7354_v0, 4  ;;  %v7374_v55 = vrot.slane %v7372_v27, 4  ;;  %11446 = vmatprep.subr.bf16.mxu0 %v12357_v3  ;;  %v7203_v13 = vld [vmem:[#allocation3 + $0x6c] sm:$0xf] }
 0x316   : > { %v7377_v12 = vrot.slane %v7375_v34, 5  ;;  %v7365_v54 = vrot.slane %v7364_v31, 4  ;;  %v7383_v48 = vrot.slane %v7381_v15, 5  ;;  %v7391_v8 = vshll.u32 %v15693_v6, 16  ;;  %11407 = vmatpush3.bf16.msra.mxu1 %v12356_v44  ;;  %v15748_v27 = vld [vmem:[#allocation3 + $0x70] sm:$0xf] }
 0x317   : > { %v7387_v39 = vrot.slane %v7385_v9, 4  ;;  %11376 = vmatprep.mubr.msk.bf16.mxu0 %vm5293_vm14, %v10506_v33  ;;  %v7360_v20 = vsel %vm15340_vm1, %v7355_v21, %v7359_v47  ;;  %v15715_v61 = vadd.f32 %v15659_v63, %v15645_v53  ;;  %v15718_v24 = vadd.f32 %v11227_v59, %v15645_v53  ;;  %11480 = vmatprep.subr.bf16.mxu1 %v15702_v1  ;;  %v15750_v34 = vld [vmem:[#allocation3 + $0x74] sm:$0x1] }
 0x318   : > { %v7378_v25 = vor.u32 %v7377_v12, %v7374_v55  ;;  %v7370_v44 = vsel %vm15340_vm1, %v7365_v54, %v7369_v11  ;;  %v7393_v56 = vrot.slane %v7391_v8, 5  ;;  %v15725_v19 = vadd.f32 %v15645_v53, %v5376_v41  ;;  %11447 = vmatpush3.bf16.msra.mxu0 %v12357_v3  ;;  %v12346_v54 = vld [vmem:[#allocation3 + $0x60] sm:$0xff]   ;;  %v12355_v42 = vld [vmem:[#allocation3 + $0xb4] sm:$0xff]  }
 0x319   : > { %17595 = vst [vmem:[#allocation17_spill] sm:$0xff] %v15718_v24  ;;  %v7388_v49 = vor.u32 %v7387_v39, %v7383_v48  ;;  %11337 = vmatmul.mubr.msk.bf16.gmra.mxu1 %vm5293_vm14, %v12342_v43  ;;  %v10507_v63 = vcombine.low %v7360_v20, %v7370_v44  ;;  %v15732_v7 = vadd.f32 %v15645_v53, %v5443_v17  ;;  %v7396_v10 = vshrl.u32 %v7200_v4, 16  ;;  %v12347_v43 = vld [vmem:[#allocation3 + $0x6c] sm:$0xff]   ;;  %v15826_v24 = vld [vmem:[#allocation3 + $0xb8] sm:$0xf] }
 0x31a   : > { %v7379_v45 = vrot.slane %v7378_v25, 4  ;;  %v15735_v47 = vadd.f32 %v11211_v62, %v15645_v53  ;;  %11520 = vmatprep.subr.bf16.mxu0 %v15707_v26  ;;  %11340 = vmatprep.mubr.msk.bf16.mxu1 %vm5293_vm14, %v12343_v46  ;;  %v7399_v51 = vshll.u32 %v7200_v4, 16  ;;  %v7405_v3 = vshll.u32 %v15720_v16, 16  ;;  %v7206_v62 = vld [vmem:[#allocation3 + $0x78] sm:$0xf] }
 0x31b   : > { %17596 = vst [vmem:[#allocation40_spill] sm:$0xff] %v15732_v7  ;;  %v7389_v41 = vrot.slane %v7388_v49, 4  ;;  %11377 = vmatmul.mubr.msk.bf16.gmra.mxu0 %vm5293_vm14, %v10507_v63  ;;  %v7409_v59 = vshrl.u32 %v15720_v16, 16  ;;  %v7415_v0 = vshll.u32 %v15727_v37, 16  ;;  %v15746_v11 = vadd.f32 %v15645_v53, %v5379_v52  ;;  %v15758_v46 = vld [vmem:[#allocation3 + $0x7c] sm:$0xf] }
 0x31c   : > { %v7384_v38 = vsel %vm15340_vm1, %v7379_v45, %v7383_v48  ;;  %v7398_v31 = vrot.slane %v7396_v10, 4  ;;  %v7401_v15 = vrot.slane %v7399_v51, 5  ;;  %v7407_v9 = vrot.slane %v7405_v3, 5  ;;  %v15760_v45 = vld [vmem:[#allocation3 + $0x80] sm:$0x1] }
 0x31d   : > { %17597 = vst [vmem:[#allocation22_spill] sm:$0xff] %v15746_v11  ;;  %v7394_v58 = vsel %vm15340_vm1, %v7389_v41, %v7393_v56  ;;  %v7411_v21 = vrot.slane %v7409_v59, 4  ;;  %v7417_v55 = vrot.slane %v7415_v0, 5  ;;  %v7420_v12 = vshrl.u32 %v7203_v13, 16  ;;  %v15851_v11 = vld [vmem:[#allocation3 + $0xc4] sm:$0xf] }
 0x31e   : > { %v10508_v33 = vcombine.low %v7384_v38, %v7394_v58  ;;  %v7402_v48 = vor.u32 %v7401_v15, %v7398_v31  ;;  %v7423_v39 = vshll.u32 %v7203_v13, 16  ;;  %v7429_v8 = vshll.u32 %v15748_v27, 16  ;;  %v7209_v58 = vld [vmem:[#allocation3 + $0x84] sm:$0xf] }
 0x31f   : > { %v7433_v17 = vshrl.u32 %v15748_v27, 16  ;;  %v7412_v20 = vor.u32 %v7411_v21, %v7407_v9  ;;  %v7422_v25 = vrot.slane %v7420_v12, 4  ;;  %v7439_v4 = vshll.u32 %v15750_v34, 16  ;;  %v15771_v12 = vld [vmem:[#allocation3 + $0x88] sm:$0xf] }
 0x320   : > { %11380 = vmatprep.mubr.msk.bf16.mxu0 %vm5293_vm14, %v10508_v33  ;;  %v7444_v44 = vshrl.u32 %v7206_v62, 16  ;;  %v7403_v49 = vrot.slane %v7402_v48, 4  ;;  %v7425_v56 = vrot.slane %v7423_v39, 5  ;;  %v7431_v52 = vrot.slane %v7429_v8, 5 }
 0x321   : > { %v7435_v63 = vrot.slane %v7433_v17, 4  ;;  %11341 = vmatmul.mubr.msk.bf16.gmra.mxu1 %vm5293_vm14, %v12346_v54  ;;  %v7413_v41 = vrot.slane %v7412_v20, 4  ;;  %v7441_v10 = vrot.slane %v7439_v4, 5  ;;  %v7447_v3 = vshll.u32 %v7206_v62, 16 }
 0x322   : > { %v7446_v51 = vrot.slane %v7444_v44, 4  ;;  %11344 = vmatprep.mubr.msk.bf16.mxu1 %vm5293_vm14, %v12347_v43  ;;  %v7408_v13 = vsel %vm15340_vm1, %v7403_v49, %v7407_v9  ;;  %v7426_v38 = vor.u32 %v7425_v56, %v7422_v25  ;;  %v7453_v0 = vshll.u32 %v15758_v46, 16  ;;  %v15773_v43 = vld [vmem:[#allocation3 + $0x8c] sm:$0x1]  ;;  %v7212_v49 = vld [vmem:[#allocation3 + $0x90] sm:$0xf] }
 0x323   : > { %v7436_v59 = vor.u32 %v7435_v63, %v7431_v52  ;;  %v7418_v31 = vsel %vm15340_vm1, %v7413_v41, %v7417_v55  ;;  %v7449_v15 = vrot.slane %v7447_v3, 5  ;;  %v7457_v33 = vshrl.u32 %v15758_v46, 16  ;;  %v12348_v63 = vld [vmem:[#allocation3 + $0x78] sm:$0xff]  }
 0x324   : > { %v7463_v21 = vshll.u32 %v15760_v45, 16  ;;  %v10509_v62 = vcombine.low %v7408_v13, %v7418_v31  ;;  %v7427_v54 = vrot.slane %v7426_v38, 4  ;;  %v7455_v39 = vrot.slane %v7453_v0, 5  ;;  %v15781_v13 = vld [vmem:[#allocation3 + $0x94] sm:$0xf]  ;;  %v12349_v38 = vld [vmem:[#allocation3 + $0x84] sm:$0xff]  }
 0x325   : > { %v7437_v48 = vrot.slane %v7436_v59, 4  ;;  %v7450_v9 = vor.u32 %v7449_v15, %v7446_v51  ;;  %v7459_v8 = vrot.slane %v7457_v33, 4  ;;  %v7468_v20 = vshrl.u32 %v7209_v58, 16  ;;  %v15789_v15 = vld [vmem:[#allocation3 + $0x98] sm:$0x1] }
 0x326   : > { %v7465_v17 = vrot.slane %v7463_v21, 5  ;;  %11381 = vmatmul.mubr.msk.bf16.gmra.mxu0 %vm5293_vm14, %v10509_v62  ;;  %v7432_v55 = vsel %vm15340_vm1, %v7427_v54, %v7431_v52  ;;  %v7471_v4 = vshll.u32 %v7209_v58, 16  ;;  %v7477_v44 = vshll.u32 %v15771_v12, 16 }
 0x327   : > { %v7442_v25 = vsel %vm15340_vm1, %v7437_v48, %v7441_v10  ;;  %v7451_v41 = vrot.slane %v7450_v9, 4  ;;  %v7460_v51 = vor.u32 %v7459_v8, %v7455_v39  ;;  %v7470_v3 = vrot.slane %v7468_v20, 4  ;;  %v7215_v8 = vld [vmem:[#allocation3 + $0x9c] sm:$0xf] }
 0x328   : > { %v10510_v56 = vcombine.low %v7432_v55, %v7442_v25  ;;  %v7473_v59 = vrot.slane %v7471_v4, 5  ;;  %v7479_v0 = vrot.slane %v7477_v44, 5  ;;  %v7481_v31 = vshrl.u32 %v15771_v12, 16  ;;  %v15796_v4 = vld [vmem:[#allocation3 + $0xa0] sm:$0xf] }
 0x329   : > { %v7487_v52 = vshll.u32 %v15773_v43, 16  ;;  %11345 = vmatmul.mubr.msk.bf16.gmra.mxu1 %vm5293_vm14, %v12348_v63  ;;  %v7456_v10 = vsel %vm15340_vm1, %v7451_v41, %v7455_v39  ;;  %v7461_v58 = vrot.slane %v7460_v51, 4  ;;  %v7492_v33 = vshrl.u32 %v7212_v49, 16 }
 0x32a   : > { %11384 = vmatprep.mubr.msk.bf16.mxu0 %vm5293_vm14, %v10510_v56  ;;  %v7495_v21 = vshll.u32 %v7212_v49, 16  ;;  %11348 = vmatprep.mubr.msk.bf16.mxu1 %vm5293_vm14, %v12349_v38  ;;  %v7474_v62 = vor.u32 %v7473_v59, %v7470_v3  ;;  %v7483_v54 = vrot.slane %v7481_v31, 4  ;;  %v7501_v9 = vshll.u32 %v15781_v13, 16  ;;  %v15802_v31 = vld [vmem:[#allocation3 + $0xa4] sm:$0x1] }
 0x32b   : > { %v7489_v48 = vrot.slane %v7487_v52, 5  ;;  %v7466_v20 = vsel %vm15340_vm1, %v7461_v58, %v7465_v17  ;;  %v7494_v55 = vrot.slane %v7492_v33, 4  ;;  %v7505_v39 = vshrl.u32 %v15781_v13, 16  ;;  %v12352_v33 = vld [vmem:[#allocation3 + $0x90] sm:$0xff]  }
 0x32c   : > { %v7497_v25 = vrot.slane %v7495_v21, 5  ;;  %v10511_v44 = vcombine.low %v7456_v10, %v7466_v20  ;;  %v7475_v56 = vrot.slane %v7474_v62, 4  ;;  %v7484_v49 = vor.u32 %v7483_v54, %v7479_v0  ;;  %v11230_v10 = vpop.f32.mrf.mxu1  ;;  %v7218_v20 = vld [vmem:[#allocation3 + $0xa8] sm:$0xf] }
 0x32d   : > { %v7503_v63 = vrot.slane %v7501_v9, 5  ;;  %v7507_v51 = vrot.slane %v7505_v39, 4  ;;  %v7511_v3 = vshll.u32 %v15789_v15, 16  ;;  %v7516_v38 = vshrl.u32 %v7215_v8, 16 }
 0x32e   : > { %v7498_v41 = vor.u32 %v7497_v25, %v7494_v55  ;;  %11385 = vmatmul.mubr.msk.bf16.gmra.mxu0 %vm5293_vm14, %v10511_v44  ;;  %v7480_v17 = vsel %vm15340_vm1, %v7475_v56, %v7479_v0  ;;  %v7485_v59 = vrot.slane %v7484_v49, 4  ;;  %v7519_v52 = vshll.u32 %v7215_v8, 16  ;;  %v12353_v25 = vld [vmem:[#allocation3 + $0x9c] sm:$0xff]   ;;  %v15808_v56 = vld [vmem:[#allocation3 + $0xac] sm:$0xf] }
 0x32f   : > { %v7525_v58 = vshll.u32 %v15796_v4, 16  ;;  %v7508_v62 = vor.u32 %v7507_v51, %v7503_v63  ;;  %v7513_v54 = vrot.slane %v7511_v3, 5  ;;  %v7518_v9 = vrot.slane %v7516_v38, 4 }
 0x330   : > { %v7499_v21 = vrot.slane %v7498_v41, 4  ;;  %v7490_v55 = vsel %vm15340_vm1, %v7485_v59, %v7489_v48  ;;  %v7521_v39 = vrot.slane %v7519_v52, 5  ;;  %v7529_v0 = vshrl.u32 %v15796_v4, 16  ;;  %v15818_v59 = vld [vmem:[#allocation3 + $0xb0] sm:$0x1] }
 0x331   : > { %v7527_v44 = vrot.slane %v7525_v58, 5  ;;  %v10512_v8 = vcombine.low %v7480_v17, %v7490_v55  ;;  %11349 = vmatmul.mubr.msk.bf16.gmra.mxu1 %vm5293_vm14, %v12352_v33  ;;  %v7509_v41 = vrot.slane %v7508_v62, 4  ;;  %v7535_v51 = vshll.u32 %v15802_v31, 16  ;;  %v5456_v58 = vpop.f32.mrf.mxu1  ;;  %v7221_v62 = vld [vmem:[#allocation3 + $0xb4] sm:$0xf] }
 0x332   : > { %v7504_v49 = vsel %vm15340_vm1, %v7499_v21, %v7503_v63  ;;  %11352 = vmatprep.mubr.msk.bf16.mxu1 %vm5293_vm14, %v12353_v25  ;;  %v7522_v3 = vor.u32 %v7521_v39, %v7518_v9  ;;  %v7531_v48 = vrot.slane %v7529_v0, 4  ;;  %v15816_v38 = vadd.f32 %v11230_v10, %v15645_v53 }
 0x333   : > { %v7540_v52 = vshrl.u32 %v7218_v20, 16  ;;  %11388 = vmatprep.mubr.msk.bf16.mxu0 %vm5293_vm14, %v10512_v8  ;;  %v7514_v17 = vsel %vm15340_vm1, %v7509_v41, %v7513_v54  ;;  %v7537_v63 = vrot.slane %v7535_v51, 5  ;;  %v7543_v33 = vshll.u32 %v7218_v20, 16  ;;  %v11231_v41 = vpop.f32.mrf.mxu1  ;;  %v12354_v51 = vld [vmem:[#allocation3 + $0xa8] sm:$0xff]  }
 0x334   : > { %17598 = vst [vmem:[#allocation39_spill] sm:$0xff] %v15816_v38  ;;  %v7549_v21 = vshll.u32 %v15808_v56, 16  ;;  %v10513_v55 = vcombine.low %v7504_v49, %v7514_v17  ;;  %v7523_v9 = vrot.slane %v7522_v3, 4  ;;  %v7532_v25 = vor.u32 %v7531_v48, %v7527_v44  ;;  %v15834_v17 = vld [vmem:[#allocation3 + $0xbc] sm:$0x1] }
 0x335   : > { %v7542_v39 = vrot.slane %v7540_v52, 4  ;;  %v7545_v10 = vrot.slane %v7543_v33, 5  ;;  %v7553_v38 = vshrl.u32 %v15808_v56, 16  ;;  %v7559_v7 = vshll.u32 %v15818_v59, 16 }
 0x336   : > { %v7551_v0 = vrot.slane %v7549_v21, 5  ;;  %11389 = vmatmul.mubr.msk.bf16.gmra.mxu0 %vm5293_vm14, %v10513_v55  ;;  %v7528_v54 = vsel %vm15340_vm1, %v7523_v9, %v7527_v44  ;;  %v7533_v20 = vrot.slane %v7532_v25, 4  ;;  %v15832_v8 = vadd.f32 %v15645_v53, %v5456_v58  ;;  %v11214_v21 = vpop.f32.mrf.mxu0  ;;  %v7933_v9 = vld [vmem:[#allocation3 + $0xc] sm:$0xe] }
 0x337   : > { %v7564_v49 = vshrl.u32 %v7221_v62, 16  ;;  %v7546_v3 = vor.u32 %v7545_v10, %v7542_v39  ;;  %v7555_v48 = vrot.slane %v7553_v38, 4  ;;  %v7561_v52 = vrot.slane %v7559_v7, 5 }
 0x338   : > { %17599 = vst [vmem:[#allocation72_spill] sm:$0xff] %v15832_v8  ;;  %v7567_v33 = vshll.u32 %v7221_v62, 16  ;;  %v7538_v55 = vsel %vm15340_vm1, %v7533_v20, %v7537_v63  ;;  %v7573_v44 = vshll.u32 %v15826_v24, 16  ;;  %v7577_v58 = vshrl.u32 %v15826_v24, 16  ;;  %v5459_v20 = vpop.f32.mrf.mxu1 }
 0x339   : > { %v7566_v5 = vrot.slane %v7564_v49, 4  ;;  %v10514_v25 = vcombine.low %v7528_v54, %v7538_v55  ;;  %11353 = vmatmul.mubr.msk.bf16.gmra.mxu1 %vm5293_vm14, %v12354_v51  ;;  %v7547_v39 = vrot.slane %v7546_v3, 4  ;;  %v7556_v38 = vor.u32 %v7555_v48, %v7551_v0  ;;  %v7224_v48 = vld [vmem:[#allocation3 + $0xc0] sm:$0xf] }
 0x33a   : > { %v7569_v7 = vrot.slane %v7567_v33, 5  ;;  %11356 = vmatprep.mubr.msk.bf16.mxu1 %vm5293_vm14, %v12355_v42  ;;  %v7575_v62 = vrot.slane %v7573_v44, 5  ;;  %v7579_v10 = vrot.slane %v7577_v58, 4  ;;  %v7583_v8 = vshll.u32 %v15834_v17, 16  ;;  %v5392_v33 = vpop.f32.mrf.mxu0 }
 0x33b   : > { %v15844_v63 = vadd.f32 %v11231_v41, %v15645_v53  ;;  %11392 = vmatprep.mubr.msk.bf16.mxu0 %vm5293_vm14, %v10514_v25  ;;  %v7552_v54 = vsel %vm15340_vm1, %v7547_v39, %v7551_v0  ;;  %v7557_v49 = vrot.slane %v7556_v38, 4  ;;  %v10538_v3 = vrot.slane %v7933_v9, 9  ;;  %v15861_v0 = vld [vmem:[#allocation3 + $0xc8] sm:$0x1]  ;;  %v12358_v38 = vld [vmem:[#allocation3 + $0xc0] sm:$0xff]  }
 0x33c   : > { %v7570_v51 = vor.u32 %v7569_v7, %v7566_v5  ;;  %v7580_v55 = vor.u32 %v7579_v10, %v7575_v62  ;;  %v7585_v42 = vrot.slane %v7583_v8, 5  ;;  %v7999_v44 = vrot.slane %v15577_v18, 5 }
 0x33d   : > { %17600 = vst [vmem:[#allocation61_spill] sm:$0xff] %v15844_v63  ;;  %v8002_v58 = vrot.slane %v15581_v29, 5  ;;  %v7562_v41 = vsel %vm15340_vm1, %v7557_v49, %v7561_v52  ;;  %v15856_v63 = vadd.f32 %v15645_v53, %v5459_v20  ;;  %v15859_v5 = vadd.f32 %v11214_v21, %v15645_v53  ;;  %v11215_v20 = vpop.f32.mrf.mxu0 }
 0x33e   : > { %v7571_v25 = vrot.slane %v7570_v51, 4  ;;  %v10515_v9 = vcombine.low %v7552_v54, %v7562_v41  ;;  %v7581_v8 = vrot.slane %v7580_v55, 4  ;;  %v8000_v18 = vsel %vm15381_vm4, %v10538_v3, %v7999_v44  ;;  %v7934_v3 = vld [vmem:[#allocation3 + $0x18] sm:$0xe]  ;;  %v7935_v41 = vld [vmem:[#allocation3 + $0x24] sm:$0xe] }
 0x33f   : > { %17601 = vst [vmem:[#allocation70_spill] sm:$0xff] %v15856_v63  ;;  %v8001_v29 = vrot.slane %v7999_v44, 4  ;;  %v7588_v52 = vshrl.u32 %v7224_v48, 16  ;;  %v7591_v7 = vshll.u32 %v7224_v48, 16  ;;  %v7597_v10 = vshll.u32 %v15851_v11, 16 }
 0x340   : > { %v7576_v39 = vsel %vm15340_vm1, %v7571_v25, %v7575_v62  ;;  %11393 = vmatmul.mubr.msk.bf16.gmra.mxu0 %vm5293_vm14, %v10515_v9  ;;  %v7586_v21 = vsel %vm15340_vm1, %v7581_v8, %v7585_v42  ;;  %v7601_v49 = vshrl.u32 %v15851_v11, 16  ;;  %v7607_v51 = vshll.u32 %v15861_v0, 16 }
 0x341   : > { %v8003_v54 = vsel %vm15381_vm4, %v8001_v29, %v8002_v58  ;;  %v10516_v62 = vcombine.low %v7576_v39, %v7586_v21  ;;  %11357 = vmatmul.mubr.msk.bf16.gmra.mxu1 %vm5293_vm14, %v12358_v38  ;;  %v7590_v55 = vrot.slane %v7588_v52, 4  ;;  %v7593_v44 = vrot.slane %v7591_v7, 5  ;;  %v5395_v39 = vpop.f32.mrf.mxu0  ;;  %v11234_v21 = vpop.f32.mrf.mxu1 }
 0x342   : > { %v10562_v48 = vcombine.low %v8000_v18, %v8003_v54  ;;  %v7599_v25 = vrot.slane %v7597_v10, 5  ;;  %v7603_v9 = vrot.slane %v7601_v49, 4  ;;  %v7609_v63 = vrot.slane %v7607_v51, 5 }
 0x343   : > { %v15877_v42 = vadd.f32 %v15645_v53, %v5392_v33  ;;  %11396 = vmatprep.mubr.msk.bf16.mxu0 %vm5293_vm14, %v10516_v62  ;;  %v7594_v58 = vor.u32 %v7593_v44, %v7590_v55  ;;  %v15882_v8 = vadd.f32 %v11215_v20, %v15645_v53  ;;  %v10539_v29 = vrot.slane %v7934_v3, 9  ;;  %v7936_v33 = vld [vmem:[#allocation3 + $0x30] sm:$0xe] }
 0x344   : > { %11408 = vmatprep.mubr.msk.bf16.mxu1 %vm5293_vm14, %v10562_v48  ;;  %v8006_v18 = vrot.slane %v15589_v23, 5  ;;  %v7604_v38 = vor.u32 %v7603_v9, %v7599_v25  ;;  %v8009_v52 = vrot.slane %v15594_v32, 5  ;;  %v10540_v7 = vrot.slane %v7935_v41, 9  ;;  %v7937_v41 = vld [vmem:[#allocation3 + $0x3c] sm:$0xe] }
 0x345   : > { %v8013_v10 = vrot.slane %v15600_v22, 5  ;;  %v7595_v54 = vrot.slane %v7594_v58, 4  ;;  %v8016_v20 = vrot.slane %v15607_v30, 5  ;;  %v15893_v48 = vadd.f32 %v15645_v53, %v5395_v39  ;;  %v7938_v9 = vld [vmem:[#allocation3 + $0x48] sm:$0xe] }
 0x346   : > { %v8007_v49 = vsel %vm15381_vm4, %v10539_v29, %v8006_v18  ;;  %v8008_v51 = vrot.slane %v8006_v18, 4  ;;  %v7605_v62 = vrot.slane %v7604_v38, 4  ;;  %v10541_v55 = vrot.slane %v7936_v33, 9  ;;  %v7939_v39 = vld [vmem:[#allocation3 + $0x54] sm:$0xe]  ;;  %v5472_v38 = vpop.f32.mrf.mxu1  ;;  %v12359_v33 = vld [vmem:[#allocation3 + $0x18] sm:$0xff]  }
 0x347   : > { %v8014_v23 = vsel %vm15381_vm4, %v10540_v7, %v8013_v10  ;;  %v8015_v3 = vrot.slane %v8013_v10, 4  ;;  %v7600_v32 = vsel %vm15340_vm1, %v7595_v54, %v7599_v25  ;;  %v8020_v44 = vrot.slane %v15613_v2, 5  ;;  %v12366_v2 = vld [vmem:[%s17163_s3 + $0xf0] sm:$0xff]  }
 0x348   : > { %v8010_v22 = vsel %vm15381_vm4, %v8008_v51, %v8009_v52  ;;  %v7610_v30 = vsel %vm15340_vm1, %v7605_v62, %v7609_v63  ;;  %v8023_v18 = vrot.slane %v15620_v28, 5  ;;  %v10542_v63 = vrot.slane %v7937_v41, 9  ;;  %v15913_v51 = vpop.f32.mrf.mxu0 }
 0x349   : > { %v10563_v58 = vcombine.low %v8007_v49, %v8010_v22  ;;  %v8017_v29 = vsel %vm15381_vm4, %v8015_v3, %v8016_v20  ;;  %v10517_v25 = vcombine.low %v7600_v32, %v7610_v30  ;;  %v8021_v52 = vsel %vm15381_vm4, %v10541_v55, %v8020_v44  ;;  %v7940_v32 = vld [vmem:[#allocation3 + $0x60] sm:$0xe]  ;;  %v12372_v30 = vld [vmem:[%s17163_s3 + $0xe8] sm:$0xff]  }
 0x34a   : > { %v10564_v7 = vcombine.low %v8014_v23, %v8017_v29  ;;  %v8022_v10 = vrot.slane %v8020_v44, 4  ;;  %v8027_v54 = vrot.slane %v15630_v36, 5  ;;  %v8030_v28 = vrot.slane %v15635_v40, 5  ;;  %v11235_v44 = vpop.f32.mrf.mxu1 }
 0x34b   : > { %11409 = vmatmul.mubr.msk.bf16.vlgmr.msra.gmra.mxu1 %vm5293_vm14, %v10563_v58  ;;  %v10543_v49 = vrot.slane %v7938_v9, 9  ;;  %11397 = vmatmul.mubr.msk.bf16.gmra.mxu0 %vm5293_vm14, %v10517_v25  ;;  %v8034_v62 = vrot.slane %v15657_v35, 5  ;;  %v8037_v23 = vrot.slane %v15669_v60, 5  ;;  %v10544_v3 = vrot.slane %v7939_v39, 9  ;;  %v5408_v39 = vpop.f32.mrf.mxu0 }
 0x34c   : > { %11412 = vmatprep.mubr.msk.bf16.mxu1 %vm5293_vm14, %v10564_v7  ;;  %v8024_v20 = vsel %vm15381_vm4, %v8022_v10, %v8023_v18  ;;  %11448 = vmatprep.mubr.msk.bf16.mxu0 %vm5293_vm14, %v12359_v33  ;;  %v8028_v40 = vsel %vm15381_vm4, %v10542_v63, %v8027_v54  ;;  %v8029_v22 = vrot.slane %v8027_v54, 4  ;;  %v8041_v55 = vrot.slane %v15679_v14, 5  ;;  %v5475_v54 = vpop.f32.mrf.mxu1 }
 0x34d   : > { %11481 = vmatpush3.bf16.msra.mxu1 %v15702_v1  ;;  %v10565_v36 = vcombine.low %v8021_v52, %v8024_v20  ;;  %v15928_v41 = vsel %vm15381_vm4, %v10543_v49, %v8034_v62  ;;  %v8036_v35 = vrot.slane %v8034_v62, 4  ;;  %v8044_v60 = vrot.slane %v15693_v6, 5  ;;  %v7941_v1 = vld [vmem:[#allocation3 + $0x6c] sm:$0xe]  ;;  %v12362_v49 = vld [vmem:[#allocation3 + $0x24] sm:$0xff]  }
 0x34e   : > { %11482 = vmatprep.subr.bf16.mxu1 %v12366_v2  ;;  %v15932_v9 = vadd.f32 %v11234_v21, %v15645_v53  ;;  %v8031_v14 = vsel %vm15381_vm4, %v8029_v22, %v8030_v28  ;;  %v15941_v58 = vsel %vm15381_vm4, %v10544_v3, %v8041_v55  ;;  %v8043_v29 = vrot.slane %v8041_v55, 4  ;;  %v7942_v28 = vld [vmem:[#allocation3 + $0x78] sm:$0xe]  ;;  %v11219_v55 = vpop.f32.mrf.mxu0 }
 0x34f   : > { %v10545_v18 = vrot.slane %v7940_v32, 9  ;;  %v10566_v6 = vcombine.low %v8028_v40, %v8031_v14  ;;  %v15945_v21 = vsel %vm15381_vm4, %v8036_v35, %v8037_v23  ;;  %v8048_v25 = vrot.slane %v15720_v16, 5  ;;  %v12367_v16 = vld [vmem:[%s17163_s3 + $0x110] sm:$0xff]   ;;  %v7943_v23 = vld [vmem:[#allocation3 + $0x84] sm:$0xe] }
 0x350   : > { %v8051_v7 = vrot.slane %v15727_v37, 5  ;;  %v10567_v52 = vcombine.low %v15928_v41, %v15945_v21  ;;  %v15953_v10 = vsel %vm15381_vm4, %v8043_v29, %v8044_v60  ;;  %v10546_v33 = vrot.slane %v7941_v1, 9 }
 0x351   : > { %11483 = vmatpush3.bf16.msra.mxu1 %v12366_v2  ;;  %v8055_v63 = vrot.slane %v15748_v27, 5  ;;  %v10568_v20 = vcombine.low %v15941_v58, %v15953_v10  ;;  %v15963_v37 = vsel %vm15381_vm4, %v10545_v18, %v8048_v25  ;;  %v8050_v62 = vrot.slane %v8048_v25, 4  ;;  %v12363_v27 = vld [vmem:[#allocation3 + $0x30] sm:$0xff]  }
 0x352   : > { %v8058_v2 = vrot.slane %v15750_v34, 5  ;;  %11484 = vmatprep.subr.bf16.mxu1 %v12372_v30  ;;  %v15972_v40 = vadd.f32 %v15645_v53, %v5472_v38  ;;  %v15975_v22 = vadd.f32 %v11235_v44, %v15645_v53  ;;  %v12378_v34 = vld [vmem:[%s17163_s3 + $0xe0] sm:$0xff]   ;;  %v15987_v35 = vadd.f32 %v15645_v53, %v5475_v54  ;;  %v7944_v18 = vld [vmem:[#allocation3 + $0x90] sm:$0xe] }
 0x353   : > { %11413 = vmatmul.mubr.msk.bf16.gmra.mxu1 %vm5293_vm14, %v10565_v36  ;;  %v15969_v3 = vsel %vm15381_vm4, %v10546_v33, %v8055_v63  ;;  %v8057_v32 = vrot.slane %v8055_v63, 4  ;;  %11449 = vmatmul.mubr.msk.bf16.vlgmr.msra.gmra.mxu0 %vm5293_vm14, %v12362_v49  ;;  %v15984_v36 = vsel %vm15381_vm4, %v8050_v62, %v8051_v7  ;;  %v10547_v38 = vrot.slane %v7942_v28, 9  ;;  %v12373_v7 = vld [vmem:[%s17163_s3 + $0x108] sm:$0xff]   ;;  %v7945_v33 = vld [vmem:[#allocation3 + $0x9c] sm:$0xe]  ;;  %v5411_v49 = vpop.f32.mrf.mxu0 }
 0x354   : > { %11416 = vmatprep.mubr.msk.bf16.mxu1 %vm5293_vm14, %v10566_v6  ;;  %v8062_v44 = vrot.slane %v15758_v46, 5  ;;  %11521 = vmatpush3.bf16.msra.mxu0 %v15707_v26  ;;  %v10569_v60 = vcombine.low %v15963_v37, %v15984_v36  ;;  %v8065_v14 = vrot.slane %v15760_v45, 5  ;;  %v10548_v29 = vrot.slane %v7943_v23, 9  ;;  %v16125_v36 = vld [vmem:[%s17164_s4] ss:$0 sm:$0xff] }
 0x355   : > { %11452 = vmatprep.mubr.msk.bf16.mxu0 %vm5293_vm14, %v12363_v27  ;;  %v15996_v1 = vsel %vm15381_vm4, %v8057_v32, %v8058_v2  ;;  %11522 = vmatprep.subr.bf16.mxu0 %v12367_v16  ;;  %v8069_v25 = vrot.slane %v15771_v12, 5  ;;  %v8072_v45 = vrot.slane %v15773_v43, 5  ;;  %v16012_v63 = vadd.f32 %v15913_v51, %v15645_v53  ;;  %v11238_v12 = vpop.f32.mrf.mxu1  ;;  %v7946_v2 = vld [vmem:[#allocation3 + $0xa8] sm:$0xe] }
 0x356   : > { %v10570_v6 = vcombine.low %v15969_v3, %v15996_v1  ;;  %v16003_v26 = vsel %vm15381_vm4, %v10547_v38, %v8062_v44  ;;  %v8064_v46 = vrot.slane %v8062_v44, 4  ;;  %11485 = vmatpush3.bf16.msra.mxu1 %v12372_v30  ;;  %v16015_v54 = vadd.f32 %v15645_v53, %v5408_v39  ;;  %v12370_v3 = vld [vmem:[#allocation3 + $0x6c] sm:$0xff]   ;;  %v12371_v39 = vld [vmem:[#allocation3 + $0x78] sm:$0xff]  }
 0x357   : > { %v16018_v28 = vadd.f32 %v11219_v55, %v15645_v53  ;;  %11486 = vmatprep.subr.bf16.mxu1 %v12378_v34  ;;  %v16026_v43 = vsel %vm15381_vm4, %v10548_v29, %v8069_v25  ;;  %v8071_v62 = vrot.slane %v8069_v25, 4  ;;  %v10549_v51 = vrot.slane %v7944_v18, 9  ;;  %v12364_v55 = vld [vmem:[#allocation3 + $0x3c] sm:$0xff]   ;;  %v7947_v29 = vld [vmem:[#allocation3 + $0xb4] sm:$0xe] }
 0x358   : > { %v16022_v30 = vsel %vm15381_vm4, %v8064_v46, %v8065_v14  ;;  %11523 = vmatpush3.bf16.msra.mxu0 %v12367_v16  ;;  %v8076_v23 = vrot.slane %v15781_v13, 5  ;;  %v8079_v27 = vrot.slane %v15789_v15, 5  ;;  %v10550_v32 = vrot.slane %v7945_v33, 9  ;;  %v12379_v13 = vld [vmem:[%s17163_s3 + $0x100] sm:$0xff]  }
 0x359   : > { %v16034_v38 = vsel %vm15381_vm4, %v8071_v62, %v8072_v45  ;;  %11524 = vmatprep.subr.bf16.mxu0 %v12373_v7  ;;  %v8083_v44 = vrot.slane %v15796_v4, 5  ;;  %v8086_v14 = vrot.slane %v15802_v31, 5  ;;  %v16039_v16 = vadd.f32 %v15645_v53, %v5411_v49  ;;  %v12365_v15 = vld [vmem:[#allocation3 + $0x48] sm:$0xff]   ;;  %v8818_v62 = vld [vmem:[#allocation3 + $0x18] sm:$0xf] }
 0x35a   : > { %11487 = vmatpush3.bf16.msra.mxu1 %v12378_v34  ;;  %v16052_v31 = vsel %vm15381_vm4, %v10549_v51, %v8076_v23  ;;  %v8078_v18 = vrot.slane %v8076_v23, 4  ;;  %v10551_v46 = vrot.slane %v7946_v2, 9  ;;  %v5488_v34 = vpop.f32.mrf.mxu1  ;;  %v8093_v25 = vrot.slane %v15818_v59, 5  ;;  %v8819_v23 = vld [vmem:[#allocation3 + $0x1c] sm:$0xf] }
 0x35b   : > { %11417 = vmatmul.mubr.msk.bf16.gmra.mxu1 %vm5293_vm14, %v10567_v52  ;;  %11453 = vmatmul.mubr.msk.bf16.gmra.mxu0 %vm5293_vm14, %v12364_v55  ;;  %v16061_v41 = vsel %vm15381_vm4, %v10550_v32, %v8083_v44  ;;  %v8085_v21 = vrot.slane %v8083_v44, 4  ;;  %v8090_v52 = vrot.slane %v15808_v56, 5  ;;  %v10552_v45 = vrot.slane %v7947_v29, 9  ;;  %v8820_v29 = vld [vmem:[#allocation3 + $0x20] sm:$0x1] }
 0x35c   : > { %11420 = vmatprep.mubr.msk.bf16.mxu1 %vm5293_vm14, %v10568_v20  ;;  %11456 = vmatprep.mubr.msk.bf16.mxu0 %vm5293_vm14, %v12365_v15  ;;  %v16068_v33 = vsel %vm15381_vm4, %v8078_v18, %v8079_v27  ;;  %v8097_v58 = vrot.slane %v15826_v24, 5  ;;  %v8100_v10 = vrot.slane %v15834_v17, 5  ;;  %v7948_v20 = vld [vmem:[#allocation3 + $0xc0] sm:$0xe]  ;;  %v16089_v2 = vadd.f32 %v11238_v12, %v15645_v53  ;;  %v11239_v27 = vpop.f32.mrf.mxu1  ;;  %v11222_v15 = vpop.f32.mrf.mxu0 }
 0x35d   : > { %11525 = vmatpush3.bf16.msra.mxu0 %v12373_v7  ;;  %v16076_v56 = vsel %vm15381_vm4, %v8085_v21, %v8086_v14  ;;  %v16080_v59 = vsel %vm15381_vm4, %v10551_v46, %v8090_v52  ;;  %v8092_v7 = vrot.slane %v8090_v52, 4  ;;  %v10553_v55 = vrot.slane %v7948_v20, 9  ;;  %v12368_v21 = vld [vmem:[#allocation3 + $0x54] sm:$0xff]   ;;  %v12369_v52 = vld [vmem:[#allocation3 + $0x60] sm:$0xff]  }
 0x35e   : > { %11526 = vmatprep.subr.bf16.mxu0 %v12379_v13  ;;  %v16086_v17 = vsel %vm15381_vm4, %v10552_v45, %v8097_v58  ;;  %v8099_v51 = vrot.slane %v8097_v58, 4  ;;  %17602 = vst [vmem:[#allocation69_spill] sm:$0xff] %v16089_v2  ;;  %v8104_v44 = vrot.slane %v15851_v11, 5  ;;  %v8107_v14 = vrot.slane %v15861_v0, 5 }
 0x35f   : > { %v16093_v32 = vsel %vm15381_vm4, %v8092_v7, %v8093_v25  ;;  %v8867_v12 = vshrl.u32 %v8818_v62, 16  ;;  %v8870_v46 = vshll.u32 %v8818_v62, 16  ;;  %v8876_v45 = vshll.u32 %v8819_v23, 16  ;;  %v5491_v7 = vpop.f32.mrf.mxu1  ;;  %v9572_v62 = vld [vmem:[#allocation3 + $0x18] sm:$0xe] }
 0x360   : > { %v16101_v53 = vsel %vm15381_vm4, %v8099_v51, %v8100_v10  ;;  %v16107_v11 = vsel %vm15381_vm4, %v10553_v55, %v8104_v44  ;;  %v8106_v0 = vrot.slane %v8104_v44, 4  ;;  %v8880_v10 = vshrl.u32 %v8819_v23, 16  ;;  %v5424_v44 = vpop.f32.mrf.mxu0 }
 0x361   : > { %11527 = vmatpush3.bf16.msra.mxu0 %v12379_v13  ;;  %v8869_v58 = vrot.slane %v8867_v12, 4  ;;  %v8872_v13 = vrot.slane %v8870_v46, 5  ;;  %v8886_v20 = vshll.u32 %v8820_v29, 16  ;;  %v8878_v37 = vrot.slane %v8876_v45, 5  ;;  %v8821_v12 = vld [vmem:[#allocation3 + $0x24] sm:$0xf] }
 0x362   : > { %v16120_v51 = vsel %vm15381_vm4, %v8106_v0, %v8107_v14  ;;  %v16131_v55 = vadd.f32 %v16125_v36, %v11239_v27  ;;  %v16137_v46 = vadd.f32 %v16125_v36, %v11222_v15  ;;  %v9638_v0 = vrot.slane %v8819_v23, 5  ;;  %v16142_v27 = vld [vmem:[#allocation3 + $0x28] sm:$0xf] }
 0x363   : > { %11421 = vmatmul.mubr.msk.bf16.gmra.mxu1 %vm5293_vm14, %v10569_v60  ;;  %11457 = vmatmul.mubr.msk.bf16.gmra.mxu0 %vm5293_vm14, %v12368_v21  ;;  %v16128_v60 = vadd.f32 %v16125_v36, %v5488_v34  ;;  %v8873_v1 = vor.u32 %v8872_v13, %v8869_v58  ;;  %v8888_v14 = vrot.slane %v8886_v20, 5  ;;  %v16140_v21 = vadd.f32 %v16125_v36, %v5491_v7 }
 0x364   : > { %11424 = vmatprep.mubr.msk.bf16.mxu1 %vm5293_vm14, %v10570_v6  ;;  %17604 = vst [vmem:[#allocation74_spill] sm:$0xff] %v16131_v55  ;;  %11460 = vmatprep.mubr.msk.bf16.mxu0 %vm5293_vm14, %v12369_v52  ;;  %v8882_v6 = vrot.slane %v8880_v10, 4  ;;  %v10686_v34 = vrot.slane %v9572_v62, 9  ;;  %v9641_v52 = vrot.slane %v8820_v29, 5  ;;  %v16145_v18 = vadd.f32 %v16125_v36, %v5424_v44  ;;  %v16151_v10 = vld [vmem:[#allocation3 + $0x2c] sm:$0x1]  ;;  %v11223_v62 = vpop.f32.mrf.mxu0 }
 0x365   : > { %17603 = vst [vmem:[#allocation49_spill] sm:$0xff] %v16128_v60  ;;  %17605 = vst [vmem:[#allocation46_spill] sm:$0xff] %v16140_v21  ;;  %v8874_v45 = vrot.slane %v8873_v1, 4  ;;  %v9640_v13 = vrot.slane %v9638_v0, 4  ;;  %v8891_v20 = vshrl.u32 %v8821_v12, 16  ;;  %v8894_v7 = vshll.u32 %v8821_v12, 16 }
 0x366   : > { %v8883_v25 = vor.u32 %v8882_v6, %v8878_v37  ;;  %v16149_v58 = vsel %vm15381_vm4, %v10686_v34, %v9638_v0  ;;  %v8900_v44 = vshll.u32 %v16142_v27, 16  ;;  %v8824_v6 = vld [vmem:[#allocation3 + $0x30] sm:$0xf]  ;;  %v8904_v49 = vshrl.u32 %v16142_v27, 16  ;;  %v16162_v12 = vld [vmem:[#allocation3 + $0x34] sm:$0xf] }
 0x367   : > { %v8879_v23 = vsel %vm15340_vm1, %v8874_v45, %v8878_v37  ;;  %v16159_v34 = vsel %vm15381_vm4, %v9640_v13, %v9641_v52  ;;  %v8893_v0 = vrot.slane %v8891_v20, 4  ;;  %v8896_v24 = vrot.slane %v8894_v7, 5  ;;  %v16173_v13 = vld [vmem:[#allocation3 + $0x38] sm:$0x1]  ;;  %v5427_v7 = vpop.f32.mrf.mxu0 }
 0x368   : > { %v11250_v15 = vpop.f32.mrf.mxu1  ;;  %v8884_v1 = vrot.slane %v8883_v25, 4  ;;  %v17606_v25 = vcombine.low %v16003_v26, %v16022_v30  ;;  %v8902_v45 = vrot.slane %v8900_v44, 5  ;;  %v8910_v52 = vshll.u32 %v16151_v10, 16 }
 0x369   : > { %v6262_v29 = vadd.f32 %v11250_v15, %v15715_v61  ;;  %v17607_v15 = vcombine.low %v16026_v43, %v16034_v38  ;;  %v8897_v30 = vor.u32 %v8896_v24, %v8893_v0  ;;  %v8906_v20 = vrot.slane %v8904_v49, 4 }
 0x36a   : > { %v6133_v4 = vpop.f32.mrf.mxu1  ;;  %v8889_v61 = vsel %vm15340_vm1, %v8884_v1, %v8888_v14  ;;  %v16183_v14 = vadd.f32 %v16125_v36, %v11223_v62  ;;  %v8912_v44 = vrot.slane %v8910_v52, 5  ;;  %v8918_v37 = vshll.u32 %v8824_v6, 16 }
 0x36b   : > { %11425 = vmatmul.mubr.msk.bf16.gmra.mxu1 %vm5293_vm14, %v17606_v25  ;;  %11461 = vmatmul.mubr.msk.bf16.gmra.mxu0 %vm5293_vm14, %v12370_v3  ;;  %v16180_v26 = vcombine.low %v8879_v23, %v8889_v61  ;;  %v8915_v25 = vshrl.u32 %v8824_v6, 16  ;;  %v8924_v3 = vshll.u32 %v16162_v12, 16  ;;  %v8898_v21 = vrot.slane %v8897_v30, 4  ;;  %v9573_v61 = vld [vmem:[#allocation3 + $0x24] sm:$0xe] }
 0x36c   : > { %11428 = vmatprep.mubr.msk.bf16.mxu1 %vm5293_vm14, %v17607_v15  ;;  %v11251_v1 = vpop.f32.mrf.mxu1  ;;  %11464 = vmatprep.mubr.msk.bf16.mxu0 %vm5293_vm14, %v12371_v39  ;;  %v8907_v43 = vor.u32 %v8906_v20, %v8902_v45  ;;  %v8928_v38 = vshrl.u32 %v16162_v12, 16  ;;  %v8934_v23 = vshll.u32 %v16173_v13, 16  ;;  %v8920_v49 = vrot.slane %v8918_v37, 5  ;;  %v9574_v37 = vld [vmem:[#allocation3 + $0x30] sm:$0xe] }
 0x36d   : > { %v8917_v24 = vrot.slane %v8915_v25, 4  ;;  %v8926_v0 = vrot.slane %v8924_v3, 5  ;;  %v6260_v62 = vadd.f32 %v6133_v4, %v15725_v19  ;;  %v8903_v39 = vsel %vm15340_vm1, %v8898_v21, %v8902_v45  ;;  %v12374_v3 = vld [vmem:[#allocation3 + $0x84] sm:$0xff]  }
 0x36e   : > { %v8908_v52 = vrot.slane %v8907_v43, 4  ;;  %v8930_v15 = vrot.slane %v8928_v38, 4  ;;  %v8936_v6 = vrot.slane %v8934_v23, 5  ;;  %v6136_v60 = vpop.f32.mrf.mxu1  ;;  %v16193_v20 = vadd.f32 %v16125_v36, %v5427_v7  ;;  %v12375_v38 = vld [vmem:[#allocation3 + $0x90] sm:$0xff]  }
 0x36f   : > { %v8921_v30 = vor.u32 %v8920_v49, %v8917_v24  ;;  %v6263_v2 = vadd.f32 %v11251_v1, %v15735_v47  ;;  %v10687_v21 = vrot.slane %v9573_v61, 9  ;;  %v9645_v45 = vrot.slane %v16142_v27, 5  ;;  %v8827_v1 = vld [vmem:[#allocation3 + $0x3c] sm:$0xf] }
 0x370   : > { %v11290_v55 = vpop.f32.mrf.mxu0  ;;  %v8913_v19 = vsel %vm15340_vm1, %v8908_v52, %v8912_v44  ;;  %v8931_v4 = vor.u32 %v8930_v15, %v8926_v0  ;;  %v17608_v23 = vcombine.low %v16052_v31, %v16068_v33  ;;  %v17610_v27 = vcombine.low %v16061_v41, %v16076_v56  ;;  %v16225_v56 = vld [vmem:[#allocation3 + $0x40] sm:$0xf]  ;;  %v16233_v15 = vld [vmem:[#allocation3 + $0x44] sm:$0x1] }
 0x371   : > { %v16196_v25 = vadd.f32 %v11290_v55, %v6262_v29  ;;  %v16205_v36 = vcombine.low %v8903_v39, %v8913_v19  ;;  %v8922_v47 = vrot.slane %v8921_v30, 4  ;;  %v9648_v55 = vrot.slane %v16151_v10, 5  ;;  %v17609_v29 = vld [vmem:[#allocation22_spill] sm:$0xff] }
 0x372   : > { %v6634_v43 = vpop.f32.mrf.mxu0  ;;  %v6261_v7 = vadd.f32 %v6136_v60, %v17609_v29  ;;  %v8932_v44 = vrot.slane %v8931_v4, 4  ;;  %v16216_v31 = vsel %vm15381_vm4, %v10687_v21, %v9645_v45  ;;  %v9647_v33 = vrot.slane %v9645_v45, 4  ;;  %v12376_v29 = vld [vmem:[#allocation3 + $0x9c] sm:$0xff]  }
 0x373   : > { %11429 = vmatmul.mubr.msk.bf16.gmra.mxu1 %vm5293_vm14, %v17608_v23  ;;  %11465 = vmatmul.mubr.msk.bf16.gmra.mxu0 %vm5293_vm14, %v12374_v3  ;;  %v10688_v24 = vrot.slane %v9574_v37, 9  ;;  %v8927_v60 = vsel %vm15340_vm1, %v8922_v47, %v8926_v0  ;;  %v9652_v10 = vrot.slane %v16162_v12, 5  ;;  %v9655_v61 = vrot.slane %v16173_v13, 5  ;;  %v8830_v0 = vld [vmem:[#allocation3 + $0x48] sm:$0xf] }
 0x374   : > { %11432 = vmatprep.mubr.msk.bf16.mxu1 %vm5293_vm14, %v17610_v27  ;;  %v11291_v49 = vpop.f32.mrf.mxu0  ;;  %11468 = vmatprep.mubr.msk.bf16.mxu0 %vm5293_vm14, %v12375_v38  ;;  %v16223_v41 = vadd.f32 %v6634_v43, %v6260_v62  ;;  %v8937_v39 = vsel %vm15340_vm1, %v8932_v44, %v8936_v6  ;;  %v16231_v52 = vsel %vm15381_vm4, %v9647_v33, %v9648_v55  ;;  %v8939_v30 = vshrl.u32 %v8827_v1, 16  ;;  %v16252_v47 = vld [vmem:[#allocation3 + $0x4c] sm:$0xf] }
 0x375   : > { %v8942_v37 = vshll.u32 %v8827_v1, 16  ;;  %v16235_v3 = vcombine.low %v8927_v60, %v8937_v39  ;;  %v16241_v13 = vsel %vm15381_vm4, %v10688_v24, %v9652_v10  ;;  %v9654_v62 = vrot.slane %v9652_v10, 4  ;;  %v16256_v60 = vld [vmem:[#allocation3 + $0x50] sm:$0x1]  ;;  %v12377_v10 = vld [vmem:[#allocation3 + $0xa8] sm:$0xff]  }
 0x376   : > { %v6637_v6 = vpop.f32.mrf.mxu0  ;;  %v8941_v19 = vrot.slane %v8939_v30, 4  ;;  %v8948_v21 = vshll.u32 %v16225_v56, 16  ;;  %v8952_v45 = vshrl.u32 %v16225_v56, 16  ;;  %v8958_v38 = vshll.u32 %v16233_v15, 16  ;;  %v9576_v1 = vld [vmem:[#allocation3 + $0x48] sm:$0xe] }
 0x377   : > { %v8944_v4 = vrot.slane %v8942_v37, 5  ;;  %v16247_v43 = vsel %vm15381_vm4, %v9654_v62, %v9655_v61  ;;  %v16250_v23 = vadd.f32 %v11291_v49, %v6263_v2  ;;  %v8963_v55 = vshrl.u32 %v8830_v0, 16 }
 0x378   : > { %v8950_v33 = vrot.slane %v8948_v21, 5  ;;  %v8954_v24 = vrot.slane %v8952_v45, 4  ;;  %v17611_v61 = vcombine.low %v16080_v59, %v16093_v32  ;;  %v8960_v49 = vrot.slane %v8958_v38, 5 }
 0x379   : > { %v11254_v27 = vpop.f32.mrf.mxu1  ;;  %v8945_v44 = vor.u32 %v8944_v4, %v8941_v19  ;;  %v8965_v39 = vrot.slane %v8963_v55, 4  ;;  %v8966_v30 = vshll.u32 %v8830_v0, 16  ;;  %v17612_v62 = vcombine.low %v16086_v17, %v16101_v53  ;;  %v9575_v55 = vld [vmem:[#allocation3 + $0x3c] sm:$0xe] }
 0x37a   : > { %v6266_v2 = vadd.f32 %v11254_v27, %v15859_v5  ;;  %v11294_v37 = vpop.f32.mrf.mxu0  ;;  %v8955_v4 = vor.u32 %v8954_v24, %v8950_v33  ;;  %v8972_v21 = vshll.u32 %v16252_v47, 16  ;;  %v8976_v59 = vshrl.u32 %v16252_v47, 16 }
 0x37b   : > { %11433 = vmatmul.mubr.msk.bf16.gmra.mxu1 %vm5293_vm14, %v17611_v61  ;;  %11469 = vmatmul.mubr.msk.bf16.gmra.mxu0 %vm5293_vm14, %v12376_v29  ;;  %v8946_v19 = vrot.slane %v8945_v44, 4  ;;  %v6149_v32 = vpop.f32.mrf.mxu1  ;;  %v8968_v5 = vrot.slane %v8966_v30, 5  ;;  %v8982_v0 = vshll.u32 %v16256_v60, 16  ;;  %v16273_v38 = vadd.f32 %v6637_v6, %v6261_v7 }
 0x37c   : > { %11436 = vmatprep.mubr.msk.bf16.mxu1 %vm5293_vm14, %v17612_v62  ;;  %11472 = vmatprep.mubr.msk.bf16.mxu0 %vm5293_vm14, %v12377_v10  ;;  %v6264_v45 = vadd.f32 %v6149_v32, %v15877_v42  ;;  %v6650_v17 = vpop.f32.mrf.mxu0  ;;  %v8956_v29 = vrot.slane %v8955_v4, 4  ;;  %v8974_v27 = vrot.slane %v8972_v21, 5  ;;  %v8978_v44 = vrot.slane %v8976_v59, 4 }
 0x37d   : > { %v8951_v53 = vsel %vm15340_vm1, %v8946_v19, %v8950_v33  ;;  %v11255_v24 = vpop.f32.mrf.mxu1  ;;  %v8969_v61 = vor.u32 %v8968_v5, %v8965_v39  ;;  %v8984_v62 = vrot.slane %v8982_v0, 5  ;;  %v16278_v30 = vadd.f32 %v11294_v37, %v6266_v2  ;;  %v12380_v2 = vld [vmem:[#allocation3 + $0xb4] sm:$0xff]  }
 0x37e   : > { %v6267_v10 = vadd.f32 %v11255_v24, %v15882_v8  ;;  %v11295_v12 = vpop.f32.mrf.mxu0  ;;  %v8961_v42 = vsel %vm15340_vm1, %v8956_v29, %v8960_v49  ;;  %v8979_v7 = vor.u32 %v8978_v44, %v8974_v27  ;;  %v10689_v6 = vrot.slane %v9575_v55, 9  ;;  %v8833_v8 = vld [vmem:[#allocation3 + $0x54] sm:$0xf]  ;;  %v16305_v44 = vld [vmem:[#allocation3 + $0x58] sm:$0xf] }
 0x37f   : > { %v9659_v32 = vrot.slane %v16225_v56, 5  ;;  %v6152_v33 = vpop.f32.mrf.mxu1  ;;  %v16283_v19 = vcombine.low %v8951_v53, %v8961_v42  ;;  %v8970_v4 = vrot.slane %v8969_v61, 4  ;;  %v9662_v39 = vrot.slane %v16233_v15, 5  ;;  %v12381_v56 = vld [vmem:[#allocation3 + $0xc0] sm:$0xff]  }
 0x380   : > { %v16287_v21 = vadd.f32 %v6152_v33, %v15893_v48  ;;  %v8980_v37 = vrot.slane %v8979_v7, 4  ;;  %v10690_v5 = vrot.slane %v9576_v1, 9  ;;  %v16293_v0 = vpop.f32.mrf.mxu0  ;;  %v17613_v55 = vcombine.low %v16107_v11, %v16120_v51  ;;  %v16316_v1 = vld [vmem:[#allocation3 + $0x5c] sm:$0x1]  ;;  %v8836_v24 = vld [vmem:[#allocation3 + $0x60] sm:$0xf] }
 0x381   : > { %v16291_v59 = vsel %vm15381_vm4, %v10689_v6, %v9659_v32  ;;  %v9661_v49 = vrot.slane %v9659_v32, 4  ;;  %v8975_v48 = vsel %vm15340_vm1, %v8970_v4, %v8974_v27  ;;  %v9666_v15 = vrot.slane %v16252_v47, 5  ;;  %v16329_v32 = vld [vmem:[#allocation3 + $0x64] sm:$0xf] }
 0x382   : > { %v9669_v53 = vrot.slane %v16256_v60, 5  ;;  %v16303_v29 = vadd.f32 %v6650_v17, %v6264_v45  ;;  %v8985_v11 = vsel %vm15340_vm1, %v8980_v37, %v8984_v62  ;;  %v8987_v47 = vshrl.u32 %v8833_v8, 16  ;;  %v16339_v37 = vld [vmem:[#allocation3 + $0x68] sm:$0x1] }
 0x383   : > { %11437 = vmatmul.mubr.msk.bf16.gmra.mxu1 %vm5293_vm14, %v17613_v55  ;;  %11473 = vmatmul.mubr.msk.bf16.gmra.mxu0 %vm5293_vm14, %v12380_v2  ;;  %v16314_v51 = vsel %vm15381_vm4, %v9661_v49, %v9662_v39  ;;  %v8990_v60 = vshll.u32 %v8833_v8, 16  ;;  %v16319_v45 = vcombine.low %v8975_v48, %v8985_v11  ;;  %v9668_v27 = vrot.slane %v9666_v15, 4  ;;  %v12382_v49 = vld [vmem:[#allocation3 + $0xcc] sm:$0xff]  }
 0x384   : > { %17614 = vst [vmem:[#allocation27_spill] sm:$0xff] %v16303_v29  ;;  %11488 = vmatprep.mubr.msk.bf16.mxu1 %vm5293_vm14, %v16180_v26  ;;  %11476 = vmatprep.mubr.msk.bf16.mxu0 %vm5293_vm14, %v12381_v56  ;;  %v16325_v26 = vsel %vm15381_vm4, %v10690_v5, %v9666_v15  ;;  %v8989_v62 = vrot.slane %v8987_v47, 4  ;;  %v8996_v7 = vshll.u32 %v16305_v44, 16  ;;  %v9000_v6 = vshrl.u32 %v16305_v44, 16 }
 0x385   : > { %v11258_v61 = vpop.f32.mrf.mxu1  ;;  %v8992_v42 = vrot.slane %v8990_v60, 5  ;;  %v16333_v4 = vsel %vm15381_vm4, %v9668_v27, %v9669_v53  ;;  %v9006_v8 = vshll.u32 %v16316_v1, 16  ;;  %v16337_v2 = vadd.f32 %v11295_v12, %v6267_v10 }
 0x386   : > { %v11298_v33 = vpop.f32.mrf.mxu0  ;;  %v6270_v39 = vadd.f32 %v11258_v61, %v16012_v63  ;;  %v8998_v55 = vrot.slane %v8996_v7, 5  ;;  %v9002_v48 = vrot.slane %v9000_v6, 4  ;;  %v9011_v53 = vshrl.u32 %v8836_v24, 16 }
 0x387   : > { %17615 = vst [vmem:[#allocation10_spill] sm:$0xff] %v16337_v2  ;;  %v8993_v56 = vor.u32 %v8992_v42, %v8989_v62  ;;  %v6165_v15 = vpop.f32.mrf.mxu1  ;;  %v9008_v47 = vrot.slane %v9006_v8, 5  ;;  %v9014_v60 = vshll.u32 %v8836_v24, 16  ;;  %v9020_v63 = vshll.u32 %v16329_v32, 16  ;;  %v9577_v8 = vld [vmem:[#allocation3 + $0x54] sm:$0xe] }
 0x388   : > { %v6666_v11 = vpop.f32.mrf.mxu0  ;;  %v9003_v61 = vor.u32 %v9002_v48, %v8998_v55  ;;  %v9024_v12 = vshrl.u32 %v16329_v32, 16  ;;  %v9030_v10 = vshll.u32 %v16339_v37, 16  ;;  %v9013_v62 = vrot.slane %v9011_v53, 4  ;;  %v9578_v53 = vld [vmem:[#allocation3 + $0x60] sm:$0xe] }
 0x389   : > { %v8994_v27 = vrot.slane %v8993_v56, 4  ;;  %v11259_v17 = vpop.f32.mrf.mxu1  ;;  %v9016_v42 = vrot.slane %v9014_v60, 5  ;;  %v9022_v7 = vrot.slane %v9020_v63, 5  ;;  %v6268_v6 = vadd.f32 %v6165_v15, %v16015_v54 }
 0x38a   : > { %v11299_v5 = vpop.f32.mrf.mxu0  ;;  %v9004_v56 = vrot.slane %v9003_v61, 4  ;;  %v9026_v48 = vrot.slane %v9024_v12, 4  ;;  %v9032_v2 = vrot.slane %v9030_v10, 5  ;;  %v16360_v15 = vadd.f32 %v16293_v0, %v16287_v21  ;;  %v8839_v0 = vld [vmem:[#allocation3 + $0x6c] sm:$0xf] }
 0x38b   : > { %11489 = vmatmul.mubr.msk.bf16.vlgmr.msra.gmra.mxu1 %vm5293_vm14, %v16205_v36  ;;  %11477 = vmatmul.mubr.msk.bf16.gmra.mxu0 %vm5293_vm14, %v12382_v49  ;;  %v8999_v24 = vsel %vm15340_vm1, %v8994_v27, %v8998_v55  ;;  %v6168_v29 = vpop.f32.mrf.mxu1  ;;  %v17616_v36 = vcombine.low %v16149_v58, %v16159_v34  ;;  %v9017_v54 = vor.u32 %v9016_v42, %v9013_v62  ;;  %v10691_v63 = vrot.slane %v9577_v8, 9 }
 0x38c   : > { %11492 = vmatprep.mubr.msk.bf16.mxu1 %vm5293_vm14, %v16235_v3  ;;  %v6271_v49 = vadd.f32 %v11259_v17, %v16018_v28  ;;  %v16363_v3 = vadd.f32 %v11298_v33, %v6270_v39  ;;  %v9009_v55 = vsel %vm15340_vm1, %v9004_v56, %v9008_v47  ;;  %v9027_v60 = vor.u32 %v9026_v48, %v9022_v7  ;;  %v6669_v12 = vpop.f32.mrf.mxu0 }
 0x38d   : > { %11528 = vmatprep.mubr.msk.bf16.mxu0 %vm5293_vm14, %v17616_v36  ;;  %v9673_v27 = vrot.slane %v16305_v44, 5  ;;  %v16368_v58 = vcombine.low %v8999_v24, %v9009_v55  ;;  %v9018_v34 = vrot.slane %v9017_v54, 4  ;;  %v9676_v61 = vrot.slane %v16316_v1, 5  ;;  %v16391_v24 = vld [vmem:[#allocation3 + $0x74] sm:$0x1] }
 0x38e   : > { %v6269_v21 = vadd.f32 %v6168_v29, %v16039_v16  ;;  %v9028_v28 = vrot.slane %v9027_v60, 4  ;;  %v10692_v39 = vrot.slane %v9578_v53, 9  ;;  %v9680_v44 = vrot.slane %v16329_v32, 5  ;;  %v16382_v16 = vld [vmem:[#allocation3 + $0x70] sm:$0xf] }
 0x38f   : > { %v16374_v17 = vsel %vm15381_vm4, %v10691_v63, %v9673_v27  ;;  %v9675_v33 = vrot.slane %v9673_v27, 4  ;;  %v9023_v47 = vsel %vm15340_vm1, %v9018_v34, %v9022_v7  ;;  %v9683_v10 = vrot.slane %v16339_v37, 5  ;;  %v8842_v32 = vld [vmem:[#allocation3 + $0x78] sm:$0xf]  ;;  %v16409_v55 = vld [vmem:[#allocation3 + $0x7c] sm:$0xf] }
 0x390   : > { %v16380_v62 = vadd.f32 %v6666_v11, %v6268_v6  ;;  %v11262_v1 = vpop.f32.mrf.mxu1  ;;  %v9033_v29 = vsel %vm15340_vm1, %v9028_v28, %v9032_v2  ;;  %v9035_v7 = vshrl.u32 %v8839_v0, 16  ;;  %v16399_v2 = vsel %vm15381_vm4, %v10692_v39, %v9680_v44  ;;  %v16422_v63 = vld [vmem:[#allocation3 + $0x80] sm:$0x1] }
 0x391   : > { %v16388_v42 = vsel %vm15381_vm4, %v9675_v33, %v9676_v61  ;;  %v6274_v8 = vadd.f32 %v11262_v1, %v16137_v46  ;;  %v10656_v37 = vcombine.low %v9023_v47, %v9033_v29  ;;  %v9682_v6 = vrot.slane %v9680_v44, 4 }
 0x392   : > { %v10715_v11 = vcombine.low %v16374_v17, %v16388_v42  ;;  %v6181_v56 = vpop.f32.mrf.mxu1  ;;  %v17617_v46 = vcombine.low %v16216_v31, %v16231_v52  ;;  %v9038_v36 = vshll.u32 %v8839_v0, 16  ;;  %v9044_v54 = vshll.u32 %v16382_v16, 16 }
 0x393   : > { %11493 = vmatmul.mubr.msk.bf16.gmra.mxu1 %vm5293_vm14, %v16283_v19  ;;  %v11302_v48 = vpop.f32.mrf.mxu0  ;;  %v9037_v19 = vrot.slane %v9035_v7, 4  ;;  %v9048_v53 = vshrl.u32 %v16382_v16, 16  ;;  %v17618_v60 = vcombine.low %v16241_v13, %v16247_v43  ;;  %v16417_v31 = vsel %vm15381_vm4, %v9682_v6, %v9683_v10  ;;  %v9579_v7 = vld [vmem:[#allocation3 + $0x6c] sm:$0xe] }
 0x394   : > { %11529 = vmatmul.mubr.msk.bf16.vlgmr.msra.gmra.mxu0 %vm5293_vm14, %v17617_v46  ;;  %11496 = vmatprep.mubr.msk.bf16.mxu1 %vm5293_vm14, %v16319_v45  ;;  %v9054_v52 = vshll.u32 %v16391_v24, 16  ;;  %v16420_v45 = vadd.f32 %v11299_v5, %v6271_v49  ;;  %v9059_v27 = vshrl.u32 %v8842_v32, 16  ;;  %v9040_v0 = vrot.slane %v9038_v36, 5  ;;  %v11263_v43 = vpop.f32.mrf.mxu1 }
 0x395   : > { %11532 = vmatprep.mubr.msk.bf16.mxu0 %vm5293_vm14, %v17618_v60  ;;  %v6682_v34 = vpop.f32.mrf.mxu0  ;;  %v9046_v28 = vrot.slane %v9044_v54, 5  ;;  %v9050_v13 = vrot.slane %v9048_v53, 4  ;;  %v9062_v47 = vshll.u32 %v8842_v32, 16  ;;  %v9068_v44 = vshll.u32 %v16409_v55, 16 }
 0x396   : > { %v9056_v33 = vrot.slane %v9054_v52, 5  ;;  %v9061_v39 = vrot.slane %v9059_v27, 4  ;;  %v9041_v5 = vor.u32 %v9040_v0, %v9037_v19  ;;  %v9072_v1 = vshrl.u32 %v16409_v55, 16  ;;  %v6184_v27 = vpop.f32.mrf.mxu1 }
 0x397   : > { %v16427_v10 = vpop.f32.mrf.mxu0  ;;  %v9051_v49 = vor.u32 %v9050_v13, %v9046_v28  ;;  %v9078_v29 = vshll.u32 %v16422_v63, 16  ;;  %v9064_v6 = vrot.slane %v9062_v47, 5  ;;  %v9070_v46 = vrot.slane %v9068_v44, 5  ;;  %v9580_v47 = vld [vmem:[#allocation3 + $0x78] sm:$0xe] }
 0x398   : > { %v6272_v36 = vadd.f32 %v6181_v56, %v16145_v18  ;;  %v16432_v54 = vadd.f32 %v6669_v12, %v6269_v21  ;;  %v9042_v53 = vrot.slane %v9041_v5, 4  ;;  %v9074_v32 = vrot.slane %v9072_v1, 4 }
 0x399   : > { %v9052_v60 = vrot.slane %v9051_v49, 4  ;;  %v9080_v52 = vrot.slane %v9078_v29, 5  ;;  %v9065_v19 = vor.u32 %v9064_v6, %v9061_v39  ;;  %v6275_v0 = vadd.f32 %v11263_v43, %v16183_v14  ;;  %v16439_v44 = vpop.f32.mrf.mxu0  ;;  %v17621_v29 = vld [vmem:[#allocation31_spill] sm:$0xff]  ;;  %v16476_v6 = vld [vmem:[#allocation3 + $0x8c] sm:$0x1] }
 0x39a   : > { %v16437_v13 = vadd.f32 %v11302_v48, %v6274_v8  ;;  %v10693_v61 = vrot.slane %v9579_v7, 9  ;;  %v17619_v18 = vcombine.low %v16291_v59, %v16314_v51  ;;  %v9047_v21 = vsel %vm15340_vm1, %v9042_v53, %v9046_v28  ;;  %v8845_v48 = vld [vmem:[#allocation3 + $0x84] sm:$0xf] }
 0x39b   : > { %11497 = vmatmul.mubr.msk.bf16.gmra.mxu1 %vm5293_vm14, %v16368_v58  ;;  %v9057_v58 = vsel %vm15340_vm1, %v9052_v60, %v9056_v33  ;;  %v9075_v14 = vor.u32 %v9074_v32, %v9070_v46  ;;  %v9687_v12 = vrot.slane %v16382_v16, 5  ;;  %v17620_v8 = vcombine.low %v16325_v26, %v16333_v4 }
 0x39c   : > { %11533 = vmatmul.mubr.msk.bf16.gmra.mxu0 %vm5293_vm14, %v17619_v18  ;;  %11500 = vmatprep.mubr.msk.bf16.mxu1 %vm5293_vm14, %v10656_v37  ;;  %v10657_v56 = vcombine.low %v9047_v21, %v9057_v58  ;;  %v9066_v59 = vrot.slane %v9065_v19, 4  ;;  %v9690_v51 = vrot.slane %v16391_v24, 5  ;;  %v6273_v37 = vadd.f32 %v6184_v27, %v16193_v20  ;;  %v16467_v24 = vld [vmem:[#allocation3 + $0x88] sm:$0xf]  ;;  %v16488_v18 = vld [vmem:[#allocation3 + $0x94] sm:$0xf] }
 0x39d   : > { %11536 = vmatprep.mubr.msk.bf16.mxu0 %vm5293_vm14, %v17620_v8  ;;  %v9076_v43 = vrot.slane %v9075_v14, 4  ;;  %v16459_v28 = vsel %vm15381_vm4, %v10693_v61, %v9687_v12  ;;  %v9689_v33 = vrot.slane %v9687_v12, 4  ;;  %v10694_v39 = vrot.slane %v9580_v47, 9  ;;  %v11266_v16 = vpop.f32.mrf.mxu1  ;;  %v16497_v8 = vld [vmem:[#allocation3 + $0x98] sm:$0x1] }
 0x39e   : > { %v9071_v26 = vsel %vm15340_vm1, %v9066_v59, %v9070_v46  ;;  %v9694_v4 = vrot.slane %v16409_v55, 5  ;;  %v9697_v5 = vrot.slane %v16422_v63, 5  ;;  %v16465_v49 = vadd.f32 %v6682_v34, %v6272_v36  ;;  %v11306_v20 = vpop.f32.mrf.mxu0  ;;  %v8848_v55 = vld [vmem:[#allocation3 + $0x90] sm:$0xf] }
 0x39f   : > { %v9081_v1 = vsel %vm15340_vm1, %v9076_v43, %v9080_v52  ;;  %v16473_v61 = vsel %vm15381_vm4, %v9689_v33, %v9690_v51  ;;  %v6278_v7 = vadd.f32 %v11266_v16, %v17621_v29  ;;  %v9083_v46 = vshrl.u32 %v8845_v48, 16  ;;  %v6197_v53 = vpop.f32.mrf.mxu1 }
 0x3a0   : > { %v10658_v63 = vcombine.low %v9071_v26, %v9081_v1  ;;  %v10717_v34 = vcombine.low %v16459_v28, %v16473_v61  ;;  %v16482_v36 = vsel %vm15381_vm4, %v10694_v39, %v9694_v4  ;;  %v9696_v60 = vrot.slane %v9694_v4, 4  ;;  %v16484_v32 = vpop.f32.mrf.mxu0 }
 0x3a1   : > { %v9085_v52 = vrot.slane %v9083_v46, 4  ;;  %v9086_v27 = vshll.u32 %v8845_v48, 16  ;;  %v9092_v19 = vshll.u32 %v16467_v24, 16  ;;  %v9096_v47 = vshrl.u32 %v16467_v24, 16  ;;  %v11267_v21 = vpop.f32.mrf.mxu1 }
 0x3a2   : > { %v9698_v58 = vsel %vm15381_vm4, %v9696_v60, %v9697_v5  ;;  %v9102_v14 = vshll.u32 %v16476_v6, 16  ;;  %v16495_v12 = vadd.f32 %v16427_v10, %v6275_v0  ;;  %v9107_v59 = vshrl.u32 %v8848_v55, 16  ;;  %v16499_v51 = vpop.f32.mrf.mxu0  ;;  %v9581_v5 = vld [vmem:[#allocation3 + $0x84] sm:$0xe] }
 0x3a3   : > { %11501 = vmatmul.mubr.msk.bf16.gmra.mxu1 %vm5293_vm14, %v10657_v56  ;;  %v10718_v56 = vcombine.low %v16482_v36, %v9698_v58  ;;  %v9088_v48 = vrot.slane %v9086_v27, 5  ;;  %v9094_v43 = vrot.slane %v9092_v19, 5  ;;  %v9098_v28 = vrot.slane %v9096_v47, 4  ;;  %v6200_v17 = vpop.f32.mrf.mxu1  ;;  %v17624_v27 = vld [vmem:[#allocation17_spill] sm:$0xff] }
 0x3a4   : > { %11537 = vmatmul.mubr.msk.bf16.gmra.mxu0 %vm5293_vm14, %v10715_v11  ;;  %11504 = vmatprep.mubr.msk.bf16.mxu1 %vm5293_vm14, %v10658_v63  ;;  %v17622_v10 = vcombine.low %v16399_v2, %v16417_v31  ;;  %v9104_v0 = vrot.slane %v9102_v14, 5  ;;  %v9109_v33 = vrot.slane %v9107_v59, 4  ;;  %v9110_v39 = vshll.u32 %v8848_v55, 16  ;;  %v16514_v1 = vpop.f32.mrf.mxu0  ;;  %v17623_v2 = vld [vmem:[#allocation9_spill] sm:$0xff]  ;;  %v9582_v14 = vld [vmem:[#allocation3 + $0x90] sm:$0xe] }
 0x3a5   : > { %v9116_v16 = vshll.u32 %v16488_v18, 16  ;;  %v9089_v42 = vor.u32 %v9088_v48, %v9085_v52  ;;  %v9099_v11 = vor.u32 %v9098_v28, %v9094_v43  ;;  %v9120_v26 = vshrl.u32 %v16488_v18, 16 }
 0x3a6   : > { %11540 = vmatprep.mubr.msk.bf16.mxu0 %vm5293_vm14, %v17622_v10  ;;  %v9126_v4 = vshll.u32 %v16497_v8, 16  ;;  %v9112_v61 = vrot.slane %v9110_v39, 5  ;;  %v6276_v31 = vadd.f32 %v6197_v53, %v17623_v2  ;;  %v16518_v46 = vadd.f32 %v16439_v44, %v6273_v37  ;;  %v8851_v39 = vld [vmem:[#allocation3 + $0x9c] sm:$0xf]  ;;  %v17626_v2 = vld [vmem:[#allocation39_spill] sm:$0xff] }
 0x3a7   : > { %v9118_v29 = vrot.slane %v9116_v16, 5  ;;  %v9090_v55 = vrot.slane %v9089_v42, 4  ;;  %v9100_v63 = vrot.slane %v9099_v11, 4  ;;  %v9122_v36 = vrot.slane %v9120_v26, 4 }
 0x3a8   : > { %v9128_v60 = vrot.slane %v9126_v4, 5  ;;  %v9113_v52 = vor.u32 %v9112_v61, %v9109_v33  ;;  %v6279_v19 = vadd.f32 %v11267_v21, %v17624_v27  ;;  %v16521_v47 = vadd.f32 %v11306_v20, %v6278_v7  ;;  %v17625_v20 = vld [vmem:[#allocation40_spill] sm:$0xff]  ;;  %v16546_v4 = vld [vmem:[#allocation3 + $0xa0] sm:$0xf] }
 0x3a9   : > { %v10695_v58 = vrot.slane %v9581_v5, 9  ;;  %v11270_v59 = vpop.f32.mrf.mxu1  ;;  %v9095_v48 = vsel %vm15340_vm1, %v9090_v55, %v9094_v43  ;;  %v9105_v53 = vsel %vm15340_vm1, %v9100_v63, %v9104_v0  ;;  %v9123_v44 = vor.u32 %v9122_v36, %v9118_v29  ;;  %v16553_v63 = vld [vmem:[#allocation3 + $0xa4] sm:$0x1] }
 0x3aa   : > { %v9701_v37 = vrot.slane %v16467_v24, 5  ;;  %v16528_v28 = vpop.f32.mrf.mxu0  ;;  %v10659_v10 = vcombine.low %v9095_v48, %v9105_v53  ;;  %v9114_v33 = vrot.slane %v9113_v52, 4  ;;  %v9704_v21 = vrot.slane %v16476_v6, 5  ;;  %v16561_v48 = vld [vmem:[#allocation3 + $0xac] sm:$0xf] }
 0x3ab   : > { %v6277_v7 = vadd.f32 %v6200_v17, %v17625_v20  ;;  %v6213_v16 = vpop.f32.mrf.mxu1  ;;  %v9124_v42 = vrot.slane %v9123_v44, 4  ;;  %v10696_v11 = vrot.slane %v9582_v14, 9  ;;  %v9708_v6 = vrot.slane %v16488_v18, 5  ;;  %v8854_v18 = vld [vmem:[#allocation3 + $0xa8] sm:$0xf] }
 0x3ac   : > { %11541 = vmatmul.mubr.msk.bf16.gmra.mxu0 %vm5293_vm14, %v10717_v34  ;;  %v9702_v43 = vsel %vm15381_vm4, %v10695_v58, %v9701_v37  ;;  %v9703_v0 = vrot.slane %v9701_v37, 4  ;;  %v16535_v26 = vpop.f32.mrf.mxu0  ;;  %11505 = vmatmul.mubr.msk.bf16.gmra.mxu1 %vm5293_vm14, %v10659_v10  ;;  %v9119_v24 = vsel %vm15340_vm1, %v9114_v33, %v9118_v29  ;;  %v9711_v17 = vrot.slane %v16497_v8, 5  ;;  %v16570_v37 = vld [vmem:[#allocation3 + $0xb0] sm:$0x1] }
 0x3ad   : > { %11544 = vmatprep.mubr.msk.bf16.mxu0 %vm5293_vm14, %v10718_v56  ;;  %v16544_v34 = vadd.f32 %v16484_v32, %v6276_v31  ;;  %v11271_v5 = vpop.f32.mrf.mxu1  ;;  %v9129_v61 = vsel %vm15340_vm1, %v9124_v42, %v9128_v60  ;;  %v6282_v55 = vadd.f32 %v11270_v59, %v17626_v2  ;;  %v9131_v29 = vshrl.u32 %v8851_v39, 16 }
 0x3ae   : > { %v9705_v56 = vsel %vm15381_vm4, %v9703_v0, %v9704_v21  ;;  %v10660_v36 = vcombine.low %v9119_v24, %v9129_v61  ;;  %v9709_v32 = vsel %vm15381_vm4, %v10696_v11, %v9708_v6  ;;  %v9710_v31 = vrot.slane %v9708_v6, 4  ;;  %v16557_v52 = vpop.f32.mrf.mxu0 }
 0x3af   : > { %v10719_v8 = vcombine.low %v9702_v43, %v9705_v56  ;;  %v9133_v27 = vrot.slane %v9131_v29, 4  ;;  %v9134_v58 = vshll.u32 %v8851_v39, 16  ;;  %v9140_v60 = vshll.u32 %v16546_v4, 16  ;;  %v6216_v33 = vpop.f32.mrf.mxu1  ;;  %v9583_v56 = vld [vmem:[#allocation3 + $0x9c] sm:$0xe] }
 0x3b0   : > { %v9144_v14 = vshrl.u32 %v16546_v4, 16  ;;  %11508 = vmatprep.mubr.msk.bf16.mxu1 %vm5293_vm14, %v10660_v36  ;;  %v9712_v59 = vsel %vm15381_vm4, %v9710_v31, %v9711_v17  ;;  %v9150_v53 = vshll.u32 %v16553_v63, 16  ;;  %v16568_v44 = vadd.f32 %v16499_v51, %v6279_v19  ;;  %v16573_v6 = vpop.f32.mrf.mxu0  ;;  %v17627_v36 = vld [vmem:[#allocation72_spill] sm:$0xff] }
 0x3b1   : > { %v9155_v10 = vshrl.u32 %v8854_v18, 16  ;;  %v10720_v21 = vcombine.low %v9709_v32, %v9712_v59  ;;  %v9136_v20 = vrot.slane %v9134_v58, 5  ;;  %v9142_v39 = vrot.slane %v9140_v60, 5  ;;  %v17628_v59 = vld [vmem:[#allocation61_spill] sm:$0xff] }
 0x3b2   : > { %v9146_v42 = vrot.slane %v9144_v14, 4  ;;  %v9152_v43 = vrot.slane %v9150_v53, 5  ;;  %v9158_v11 = vshll.u32 %v8854_v18, 16  ;;  %v9164_v24 = vshll.u32 %v16561_v48, 16 }
 0x3b3   : > { %v9157_v0 = vrot.slane %v9155_v10, 4  ;;  %v9137_v17 = vor.u32 %v9136_v20, %v9133_v27  ;;  %v9168_v19 = vshrl.u32 %v16561_v48, 16  ;;  %v9174_v61 = vshll.u32 %v16570_v37, 16 }
 0x3b4   : > { %11545 = vmatmul.mubr.msk.bf16.gmra.mxu0 %vm5293_vm14, %v10719_v8  ;;  %v9147_v51 = vor.u32 %v9146_v42, %v9142_v39  ;;  %v9160_v2 = vrot.slane %v9158_v11, 5  ;;  %v9166_v29 = vrot.slane %v9164_v24, 5  ;;  %v6280_v32 = vadd.f32 %v6213_v16, %v17627_v36 }
 0x3b5   : > { %11548 = vmatprep.mubr.msk.bf16.mxu0 %vm5293_vm14, %v10720_v21  ;;  %v16581_v18 = vadd.f32 %v16514_v1, %v6277_v7  ;;  %v11274_v31 = vpop.f32.mrf.mxu1  ;;  %v9138_v58 = vrot.slane %v9137_v17, 4  ;;  %v9170_v8 = vrot.slane %v9168_v19, 4  ;;  %v9176_v27 = vrot.slane %v9174_v61, 5  ;;  %v9584_v21 = vld [vmem:[#allocation3 + $0xa8] sm:$0xe] }
 0x3b6   : > { %v9148_v60 = vrot.slane %v9147_v51, 4  ;;  %v9161_v14 = vor.u32 %v9160_v2, %v9157_v0  ;;  %v6283_v53 = vadd.f32 %v11271_v5, %v17628_v59  ;;  %v16585_v10 = vadd.f32 %v16528_v28, %v6282_v55  ;;  %v16589_v11 = vpop.f32.mrf.mxu0  ;;  %v17629_v55 = vld [vmem:[#allocation70_spill] sm:$0xff]  ;;  %v8857_v51 = vld [vmem:[#allocation3 + $0xb4] sm:$0xf] }
 0x3b7   : > { %v10697_v20 = vrot.slane %v9583_v56, 9  ;;  %v16587_v42 = vpop.f32.mrf.mxu1  ;;  %v9143_v1 = vsel %vm15340_vm1, %v9138_v58, %v9142_v39  ;;  %v9171_v16 = vor.u32 %v9170_v8, %v9166_v29  ;;  %v9715_v0 = vrot.slane %v16546_v4, 5  ;;  %v16610_v58 = vld [vmem:[#allocation3 + $0xb8] sm:$0xf] }
 0x3b8   : > { %v9153_v7 = vsel %vm15340_vm1, %v9148_v60, %v9152_v43  ;;  %v9162_v5 = vrot.slane %v9161_v14, 4  ;;  %v9718_v28 = vrot.slane %v16553_v63, 5  ;;  %v6281_v17 = vadd.f32 %v6216_v33, %v17629_v55  ;;  %v16598_v19 = vpop.f32.mrf.mxu0  ;;  %v16637_v55 = vld [vmem:[#allocation3 + $0xc8] sm:$0x1] }
 0x3b9   : > { %v10661_v24 = vcombine.low %v9143_v1, %v9153_v7  ;;  %v9172_v61 = vrot.slane %v9171_v16, 4  ;;  %v9716_v56 = vsel %vm15381_vm4, %v10697_v20, %v9715_v0  ;;  %v9717_v39 = vrot.slane %v9715_v0, 4  ;;  %v11275_v36 = vpop.f32.mrf.mxu1  ;;  %v8860_v20 = vld [vmem:[#allocation3 + $0xc0] sm:$0xf] }
 0x3ba   : > { %v10698_v2 = vrot.slane %v9584_v21, 9  ;;  %v9167_v4 = vsel %vm15340_vm1, %v9162_v5, %v9166_v29  ;;  %v9722_v43 = vrot.slane %v16561_v48, 5  ;;  %v9725_v63 = vrot.slane %v16570_v37, 5  ;;  %v16612_v60 = vpop.f32.mrf.mxu0  ;;  %v16619_v29 = vld [vmem:[#allocation3 + $0xbc] sm:$0x1] }
 0x3bb   : > { %11509 = vmatmul.mubr.msk.bf16.gmra.mxu1 %vm5293_vm14, %v10661_v24  ;;  %v16608_v33 = vadd.f32 %v16535_v26, %v6280_v32  ;;  %v9177_v8 = vsel %vm15340_vm1, %v9172_v61, %v9176_v27  ;;  %v9719_v14 = vsel %vm15381_vm4, %v9717_v39, %v9718_v28  ;;  %v6286_v59 = vadd.f32 %v11274_v31, %v15932_v9  ;;  %v16627_v24 = vld [vmem:[#allocation3 + $0xc4] sm:$0xf]  ;;  %v6232_v9 = vpop.f32.mrf.mxu1 }
 0x3bc   : > { %v9179_v48 = vshrl.u32 %v8857_v51, 16  ;;  %v10662_v37 = vcombine.low %v9167_v4, %v9177_v8  ;;  %v10721_v21 = vcombine.low %v9716_v56, %v9719_v14  ;;  %v9723_v26 = vsel %vm15381_vm4, %v10698_v2, %v9722_v43  ;;  %v16623_v1 = vpop.f32.mrf.mxu0 }
 0x3bd   : > { %17630 = vst [vmem:[#allocation25_spill] sm:$0xff] %v16608_v33  ;;  %v9724_v32 = vrot.slane %v9722_v43, 4  ;;  %v9182_v16 = vshll.u32 %v8857_v51, 16  ;;  %v9188_v27 = vshll.u32 %v16610_v58, 16  ;;  %v9192_v0 = vshrl.u32 %v16610_v58, 16 }
 0x3be   : > { %v9181_v7 = vrot.slane %v9179_v48, 4  ;;  %11512 = vmatprep.mubr.msk.bf16.mxu1 %vm5293_vm14, %v10662_v37  ;;  %11549 = vmatmul.mubr.msk.bf16.gmra.mxu0 %vm5293_vm14, %v10721_v21  ;;  %v9198_v5 = vshll.u32 %v16619_v29, 16  ;;  %v16635_v28 = vadd.f32 %v16557_v52, %v6283_v53  ;;  %v9203_v51 = vshrl.u32 %v8860_v20, 16  ;;  %v9585_v21 = vld [vmem:[#allocation3 + $0xb4] sm:$0xe] }
 0x3bf   : > { %v9726_v31 = vsel %vm15381_vm4, %v9724_v32, %v9725_v63  ;;  %v9184_v56 = vrot.slane %v9182_v16, 5  ;;  %v9190_v39 = vrot.slane %v9188_v27, 5  ;;  %v9194_v2 = vrot.slane %v9192_v0, 4  ;;  %v16639_v4 = vpop.f32.mrf.mxu0 }
 0x3c0   : > { %17631 = vst [vmem:[#allocation35_spill] sm:$0xff] %v16635_v28  ;;  %v10722_v61 = vcombine.low %v9723_v26, %v9726_v31  ;;  %v9200_v43 = vrot.slane %v9198_v5, 5  ;;  %v9205_v8 = vrot.slane %v9203_v51, 4  ;;  %v9206_v14 = vshll.u32 %v8860_v20, 16 }
 0x3c1   : > { %v9212_v48 = vshll.u32 %v16627_v24, 16  ;;  %v9185_v63 = vor.u32 %v9184_v56, %v9181_v7  ;;  %v9195_v37 = vor.u32 %v9194_v2, %v9190_v39  ;;  %v9216_v52 = vshrl.u32 %v16627_v24, 16  ;;  %v11278_v26 = vpop.f32.mrf.mxu1  ;;  %v16645_v32 = vpop.f32.mrf.mxu0 }
 0x3c2   : > { %11552 = vmatprep.mubr.msk.bf16.mxu0 %vm5293_vm14, %v10722_v61  ;;  %v9222_v53 = vshll.u32 %v16637_v55, 16  ;;  %v9208_v16 = vrot.slane %v9206_v14, 5  ;;  %v6284_v0 = vadd.f32 %v16587_v42, %v15972_v40  ;;  %v16650_v20 = vadd.f32 %v16573_v6, %v6281_v17 }
 0x3c3   : > { %v9214_v27 = vrot.slane %v9212_v48, 5  ;;  %v9186_v31 = vrot.slane %v9185_v63, 4  ;;  %v9196_v5 = vrot.slane %v9195_v37, 4  ;;  %v9218_v7 = vrot.slane %v9216_v52, 4  ;;  %v6245_v61 = vpop.f32.mrf.mxu1  ;;  %v16652_v56 = vpop.f32.mrf.mxu0  ;;  %v9586_v48 = vld [vmem:[#allocation3 + $0xc0] sm:$0xe] }
 0x3c4   : > { %v9224_v51 = vrot.slane %v9222_v53, 5  ;;  %v9209_v2 = vor.u32 %v9208_v16, %v9205_v8  ;;  %v6287_v28 = vadd.f32 %v11275_v36, %v15975_v22  ;;  %v16656_v33 = vadd.f32 %v16589_v11, %v6286_v59  ;;  %v8863_v11 = vld [vmem:[#allocation3 + $0xcc] sm:$0xf] }
 0x3c5   : > { %v10699_v14 = vrot.slane %v9585_v21, 9  ;;  %v9191_v40 = vsel %vm15340_vm1, %v9186_v31, %v9190_v39  ;;  %v9201_v6 = vsel %vm15340_vm1, %v9196_v5, %v9200_v43  ;;  %v9219_v42 = vor.u32 %v9218_v7, %v9214_v27  ;;  %v11279_v63 = vpop.f32.mrf.mxu1  ;;  %v6749_v16 = vpop.f32.mrf.mxu0  ;;  %v17632_v7 = vld [vmem:[#allocation69_spill] sm:$0xff] }
 0x3c6   : > { %v9729_v17 = vrot.slane %v16610_v58, 5  ;;  %v10663_v37 = vcombine.low %v9191_v40, %v9201_v6  ;;  %v9210_v52 = vrot.slane %v9209_v2, 4  ;;  %v9732_v8 = vrot.slane %v16619_v29, 5 }
 0x3c7   : > { %v6285_v22 = vadd.f32 %v6232_v9, %v15987_v35  ;;  %v9220_v36 = vrot.slane %v9219_v42, 4  ;;  %v10700_v39 = vrot.slane %v9586_v48, 9  ;;  %v6248_v21 = vpop.f32.mrf.mxu1  ;;  %v9736_v43 = vrot.slane %v16627_v24, 5  ;;  %v8864_v9 = vld [vmem:[#allocation3 + $0xd0] sm:$0xf] }
 0x3c8   : > { %v9730_v59 = vsel %vm15381_vm4, %v10699_v14, %v9729_v17  ;;  %v9731_v53 = vrot.slane %v9729_v17, 4  ;;  %11513 = vmatmul.mubr.msk.bf16.gmra.mxu1 %vm5293_vm14, %v10663_v37  ;;  %v9215_v58 = vsel %vm15340_vm1, %v9210_v52, %v9214_v27  ;;  %v9739_v29 = vrot.slane %v16637_v55, 5  ;;  %v8865_v14 = vld [vmem:[#allocation3 + $0xd4] sm:$0x1] }
 0x3c9   : > { %v16673_v35 = vadd.f32 %v16598_v19, %v6284_v0  ;;  %v9225_v31 = vsel %vm15340_vm1, %v9220_v36, %v9224_v51  ;;  %v6290_v2 = vadd.f32 %v11278_v26, %v17632_v7  ;;  %v9227_v48 = vshrl.u32 %v8863_v11, 16  ;;  %v11330_v40 = vpop.f32.mrf.mxu1  ;;  %v17633_v36 = vld [vmem:[#allocation49_spill] sm:$0xff] }
 0x3ca   : > { %v9733_v5 = vsel %vm15381_vm4, %v9731_v53, %v9732_v8  ;;  %v10664_v27 = vcombine.low %v9215_v58, %v9225_v31  ;;  %v9737_v24 = vsel %vm15381_vm4, %v10700_v39, %v9736_v43  ;;  %v9738_v55 = vrot.slane %v9736_v43, 4  ;;  %v9587_v53 = vld [vmem:[#allocation3 + $0xcc] sm:$0xe] }
 0x3cb   : > { %v10723_v6 = vcombine.low %v9730_v59, %v9733_v5  ;;  %v9229_v19 = vrot.slane %v9227_v48, 4  ;;  %v9230_v0 = vshll.u32 %v8863_v11, 16  ;;  %v9236_v42 = vshll.u32 %v8864_v9, 16  ;;  %v7020_v37 = vpop.f32.mrf.mxu1  ;;  %v11370_v51 = vpop.f32.mrf.mxu0 }
 0x3cc   : > { %v9240_v17 = vshrl.u32 %v8864_v9, 16  ;;  %11516 = vmatprep.mubr.msk.bf16.mxu1 %vm5293_vm14, %v10664_v27  ;;  %v9740_v26 = vsel %vm15381_vm4, %v9738_v55, %v9739_v29  ;;  %v9246_v52 = vshll.u32 %v8865_v14, 16  ;;  %v16687_v8 = vadd.f32 %v16612_v60, %v6287_v28  ;;  %v17634_v27 = vld [vmem:[#allocation74_spill] sm:$0xff] }
 0x3cd   : > { %11553 = vmatmul.mubr.msk.bf16.gmra.mxu0 %vm5293_vm14, %v10723_v6  ;;  %v6288_v59 = vadd.f32 %v6245_v61, %v17633_v36  ;;  %v10724_v39 = vcombine.low %v9737_v24, %v9740_v26  ;;  %v9232_v11 = vrot.slane %v9230_v0, 5  ;;  %v9238_v58 = vrot.slane %v9236_v42, 5  ;;  %v11331_v31 = vpop.f32.mrf.mxu1  ;;  %v7774_v5 = vpop.f32.mrf.mxu0 }
 0x3ce   : > { %v9242_v43 = vrot.slane %v9240_v17, 4  ;;  %v9248_v7 = vrot.slane %v9246_v52, 5  ;;  %v16691_v48 = vadd.f32 %v16623_v1, %v6285_v22  ;;  %v6291_v6 = vadd.f32 %v11279_v63, %v17634_v27  ;;  %v17635_v17 = vld [vmem:[#allocation46_spill] sm:$0xff] }
 0x3cf   : > { %v16695_v29 = vadd.f32 %v16639_v4, %v6290_v2  ;;  %11556 = vmatprep.mubr.msk.bf16.mxu0 %vm5293_vm14, %v10724_v39  ;;  %v9233_v60 = vor.u32 %v9232_v11, %v9229_v19  ;;  %v10701_v61 = vrot.slane %v9587_v53, 9  ;;  %v9743_v24 = vrot.slane %v8864_v9, 5  ;;  %v7023_v55 = vpop.f32.mrf.mxu1  ;;  %v11371_v0 = vpop.f32.mrf.mxu0 }
 0x3d0   : > { %v9243_v28 = vor.u32 %v9242_v43, %v9238_v58  ;;  %v9746_v42 = vrot.slane %v8865_v14, 5  ;;  %v6289_v26 = vadd.f32 %v6248_v21, %v17635_v17  ;;  %v16700_v52 = vadd.f32 %v16645_v32, %v6288_v59 }
 0x3d1   : > { %v7149_v1 = vadd.f32 %v11330_v40, %v16196_v25  ;;  %v9234_v63 = vrot.slane %v9233_v60, 4  ;;  %v9744_v4 = vsel %vm15381_vm4, %v10701_v61, %v9743_v24  ;;  %v9745_v2 = vrot.slane %v9743_v24, 4  ;;  %v11334_v19 = vpop.f32.mrf.mxu1  ;;  %v7777_v36 = vpop.f32.mrf.mxu0 }
 0x3d2   : > { %v9244_v22 = vrot.slane %v9243_v28, 4  ;;  %v16706_v9 = vadd.f32 %v16652_v56, %v6291_v6  ;;  %v7147_v14 = vadd.f32 %v7020_v37, %v16223_v41  ;;  %v16709_v53 = vadd.f32 %v6749_v16, %v6289_v26 }
 0x3d3   : > { %v7150_v32 = vadd.f32 %v11331_v31, %v16250_v23  ;;  %v9239_v25 = vsel %vm15340_vm1, %v9234_v63, %v9238_v58  ;;  %v9747_v40 = vsel %vm15381_vm4, %v9745_v2, %v9746_v42  ;;  %v16718_v59 = vadd.f32 %v11370_v51, %v7149_v1  ;;  %v7036_v39 = vpop.f32.mrf.mxu1  ;;  %v11374_v56 = vpop.f32.mrf.mxu0  ;;  %v17636_v58 = vld [vmem:[#allocation27_spill] sm:$0xff]  ;;  %v17637_v51 = vld [vmem:[#allocation10_spill] sm:$0xff] }
 0x3d4   : > { %v9249_v21 = vsel %vm15340_vm1, %v9244_v22, %v9248_v7  ;;  %v10725_v43 = vcombine.low %v9744_v4, %v9747_v40  ;;  %v7148_v41 = vadd.f32 %v7023_v55, %v16273_v38  ;;  %v16721_v16 = vadd.f32 %v7774_v5, %v7147_v14 }
 0x3d5   : > { %v10665_v11 = vcombine.low %v9239_v25, %v9249_v21  ;;  %v7153_v23 = vadd.f32 %v11334_v19, %v16278_v30  ;;  %v16724_v37 = vadd.f32 %v11371_v0, %v7150_v32  ;;  %v7151_v50 = vadd.f32 %v7036_v39, %v17636_v58  ;;  %v11335_v31 = vpop.f32.mrf.mxu1  ;;  %v7790_v7 = vpop.f32.mrf.mxu0 }
 0x3d6   : > { %11557 = vmatmul.mubr.msk.bf16.gmra.mxu0 %vm5293_vm14, %v10725_v43  ;;  %v16729_v57 = vadd.f32 %v7777_v36, %v7148_v41  ;;  %v7154_v27 = vadd.f32 %v11335_v31, %v17637_v51 }
 0x3d7   : > { %11517 = vmatmul.mubr.msk.bf16.gmra.mxu1 %vm5293_vm14, %v10665_v11  ;;  %v16732_v6 = vadd.f32 %v11374_v56, %v7153_v23  ;;  %v7039_v38 = vpop.f32.mrf.mxu1  ;;  %v16734_v5 = vadd.f32 %v7790_v7, %v7151_v50  ;;  %v11375_v30 = vpop.f32.mrf.mxu0 }
 0x3d8   : > { %v7152_v60 = vadd.f32 %v7039_v38, %v16360_v15  ;;  %v16737_v28 = vadd.f32 %v11375_v30, %v7154_v27 }
 0x3d9   : > { %v11338_v61 = vpop.f32.mrf.mxu1  ;;  %v7793_v24 = vpop.f32.mrf.mxu0 }
 0x3da   : > { %v7157_v55 = vadd.f32 %v11338_v61, %v16363_v3  ;;  %v16740_v0 = vadd.f32 %v7793_v24, %v7152_v60 }
 0x3db   : > { %v7052_v42 = vpop.f32.mrf.mxu1  ;;  %v11378_v17 = vpop.f32.mrf.mxu0 }
 0x3dc   : > { %v7155_v26 = vadd.f32 %v7052_v42, %v16380_v62  ;;  %v16743_v1 = vadd.f32 %v11378_v17, %v7157_v55 }
 0x3dd   : > { %v11339_v63 = vpop.f32.mrf.mxu1  ;;  %v7806_v22 = vpop.f32.mrf.mxu0 }
 0x3de   : > { %v7158_v4 = vadd.f32 %v11339_v63, %v16420_v45  ;;  %v16746_v2 = vadd.f32 %v7806_v22, %v7155_v26  ;;  %v17643_v63 = vld [vmem:[#allocation25_spill] sm:$0xff] }
 0x3df   : > { %v7055_v15 = vpop.f32.mrf.mxu1  ;;  %v11379_v19 = vpop.f32.mrf.mxu0 }
 0x3e0   : > { %v7156_v36 = vadd.f32 %v7055_v15, %v16432_v54  ;;  %v16749_v14 = vadd.f32 %v11379_v19, %v7158_v4  ;;  %v17645_v19 = vld [vmem:[#allocation35_spill] sm:$0xff] }
 0x3e1   : > { %v11342_v3 = vpop.f32.mrf.mxu1  ;;  %v7809_v32 = vpop.f32.mrf.mxu0 }
 0x3e2   : > { %v7161_v25 = vadd.f32 %v11342_v3, %v16437_v13  ;;  %v16752_v21 = vadd.f32 %v7809_v32, %v7156_v36 }
 0x3e3   : > { %v7068_v62 = vpop.f32.mrf.mxu1 }
 0x3e4   : > { %v7159_v40 = vadd.f32 %v7068_v62, %v16465_v49 }
 0x3e5   : > { %v11343_v39 = vpop.f32.mrf.mxu1 }
 0x3e6   : > { %v7162_v45 = vadd.f32 %v11343_v39, %v16495_v12  ;;  %v11382_v56 = vpop.f32.mrf.mxu0 }
 0x3e7   : > { %v16756_v11 = vadd.f32 %v11382_v56, %v7161_v25  ;;  %v7071_v43 = vpop.f32.mrf.mxu1 }
 0x3e8   : > { %v7160_v54 = vadd.f32 %v7071_v43, %v16518_v46  ;;  %v7822_v41 = vpop.f32.mrf.mxu0 }
 0x3e9   : > { %v16759_v23 = vadd.f32 %v7822_v41, %v7159_v40  ;;  %v11346_v58 = vpop.f32.mrf.mxu1 }
 0x3ea   : > { %v7165_v13 = vadd.f32 %v11346_v58, %v16521_v47  ;;  %v11383_v50 = vpop.f32.mrf.mxu0 }
 0x3eb   : > { %v16762_v31 = vadd.f32 %v11383_v50, %v7162_v45  ;;  %v7084_v7 = vpop.f32.mrf.mxu1 }
 0x3ec   : > { %v7163_v49 = vadd.f32 %v7084_v7, %v16544_v34  ;;  %v7825_v51 = vpop.f32.mrf.mxu0 }
 0x3ed   : > { %17638 = vst [vmem:[#allocation28_spill] sm:$0xff] %v16762_v31  ;;  %v16765_v12 = vadd.f32 %v7825_v51, %v7160_v54  ;;  %v11347_v27 = vpop.f32.mrf.mxu1 }
 0x3ee   : > { %v7166_v38 = vadd.f32 %v11347_v27, %v16568_v44  ;;  %v11386_v30 = vpop.f32.mrf.mxu0 }
 0x3ef   : > { %17639 = vst [vmem:[#allocation50_spill] sm:$0xff] %v16765_v12  ;;  %v16768_v46 = vadd.f32 %v11386_v30, %v7165_v13  ;;  %v7087_v60 = vpop.f32.mrf.mxu1 }
 0x3f0   : > { %v7164_v61 = vadd.f32 %v7087_v60, %v16581_v18  ;;  %v7838_v24 = vpop.f32.mrf.mxu0 }
 0x3f1   : > { %17640 = vst [vmem:[#allocation76_spill] sm:$0xff] %v16768_v46  ;;  %v16771_v47 = vadd.f32 %v7838_v24, %v7163_v49  ;;  %v11350_v55 = vpop.f32.mrf.mxu1 }
 0x3f2   : > { %v7169_v42 = vadd.f32 %v11350_v55, %v16585_v10  ;;  %v11387_v17 = vpop.f32.mrf.mxu0 }
 0x3f3   : > { %17641 = vst [vmem:[#allocation73_spill] sm:$0xff] %v16771_v47  ;;  %v16774_v34 = vadd.f32 %v11387_v17, %v7166_v38  ;;  %v7100_v26 = vpop.f32.mrf.mxu1 }
 0x3f4   : > { %v7167_v22 = vadd.f32 %v7100_v26, %v17643_v63  ;;  %v7841_v4 = vpop.f32.mrf.mxu0 }
 0x3f5   : > { %17642 = vst [vmem:[#allocation26_spill] sm:$0xff] %v16774_v34  ;;  %v16777_v44 = vadd.f32 %v7841_v4, %v7164_v61  ;;  %v11351_v15 = vpop.f32.mrf.mxu1 }
 0x3f6   : > { %v7170_v36 = vadd.f32 %v11351_v15, %v17645_v19  ;;  %v11390_v3 = vpop.f32.mrf.mxu0 }
 0x3f7   : > { %17644 = vst [vmem:[#allocation75_spill] sm:$0xff] %v16777_v44  ;;  %v16780_v18 = vadd.f32 %v11390_v3, %v7169_v42  ;;  %v7103_v32 = vpop.f32.mrf.mxu1 }
 0x3f8   : > { %v7168_v25 = vadd.f32 %v7103_v32, %v16650_v20  ;;  %v7854_v62 = vpop.f32.mrf.mxu0 }
 0x3f9   : > { %17646 = vst [vmem:[#allocation37_spill] sm:$0xff] %v16780_v18  ;;  %v16783_v10 = vadd.f32 %v7854_v62, %v7167_v22  ;;  %v11354_v40 = vpop.f32.mrf.mxu1 }
 0x3fa   : > { %v7173_v39 = vadd.f32 %v11354_v40, %v16656_v33  ;;  %v11391_v45 = vpop.f32.mrf.mxu0 }
 0x3fb   : > { %17647 = vst [vmem:[#allocation36_spill] sm:$0xff] %v16783_v10  ;;  %v16786_v56 = vadd.f32 %v11391_v45, %v7170_v36  ;;  %v7116_v43 = vpop.f32.mrf.mxu1 }
 0x3fc   : > { %v7171_v54 = vadd.f32 %v7116_v43, %v16673_v35  ;;  %v7857_v41 = vpop.f32.mrf.mxu0 }
 0x3fd   : > { %17648 = vst [vmem:[#allocation42_spill] sm:$0xff] %v16786_v56  ;;  %v16789_v58 = vadd.f32 %v7857_v41, %v7168_v25  ;;  %v11355_v13 = vpop.f32.mrf.mxu1 }
 0x3fe   : > { %v7174_v50 = vadd.f32 %v11355_v13, %v16687_v8 }
 0x3ff   : > { %17649 = vst [vmem:[#allocation41_spill] sm:$0xff] %v16789_v58  ;;  %v7119_v7 = vpop.f32.mrf.mxu1 }
 0x400   : > { %v11394_v20 = vpop.f32.mrf.mxu0  ;;  %v7172_v49 = vadd.f32 %v7119_v7, %v16691_v48 }
 0x401   : > { %v16793_v51 = vadd.f32 %v11394_v20, %v7173_v39  ;;  %v11358_v27 = vpop.f32.mrf.mxu1 }
 0x402   : > { %v7870_v33 = vpop.f32.mrf.mxu0  ;;  %v7177_v38 = vadd.f32 %v11358_v27, %v16695_v29 }
 0x403   : > { %v16796_v30 = vadd.f32 %v7870_v33, %v7171_v54  ;;  %v7132_v60 = vpop.f32.mrf.mxu1 }
 0x404   : > { %v11395_v35 = vpop.f32.mrf.mxu0  ;;  %v7175_v61 = vadd.f32 %v7132_v60, %v16700_v52 }
 0x405   : > { %v16799_v24 = vadd.f32 %v11395_v35, %v7174_v50  ;;  %v11359_v55 = vpop.f32.mrf.mxu1 }
 0x406   : > { %v7873_v8 = vpop.f32.mrf.mxu0  ;;  %v7178_v42 = vadd.f32 %v11359_v55, %v16706_v9 }
 0x407   : > { %v16802_v17 = vadd.f32 %v7873_v8, %v7172_v49  ;;  %v7135_v48 = vpop.f32.mrf.mxu1 }
 0x408   : > { %v7176_v26 = vadd.f32 %v7135_v48, %v16709_v53 }
 0x40b   : > { %v16805_v63 = vpop.f32.mrf.mxu1  ;;  %v11398_v29 = vpop.f32.mrf.mxu0 }
 0x40c   : > { %v16807_v22 = vadd.f32 %v11398_v29, %v7177_v38 }
 0x40d   : > { %v16809_v4 = vpop.f32.mrf.mxu1  ;;  %v7886_v15 = vpop.f32.mrf.mxu0 }
 0x40e   : > { %v16811_v52 = vadd.f32 %v7886_v15, %v7175_v61 }
 0x40f   : > { %v16813_v19 = vpop.f32.mrf.mxu1  ;;  %v11399_v36 = vpop.f32.mrf.mxu0 }
 0x410   : > { %v16815_v3 = vadd.f32 %v11399_v36, %v7178_v42 }
 0x411   : > { %v16817_v9 = vpop.f32.mrf.mxu1  ;;  %v7889_v32 = vpop.f32.mrf.mxu0 }
 0x412   : > { %v16819_v25 = vadd.f32 %v7889_v32, %v7176_v26 }
 0x413   : > { %v16821_v53 = vpop.f32.mrf.mxu1  ;;  %v16823_v62 = vpop.f32.mrf.mxu0 }
 0x415   : > { %v16825_v40 = vpop.f32.mrf.mxu1  ;;  %v16827_v39 = vpop.f32.mrf.mxu0 }
 0x417   : > { %v16829_v45 = vpop.f32.mrf.mxu1  ;;  %v16831_v43 = vpop.f32.mrf.mxu0 }
 0x419   : > { %v16833_v54 = vpop.f32.mrf.mxu1  ;;  %v16835_v41 = vpop.f32.mrf.mxu0 }
 0x41b   : > { %v16837_v13 = vpop.f32.mrf.mxu1  ;;  %v16839_v50 = vpop.f32.mrf.mxu0 }
 0x41d   : > { %v16841_v7 = vpop.f32.mrf.mxu1  ;;  %v16843_v20 = vpop.f32.mrf.mxu0 }
 0x41f   : > { %v16845_v49 = vpop.f32.mrf.mxu1  ;;  %v16847_v27 = vpop.f32.mrf.mxu0 }
 0x421   : > { %v16849_v33 = vpop.f32.mrf.mxu1  ;;  %v16851_v38 = vpop.f32.mrf.mxu0 }
 0x423   : > { %v16853_v60 = vpop.f32.mrf.mxu1  ;;  %v16855_v35 = vpop.f32.mrf.mxu0 }
 0x425   : > { %v16857_v61 = vpop.f32.mrf.mxu1  ;;  %v16859_v55 = vpop.f32.mrf.mxu0 }
 0x427   : > { %v16861_v8 = vpop.f32.mrf.mxu1  ;;  %v16863_v42 = vpop.f32.mrf.mxu0 }
 0x428   : > { %17650 = vst [vmem:[#allocation77_spill] sm:$0xff] %v16861_v8 }
 0x429   : > { %v16865_v48 = vpop.f32.mrf.mxu1  ;;  %v16867_v26 = vpop.f32.mrf.mxu0 }
 0x42a   : > { %17651 = vst [vmem:[#allocation30_spill] sm:$0xff] %v16865_v48 }
 0x42b   : > { %v16869_v29 = vpop.f32.mrf.mxu1  ;;  %v16871_v15 = vpop.f32.mrf.mxu0 }
 0x42c   : > { %17652 = vst [vmem:[#allocation29_spill] sm:$0xff] %v16869_v29  ;;  %17653 = vst [vmem:[#allocation45_spill] sm:$0xff] %v16871_v15 }
 0x42d   : > { %v16873_v36 = vpop.f32.mrf.mxu1  ;;  %v16875_v32 = vpop.f32.mrf.mxu0 }
 0x42e   : > { %17654 = vst [vmem:[#allocation44_spill] sm:$0xff] %v16873_v36  ;;  %17655 = vst [vmem:[#allocation33_spill] sm:$0xff] %v16875_v32 }
 0x42f   : > { %v16877_v58 = vpop.f32.mrf.mxu1  ;;  %v16879_v56 = vpop.f32.mrf.mxu0 }
 0x430   : > { %17656 = vst [vmem:[#allocation48_spill] sm:$0xff] %v16877_v58  ;;  %17657 = vst [vmem:[#allocation81_spill] sm:$0xff] %v16879_v56 }
 0x431   : > { %v16881_v10 = vpop.f32.mrf.mxu1  ;;  %v16883_v18 = vpop.f32.mrf.mxu0 }
 0x432   : > { %17658 = vst [vmem:[#allocation47_spill] sm:$0xff] %v16881_v10  ;;  %17659 = vst [vmem:[#allocation82_spill] sm:$0xff] %v16883_v18 }
 0x433   : > { %v16885_v44 = vpop.f32.mrf.mxu1  ;;  %v16887_v34 = vpop.f32.mrf.mxu0 }
 0x434   : > { %17660 = vst [vmem:[#allocation79_spill] sm:$0xff] %v16885_v44  ;;  %17661 = vst [vmem:[#allocation78_spill] sm:$0xff] %v16887_v34 }
 0x435   : > { %v16889_v47 = vpop.f32.mrf.mxu1  ;;  %v16891_v29 = vpop.f32.mrf.mxu0 }
 0x436   : > { %17662 = vst [vmem:[#allocation80_spill] sm:$0xff] %v16889_v47  ;;  %17663 = vst [vmem:[#allocation55_spill] sm:$0xff] %v16891_v29 }
 0x437   : > { %v16893_v46 = vpop.f32.mrf.mxu1  ;;  %v16895_v36 = vpop.f32.mrf.mxu0 }
 0x438   : > { %17664 = vst [vmem:[#allocation54_spill] sm:$0xff] %v16893_v46  ;;  %17665 = vst [vmem:[#allocation58_spill] sm:$0xff] %v16895_v36 }
 0x439   : > { %v16897_v48 = vpop.f32.mrf.mxu1  ;;  %v16899_v58 = vpop.f32.mrf.mxu0 }
 0x43a   : > { %17666 = vst [vmem:[#allocation57_spill] sm:$0xff] %v16897_v48  ;;  %17667 = vst [vmem:[#allocation83_spill] sm:$0xff] %v16899_v58 }
 0x43b   : > { %v11434_v56 = vpop.f32.mrf.mxu1  ;;  %v16901_v10 = vpop.f32.mrf.mxu0 }
 0x43c   : > { %17668 = vst [vmem:[#allocation56_spill] sm:$0xff] %v16901_v10  ;;  %v8425_v18 = vadd.f32 %v11434_v56, %v16793_v51 }
 0x43d   : > { %v8368_v44 = vpop.f32.mrf.mxu1  ;;  %v16904_v12 = vpop.f32.mrf.mxu0 }
 0x43e   : > { %17669 = vst [vmem:[#allocation60_spill] sm:$0xff] %v16904_v12  ;;  %v8423_v47 = vadd.f32 %v8368_v44, %v16796_v30 }
 0x43f   : > { %v11435_v34 = vpop.f32.mrf.mxu1  ;;  %v16907_v29 = vpop.f32.mrf.mxu0 }
 0x440   : > { %17670 = vst [vmem:[#allocation59_spill] sm:$0xff] %v16907_v29  ;;  %v8426_v46 = vadd.f32 %v11435_v34, %v16799_v24 }
 0x441   : > { %v8371_v36 = vpop.f32.mrf.mxu1  ;;  %v16910_v32 = vpop.f32.mrf.mxu0 }
 0x442   : > { %17671 = vst [vmem:[#allocation6_spill] sm:$0xff] %v16910_v32  ;;  %v8424_v48 = vadd.f32 %v8371_v36, %v16802_v17 }
 0x443   : > { %v11438_v58 = vpop.f32.mrf.mxu1  ;;  %v11474_v8 = vpop.f32.mrf.mxu0 }
 0x444   : > { %v8429_v10 = vadd.f32 %v11438_v58, %v16807_v22  ;;  %v16914_v56 = vadd.f32 %v11474_v8, %v8425_v18 }
 0x445   : > { %v8384_v51 = vpop.f32.mrf.mxu1  ;;  %v8755_v12 = vpop.f32.mrf.mxu0 }
 0x446   : > { %v8427_v44 = vadd.f32 %v8384_v51, %v16811_v52  ;;  %v16917_v30 = vadd.f32 %v8755_v12, %v8423_v47  ;;  %v8401_v12 = vadd.f32 %v16805_v63, %v16718_v59 }
 0x447   : > { %v11439_v29 = vpop.f32.mrf.mxu1  ;;  %v11475_v31 = vpop.f32.mrf.mxu0 }
 0x448   : > { %v8430_v34 = vadd.f32 %v11439_v29, %v16815_v3  ;;  %v16920_v24 = vadd.f32 %v11475_v31, %v8426_v46  ;;  %v8399_v46 = vadd.f32 %v16809_v4, %v16721_v16  ;;  %v16944_v16 = vld [vmem:[%s17165_s5] ss:$0 sm:$0xff]  ;;  %v8400_v4 = vadd.f32 %v16817_v9, %v16729_v57 }
 0x449   : > { %v8387_v32 = vpop.f32.mrf.mxu1  ;;  %v8758_v17 = vpop.f32.mrf.mxu0 }
 0x44a   : > { %v8428_v36 = vadd.f32 %v8387_v32, %v16819_v25  ;;  %v16923_v15 = vadd.f32 %v8758_v17, %v8424_v48  ;;  %v8788_v25 = vadd.f32 %v16823_v62, %v8401_v12  ;;  %v8786_v51 = vadd.f32 %v16827_v39, %v8399_v46 }
 0x44b   : > { %v11490_v18 = vpop.f32.mrf.mxu1  ;;  %v11478_v58 = vpop.f32.mrf.mxu0  ;;  %v8405_v39 = vadd.f32 %v16821_v53, %v16732_v6 }
 0x44c   : > { %v16925_v22 = vadd.f32 %v11478_v58, %v8429_v10  ;;  %v8402_v10 = vadd.f32 %v16813_v19, %v16724_v37  ;;  %v9542_v59 = vadd.f32 %v11490_v18, %v8788_v25  ;;  %v8787_v58 = vadd.f32 %v16835_v41, %v8400_v4 }
 0x44d   : > { %v9413_v8 = vpop.f32.mrf.mxu1  ;;  %v8771_v52 = vpop.f32.mrf.mxu0  ;;  %v8792_v12 = vadd.f32 %v16839_v50, %v8405_v39  ;;  %v8406_v41 = vadd.f32 %v16829_v45, %v16737_v28  ;;  %v8404_v28 = vadd.f32 %v16833_v54, %v16740_v0  ;;  %v8409_v39 = vadd.f32 %v16837_v13, %v16743_v1 }
 0x44e   : > { %v16929_v47 = vadd.f32 %v8771_v52, %v8427_v44  ;;  %v8789_v62 = vadd.f32 %v16831_v43, %v8402_v10 }
 0x44f   : > { %v11491_v3 = vpop.f32.mrf.mxu1  ;;  %v11479_v31 = vpop.f32.mrf.mxu0  ;;  %v8793_v45 = vadd.f32 %v16847_v27, %v8406_v41 }
 0x450   : > { %v16934_v48 = vadd.f32 %v11479_v31, %v8430_v34  ;;  %v9540_v34 = vadd.f32 %v9413_v8, %v8786_v51  ;;  %v9543_v52 = vadd.f32 %v11491_v3, %v8789_v62  ;;  %v8403_v8 = vadd.f32 %v16825_v40, %v16734_v5 }
 0x451   : > { %v9416_v29 = vpop.f32.mrf.mxu1  ;;  %v8774_v32 = vpop.f32.mrf.mxu0 }
 0x452   : > { %v16939_v63 = vadd.f32 %v8774_v32, %v8428_v36  ;;  %v16954_v36 = vld [vmem:[%s17166_s6] ss:$0 sm:$0xff]  ;;  %v9541_v31 = vadd.f32 %v9416_v29, %v8787_v58  ;;  %v8790_v3 = vadd.f32 %v16843_v20, %v8403_v8  ;;  %v8796_v8 = vadd.f32 %v16855_v35, %v8409_v39 }
 0x453   : > { %v11494_v44 = vpop.f32.mrf.mxu1 }
 0x454   : > { %v11530_v17 = vpop.f32.mrf.mxu0  ;;  %v9546_v5 = vadd.f32 %v11494_v44, %v8792_v12 }
 0x455   : > { %v10040_v37 = vadd.f32 %v11530_v17, %v9542_v59  ;;  %v9429_v19 = vpop.f32.mrf.mxu1 }
 0x456   : > { %v9911_v18 = vpop.f32.mrf.mxu0  ;;  %v9544_v20 = vadd.f32 %v9429_v19, %v8790_v3 }
 0x457   : > { %v10079_v57 = vmul.f32 %v16944_v16, %v10040_v37  ;;  %v10038_v9 = vadd.f32 %v9911_v18, %v9540_v34  ;;  %v11495_v43 = vpop.f32.mrf.mxu1  ;;  %v8791_v18 = vadd.f32 %v16851_v38, %v8404_v28 }
 0x458   : > { %v11531_v6 = vpop.f32.mrf.mxu0  ;;  %v9547_v0 = vadd.f32 %v11495_v43, %v8793_v45 }
 0x459   : > { %v10118_v53 = vadd.f32 %v16954_v36, %v10079_v57  ;;  %v10077_v46 = vmul.f32 %v16944_v16, %v10038_v9  ;;  %v10041_v25 = vadd.f32 %v11531_v6, %v9543_v52  ;;  %v9432_v32 = vpop.f32.mrf.mxu1  ;;  %v8407_v9 = vadd.f32 %v16841_v7, %v16746_v2 }
 0x45a   : > { %v9914_v40 = vpop.f32.mrf.mxu0  ;;  %v9545_v1 = vadd.f32 %v9432_v32, %v8791_v18 }
 0x45b   : > { %v10150_v50 = vmax.f32 %v10118_v53, 0.0  ;;  %v10116_v29 = vadd.f32 %v16954_v36, %v10077_v46  ;;  %v10080_v10 = vmul.f32 %v16944_v16, %v10041_v25  ;;  %v10039_v51 = vadd.f32 %v9914_v40, %v9541_v31  ;;  %v11498_v59 = vpop.f32.mrf.mxu1 }
 0x45c   : > { %v11534_v17 = vpop.f32.mrf.mxu0  ;;  %v8410_v31 = vadd.f32 %v16845_v49, %v16749_v14  ;;  %v8794_v46 = vadd.f32 %v16859_v55, %v8407_v9  ;;  %v9550_v2 = vadd.f32 %v11498_v59, %v8796_v8  ;;  %v8413_v59 = vadd.f32 %v16853_v60, %v16756_v11 }
 0x45d   : > { %10182 = vst.msk [vmem:[%s16970_s9 + $0x10] sm:$0xff] %vm5293_vm14, %v10150_v50  ;;  %v10148_v4 = vmax.f32 %v10116_v29, 0.0  ;;  %v10119_v44 = vadd.f32 %v16954_v36, %v10080_v10  ;;  %v10078_v62 = vmul.f32 %v16944_v16, %v10039_v51  ;;  %v10044_v34 = vadd.f32 %v11534_v17, %v9546_v5  ;;  %v9445_v37 = vpop.f32.mrf.mxu1 }
 0x45e   : > { %v9927_v54 = vpop.f32.mrf.mxu0  ;;  %v8408_v5 = vadd.f32 %v16849_v33, %v16752_v21  ;;  %v8797_v40 = vadd.f32 %v16863_v42, %v8410_v31  ;;  %v9548_v14 = vadd.f32 %v9445_v37, %v8794_v46 }
 0x45f   : > { %10180 = vst.msk [vmem:[%s16970_s9] sm:$0xff] %vm5293_vm14, %v10148_v4  ;;  %v10151_v27 = vmax.f32 %v10119_v44, 0.0  ;;  %v10117_v19 = vadd.f32 %v16954_v36, %v10078_v62  ;;  %v10083_v58 = vmul.f32 %v16944_v16, %v10044_v34  ;;  %v10042_v52 = vadd.f32 %v9927_v54, %v9544_v20  ;;  %v11499_v57 = vpop.f32.mrf.mxu1  ;;  %v17672_v62 = vld [vmem:[#allocation45_spill] sm:$0xff]  ;;  %v17673_v54 = vld [vmem:[#allocation28_spill] sm:$0xff] }
 0x460   : > { %v11535_v13 = vpop.f32.mrf.mxu0  ;;  %v8795_v28 = vadd.f32 %v16867_v26, %v8408_v5  ;;  %v9551_v21 = vadd.f32 %v11499_v57, %v8797_v40  ;;  %v8411_v44 = vadd.f32 %v16857_v61, %v16759_v23  ;;  %v8800_v34 = vadd.f32 %v17672_v62, %v8413_v59  ;;  %v17681_v5 = vld [vmem:[#allocation82_spill] sm:$0xff]  ;;  %v17682_v59 = vld [vmem:[#allocation73_spill] sm:$0xff] }
 0x461   : > { %10183 = vst.msk [vmem:[%s16970_s9 + $0x18] sm:$0xff] %vm5293_vm14, %v10151_v27  ;;  %v10149_v38 = vmax.f32 %v10117_v19, 0.0  ;;  %v10122_v43 = vadd.f32 %v16954_v36, %v10083_v58  ;;  %v10081_v12 = vmul.f32 %v16944_v16, %v10042_v52  ;;  %v10045_v6 = vadd.f32 %v11535_v13, %v9547_v0  ;;  %v9448_v53 = vpop.f32.mrf.mxu1  ;;  %v17674_v27 = vld [vmem:[#allocation77_spill] sm:$0xff]  ;;  %v17676_v13 = vld [vmem:[#allocation50_spill] sm:$0xff] }
 0x462   : > { %v9930_v7 = vpop.f32.mrf.mxu0  ;;  %v9549_v11 = vadd.f32 %v9448_v53, %v8795_v28  ;;  %v8414_v19 = vadd.f32 %v17674_v27, %v17673_v54  ;;  %v17675_v58 = vld [vmem:[#allocation33_spill] sm:$0xff]  ;;  %v17683_v28 = vld [vmem:[#allocation44_spill] sm:$0xff] }
 0x463   : > { %10181 = vst.msk [vmem:[%s16970_s9 + $0x8] sm:$0xff] %vm5293_vm14, %v10149_v38  ;;  %v10154_v35 = vmax.f32 %v10122_v43, 0.0  ;;  %v10120_v25 = vadd.f32 %v16954_v36, %v10081_v12  ;;  %v10084_v32 = vmul.f32 %v16944_v16, %v10045_v6  ;;  %v10043_v41 = vadd.f32 %v9930_v7, %v9545_v1  ;;  %v11502_v3 = vpop.f32.mrf.mxu1  ;;  %v17677_v38 = vld [vmem:[#allocation30_spill] sm:$0xff]  ;;  %v17678_v12 = vld [vmem:[#allocation81_spill] sm:$0xff] }
 0x464   : > { %v11538_v49 = vpop.f32.mrf.mxu0  ;;  %v8798_v52 = vadd.f32 %v17675_v58, %v8411_v44  ;;  %v9554_v23 = vadd.f32 %v11502_v3, %v8800_v34  ;;  %v8412_v43 = vadd.f32 %v17677_v38, %v17676_v13  ;;  %v8801_v6 = vadd.f32 %v17678_v12, %v8414_v19 }
 0x465   : > { %10186 = vst.msk [vmem:[%s16970_s9 + $0x30] sm:$0xff] %vm5293_vm14, %v10154_v35  ;;  %v10152_v55 = vmax.f32 %v10120_v25, 0.0  ;;  %v10123_v50 = vadd.f32 %v16954_v36, %v10084_v32  ;;  %v10082_v29 = vmul.f32 %v16944_v16, %v10043_v41  ;;  %v10048_v10 = vadd.f32 %v11538_v49, %v9550_v2  ;;  %v9461_v51 = vpop.f32.mrf.mxu1  ;;  %v17679_v32 = vld [vmem:[#allocation76_spill] sm:$0xff]  ;;  %v17680_v41 = vld [vmem:[#allocation29_spill] sm:$0xff] }
 0x466   : > { %v9943_v33 = vpop.f32.mrf.mxu0  ;;  %v9552_v53 = vadd.f32 %v9461_v51, %v8798_v52  ;;  %v8417_v3 = vadd.f32 %v17680_v41, %v17679_v32  ;;  %v8799_v40 = vadd.f32 %v17681_v5, %v8412_v43  ;;  %v17688_v52 = vld [vmem:[#allocation75_spill] sm:$0xff] }
 0x467   : > { %10184 = vst.msk [vmem:[%s16970_s9 + $0x20] sm:$0xff] %vm5293_vm14, %v10152_v55  ;;  %v10155_v42 = vmax.f32 %v10123_v50, 0.0  ;;  %v10121_v45 = vadd.f32 %v16954_v36, %v10082_v29  ;;  %v10087_v20 = vmul.f32 %v16944_v16, %v10048_v10  ;;  %v10046_v17 = vadd.f32 %v9943_v33, %v9548_v14  ;;  %v11503_v4 = vpop.f32.mrf.mxu1  ;;  %v17684_v33 = vld [vmem:[#allocation78_spill] sm:$0xff] }
 0x468   : > { %v11539_v60 = vpop.f32.mrf.mxu0  ;;  %v9555_v14 = vadd.f32 %v11503_v4, %v8801_v6 }
 0x469   : > { %10187 = vst.msk [vmem:[%s16970_s9 + $0x38] sm:$0xff] %vm5293_vm14, %v10155_v42  ;;  %v10153_v26 = vmax.f32 %v10121_v45, 0.0  ;;  %v10126_v37 = vadd.f32 %v16954_v36, %v10087_v20  ;;  %v10085_v39 = vmul.f32 %v16944_v16, %v10046_v17  ;;  %v10049_v18 = vadd.f32 %v11539_v60, %v9551_v21  ;;  %v9464_v0 = vpop.f32.mrf.mxu1  ;;  %v17686_v60 = vld [vmem:[#allocation48_spill] sm:$0xff] }
 0x46a   : > { %v9946_v61 = vpop.f32.mrf.mxu0  ;;  %v8415_v21 = vadd.f32 %v17683_v28, %v17682_v59  ;;  %v8804_v42 = vadd.f32 %v17684_v33, %v8417_v3  ;;  %v9553_v45 = vadd.f32 %v9464_v0, %v8799_v40 }
 0x46b   : > { %10185 = vst.msk [vmem:[%s16970_s9 + $0x28] sm:$0xff] %vm5293_vm14, %v10153_v26  ;;  %v10158_v57 = vmax.f32 %v10126_v37, 0.0  ;;  %v10124_v9 = vadd.f32 %v16954_v36, %v10085_v39  ;;  %v10088_v8 = vmul.f32 %v16944_v16, %v10049_v18  ;;  %v10047_v1 = vadd.f32 %v9946_v61, %v9549_v11  ;;  %v17685_v11 = vld [vmem:[#allocation26_spill] sm:$0xff]  ;;  %v17687_v37 = vld [vmem:[#allocation55_spill] sm:$0xff] }
 0x46c   : > { %v11542_v31 = vpop.f32.mrf.mxu0  ;;  %v11506_v25 = vpop.f32.mrf.mxu1  ;;  %v8418_v26 = vadd.f32 %v17686_v60, %v17685_v11  ;;  %v8802_v39 = vadd.f32 %v17687_v37, %v8415_v21  ;;  %v17697_v60 = vld [vmem:[#allocation42_spill] sm:$0xff] }
 0x46d   : > { %10190 = vst.msk [vmem:[%s16970_s9 + $0x50] sm:$0xff] %vm5293_vm14, %v10158_v57  ;;  %v10156_v46 = vmax.f32 %v10124_v9, 0.0  ;;  %v10127_v2 = vadd.f32 %v16954_v36, %v10088_v8  ;;  %v10086_v7 = vmul.f32 %v16944_v16, %v10047_v1  ;;  %v10052_v35 = vadd.f32 %v11542_v31, %v9554_v23  ;;  %v17689_v23 = vld [vmem:[#allocation47_spill] sm:$0xff]  ;;  %v17690_v57 = vld [vmem:[#allocation58_spill] sm:$0xff] }
 0x46e   : > { %v9959_v49 = vpop.f32.mrf.mxu0  ;;  %v9477_v51 = vpop.f32.mrf.mxu1  ;;  %v9558_v18 = vadd.f32 %v11506_v25, %v8804_v42  ;;  %v8416_v61 = vadd.f32 %v17689_v23, %v17688_v52  ;;  %v8805_v9 = vadd.f32 %v17690_v57, %v8418_v26  ;;  %v17694_v42 = vld [vmem:[#allocation36_spill] sm:$0xff]  ;;  %v17698_v26 = vld [vmem:[#allocation54_spill] sm:$0xff]  ;;  %v17700_v52 = vld [vmem:[#allocation41_spill] sm:$0xff] }
 0x46f   : > { %10188 = vst.msk [vmem:[%s16970_s9 + $0x40] sm:$0xff] %vm5293_vm14, %v10156_v46  ;;  %v10159_v55 = vmax.f32 %v10127_v2, 0.0  ;;  %v10125_v50 = vadd.f32 %v16954_v36, %v10086_v7  ;;  %v10091_v29 = vmul.f32 %v16944_v16, %v10052_v35  ;;  %v10050_v10 = vadd.f32 %v9959_v49, %v9552_v53  ;;  %v17691_v53 = vld [vmem:[#allocation83_spill] sm:$0xff]  ;;  %v17701_v23 = vld [vmem:[#allocation57_spill] sm:$0xff] }
 0x470   : > { %v11543_v20 = vpop.f32.mrf.mxu0  ;;  %v11507_v34 = vpop.f32.mrf.mxu1  ;;  %v9556_v8 = vadd.f32 %v9477_v51, %v8802_v39  ;;  %v8803_v31 = vadd.f32 %v17691_v53, %v8416_v61  ;;  %v8422_v37 = vadd.f32 %v17698_v26, %v17697_v60  ;;  %v17699_v39 = vld [vmem:[#allocation60_spill] sm:$0xff]  ;;  %v8420_v61 = vadd.f32 %v17701_v23, %v17700_v52  ;;  %v17702_v57 = vld [vmem:[#allocation59_spill] sm:$0xff] }
 0x471   : > { %10191 = vst.msk [vmem:[%s16970_s9 + $0x58] sm:$0xff] %vm5293_vm14, %v10159_v55  ;;  %v10157_v17 = vmax.f32 %v10125_v50, 0.0  ;;  %v10130_v4 = vadd.f32 %v16954_v36, %v10091_v29  ;;  %v10089_v44 = vmul.f32 %v16944_v16, %v10050_v10  ;;  %v10053_v62 = vadd.f32 %v11543_v20, %v9555_v14  ;;  %v17692_v55 = vld [vmem:[#allocation37_spill] sm:$0xff]  ;;  %v17693_v50 = vld [vmem:[#allocation79_spill] sm:$0xff] }
 0x472   : > { %v9962_v54 = vpop.f32.mrf.mxu0  ;;  %v9480_v6 = vpop.f32.mrf.mxu1  ;;  %v9559_v46 = vadd.f32 %v11507_v34, %v8805_v9  ;;  %v8421_v29 = vadd.f32 %v17693_v50, %v17692_v55  ;;  %v8809_v9 = vadd.f32 %v17702_v57, %v8422_v37 }
 0x473   : > { %10189 = vst.msk [vmem:[%s16970_s9 + $0x48] sm:$0xff] %vm5293_vm14, %v10157_v17  ;;  %v10162_v0 = vmax.f32 %v10130_v4, 0.0  ;;  %v10128_v27 = vadd.f32 %v16954_v36, %v10089_v44  ;;  %v10092_v19 = vmul.f32 %v16944_v16, %v10053_v62  ;;  %v10051_v58 = vadd.f32 %v9962_v54, %v9553_v45  ;;  %v17695_v45 = vld [vmem:[#allocation80_spill] sm:$0xff] }
 0x474   : > { %v11546_v1 = vpop.f32.mrf.mxu0  ;;  %v9557_v41 = vadd.f32 %v9480_v6, %v8803_v31  ;;  %v8419_v20 = vadd.f32 %v17695_v45, %v17694_v42  ;;  %v17696_v17 = vld [vmem:[#allocation56_spill] sm:$0xff] }
 0x475   : > { %10194 = vst.msk [vmem:[%s16970_s9 + $0x70] sm:$0xff] %vm5293_vm14, %v10162_v0  ;;  %v10160_v13 = vmax.f32 %v10128_v27, 0.0  ;;  %v10131_v38 = vadd.f32 %v16954_v36, %v10092_v19  ;;  %v10090_v43 = vmul.f32 %v16944_v16, %v10051_v58  ;;  %v10056_v12 = vadd.f32 %v11546_v1, %v9558_v18 }
 0x476   : > { %v9975_v2 = vpop.f32.mrf.mxu0  ;;  %v8808_v4 = vadd.f32 %v17696_v17, %v8421_v29  ;;  %v8806_v18 = vadd.f32 %v17699_v39, %v8419_v20 }
 0x477   : > { %10192 = vst.msk [vmem:[%s16970_s9 + $0x60] sm:$0xff] %vm5293_vm14, %v10160_v13  ;;  %v10163_v7 = vmax.f32 %v10131_v38, 0.0  ;;  %v10129_v35 = vadd.f32 %v16954_v36, %v10090_v43  ;;  %v10095_v25 = vmul.f32 %v16944_v16, %v10056_v12  ;;  %v10054_v32 = vadd.f32 %v9975_v2, %v9556_v8  ;;  %v17703_v12 = vld [vmem:[#allocation6_spill] sm:$0xff] }
 0x478   : > { %v11547_v3 = vpop.f32.mrf.mxu0  ;;  %v8807_v6 = vadd.f32 %v17703_v12, %v8420_v61 }
 0x479   : > { %10195 = vst.msk [vmem:[%s16970_s9 + $0x78] sm:$0xff] %vm5293_vm14, %v10163_v7  ;;  %v10161_v5 = vmax.f32 %v10129_v35, 0.0  ;;  %v10134_v40 = vadd.f32 %v16954_v36, %v10095_v25  ;;  %v10093_v14 = vmul.f32 %v16944_v16, %v10054_v32  ;;  %v10057_v49 = vadd.f32 %v11547_v3, %v9559_v46 }
 0x47a   : > { %v9978_v10 = vpop.f32.mrf.mxu0 }
 0x47b   : > { %10193 = vst.msk [vmem:[%s16970_s9 + $0x68] sm:$0xff] %vm5293_vm14, %v10161_v5  ;;  %v10166_v51 = vmax.f32 %v10134_v40, 0.0  ;;  %v10132_v59 = vadd.f32 %v16954_v36, %v10093_v14  ;;  %v11510_v28 = vpop.f32.mrf.mxu1  ;;  %v10096_v21 = vmul.f32 %v16944_v16, %v10057_v49  ;;  %v10055_v33 = vadd.f32 %v9978_v10, %v9557_v41 }
 0x47c   : > { %v9562_v54 = vadd.f32 %v11510_v28, %v8808_v4 }
 0x47d   : > { %10198 = vst.msk [vmem:[%s16970_s9 + $0x90] sm:$0xff] %vm5293_vm14, %v10166_v51  ;;  %v10164_v44 = vmax.f32 %v10132_v59, 0.0  ;;  %v10135_v62 = vadd.f32 %v16954_v36, %v10096_v21  ;;  %v9493_v34 = vpop.f32.mrf.mxu1  ;;  %v10094_v11 = vmul.f32 %v16944_v16, %v10055_v33 }
 0x47e   : > { %v11550_v58 = vpop.f32.mrf.mxu0  ;;  %v9560_v8 = vadd.f32 %v9493_v34, %v8806_v18 }
 0x47f   : > { %10196 = vst.msk [vmem:[%s16970_s9 + $0x80] sm:$0xff] %vm5293_vm14, %v10164_v44  ;;  %v10167_v0 = vmax.f32 %v10135_v62, 0.0  ;;  %v10133_v27 = vadd.f32 %v16954_v36, %v10094_v11  ;;  %v11511_v19 = vpop.f32.mrf.mxu1  ;;  %v10060_v1 = vadd.f32 %v11550_v58, %v9562_v54 }
 0x480   : > { %v9991_v43 = vpop.f32.mrf.mxu0  ;;  %v9563_v53 = vadd.f32 %v11511_v19, %v8809_v9 }
 0x481   : > { %10199 = vst.msk [vmem:[%s16970_s9 + $0x98] sm:$0xff] %vm5293_vm14, %v10167_v0  ;;  %v10165_v13 = vmax.f32 %v10133_v27, 0.0  ;;  %v9496_v38 = vpop.f32.mrf.mxu1  ;;  %v10099_v31 = vmul.f32 %v16944_v16, %v10060_v1  ;;  %v10058_v46 = vadd.f32 %v9991_v43, %v9560_v8 }
 0x482   : > { %v11551_v2 = vpop.f32.mrf.mxu0  ;;  %v9561_v35 = vadd.f32 %v9496_v38, %v8807_v6 }
 0x483   : > { %10197 = vst.msk [vmem:[%s16970_s9 + $0x88] sm:$0xff] %vm5293_vm14, %v10165_v13  ;;  %v10138_v7 = vadd.f32 %v16954_v36, %v10099_v31  ;;  %v10097_v25 = vmul.f32 %v16944_v16, %v10058_v46  ;;  %v10061_v32 = vadd.f32 %v11551_v2, %v9563_v53 }
 0x484   : > { %v9994_v41 = vpop.f32.mrf.mxu0 }
 0x485   : > { %v10170_v3 = vmax.f32 %v10138_v7, 0.0  ;;  %v10136_v5 = vadd.f32 %v16954_v36, %v10097_v25  ;;  %v10100_v40 = vmul.f32 %v16944_v16, %v10061_v32  ;;  %v10059_v14 = vadd.f32 %v9994_v41, %v9561_v35 }
 0x487   : > { %10202 = vst.msk [vmem:[%s16970_s9 + $0xb0] sm:$0xff] %vm5293_vm14, %v10170_v3  ;;  %v10168_v49 = vmax.f32 %v10136_v5, 0.0  ;;  %v10139_v55 = vadd.f32 %v16954_v36, %v10100_v40  ;;  %v10098_v50 = vmul.f32 %v16944_v16, %v10059_v14 }
 0x488   : > { %v11514_v29 = vpop.f32.mrf.mxu1 }
 0x489   : > { %10200 = vst.msk [vmem:[%s16970_s9 + $0xa0] sm:$0xff] %vm5293_vm14, %v10168_v49  ;;  %v10171_v10 = vmax.f32 %v10139_v55, 0.0  ;;  %v10137_v51 = vadd.f32 %v16954_v36, %v10098_v50  ;;  %v9566_v28 = vadd.f32 %v11514_v29, %v16914_v56 }
 0x48a   : > { %v9509_v59 = vpop.f32.mrf.mxu1 }
 0x48b   : > { %10203 = vst.msk [vmem:[%s16970_s9 + $0xb8] sm:$0xff] %vm5293_vm14, %v10171_v10  ;;  %v10169_v21 = vmax.f32 %v10137_v51, 0.0  ;;  %v9564_v45 = vadd.f32 %v9509_v59, %v16917_v30 }
 0x48c   : > { %v11515_v33 = vpop.f32.mrf.mxu1 }
 0x48d   : > { %v11554_v42 = vpop.f32.mrf.mxu0  ;;  %10201 = vst.msk [vmem:[%s16970_s9 + $0xa8] sm:$0xff] %vm5293_vm14, %v10169_v21  ;;  %v9567_v44 = vadd.f32 %v11515_v33, %v16920_v24 }
 0x48e   : > { %v10064_v20 = vadd.f32 %v11554_v42, %v9566_v28  ;;  %v9512_v17 = vpop.f32.mrf.mxu1 }
 0x48f   : > { %v10007_v4 = vpop.f32.mrf.mxu0  ;;  %v9565_v60 = vadd.f32 %v9512_v17, %v16923_v15 }
 0x490   : > { %v10103_v62 = vmul.f32 %v16944_v16, %v10064_v20  ;;  %v10062_v34 = vadd.f32 %v10007_v4, %v9564_v45 }
 0x491   : > { %v11555_v11 = vpop.f32.mrf.mxu0 }
 0x492   : > { %v10142_v56 = vadd.f32 %v16954_v36, %v10103_v62  ;;  %v10101_v26 = vmul.f32 %v16944_v16, %v10062_v34  ;;  %v10065_v30 = vadd.f32 %v11555_v11, %v9567_v44 }
 0x493   : > { %v10010_v37 = vpop.f32.mrf.mxu0 }
 0x494   : > { %v10174_v39 = vmax.f32 %v10142_v56, 0.0  ;;  %v10140_v18 = vadd.f32 %v16954_v36, %v10101_v26  ;;  %v10104_v54 = vmul.f32 %v16944_v16, %v10065_v30  ;;  %v10063_v24 = vadd.f32 %v10010_v37, %v9565_v60 }
 0x496   : > { %10206 = vst.msk [vmem:[%s16970_s9 + $0xd0] sm:$0xff] %vm5293_vm14, %v10174_v39  ;;  %v10172_v0 = vmax.f32 %v10140_v18, 0.0  ;;  %v10143_v27 = vadd.f32 %v16954_v36, %v10104_v54  ;;  %v10102_v19 = vmul.f32 %v16944_v16, %v10063_v24  ;;  %v11558_v58 = vpop.f32.mrf.mxu0 }
 0x497   : > { %v11518_v15 = vpop.f32.mrf.mxu1 }
 0x498   : > { %10204 = vst.msk [vmem:[%s16970_s9 + $0xc0] sm:$0xff] %vm5293_vm14, %v10172_v0  ;;  %v9570_v52 = vadd.f32 %v11518_v15, %v16925_v22  ;;  %v10175_v23 = vmax.f32 %v10143_v27, 0.0  ;;  %v10141_v61 = vadd.f32 %v16954_v36, %v10102_v19  ;;  %v10023_v9 = vpop.f32.mrf.mxu0 }
 0x499   : > { %v9525_v57 = vpop.f32.mrf.mxu1 }
 0x49a   : > { %10207 = vst.msk [vmem:[%s16970_s9 + $0xd8] sm:$0xff] %vm5293_vm14, %v10175_v23  ;;  %v9568_v8 = vadd.f32 %v9525_v57, %v16929_v47  ;;  %v10173_v1 = vmax.f32 %v10141_v61, 0.0  ;;  %v10068_v13 = vadd.f32 %v11558_v58, %v9570_v52  ;;  %v11559_v43 = vpop.f32.mrf.mxu0 }
 0x49b   : > { %v11519_v38 = vpop.f32.mrf.mxu1 }
 0x49c   : > { %10205 = vst.msk [vmem:[%s16970_s9 + $0xc8] sm:$0xff] %vm5293_vm14, %v10173_v1  ;;  %v9571_v12 = vadd.f32 %v11519_v38, %v16934_v48  ;;  %v10107_v22 = vmul.f32 %v16944_v16, %v10068_v13  ;;  %v10066_v6 = vadd.f32 %v10023_v9, %v9568_v8  ;;  %v10026_v31 = vpop.f32.mrf.mxu0 }
 0x49d   : > { %v9528_v53 = vpop.f32.mrf.mxu1 }
 0x49e   : > { %v10146_v46 = vadd.f32 %v16954_v36, %v10107_v22  ;;  %v9569_v47 = vadd.f32 %v9528_v53, %v16939_v63  ;;  %v10105_v2 = vmul.f32 %v16944_v16, %v10066_v6  ;;  %v10069_v7 = vadd.f32 %v11559_v43, %v9571_v12 }
 0x4a0   : > { %v10178_v35 = vmax.f32 %v10146_v46, 0.0  ;;  %v10144_v25 = vadd.f32 %v16954_v36, %v10105_v2  ;;  %v10108_v48 = vmul.f32 %v16944_v16, %v10069_v7  ;;  %v10067_v32 = vadd.f32 %v10026_v31, %v9569_v47 }
 0x4a2   : > { %10210 = vst.msk [vmem:[%s16970_s9 + $0xf0] sm:$0xff] %vm5293_vm14, %v10178_v35  ;;  %v10176_v41 = vmax.f32 %v10144_v25, 0.0  ;;  %v10147_v3 = vadd.f32 %v16954_v36, %v10108_v48  ;;  %v10106_v5 = vmul.f32 %v16944_v16, %v10067_v32 }
 0x4a4   : > { %10208 = vst.msk [vmem:[%s16970_s9 + $0xe0] sm:$0xff] %vm5293_vm14, %v10176_v41  ;;  %v10179_v63 = vmax.f32 %v10147_v3, 0.0  ;;  %v10145_v40 = vadd.f32 %v16954_v36, %v10106_v5 }
 0x4a6   : > { %10211 = vst.msk [vmem:[%s16970_s9 + $0xf8] sm:$0xff] %vm5293_vm14, %v10179_v63  ;;  %v10177_v14 = vmax.f32 %v10145_v40, 0.0 }
 0x4a8   : > { %10209 = vst.msk [vmem:[%s16970_s9 + $0xe8] sm:$0xff] %vm5293_vm14, %v10177_v14 }
 0x4a9 PF: > { %s17_s24 = sadd.s32 1, %s12392_s24  }
 0x4aa   : > { %p14_p4 = scmp.ge.s32.totalorder %s17_s24, 4  }
 0x4ac   :  { %16 = sbr.rel (!%p14_p4) target bundleno = 1 (0x1), region = 90 }

</bundles_post_ra>
